<compile_context>
chip_gen: v7x
topology: tpu7x:2x2x1
jax: 0.10.0
libtpu: 0.0.40
codegen_flags: <defaults>
</compile_context>

<pallas_src>
import functools

import jax
import jax.numpy as jnp
from jax.experimental import pallas as pl
from jax.experimental.pallas import tpu as pltpu


# ----------------------------------------------------------------------------
# Tiling helper
# ----------------------------------------------------------------------------
def _pick_tile(total, target):
    """Largest multiple-of-8 divisor of `total` that is <= target, else `total`."""
    if total <= target:
        return total
    t = min(target, total)
    t -= t % 8
    while t >= 8:
        if total % t == 0:
            return t
        t -= 8
    return total


# ----------------------------------------------------------------------------
# Pallas kernels
# ----------------------------------------------------------------------------
def _conv_kernel(p_ref, w_ref, s_ref, b_ref, o_ref, *, relu):
    """One M-tile of a conv: (tm, T*Cin) @ (T*Cin, Cout) + BN scale/bias (+ReLU)."""
    acc = jnp.dot(p_ref[...], w_ref[...], preferred_element_type=jnp.float32)
    y = acc * s_ref[...] + b_ref[...]
    if relu:
        y = jnp.maximum(y, 0.0)
    o_ref[...] = y.astype(o_ref.dtype)


def _maxpool_kernel(x_ref, o_ref):
    """x: (tm, 2, Wo, 2*C) -> o: (tm, Wo, C) via pairwise maxima (pure VPU)."""
    x = x_ref[...]
    a = jnp.maximum(x[:, 0], x[:, 1])            # vertical max   -> (tm, Wo, 2*C)
    c = o_ref.shape[-1]
    o_ref[...] = jnp.maximum(a[..., :c], a[..., c:])  # horizontal max -> (tm, Wo, C)


def _deconv_kernel(x_ref, w_ref, b_ref, o_ref):
    """One M-tile of ConvTranspose2d(k=2,s=2): (tm, Cin) @ (Cin, 4*Cout) + bias."""
    acc = jnp.dot(x_ref[...], w_ref[...], preferred_element_type=jnp.float32)
    o_ref[...] = (acc + b_ref[...]).astype(o_ref.dtype)


# ----------------------------------------------------------------------------
# Layer wrappers (glue: padding / im2col / reshapes; compute stays in Pallas)
# ----------------------------------------------------------------------------
_M_TILE_TARGET = 512


def conv2d_bn_relu(x_nhwc, w, scale, bias, *, relu, out_dtype=jnp.bfloat16):
    """'same' conv (odd kernel) + folded BN + optional ReLU, tap-fused matmul."""
    N, H, W, Cin = x_nhwc.shape
    kh, kw, _, Cout = w.shape
    ph, pw = (kh - 1) // 2, (kw - 1) // 2
    xp = jnp.pad(x_nhwc.astype(jnp.bfloat16), ((0, 0), (ph, ph), (pw, pw), (0, 0)))
    M = N * H * W
    T = kh * kw
    K = T * Cin

    # im2col with taps fused into the contraction axis: (M, T*Cin), bf16.
    patches = jnp.concatenate(
        [xp[:, dy:dy + H, dx:dx + W, :].reshape(M, Cin)
         for dy in range(kh) for dx in range(kw)], axis=-1)
    wf = w.reshape(K, Cout).astype(jnp.bfloat16)          # (kh,kw,Cin) order matches
    s2 = scale.reshape(1, Cout).astype(jnp.float32)
    b2 = bias.reshape(1, Cout).astype(jnp.float32)

    tm = _pick_tile(M, _M_TILE_TARGET)
    out = pl.pallas_call(
        functools.partial(_conv_kernel, relu=relu),
        out_shape=jax.ShapeDtypeStruct((M, Cout), out_dtype),
        grid=(M // tm,),
        in_specs=[
            pl.BlockSpec((tm, K), lambda i: (i, 0)),
            pl.BlockSpec((K, Cout), lambda i: (0, 0)),
            pl.BlockSpec((1, Cout), lambda i: (0, 0)),
            pl.BlockSpec((1, Cout), lambda i: (0, 0)),
        ],
        out_specs=pl.BlockSpec((tm, Cout), lambda i: (i, 0)),
        compiler_params=pltpu.CompilerParams(
            dimension_semantics=("parallel",)),
    )(patches, wf, s2, b2)
    return out.reshape(N, H, W, Cout)


def maxpool2x2(x_nhwc):
    N, H, W, C = x_nhwc.shape
    Ho, Wo = H // 2, W // 2
    R = N * Ho
    # Pure reshape (contiguous) -- no HBM transpose.
    x4 = x_nhwc.reshape(R, 2, Wo, 2 * C)
    tr = _pick_tile(R, 256)
    out = pl.pallas_call(
        _maxpool_kernel,
        out_shape=jax.ShapeDtypeStruct((R, Wo, C), x_nhwc.dtype),
        grid=(R // tr,),
        in_specs=[pl.BlockSpec((tr, 2, Wo, 2 * C), lambda i: (i, 0, 0, 0))],
        out_specs=pl.BlockSpec((tr, Wo, C), lambda i: (i, 0, 0)),
        compiler_params=pltpu.CompilerParams(
            dimension_semantics=("parallel",)),
    )(x4)
    return out.reshape(N, Ho, Wo, C)


def conv_transpose2x2(x_nhwc, w, b):
    """nn.ConvTranspose2d(Cin, Cout, kernel_size=2, stride=2).
    w: (Cin, Cout, 2, 2) torch layout, b: (Cout,). One fused matmul."""
    N, H, W, Cin = x_nhwc.shape
    Cout = w.shape[1]
    M = N * H * W
    xf = x_nhwc.reshape(M, Cin).astype(jnp.bfloat16)
    # (Cin, Cout, 2, 2) -> (Cin, dy, dx, Cout) -> (Cin, 4*Cout); columns ordered (dy, dx, cout)
    wf = jnp.transpose(w, (0, 2, 3, 1)).reshape(Cin, 4 * Cout).astype(jnp.bfloat16)
    b4 = jnp.tile(b.astype(jnp.float32), 4).reshape(1, 4 * Cout)

    tm = _pick_tile(M, _M_TILE_TARGET)
    out = pl.pallas_call(
        _deconv_kernel,
        out_shape=jax.ShapeDtypeStruct((M, 4 * Cout), jnp.bfloat16),
        grid=(M // tm,),
        in_specs=[
            pl.BlockSpec((tm, Cin), lambda i: (i, 0)),
            pl.BlockSpec((Cin, 4 * Cout), lambda i: (0, 0)),
            pl.BlockSpec((1, 4 * Cout), lambda i: (0, 0)),
        ],
        out_specs=pl.BlockSpec((tm, 4 * Cout), lambda i: (i, 0)),
        compiler_params=pltpu.CompilerParams(
            dimension_semantics=("parallel",)),
    )(xf, wf, b4)

    # interleave: out[n*H*W + h*W + w, (dy*2+dx)*Cout + c] -> y[n, 2h+dy, 2w+dx, c]
    y = (out.reshape(N, H, W, 2, 2, Cout)
         .transpose(0, 1, 3, 2, 4, 5)
         .reshape(N, 2 * H, 2 * W, Cout))
    return y


def double_conv(x, p):
    x = conv2d_bn_relu(x, p['w1'], p['s1'], p['b1'], relu=True)
    x = conv2d_bn_relu(x, p['w2'], p['s2'], p['b2'], relu=True)
    return x


def up_block(x, skip, p):
    xu = conv_transpose2x2(x, p['wt'], p['bt'])
    # torch F.pad to match skip spatial size (zero for power-of-2 inputs)
    dh = skip.shape[1] - xu.shape[1]
    dw = skip.shape[2] - xu.shape[2]
    xu = jnp.pad(xu, ((0, 0), (dh // 2, dh - dh // 2),
                      (dw // 2, dw - dw // 2), (0, 0)))
    xc = jnp.concatenate([skip.astype(jnp.bfloat16), xu], axis=-1)  # cat([x2, x1], dim=1)
    return double_conv(xc, p)


def truenet_forward(x_nchw, params):
    x = jnp.transpose(x_nchw, (0, 2, 3, 1))  # NCHW -> NHWC
    pc = params
    xi = conv2d_bn_relu(x, pc['inpconv']['w'], pc['inpconv']['s'],
                        pc['inpconv']['b'], relu=False)
    x1 = double_conv(xi, pc['convfirst'])
    x2 = double_conv(maxpool2x2(x1), pc['down1'])
    x3 = double_conv(maxpool2x2(x2), pc['down2'])
    x4 = double_conv(maxpool2x2(x3), pc['down3'])

    u = up_block(x4, x3, pc['up3'])
    u = up_block(u, x2, pc['up2'])
    u = up_block(u, x1, pc['up1'])

    logits = conv2d_bn_relu(u, pc['outconv']['w'], pc['outconv']['s'],
                            pc['outconv']['b'], relu=False,
                            out_dtype=jnp.float32)
    return jnp.transpose(logits, (0, 3, 1, 2))  # NHWC -> NCHW


# ----------------------------------------------------------------------------
# Deterministic synthetic parameter initialization
# ----------------------------------------------------------------------------
_BN_EPS = 1e-5


def init_conv_bn(key, cin, cout, k):
    kw, kb, kg, kbe, km, kv = jax.random.split(key, 6)
    w = 0.1 * jax.random.normal(kw, (k, k, cin, cout), jnp.float32)
    bc = 0.1 * jax.random.normal(kb, (cout,), jnp.float32)
    gamma = 1.0 + 0.1 * jax.random.normal(kg, (cout,), jnp.float32)
    beta = 0.1 * jax.random.normal(kbe, (cout,), jnp.float32)
    mean = 0.1 * jax.random.normal(km, (cout,), jnp.float32)
    var = 0.5 + 0.5 * jax.random.uniform(kv, (cout,), jnp.float32)
    s = gamma / jnp.sqrt(var + _BN_EPS)
    b = (bc - mean) * s + beta
    return {'w': w, 's': s, 'b': b}


def init_double_conv(key, cin, cout, k):
    k1, k2 = jax.random.split(key)
    p1 = init_conv_bn(k1, cin, cout, k)
    p2 = init_conv_bn(k2, cout, cout, k)
    return {'w1': p1['w'], 's1': p1['s'], 'b1': p1['b'],
            'w2': p2['w'], 's2': p2['s'], 'b2': p2['b']}


def init_outconv(key, cin, cout):
    kw, kb = jax.random.split(key)
    w = 0.1 * jax.random.normal(kw, (1, 1, cin, cout), jnp.float32)
    b = 0.1 * jax.random.normal(kb, (cout,), jnp.float32)
    return {'w': w, 's': jnp.ones((cout,), jnp.float32), 'b': b}


def init_up(key, cin, cout, k):
    kt, kb, kd = jax.random.split(key, 3)
    wt = 0.1 * jax.random.normal(kt, (cin, cin // 2, 2, 2), jnp.float32)
    bt = 0.1 * jax.random.normal(kb, (cin // 2,), jnp.float32)
    p = init_double_conv(kd, cin, cout, k)  # concat: cin//2 (up) + cin//2 (skip)
    p.update({'wt': wt, 'bt': bt})
    return p


def init_params(key, n_channels, n_classes, ic, k_first=3):
    ks = jax.random.split(key, 9)
    return {
        'inpconv':  init_outconv(ks[0], n_channels, 3),
        'convfirst': init_double_conv(ks[1], 3, ic, k_first),   # plane='axial'
        'down1': init_double_conv(ks[2], ic, 2 * ic, 3),
        'down2': init_double_conv(ks[3], 2 * ic, 4 * ic, 3),
        'down3': init_double_conv(ks[4], 4 * ic, 8 * ic, 3),
        'up3': init_up(ks[5], 8 * ic, 4 * ic, 3),
        'up2': init_up(ks[6], 4 * ic, 2 * ic, 3),
        'up1': init_up(ks[7], 2 * ic, ic, 3),
        'outconv': init_outconv(ks[8], ic, n_classes),
    }


if __name__ == "__main__":
    key = jax.random.PRNGKey(0)
    kx, kp = jax.random.split(key)

    N, n_channels, H, W = 2, 2, 16, 16
    n_classes, init_channels = 2, 8

    x = jax.random.normal(kx, (N, n_channels, H, W), jnp.float32)
    params = init_params(kp, n_channels, n_classes, init_channels)

    logits = jax.jit(truenet_forward)(x, params)
    jax.block_until_ready(logits)

    assert logits.shape == (N, n_classes, H, W), logits.shape
    assert logits.dtype == jnp.float32
    print("KERNEL_OK")
</pallas_src>

<mosaic_0001>
module attributes {stable_mosaic.version = 11 : i64} {
  func.func @_conv_kernel(%arg0: i32, %arg1: memref<512x2xbf16, #tpu.memory_space<vmem>>, %arg2: memref<2x3xbf16, #tpu.memory_space<vmem>>, %arg3: memref<1x3xf32, #tpu.memory_space<vmem>>, %arg4: memref<1x3xf32, #tpu.memory_space<vmem>>, %arg5: memref<512x3xbf16, #tpu.memory_space<vmem>>) attributes {dimension_semantics = [#tpu.dimension_semantics<parallel>], iteration_bounds = array<i64: 1>, scalar_prefetch = 0 : i64, scratch_operands = 0 : i64, tpu.core_type = #tpu.core_type<tc>, window_params = [{transform_indices = @transform_0, window_bounds = array<i64: 512, 2>}, {pipeline_mode = #tpu.pipeline_mode<synchronous>, transform_indices = @transform_1, window_bounds = array<i64: 2, 3>}, {pipeline_mode = #tpu.pipeline_mode<synchronous>, transform_indices = @transform_2, window_bounds = array<i64: 1, 3>}, {pipeline_mode = #tpu.pipeline_mode<synchronous>, transform_indices = @transform_3, window_bounds = array<i64: 1, 3>}, {transform_indices = @transform_4, window_bounds = array<i64: 512, 3>}]} {
    %c0 = arith.constant 0 : index
    %c0_0 = arith.constant 0 : index
    %0 = vector.load %arg1[%c0, %c0_0] : memref<512x2xbf16, #tpu.memory_space<vmem>>, vector<512x2xbf16>
    %c0_1 = arith.constant 0 : index
    %c0_2 = arith.constant 0 : index
    %1 = vector.load %arg2[%c0_1, %c0_2] : memref<2x3xbf16, #tpu.memory_space<vmem>>, vector<2x3xbf16>
    %cst = arith.constant dense<0.000000e+00> : vector<512x3xf32>
    %2 = tpu.matmul %0, %1, %cst {dimension_numbers = #tpu.dot_dimension_numbers<[1], [0], [0], [1], [0, 0, 1, 1], [], []>} : vector<512x2xbf16>, vector<2x3xbf16>, vector<512x3xf32> -> vector<512x3xf32>
    %c0_3 = arith.constant 0 : index
    %c0_4 = arith.constant 0 : index
    %3 = vector.load %arg3[%c0_3, %c0_4] : memref<1x3xf32, #tpu.memory_space<vmem>>, vector<1x3xf32>
    %4 = vector.broadcast %3 : vector<1x3xf32> to vector<512x3xf32>
    %5 = arith.mulf %2, %4 : vector<512x3xf32>
    %c0_5 = arith.constant 0 : index
    %c0_6 = arith.constant 0 : index
    %6 = vector.load %arg4[%c0_5, %c0_6] : memref<1x3xf32, #tpu.memory_space<vmem>>, vector<1x3xf32>
    %7 = vector.broadcast %6 : vector<1x3xf32> to vector<512x3xf32>
    %8 = arith.addf %5, %7 : vector<512x3xf32>
    %9 = arith.truncf %8 : vector<512x3xf32> to vector<512x3xbf16>
    %c0_7 = arith.constant 0 : index
    %c0_8 = arith.constant 0 : index
    %10 = vector.load %arg5[%c0_7, %c0_8] : memref<512x3xbf16, #tpu.memory_space<vmem>>, vector<512x3xbf16>
    tpu.vector_store %arg5[%c0_7, %c0_8], %9 {strides = array<i32>} : memref<512x3xbf16, #tpu.memory_space<vmem>>, vector<512x3xbf16>,
    return
  }
  func.func @transform_0(%arg0: i32) -> (i32, i32) {
    %c0_i32 = arith.constant 0 : i32
    %c0_i32_0 = arith.constant 0 : i32
    return %arg0, %c0_i32 : i32, i32
  }
  func.func @transform_1(%arg0: i32) -> (i32, i32) {
    %c0_i32 = arith.constant 0 : i32
    %c0_i32_0 = arith.constant 0 : i32
    %c0_i32_1 = arith.constant 0 : i32
    return %c0_i32, %c0_i32_0 : i32, i32
  }
  func.func @transform_2(%arg0: i32) -> (i32, i32) {
    %c0_i32 = arith.constant 0 : i32
    %c0_i32_0 = arith.constant 0 : i32
    %c0_i32_1 = arith.constant 0 : i32
    return %c0_i32, %c0_i32_0 : i32, i32
  }
  func.func @transform_3(%arg0: i32) -> (i32, i32) {
    %c0_i32 = arith.constant 0 : i32
    %c0_i32_0 = arith.constant 0 : i32
    %c0_i32_1 = arith.constant 0 : i32
    return %c0_i32, %c0_i32_0 : i32, i32
  }
  func.func @transform_4(%arg0: i32) -> (i32, i32) {
    %c0_i32 = arith.constant 0 : i32
    %c0_i32_0 = arith.constant 0 : i32
    return %arg0, %c0_i32 : i32, i32
  }
}

module attributes {stable_mosaic.version = 11 : i64} {
  func.func @_conv_kernel(%arg0: i32, %arg1: memref<512x27xbf16, #tpu.memory_space<vmem>>, %arg2: memref<27x8xbf16, #tpu.memory_space<vmem>>, %arg3: memref<1x8xf32, #tpu.memory_space<vmem>>, %arg4: memref<1x8xf32, #tpu.memory_space<vmem>>, %arg5: memref<512x8xbf16, #tpu.memory_space<vmem>>) attributes {dimension_semantics = [#tpu.dimension_semantics<parallel>], iteration_bounds = array<i64: 1>, scalar_prefetch = 0 : i64, scratch_operands = 0 : i64, tpu.core_type = #tpu.core_type<tc>, window_params = [{transform_indices = @transform_0, window_bounds = array<i64: 512, 27>}, {pipeline_mode = #tpu.pipeline_mode<synchronous>, transform_indices = @transform_1, window_bounds = array<i64: 27, 8>}, {pipeline_mode = #tpu.pipeline_mode<synchronous>, transform_indices = @transform_2, window_bounds = array<i64: 1, 8>}, {pipeline_mode = #tpu.pipeline_mode<synchronous>, transform_indices = @transform_3, window_bounds = array<i64: 1, 8>}, {transform_indices = @transform_4, window_bounds = array<i64: 512, 8>}]} {
    %c0 = arith.constant 0 : index
    %c0_0 = arith.constant 0 : index
    %0 = vector.load %arg1[%c0, %c0_0] : memref<512x27xbf16, #tpu.memory_space<vmem>>, vector<512x27xbf16>
    %c0_1 = arith.constant 0 : index
    %c0_2 = arith.constant 0 : index
    %1 = vector.load %arg2[%c0_1, %c0_2] : memref<27x8xbf16, #tpu.memory_space<vmem>>, vector<27x8xbf16>
    %cst = arith.constant dense<0.000000e+00> : vector<512x8xf32>
    %2 = tpu.matmul %0, %1, %cst {dimension_numbers = #tpu.dot_dimension_numbers<[1], [0], [0], [1], [0, 0, 1, 1], [], []>} : vector<512x27xbf16>, vector<27x8xbf16>, vector<512x8xf32> -> vector<512x8xf32>
    %c0_3 = arith.constant 0 : index
    %c0_4 = arith.constant 0 : index
    %3 = vector.load %arg3[%c0_3, %c0_4] : memref<1x8xf32, #tpu.memory_space<vmem>>, vector<1x8xf32>
    %4 = vector.broadcast %3 : vector<1x8xf32> to vector<512x8xf32>
    %5 = arith.mulf %2, %4 : vector<512x8xf32>
    %c0_5 = arith.constant 0 : index
    %c0_6 = arith.constant 0 : index
    %6 = vector.load %arg4[%c0_5, %c0_6] : memref<1x8xf32, #tpu.memory_space<vmem>>, vector<1x8xf32>
    %7 = vector.broadcast %6 : vector<1x8xf32> to vector<512x8xf32>
    %8 = arith.addf %5, %7 : vector<512x8xf32>
    %cst_7 = arith.constant 0.000000e+00 : f32
    %9 = vector.broadcast %cst_7 : f32 to vector<512x8xf32>
    %10 = arith.maximumf %8, %9 : vector<512x8xf32>
    %11 = arith.truncf %10 : vector<512x8xf32> to vector<512x8xbf16>
    %c0_8 = arith.constant 0 : index
    %c0_9 = arith.constant 0 : index
    %12 = vector.load %arg5[%c0_8, %c0_9] : memref<512x8xbf16, #tpu.memory_space<vmem>>, vector<512x8xbf16>
    tpu.vector_store %arg5[%c0_8, %c0_9], %11 {strides = array<i32>} : memref<512x8xbf16, #tpu.memory_space<vmem>>, vector<512x8xbf16>,
    return
  }
  func.func @transform_0(%arg0: i32) -> (i32, i32) {
    %c0_i32 = arith.constant 0 : i32
    %c0_i32_0 = arith.constant 0 : i32
    return %arg0, %c0_i32 : i32, i32
  }
  func.func @transform_1(%arg0: i32) -> (i32, i32) {
    %c0_i32 = arith.constant 0 : i32
    %c0_i32_0 = arith.constant 0 : i32
    %c0_i32_1 = arith.constant 0 : i32
    return %c0_i32, %c0_i32_0 : i32, i32
  }
  func.func @transform_2(%arg0: i32) -> (i32, i32) {
    %c0_i32 = arith.constant 0 : i32
    %c0_i32_0 = arith.constant 0 : i32
    %c0_i32_1 = arith.constant 0 : i32
    return %c0_i32, %c0_i32_0 : i32, i32
  }
  func.func @transform_3(%arg0: i32) -> (i32, i32) {
    %c0_i32 = arith.constant 0 : i32
    %c0_i32_0 = arith.constant 0 : i32
    %c0_i32_1 = arith.constant 0 : i32
    return %c0_i32, %c0_i32_0 : i32, i32
  }
  func.func @transform_4(%arg0: i32) -> (i32, i32) {
    %c0_i32 = arith.constant 0 : i32
    %c0_i32_0 = arith.constant 0 : i32
    return %arg0, %c0_i32 : i32, i32
  }
}

module attributes {stable_mosaic.version = 11 : i64} {
  func.func @_conv_kernel(%arg0: i32, %arg1: memref<512x72xbf16, #tpu.memory_space<vmem>>, %arg2: memref<72x8xbf16, #tpu.memory_space<vmem>>, %arg3: memref<1x8xf32, #tpu.memory_space<vmem>>, %arg4: memref<1x8xf32, #tpu.memory_space<vmem>>, %arg5: memref<512x8xbf16, #tpu.memory_space<vmem>>) attributes {dimension_semantics = [#tpu.dimension_semantics<parallel>], iteration_bounds = array<i64: 1>, scalar_prefetch = 0 : i64, scratch_operands = 0 : i64, tpu.core_type = #tpu.core_type<tc>, window_params = [{transform_indices = @transform_0, window_bounds = array<i64: 512, 72>}, {pipeline_mode = #tpu.pipeline_mode<synchronous>, transform_indices = @transform_1, window_bounds = array<i64: 72, 8>}, {pipeline_mode = #tpu.pipeline_mode<synchronous>, transform_indices = @transform_2, window_bounds = array<i64: 1, 8>}, {pipeline_mode = #tpu.pipeline_mode<synchronous>, transform_indices = @transform_3, window_bounds = array<i64: 1, 8>}, {transform_indices = @transform_4, window_bounds = array<i64: 512, 8>}]} {
    %c0 = arith.constant 0 : index
    %c0_0 = arith.constant 0 : index
    %0 = vector.load %arg1[%c0, %c0_0] : memref<512x72xbf16, #tpu.memory_space<vmem>>, vector<512x72xbf16>
    %c0_1 = arith.constant 0 : index
    %c0_2 = arith.constant 0 : index
    %1 = vector.load %arg2[%c0_1, %c0_2] : memref<72x8xbf16, #tpu.memory_space<vmem>>, vector<72x8xbf16>
    %cst = arith.constant dense<0.000000e+00> : vector<512x8xf32>
    %2 = tpu.matmul %0, %1, %cst {dimension_numbers = #tpu.dot_dimension_numbers<[1], [0], [0], [1], [0, 0, 1, 1], [], []>} : vector<512x72xbf16>, vector<72x8xbf16>, vector<512x8xf32> -> vector<512x8xf32>
    %c0_3 = arith.constant 0 : index
    %c0_4 = arith.constant 0 : index
    %3 = vector.load %arg3[%c0_3, %c0_4] : memref<1x8xf32, #tpu.memory_space<vmem>>, vector<1x8xf32>
    %4 = vector.broadcast %3 : vector<1x8xf32> to vector<512x8xf32>
    %5 = arith.mulf %2, %4 : vector<512x8xf32>
    %c0_5 = arith.constant 0 : index
    %c0_6 = arith.constant 0 : index
    %6 = vector.load %arg4[%c0_5, %c0_6] : memref<1x8xf32, #tpu.memory_space<vmem>>, vector<1x8xf32>
    %7 = vector.broadcast %6 : vector<1x8xf32> to vector<512x8xf32>
    %8 = arith.addf %5, %7 : vector<512x8xf32>
    %cst_7 = arith.constant 0.000000e+00 : f32
    %9 = vector.broadcast %cst_7 : f32 to vector<512x8xf32>
    %10 = arith.maximumf %8, %9 : vector<512x8xf32>
    %11 = arith.truncf %10 : vector<512x8xf32> to vector<512x8xbf16>
    %c0_8 = arith.constant 0 : index
    %c0_9 = arith.constant 0 : index
    %12 = vector.load %arg5[%c0_8, %c0_9] : memref<512x8xbf16, #tpu.memory_space<vmem>>, vector<512x8xbf16>
    tpu.vector_store %arg5[%c0_8, %c0_9], %11 {strides = array<i32>} : memref<512x8xbf16, #tpu.memory_space<vmem>>, vector<512x8xbf16>,
    return
  }
  func.func @transform_0(%arg0: i32) -> (i32, i32) {
    %c0_i32 = arith.constant 0 : i32
    %c0_i32_0 = arith.constant 0 : i32
    return %arg0, %c0_i32 : i32, i32
  }
  func.func @transform_1(%arg0: i32) -> (i32, i32) {
    %c0_i32 = arith.constant 0 : i32
    %c0_i32_0 = arith.constant 0 : i32
    %c0_i32_1 = arith.constant 0 : i32
    return %c0_i32, %c0_i32_0 : i32, i32
  }
  func.func @transform_2(%arg0: i32) -> (i32, i32) {
    %c0_i32 = arith.constant 0 : i32
    %c0_i32_0 = arith.constant 0 : i32
    %c0_i32_1 = arith.constant 0 : i32
    return %c0_i32, %c0_i32_0 : i32, i32
  }
  func.func @transform_3(%arg0: i32) -> (i32, i32) {
    %c0_i32 = arith.constant 0 : i32
    %c0_i32_0 = arith.constant 0 : i32
    %c0_i32_1 = arith.constant 0 : i32
    return %c0_i32, %c0_i32_0 : i32, i32
  }
  func.func @transform_4(%arg0: i32) -> (i32, i32) {
    %c0_i32 = arith.constant 0 : i32
    %c0_i32_0 = arith.constant 0 : i32
    return %arg0, %c0_i32 : i32, i32
  }
}

module attributes {stable_mosaic.version = 11 : i64} {
  func.func @_maxpool_kernel(%arg0: i32, %arg1: memref<16x2x8x16xbf16, #tpu.memory_space<vmem>>, %arg2: memref<16x8x8xbf16, #tpu.memory_space<vmem>>) attributes {dimension_semantics = [#tpu.dimension_semantics<parallel>], iteration_bounds = array<i64: 1>, scalar_prefetch = 0 : i64, scratch_operands = 0 : i64, tpu.core_type = #tpu.core_type<tc>, window_params = [{transform_indices = @transform_0, window_bounds = array<i64: 16, 2, 8, 16>}, {transform_indices = @transform_1, window_bounds = array<i64: 16, 8, 8>}]} {
    %c0 = arith.constant 0 : index
    %c0_0 = arith.constant 0 : index
    %c0_1 = arith.constant 0 : index
    %c0_2 = arith.constant 0 : index
    %0 = vector.load %arg1[%c0, %c0_0, %c0_1, %c0_2] : memref<16x2x8x16xbf16, #tpu.memory_space<vmem>>, vector<16x2x8x16xbf16>
    %1 = vector.extract_strided_slice %0 {offsets = [0, 0, 0, 0], sizes = [16, 1, 8, 16], strides = [1, 1, 1, 1]} : vector<16x2x8x16xbf16> to vector<16x1x8x16xbf16>
    %2 = vector.shape_cast %1 : vector<16x1x8x16xbf16> to vector<16x8x16xbf16>
    %3 = vector.extract_strided_slice %0 {offsets = [0, 1, 0, 0], sizes = [16, 1, 8, 16], strides = [1, 1, 1, 1]} : vector<16x2x8x16xbf16> to vector<16x1x8x16xbf16>
    %4 = vector.shape_cast %3 : vector<16x1x8x16xbf16> to vector<16x8x16xbf16>
    %5 = arith.maximumf %2, %4 : vector<16x8x16xbf16>
    %6 = vector.extract_strided_slice %5 {offsets = [0, 0, 0], sizes = [16, 8, 8], strides = [1, 1, 1]} : vector<16x8x16xbf16> to vector<16x8x8xbf16>
    %7 = vector.extract_strided_slice %5 {offsets = [0, 0, 8], sizes = [16, 8, 8], strides = [1, 1, 1]} : vector<16x8x16xbf16> to vector<16x8x8xbf16>
    %8 = arith.maximumf %6, %7 : vector<16x8x8xbf16>
    %c0_3 = arith.constant 0 : index
    %c0_4 = arith.constant 0 : index
    %c0_5 = arith.constant 0 : index
    %9 = vector.load %arg2[%c0_3, %c0_4, %c0_5] : memref<16x8x8xbf16, #tpu.memory_space<vmem>>, vector<16x8x8xbf16>
    tpu.vector_store %arg2[%c0_3, %c0_4, %c0_5], %8 {strides = array<i32>} : memref<16x8x8xbf16, #tpu.memory_space<vmem>>, vector<16x8x8xbf16>,
    return
  }
  func.func @transform_0(%arg0: i32) -> (i32, i32, i32, i32) {
    %c0_i32 = arith.constant 0 : i32
    %c0_i32_0 = arith.constant 0 : i32
    %c0_i32_1 = arith.constant 0 : i32
    %c0_i32_2 = arith.constant 0 : i32
    return %arg0, %c0_i32, %c0_i32_0, %c0_i32_1 : i32, i32, i32, i32
  }
  func.func @transform_1(%arg0: i32) -> (i32, i32, i32) {
    %c0_i32 = arith.constant 0 : i32
    %c0_i32_0 = arith.constant 0 : i32
    %c0_i32_1 = arith.constant 0 : i32
    return %arg0, %c0_i32, %c0_i32_0 : i32, i32, i32
  }
}

module attributes {stable_mosaic.version = 11 : i64} {
  func.func @_conv_kernel(%arg0: i32, %arg1: memref<128x72xbf16, #tpu.memory_space<vmem>>, %arg2: memref<72x16xbf16, #tpu.memory_space<vmem>>, %arg3: memref<1x16xf32, #tpu.memory_space<vmem>>, %arg4: memref<1x16xf32, #tpu.memory_space<vmem>>, %arg5: memref<128x16xbf16, #tpu.memory_space<vmem>>) attributes {dimension_semantics = [#tpu.dimension_semantics<parallel>], iteration_bounds = array<i64: 1>, scalar_prefetch = 0 : i64, scratch_operands = 0 : i64, tpu.core_type = #tpu.core_type<tc>, window_params = [{transform_indices = @transform_0, window_bounds = array<i64: 128, 72>}, {pipeline_mode = #tpu.pipeline_mode<synchronous>, transform_indices = @transform_1, window_bounds = array<i64: 72, 16>}, {pipeline_mode = #tpu.pipeline_mode<synchronous>, transform_indices = @transform_2, window_bounds = array<i64: 1, 16>}, {pipeline_mode = #tpu.pipeline_mode<synchronous>, transform_indices = @transform_3, window_bounds = array<i64: 1, 16>}, {transform_indices = @transform_4, window_bounds = array<i64: 128, 16>}]} {
    %c0 = arith.constant 0 : index
    %c0_0 = arith.constant 0 : index
    %0 = vector.load %arg1[%c0, %c0_0] : memref<128x72xbf16, #tpu.memory_space<vmem>>, vector<128x72xbf16>
    %c0_1 = arith.constant 0 : index
    %c0_2 = arith.constant 0 : index
    %1 = vector.load %arg2[%c0_1, %c0_2] : memref<72x16xbf16, #tpu.memory_space<vmem>>, vector<72x16xbf16>
    %cst = arith.constant dense<0.000000e+00> : vector<128x16xf32>
    %2 = tpu.matmul %0, %1, %cst {dimension_numbers = #tpu.dot_dimension_numbers<[1], [0], [0], [1], [0, 0, 1, 1], [], []>} : vector<128x72xbf16>, vector<72x16xbf16>, vector<128x16xf32> -> vector<128x16xf32>
    %c0_3 = arith.constant 0 : index
    %c0_4 = arith.constant 0 : index
    %3 = vector.load %arg3[%c0_3, %c0_4] : memref<1x16xf32, #tpu.memory_space<vmem>>, vector<1x16xf32>
    %4 = vector.broadcast %3 : vector<1x16xf32> to vector<128x16xf32>
    %5 = arith.mulf %2, %4 : vector<128x16xf32>
    %c0_5 = arith.constant 0 : index
    %c0_6 = arith.constant 0 : index
    %6 = vector.load %arg4[%c0_5, %c0_6] : memref<1x16xf32, #tpu.memory_space<vmem>>, vector<1x16xf32>
    %7 = vector.broadcast %6 : vector<1x16xf32> to vector<128x16xf32>
    %8 = arith.addf %5, %7 : vector<128x16xf32>
    %cst_7 = arith.constant 0.000000e+00 : f32
    %9 = vector.broadcast %cst_7 : f32 to vector<128x16xf32>
    %10 = arith.maximumf %8, %9 : vector<128x16xf32>
    %11 = arith.truncf %10 : vector<128x16xf32> to vector<128x16xbf16>
    %c0_8 = arith.constant 0 : index
    %c0_9 = arith.constant 0 : index
    %12 = vector.load %arg5[%c0_8, %c0_9] : memref<128x16xbf16, #tpu.memory_space<vmem>>, vector<128x16xbf16>
    tpu.vector_store %arg5[%c0_8, %c0_9], %11 {strides = array<i32>} : memref<128x16xbf16, #tpu.memory_space<vmem>>, vector<128x16xbf16>,
    return
  }
  func.func @transform_0(%arg0: i32) -> (i32, i32) {
    %c0_i32 = arith.constant 0 : i32
    %c0_i32_0 = arith.constant 0 : i32
    return %arg0, %c0_i32 : i32, i32
  }
  func.func @transform_1(%arg0: i32) -> (i32, i32) {
    %c0_i32 = arith.constant 0 : i32
    %c0_i32_0 = arith.constant 0 : i32
    %c0_i32_1 = arith.constant 0 : i32
    return %c0_i32, %c0_i32_0 : i32, i32
  }
  func.func @transform_2(%arg0: i32) -> (i32, i32) {
    %c0_i32 = arith.constant 0 : i32
    %c0_i32_0 = arith.constant 0 : i32
    %c0_i32_1 = arith.constant 0 : i32
    return %c0_i32, %c0_i32_0 : i32, i32
  }
  func.func @transform_3(%arg0: i32) -> (i32, i32) {
    %c0_i32 = arith.constant 0 : i32
    %c0_i32_0 = arith.constant 0 : i32
    %c0_i32_1 = arith.constant 0 : i32
    return %c0_i32, %c0_i32_0 : i32, i32
  }
  func.func @transform_4(%arg0: i32) -> (i32, i32) {
    %c0_i32 = arith.constant 0 : i32
    %c0_i32_0 = arith.constant 0 : i32
    return %arg0, %c0_i32 : i32, i32
  }
}

module attributes {stable_mosaic.version = 11 : i64} {
  func.func @_maxpool_kernel(%arg0: i32, %arg1: memref<8x2x4x32xbf16, #tpu.memory_space<vmem>>, %arg2: memref<8x4x16xbf16, #tpu.memory_space<vmem>>) attributes {dimension_semantics = [#tpu.dimension_semantics<parallel>], iteration_bounds = array<i64: 1>, scalar_prefetch = 0 : i64, scratch_operands = 0 : i64, tpu.core_type = #tpu.core_type<tc>, window_params = [{transform_indices = @transform_0, window_bounds = array<i64: 8, 2, 4, 32>}, {transform_indices = @transform_1, window_bounds = array<i64: 8, 4, 16>}]} {
    %c0 = arith.constant 0 : index
    %c0_0 = arith.constant 0 : index
    %c0_1 = arith.constant 0 : index
    %c0_2 = arith.constant 0 : index
    %0 = vector.load %arg1[%c0, %c0_0, %c0_1, %c0_2] : memref<8x2x4x32xbf16, #tpu.memory_space<vmem>>, vector<8x2x4x32xbf16>
    %1 = vector.extract_strided_slice %0 {offsets = [0, 0, 0, 0], sizes = [8, 1, 4, 32], strides = [1, 1, 1, 1]} : vector<8x2x4x32xbf16> to vector<8x1x4x32xbf16>
    %2 = vector.shape_cast %1 : vector<8x1x4x32xbf16> to vector<8x4x32xbf16>
    %3 = vector.extract_strided_slice %0 {offsets = [0, 1, 0, 0], sizes = [8, 1, 4, 32], strides = [1, 1, 1, 1]} : vector<8x2x4x32xbf16> to vector<8x1x4x32xbf16>
    %4 = vector.shape_cast %3 : vector<8x1x4x32xbf16> to vector<8x4x32xbf16>
    %5 = arith.maximumf %2, %4 : vector<8x4x32xbf16>
    %6 = vector.extract_strided_slice %5 {offsets = [0, 0, 0], sizes = [8, 4, 16], strides = [1, 1, 1]} : vector<8x4x32xbf16> to vector<8x4x16xbf16>
    %7 = vector.extract_strided_slice %5 {offsets = [0, 0, 16], sizes = [8, 4, 16], strides = [1, 1, 1]} : vector<8x4x32xbf16> to vector<8x4x16xbf16>
    %8 = arith.maximumf %6, %7 : vector<8x4x16xbf16>
    %c0_3 = arith.constant 0 : index
    %c0_4 = arith.constant 0 : index
    %c0_5 = arith.constant 0 : index
    %9 = vector.load %arg2[%c0_3, %c0_4, %c0_5] : memref<8x4x16xbf16, #tpu.memory_space<vmem>>, vector<8x4x16xbf16>
    tpu.vector_store %arg2[%c0_3, %c0_4, %c0_5], %8 {strides = array<i32>} : memref<8x4x16xbf16, #tpu.memory_space<vmem>>, vector<8x4x16xbf16>,
    return
  }
  func.func @transform_0(%arg0: i32) -> (i32, i32, i32, i32) {
    %c0_i32 = arith.constant 0 : i32
    %c0_i32_0 = arith.constant 0 : i32
    %c0_i32_1 = arith.constant 0 : i32
    %c0_i32_2 = arith.constant 0 : i32
    return %arg0, %c0_i32, %c0_i32_0, %c0_i32_1 : i32, i32, i32, i32
  }
  func.func @transform_1(%arg0: i32) -> (i32, i32, i32) {
    %c0_i32 = arith.constant 0 : i32
    %c0_i32_0 = arith.constant 0 : i32
    %c0_i32_1 = arith.constant 0 : i32
    return %arg0, %c0_i32, %c0_i32_0 : i32, i32, i32
  }
}

module attributes {stable_mosaic.version = 11 : i64} {
  func.func @_conv_kernel(%arg0: i32, %arg1: memref<128x144xbf16, #tpu.memory_space<vmem>>, %arg2: memref<144x16xbf16, #tpu.memory_space<vmem>>, %arg3: memref<1x16xf32, #tpu.memory_space<vmem>>, %arg4: memref<1x16xf32, #tpu.memory_space<vmem>>, %arg5: memref<128x16xbf16, #tpu.memory_space<vmem>>) attributes {dimension_semantics = [#tpu.dimension_semantics<parallel>], iteration_bounds = array<i64: 1>, scalar_prefetch = 0 : i64, scratch_operands = 0 : i64, tpu.core_type = #tpu.core_type<tc>, window_params = [{transform_indices = @transform_0, window_bounds = array<i64: 128, 144>}, {pipeline_mode = #tpu.pipeline_mode<synchronous>, transform_indices = @transform_1, window_bounds = array<i64: 144, 16>}, {pipeline_mode = #tpu.pipeline_mode<synchronous>, transform_indices = @transform_2, window_bounds = array<i64: 1, 16>}, {pipeline_mode = #tpu.pipeline_mode<synchronous>, transform_indices = @transform_3, window_bounds = array<i64: 1, 16>}, {transform_indices = @transform_4, window_bounds = array<i64: 128, 16>}]} {
    %c0 = arith.constant 0 : index
    %c0_0 = arith.constant 0 : index
    %0 = vector.load %arg1[%c0, %c0_0] : memref<128x144xbf16, #tpu.memory_space<vmem>>, vector<128x144xbf16>
    %c0_1 = arith.constant 0 : index
    %c0_2 = arith.constant 0 : index
    %1 = vector.load %arg2[%c0_1, %c0_2] : memref<144x16xbf16, #tpu.memory_space<vmem>>, vector<144x16xbf16>
    %cst = arith.constant dense<0.000000e+00> : vector<128x16xf32>
    %2 = tpu.matmul %0, %1, %cst {dimension_numbers = #tpu.dot_dimension_numbers<[1], [0], [0], [1], [0, 0, 1, 1], [], []>} : vector<128x144xbf16>, vector<144x16xbf16>, vector<128x16xf32> -> vector<128x16xf32>
    %c0_3 = arith.constant 0 : index
    %c0_4 = arith.constant 0 : index
    %3 = vector.load %arg3[%c0_3, %c0_4] : memref<1x16xf32, #tpu.memory_space<vmem>>, vector<1x16xf32>
    %4 = vector.broadcast %3 : vector<1x16xf32> to vector<128x16xf32>
    %5 = arith.mulf %2, %4 : vector<128x16xf32>
    %c0_5 = arith.constant 0 : index
    %c0_6 = arith.constant 0 : index
    %6 = vector.load %arg4[%c0_5, %c0_6] : memref<1x16xf32, #tpu.memory_space<vmem>>, vector<1x16xf32>
    %7 = vector.broadcast %6 : vector<1x16xf32> to vector<128x16xf32>
    %8 = arith.addf %5, %7 : vector<128x16xf32>
    %cst_7 = arith.constant 0.000000e+00 : f32
    %9 = vector.broadcast %cst_7 : f32 to vector<128x16xf32>
    %10 = arith.maximumf %8, %9 : vector<128x16xf32>
    %11 = arith.truncf %10 : vector<128x16xf32> to vector<128x16xbf16>
    %c0_8 = arith.constant 0 : index
    %c0_9 = arith.constant 0 : index
    %12 = vector.load %arg5[%c0_8, %c0_9] : memref<128x16xbf16, #tpu.memory_space<vmem>>, vector<128x16xbf16>
    tpu.vector_store %arg5[%c0_8, %c0_9], %11 {strides = array<i32>} : memref<128x16xbf16, #tpu.memory_space<vmem>>, vector<128x16xbf16>,
    return
  }
  func.func @transform_0(%arg0: i32) -> (i32, i32) {
    %c0_i32 = arith.constant 0 : i32
    %c0_i32_0 = arith.constant 0 : i32
    return %arg0, %c0_i32 : i32, i32
  }
  func.func @transform_1(%arg0: i32) -> (i32, i32) {
    %c0_i32 = arith.constant 0 : i32
    %c0_i32_0 = arith.constant 0 : i32
    %c0_i32_1 = arith.constant 0 : i32
    return %c0_i32, %c0_i32_0 : i32, i32
  }
  func.func @transform_2(%arg0: i32) -> (i32, i32) {
    %c0_i32 = arith.constant 0 : i32
    %c0_i32_0 = arith.constant 0 : i32
    %c0_i32_1 = arith.constant 0 : i32
    return %c0_i32, %c0_i32_0 : i32, i32
  }
  func.func @transform_3(%arg0: i32) -> (i32, i32) {
    %c0_i32 = arith.constant 0 : i32
    %c0_i32_0 = arith.constant 0 : i32
    %c0_i32_1 = arith.constant 0 : i32
    return %c0_i32, %c0_i32_0 : i32, i32
  }
  func.func @transform_4(%arg0: i32) -> (i32, i32) {
    %c0_i32 = arith.constant 0 : i32
    %c0_i32_0 = arith.constant 0 : i32
    return %arg0, %c0_i32 : i32, i32
  }
}

module attributes {stable_mosaic.version = 11 : i64} {
  func.func @_conv_kernel(%arg0: i32, %arg1: memref<32x144xbf16, #tpu.memory_space<vmem>>, %arg2: memref<144x32xbf16, #tpu.memory_space<vmem>>, %arg3: memref<1x32xf32, #tpu.memory_space<vmem>>, %arg4: memref<1x32xf32, #tpu.memory_space<vmem>>, %arg5: memref<32x32xbf16, #tpu.memory_space<vmem>>) attributes {dimension_semantics = [#tpu.dimension_semantics<parallel>], iteration_bounds = array<i64: 1>, scalar_prefetch = 0 : i64, scratch_operands = 0 : i64, tpu.core_type = #tpu.core_type<tc>, window_params = [{transform_indices = @transform_0, window_bounds = array<i64: 32, 144>}, {pipeline_mode = #tpu.pipeline_mode<synchronous>, transform_indices = @transform_1, window_bounds = array<i64: 144, 32>}, {pipeline_mode = #tpu.pipeline_mode<synchronous>, transform_indices = @transform_2, window_bounds = array<i64: 1, 32>}, {pipeline_mode = #tpu.pipeline_mode<synchronous>, transform_indices = @transform_3, window_bounds = array<i64: 1, 32>}, {transform_indices = @transform_4, window_bounds = array<i64: 32, 32>}]} {
    %c0 = arith.constant 0 : index
    %c0_0 = arith.constant 0 : index
    %0 = vector.load %arg1[%c0, %c0_0] : memref<32x144xbf16, #tpu.memory_space<vmem>>, vector<32x144xbf16>
    %c0_1 = arith.constant 0 : index
    %c0_2 = arith.constant 0 : index
    %1 = vector.load %arg2[%c0_1, %c0_2] : memref<144x32xbf16, #tpu.memory_space<vmem>>, vector<144x32xbf16>
    %cst = arith.constant dense<0.000000e+00> : vector<32x32xf32>
    %2 = tpu.matmul %0, %1, %cst {dimension_numbers = #tpu.dot_dimension_numbers<[1], [0], [0], [1], [0, 0, 1, 1], [], []>} : vector<32x144xbf16>, vector<144x32xbf16>, vector<32x32xf32> -> vector<32x32xf32>
    %c0_3 = arith.constant 0 : index
    %c0_4 = arith.constant 0 : index
    %3 = vector.load %arg3[%c0_3, %c0_4] : memref<1x32xf32, #tpu.memory_space<vmem>>, vector<1x32xf32>
    %4 = vector.broadcast %3 : vector<1x32xf32> to vector<32x32xf32>
    %5 = arith.mulf %2, %4 : vector<32x32xf32>
    %c0_5 = arith.constant 0 : index
    %c0_6 = arith.constant 0 : index
    %6 = vector.load %arg4[%c0_5, %c0_6] : memref<1x32xf32, #tpu.memory_space<vmem>>, vector<1x32xf32>
    %7 = vector.broadcast %6 : vector<1x32xf32> to vector<32x32xf32>
    %8 = arith.addf %5, %7 : vector<32x32xf32>
    %cst_7 = arith.constant 0.000000e+00 : f32
    %9 = vector.broadcast %cst_7 : f32 to vector<32x32xf32>
    %10 = arith.maximumf %8, %9 : vector<32x32xf32>
    %11 = arith.truncf %10 : vector<32x32xf32> to vector<32x32xbf16>
    %c0_8 = arith.constant 0 : index
    %c0_9 = arith.constant 0 : index
    %12 = vector.load %arg5[%c0_8, %c0_9] : memref<32x32xbf16, #tpu.memory_space<vmem>>, vector<32x32xbf16>
    tpu.vector_store %arg5[%c0_8, %c0_9], %11 {strides = array<i32>} : memref<32x32xbf16, #tpu.memory_space<vmem>>, vector<32x32xbf16>,
    return
  }
  func.func @transform_0(%arg0: i32) -> (i32, i32) {
    %c0_i32 = arith.constant 0 : i32
    %c0_i32_0 = arith.constant 0 : i32
    return %arg0, %c0_i32 : i32, i32
  }
  func.func @transform_1(%arg0: i32) -> (i32, i32) {
    %c0_i32 = arith.constant 0 : i32
    %c0_i32_0 = arith.constant 0 : i32
    %c0_i32_1 = arith.constant 0 : i32
    return %c0_i32, %c0_i32_0 : i32, i32
  }
  func.func @transform_2(%arg0: i32) -> (i32, i32) {
    %c0_i32 = arith.constant 0 : i32
    %c0_i32_0 = arith.constant 0 : i32
    %c0_i32_1 = arith.constant 0 : i32
    return %c0_i32, %c0_i32_0 : i32, i32
  }
  func.func @transform_3(%arg0: i32) -> (i32, i32) {
    %c0_i32 = arith.constant 0 : i32
    %c0_i32_0 = arith.constant 0 : i32
    %c0_i32_1 = arith.constant 0 : i32
    return %c0_i32, %c0_i32_0 : i32, i32
  }
  func.func @transform_4(%arg0: i32) -> (i32, i32) {
    %c0_i32 = arith.constant 0 : i32
    %c0_i32_0 = arith.constant 0 : i32
    return %arg0, %c0_i32 : i32, i32
  }
}

module attributes {stable_mosaic.version = 11 : i64} {
  func.func @_maxpool_kernel(%arg0: i32, %arg1: memref<4x2x2x64xbf16, #tpu.memory_space<vmem>>, %arg2: memref<4x2x32xbf16, #tpu.memory_space<vmem>>) attributes {dimension_semantics = [#tpu.dimension_semantics<parallel>], iteration_bounds = array<i64: 1>, scalar_prefetch = 0 : i64, scratch_operands = 0 : i64, tpu.core_type = #tpu.core_type<tc>, window_params = [{transform_indices = @transform_0, window_bounds = array<i64: 4, 2, 2, 64>}, {transform_indices = @transform_1, window_bounds = array<i64: 4, 2, 32>}]} {
    %c0 = arith.constant 0 : index
    %c0_0 = arith.constant 0 : index
    %c0_1 = arith.constant 0 : index
    %c0_2 = arith.constant 0 : index
    %0 = vector.load %arg1[%c0, %c0_0, %c0_1, %c0_2] : memref<4x2x2x64xbf16, #tpu.memory_space<vmem>>, vector<4x2x2x64xbf16>
    %1 = vector.extract_strided_slice %0 {offsets = [0, 0, 0, 0], sizes = [4, 1, 2, 64], strides = [1, 1, 1, 1]} : vector<4x2x2x64xbf16> to vector<4x1x2x64xbf16>
    %2 = vector.shape_cast %1 : vector<4x1x2x64xbf16> to vector<4x2x64xbf16>
    %3 = vector.extract_strided_slice %0 {offsets = [0, 1, 0, 0], sizes = [4, 1, 2, 64], strides = [1, 1, 1, 1]} : vector<4x2x2x64xbf16> to vector<4x1x2x64xbf16>
    %4 = vector.shape_cast %3 : vector<4x1x2x64xbf16> to vector<4x2x64xbf16>
    %5 = arith.maximumf %2, %4 : vector<4x2x64xbf16>
    %6 = vector.extract_strided_slice %5 {offsets = [0, 0, 0], sizes = [4, 2, 32], strides = [1, 1, 1]} : vector<4x2x64xbf16> to vector<4x2x32xbf16>
    %7 = vector.extract_strided_slice %5 {offsets = [0, 0, 32], sizes = [4, 2, 32], strides = [1, 1, 1]} : vector<4x2x64xbf16> to vector<4x2x32xbf16>
    %8 = arith.maximumf %6, %7 : vector<4x2x32xbf16>
    %c0_3 = arith.constant 0 : index
    %c0_4 = arith.constant 0 : index
    %c0_5 = arith.constant 0 : index
    %9 = vector.load %arg2[%c0_3, %c0_4, %c0_5] : memref<4x2x32xbf16, #tpu.memory_space<vmem>>, vector<4x2x32xbf16>
    tpu.vector_store %arg2[%c0_3, %c0_4, %c0_5], %8 {strides = array<i32>} : memref<4x2x32xbf16, #tpu.memory_space<vmem>>, vector<4x2x32xbf16>,
    return
  }
  func.func @transform_0(%arg0: i32) -> (i32, i32, i32, i32) {
    %c0_i32 = arith.constant 0 : i32
    %c0_i32_0 = arith.constant 0 : i32
    %c0_i32_1 = arith.constant 0 : i32
    %c0_i32_2 = arith.constant 0 : i32
    return %arg0, %c0_i32, %c0_i32_0, %c0_i32_1 : i32, i32, i32, i32
  }
  func.func @transform_1(%arg0: i32) -> (i32, i32, i32) {
    %c0_i32 = arith.constant 0 : i32
    %c0_i32_0 = arith.constant 0 : i32
    %c0_i32_1 = arith.constant 0 : i32
    return %arg0, %c0_i32, %c0_i32_0 : i32, i32, i32
  }
}

module attributes {stable_mosaic.version = 11 : i64} {
  func.func @_conv_kernel(%arg0: i32, %arg1: memref<32x288xbf16, #tpu.memory_space<vmem>>, %arg2: memref<288x32xbf16, #tpu.memory_space<vmem>>, %arg3: memref<1x32xf32, #tpu.memory_space<vmem>>, %arg4: memref<1x32xf32, #tpu.memory_space<vmem>>, %arg5: memref<32x32xbf16, #tpu.memory_space<vmem>>) attributes {dimension_semantics = [#tpu.dimension_semantics<parallel>], iteration_bounds = array<i64: 1>, scalar_prefetch = 0 : i64, scratch_operands = 0 : i64, tpu.core_type = #tpu.core_type<tc>, window_params = [{transform_indices = @transform_0, window_bounds = array<i64: 32, 288>}, {pipeline_mode = #tpu.pipeline_mode<synchronous>, transform_indices = @transform_1, window_bounds = array<i64: 288, 32>}, {pipeline_mode = #tpu.pipeline_mode<synchronous>, transform_indices = @transform_2, window_bounds = array<i64: 1, 32>}, {pipeline_mode = #tpu.pipeline_mode<synchronous>, transform_indices = @transform_3, window_bounds = array<i64: 1, 32>}, {transform_indices = @transform_4, window_bounds = array<i64: 32, 32>}]} {
    %c0 = arith.constant 0 : index
    %c0_0 = arith.constant 0 : index
    %0 = vector.load %arg1[%c0, %c0_0] : memref<32x288xbf16, #tpu.memory_space<vmem>>, vector<32x288xbf16>
    %c0_1 = arith.constant 0 : index
    %c0_2 = arith.constant 0 : index
    %1 = vector.load %arg2[%c0_1, %c0_2] : memref<288x32xbf16, #tpu.memory_space<vmem>>, vector<288x32xbf16>
    %cst = arith.constant dense<0.000000e+00> : vector<32x32xf32>
    %2 = tpu.matmul %0, %1, %cst {dimension_numbers = #tpu.dot_dimension_numbers<[1], [0], [0], [1], [0, 0, 1, 1], [], []>} : vector<32x288xbf16>, vector<288x32xbf16>, vector<32x32xf32> -> vector<32x32xf32>
    %c0_3 = arith.constant 0 : index
    %c0_4 = arith.constant 0 : index
    %3 = vector.load %arg3[%c0_3, %c0_4] : memref<1x32xf32, #tpu.memory_space<vmem>>, vector<1x32xf32>
    %4 = vector.broadcast %3 : vector<1x32xf32> to vector<32x32xf32>
    %5 = arith.mulf %2, %4 : vector<32x32xf32>
    %c0_5 = arith.constant 0 : index
    %c0_6 = arith.constant 0 : index
    %6 = vector.load %arg4[%c0_5, %c0_6] : memref<1x32xf32, #tpu.memory_space<vmem>>, vector<1x32xf32>
    %7 = vector.broadcast %6 : vector<1x32xf32> to vector<32x32xf32>
    %8 = arith.addf %5, %7 : vector<32x32xf32>
    %cst_7 = arith.constant 0.000000e+00 : f32
    %9 = vector.broadcast %cst_7 : f32 to vector<32x32xf32>
    %10 = arith.maximumf %8, %9 : vector<32x32xf32>
    %11 = arith.truncf %10 : vector<32x32xf32> to vector<32x32xbf16>
    %c0_8 = arith.constant 0 : index
    %c0_9 = arith.constant 0 : index
    %12 = vector.load %arg5[%c0_8, %c0_9] : memref<32x32xbf16, #tpu.memory_space<vmem>>, vector<32x32xbf16>
    tpu.vector_store %arg5[%c0_8, %c0_9], %11 {strides = array<i32>} : memref<32x32xbf16, #tpu.memory_space<vmem>>, vector<32x32xbf16>,
    return
  }
  func.func @transform_0(%arg0: i32) -> (i32, i32) {
    %c0_i32 = arith.constant 0 : i32
    %c0_i32_0 = arith.constant 0 : i32
    return %arg0, %c0_i32 : i32, i32
  }
  func.func @transform_1(%arg0: i32) -> (i32, i32) {
    %c0_i32 = arith.constant 0 : i32
    %c0_i32_0 = arith.constant 0 : i32
    %c0_i32_1 = arith.constant 0 : i32
    return %c0_i32, %c0_i32_0 : i32, i32
  }
  func.func @transform_2(%arg0: i32) -> (i32, i32) {
    %c0_i32 = arith.constant 0 : i32
    %c0_i32_0 = arith.constant 0 : i32
    %c0_i32_1 = arith.constant 0 : i32
    return %c0_i32, %c0_i32_0 : i32, i32
  }
  func.func @transform_3(%arg0: i32) -> (i32, i32) {
    %c0_i32 = arith.constant 0 : i32
    %c0_i32_0 = arith.constant 0 : i32
    %c0_i32_1 = arith.constant 0 : i32
    return %c0_i32, %c0_i32_0 : i32, i32
  }
  func.func @transform_4(%arg0: i32) -> (i32, i32) {
    %c0_i32 = arith.constant 0 : i32
    %c0_i32_0 = arith.constant 0 : i32
    return %arg0, %c0_i32 : i32, i32
  }
}

module attributes {stable_mosaic.version = 11 : i64} {
  func.func @_conv_kernel(%arg0: i32, %arg1: memref<8x576xbf16, #tpu.memory_space<vmem>>, %arg2: memref<576x64xbf16, #tpu.memory_space<vmem>>, %arg3: memref<1x64xf32, #tpu.memory_space<vmem>>, %arg4: memref<1x64xf32, #tpu.memory_space<vmem>>, %arg5: memref<8x64xbf16, #tpu.memory_space<vmem>>) attributes {dimension_semantics = [#tpu.dimension_semantics<parallel>], iteration_bounds = array<i64: 1>, scalar_prefetch = 0 : i64, scratch_operands = 0 : i64, tpu.core_type = #tpu.core_type<tc>, window_params = [{transform_indices = @transform_0, window_bounds = array<i64: 8, 576>}, {pipeline_mode = #tpu.pipeline_mode<synchronous>, transform_indices = @transform_1, window_bounds = array<i64: 576, 64>}, {pipeline_mode = #tpu.pipeline_mode<synchronous>, transform_indices = @transform_2, window_bounds = array<i64: 1, 64>}, {pipeline_mode = #tpu.pipeline_mode<synchronous>, transform_indices = @transform_3, window_bounds = array<i64: 1, 64>}, {transform_indices = @transform_4, window_bounds = array<i64: 8, 64>}]} {
    %c0 = arith.constant 0 : index
    %c0_0 = arith.constant 0 : index
    %0 = vector.load %arg1[%c0, %c0_0] : memref<8x576xbf16, #tpu.memory_space<vmem>>, vector<8x576xbf16>
    %c0_1 = arith.constant 0 : index
    %c0_2 = arith.constant 0 : index
    %1 = vector.load %arg2[%c0_1, %c0_2] : memref<576x64xbf16, #tpu.memory_space<vmem>>, vector<576x64xbf16>
    %cst = arith.constant dense<0.000000e+00> : vector<8x64xf32>
    %2 = tpu.matmul %0, %1, %cst {dimension_numbers = #tpu.dot_dimension_numbers<[1], [0], [0], [1], [0, 0, 1, 1], [], []>} : vector<8x576xbf16>, vector<576x64xbf16>, vector<8x64xf32> -> vector<8x64xf32>
    %c0_3 = arith.constant 0 : index
    %c0_4 = arith.constant 0 : index
    %3 = vector.load %arg3[%c0_3, %c0_4] : memref<1x64xf32, #tpu.memory_space<vmem>>, vector<1x64xf32>
    %4 = vector.broadcast %3 : vector<1x64xf32> to vector<8x64xf32>
    %5 = arith.mulf %2, %4 : vector<8x64xf32>
    %c0_5 = arith.constant 0 : index
    %c0_6 = arith.constant 0 : index
    %6 = vector.load %arg4[%c0_5, %c0_6] : memref<1x64xf32, #tpu.memory_space<vmem>>, vector<1x64xf32>
    %7 = vector.broadcast %6 : vector<1x64xf32> to vector<8x64xf32>
    %8 = arith.addf %5, %7 : vector<8x64xf32>
    %cst_7 = arith.constant 0.000000e+00 : f32
    %9 = vector.broadcast %cst_7 : f32 to vector<8x64xf32>
    %10 = arith.maximumf %8, %9 : vector<8x64xf32>
    %11 = arith.truncf %10 : vector<8x64xf32> to vector<8x64xbf16>
    %c0_8 = arith.constant 0 : index
    %c0_9 = arith.constant 0 : index
    %12 = vector.load %arg5[%c0_8, %c0_9] : memref<8x64xbf16, #tpu.memory_space<vmem>>, vector<8x64xbf16>
    tpu.vector_store %arg5[%c0_8, %c0_9], %11 {strides = array<i32>} : memref<8x64xbf16, #tpu.memory_space<vmem>>, vector<8x64xbf16>,
    return
  }
  func.func @transform_0(%arg0: i32) -> (i32, i32) {
    %c0_i32 = arith.constant 0 : i32
    %c0_i32_0 = arith.constant 0 : i32
    return %arg0, %c0_i32 : i32, i32
  }
  func.func @transform_1(%arg0: i32) -> (i32, i32) {
    %c0_i32 = arith.constant 0 : i32
    %c0_i32_0 = arith.constant 0 : i32
    %c0_i32_1 = arith.constant 0 : i32
    return %c0_i32, %c0_i32_0 : i32, i32
  }
  func.func @transform_2(%arg0: i32) -> (i32, i32) {
    %c0_i32 = arith.constant 0 : i32
    %c0_i32_0 = arith.constant 0 : i32
    %c0_i32_1 = arith.constant 0 : i32
    return %c0_i32, %c0_i32_0 : i32, i32
  }
  func.func @transform_3(%arg0: i32) -> (i32, i32) {
    %c0_i32 = arith.constant 0 : i32
    %c0_i32_0 = arith.constant 0 : i32
    %c0_i32_1 = arith.constant 0 : i32
    return %c0_i32, %c0_i32_0 : i32, i32
  }
  func.func @transform_4(%arg0: i32) -> (i32, i32) {
    %c0_i32 = arith.constant 0 : i32
    %c0_i32_0 = arith.constant 0 : i32
    return %arg0, %c0_i32 : i32, i32
  }
}

module attributes {stable_mosaic.version = 11 : i64} {
  func.func @_conv_kernel(%arg0: i32, %arg1: memref<8x288xbf16, #tpu.memory_space<vmem>>, %arg2: memref<288x64xbf16, #tpu.memory_space<vmem>>, %arg3: memref<1x64xf32, #tpu.memory_space<vmem>>, %arg4: memref<1x64xf32, #tpu.memory_space<vmem>>, %arg5: memref<8x64xbf16, #tpu.memory_space<vmem>>) attributes {dimension_semantics = [#tpu.dimension_semantics<parallel>], iteration_bounds = array<i64: 1>, scalar_prefetch = 0 : i64, scratch_operands = 0 : i64, tpu.core_type = #tpu.core_type<tc>, window_params = [{transform_indices = @transform_0, window_bounds = array<i64: 8, 288>}, {pipeline_mode = #tpu.pipeline_mode<synchronous>, transform_indices = @transform_1, window_bounds = array<i64: 288, 64>}, {pipeline_mode = #tpu.pipeline_mode<synchronous>, transform_indices = @transform_2, window_bounds = array<i64: 1, 64>}, {pipeline_mode = #tpu.pipeline_mode<synchronous>, transform_indices = @transform_3, window_bounds = array<i64: 1, 64>}, {transform_indices = @transform_4, window_bounds = array<i64: 8, 64>}]} {
    %c0 = arith.constant 0 : index
    %c0_0 = arith.constant 0 : index
    %0 = vector.load %arg1[%c0, %c0_0] : memref<8x288xbf16, #tpu.memory_space<vmem>>, vector<8x288xbf16>
    %c0_1 = arith.constant 0 : index
    %c0_2 = arith.constant 0 : index
    %1 = vector.load %arg2[%c0_1, %c0_2] : memref<288x64xbf16, #tpu.memory_space<vmem>>, vector<288x64xbf16>
    %cst = arith.constant dense<0.000000e+00> : vector<8x64xf32>
    %2 = tpu.matmul %0, %1, %cst {dimension_numbers = #tpu.dot_dimension_numbers<[1], [0], [0], [1], [0, 0, 1, 1], [], []>} : vector<8x288xbf16>, vector<288x64xbf16>, vector<8x64xf32> -> vector<8x64xf32>
    %c0_3 = arith.constant 0 : index
    %c0_4 = arith.constant 0 : index
    %3 = vector.load %arg3[%c0_3, %c0_4] : memref<1x64xf32, #tpu.memory_space<vmem>>, vector<1x64xf32>
    %4 = vector.broadcast %3 : vector<1x64xf32> to vector<8x64xf32>
    %5 = arith.mulf %2, %4 : vector<8x64xf32>
    %c0_5 = arith.constant 0 : index
    %c0_6 = arith.constant 0 : index
    %6 = vector.load %arg4[%c0_5, %c0_6] : memref<1x64xf32, #tpu.memory_space<vmem>>, vector<1x64xf32>
    %7 = vector.broadcast %6 : vector<1x64xf32> to vector<8x64xf32>
    %8 = arith.addf %5, %7 : vector<8x64xf32>
    %cst_7 = arith.constant 0.000000e+00 : f32
    %9 = vector.broadcast %cst_7 : f32 to vector<8x64xf32>
    %10 = arith.maximumf %8, %9 : vector<8x64xf32>
    %11 = arith.truncf %10 : vector<8x64xf32> to vector<8x64xbf16>
    %c0_8 = arith.constant 0 : index
    %c0_9 = arith.constant 0 : index
    %12 = vector.load %arg5[%c0_8, %c0_9] : memref<8x64xbf16, #tpu.memory_space<vmem>>, vector<8x64xbf16>
    tpu.vector_store %arg5[%c0_8, %c0_9], %11 {strides = array<i32>} : memref<8x64xbf16, #tpu.memory_space<vmem>>, vector<8x64xbf16>,
    return
  }
  func.func @transform_0(%arg0: i32) -> (i32, i32) {
    %c0_i32 = arith.constant 0 : i32
    %c0_i32_0 = arith.constant 0 : i32
    return %arg0, %c0_i32 : i32, i32
  }
  func.func @transform_1(%arg0: i32) -> (i32, i32) {
    %c0_i32 = arith.constant 0 : i32
    %c0_i32_0 = arith.constant 0 : i32
    %c0_i32_1 = arith.constant 0 : i32
    return %c0_i32, %c0_i32_0 : i32, i32
  }
  func.func @transform_2(%arg0: i32) -> (i32, i32) {
    %c0_i32 = arith.constant 0 : i32
    %c0_i32_0 = arith.constant 0 : i32
    %c0_i32_1 = arith.constant 0 : i32
    return %c0_i32, %c0_i32_0 : i32, i32
  }
  func.func @transform_3(%arg0: i32) -> (i32, i32) {
    %c0_i32 = arith.constant 0 : i32
    %c0_i32_0 = arith.constant 0 : i32
    %c0_i32_1 = arith.constant 0 : i32
    return %c0_i32, %c0_i32_0 : i32, i32
  }
  func.func @transform_4(%arg0: i32) -> (i32, i32) {
    %c0_i32 = arith.constant 0 : i32
    %c0_i32_0 = arith.constant 0 : i32
    return %arg0, %c0_i32 : i32, i32
  }
}

module attributes {stable_mosaic.version = 11 : i64} {
  func.func @_deconv_kernel(%arg0: i32, %arg1: memref<8x64xbf16, #tpu.memory_space<vmem>>, %arg2: memref<64x128xbf16, #tpu.memory_space<vmem>>, %arg3: memref<1x128xf32, #tpu.memory_space<vmem>>, %arg4: memref<8x128xbf16, #tpu.memory_space<vmem>>) attributes {dimension_semantics = [#tpu.dimension_semantics<parallel>], iteration_bounds = array<i64: 1>, scalar_prefetch = 0 : i64, scratch_operands = 0 : i64, tpu.core_type = #tpu.core_type<tc>, window_params = [{transform_indices = @transform_0, window_bounds = array<i64: 8, 64>}, {pipeline_mode = #tpu.pipeline_mode<synchronous>, transform_indices = @transform_1, window_bounds = array<i64: 64, 128>}, {pipeline_mode = #tpu.pipeline_mode<synchronous>, transform_indices = @transform_2, window_bounds = array<i64: 1, 128>}, {transform_indices = @transform_3, window_bounds = array<i64: 8, 128>}]} {
    %c0 = arith.constant 0 : index
    %c0_0 = arith.constant 0 : index
    %0 = vector.load %arg1[%c0, %c0_0] : memref<8x64xbf16, #tpu.memory_space<vmem>>, vector<8x64xbf16>
    %c0_1 = arith.constant 0 : index
    %c0_2 = arith.constant 0 : index
    %1 = vector.load %arg2[%c0_1, %c0_2] : memref<64x128xbf16, #tpu.memory_space<vmem>>, vector<64x128xbf16>
    %cst = arith.constant dense<0.000000e+00> : vector<8x128xf32>
    %2 = tpu.matmul %0, %1, %cst {dimension_numbers = #tpu.dot_dimension_numbers<[1], [0], [0], [1], [0, 0, 1, 1], [], []>} : vector<8x64xbf16>, vector<64x128xbf16>, vector<8x128xf32> -> vector<8x128xf32>
    %c0_3 = arith.constant 0 : index
    %c0_4 = arith.constant 0 : index
    %3 = vector.load %arg3[%c0_3, %c0_4] : memref<1x128xf32, #tpu.memory_space<vmem>>, vector<1x128xf32>
    %4 = vector.broadcast %3 : vector<1x128xf32> to vector<8x128xf32>
    %5 = arith.addf %2, %4 : vector<8x128xf32>
    %6 = arith.truncf %5 : vector<8x128xf32> to vector<8x128xbf16>
    %c0_5 = arith.constant 0 : index
    %c0_6 = arith.constant 0 : index
    %7 = vector.load %arg4[%c0_5, %c0_6] : memref<8x128xbf16, #tpu.memory_space<vmem>>, vector<8x128xbf16>
    tpu.vector_store %arg4[%c0_5, %c0_6], %6 {strides = array<i32>} : memref<8x128xbf16, #tpu.memory_space<vmem>>, vector<8x128xbf16>,
    return
  }
  func.func @transform_0(%arg0: i32) -> (i32, i32) {
    %c0_i32 = arith.constant 0 : i32
    %c0_i32_0 = arith.constant 0 : i32
    return %arg0, %c0_i32 : i32, i32
  }
  func.func @transform_1(%arg0: i32) -> (i32, i32) {
    %c0_i32 = arith.constant 0 : i32
    %c0_i32_0 = arith.constant 0 : i32
    %c0_i32_1 = arith.constant 0 : i32
    return %c0_i32, %c0_i32_0 : i32, i32
  }
  func.func @transform_2(%arg0: i32) -> (i32, i32) {
    %c0_i32 = arith.constant 0 : i32
    %c0_i32_0 = arith.constant 0 : i32
    %c0_i32_1 = arith.constant 0 : i32
    return %c0_i32, %c0_i32_0 : i32, i32
  }
  func.func @transform_3(%arg0: i32) -> (i32, i32) {
    %c0_i32 = arith.constant 0 : i32
    %c0_i32_0 = arith.constant 0 : i32
    return %arg0, %c0_i32 : i32, i32
  }
}

module attributes {stable_mosaic.version = 11 : i64} {
  func.func @_conv_kernel(%arg0: i32, %arg1: memref<32x576xbf16, #tpu.memory_space<vmem>>, %arg2: memref<576x32xbf16, #tpu.memory_space<vmem>>, %arg3: memref<1x32xf32, #tpu.memory_space<vmem>>, %arg4: memref<1x32xf32, #tpu.memory_space<vmem>>, %arg5: memref<32x32xbf16, #tpu.memory_space<vmem>>) attributes {dimension_semantics = [#tpu.dimension_semantics<parallel>], iteration_bounds = array<i64: 1>, scalar_prefetch = 0 : i64, scratch_operands = 0 : i64, tpu.core_type = #tpu.core_type<tc>, window_params = [{transform_indices = @transform_0, window_bounds = array<i64: 32, 576>}, {pipeline_mode = #tpu.pipeline_mode<synchronous>, transform_indices = @transform_1, window_bounds = array<i64: 576, 32>}, {pipeline_mode = #tpu.pipeline_mode<synchronous>, transform_indices = @transform_2, window_bounds = array<i64: 1, 32>}, {pipeline_mode = #tpu.pipeline_mode<synchronous>, transform_indices = @transform_3, window_bounds = array<i64: 1, 32>}, {transform_indices = @transform_4, window_bounds = array<i64: 32, 32>}]} {
    %c0 = arith.constant 0 : index
    %c0_0 = arith.constant 0 : index
    %0 = vector.load %arg1[%c0, %c0_0] : memref<32x576xbf16, #tpu.memory_space<vmem>>, vector<32x576xbf16>
    %c0_1 = arith.constant 0 : index
    %c0_2 = arith.constant 0 : index
    %1 = vector.load %arg2[%c0_1, %c0_2] : memref<576x32xbf16, #tpu.memory_space<vmem>>, vector<576x32xbf16>
    %cst = arith.constant dense<0.000000e+00> : vector<32x32xf32>
    %2 = tpu.matmul %0, %1, %cst {dimension_numbers = #tpu.dot_dimension_numbers<[1], [0], [0], [1], [0, 0, 1, 1], [], []>} : vector<32x576xbf16>, vector<576x32xbf16>, vector<32x32xf32> -> vector<32x32xf32>
    %c0_3 = arith.constant 0 : index
    %c0_4 = arith.constant 0 : index
    %3 = vector.load %arg3[%c0_3, %c0_4] : memref<1x32xf32, #tpu.memory_space<vmem>>, vector<1x32xf32>
    %4 = vector.broadcast %3 : vector<1x32xf32> to vector<32x32xf32>
    %5 = arith.mulf %2, %4 : vector<32x32xf32>
    %c0_5 = arith.constant 0 : index
    %c0_6 = arith.constant 0 : index
    %6 = vector.load %arg4[%c0_5, %c0_6] : memref<1x32xf32, #tpu.memory_space<vmem>>, vector<1x32xf32>
    %7 = vector.broadcast %6 : vector<1x32xf32> to vector<32x32xf32>
    %8 = arith.addf %5, %7 : vector<32x32xf32>
    %cst_7 = arith.constant 0.000000e+00 : f32
    %9 = vector.broadcast %cst_7 : f32 to vector<32x32xf32>
    %10 = arith.maximumf %8, %9 : vector<32x32xf32>
    %11 = arith.truncf %10 : vector<32x32xf32> to vector<32x32xbf16>
    %c0_8 = arith.constant 0 : index
    %c0_9 = arith.constant 0 : index
    %12 = vector.load %arg5[%c0_8, %c0_9] : memref<32x32xbf16, #tpu.memory_space<vmem>>, vector<32x32xbf16>
    tpu.vector_store %arg5[%c0_8, %c0_9], %11 {strides = array<i32>} : memref<32x32xbf16, #tpu.memory_space<vmem>>, vector<32x32xbf16>,
    return
  }
  func.func @transform_0(%arg0: i32) -> (i32, i32) {
    %c0_i32 = arith.constant 0 : i32
    %c0_i32_0 = arith.constant 0 : i32
    return %arg0, %c0_i32 : i32, i32
  }
  func.func @transform_1(%arg0: i32) -> (i32, i32) {
    %c0_i32 = arith.constant 0 : i32
    %c0_i32_0 = arith.constant 0 : i32
    %c0_i32_1 = arith.constant 0 : i32
    return %c0_i32, %c0_i32_0 : i32, i32
  }
  func.func @transform_2(%arg0: i32) -> (i32, i32) {
    %c0_i32 = arith.constant 0 : i32
    %c0_i32_0 = arith.constant 0 : i32
    %c0_i32_1 = arith.constant 0 : i32
    return %c0_i32, %c0_i32_0 : i32, i32
  }
  func.func @transform_3(%arg0: i32) -> (i32, i32) {
    %c0_i32 = arith.constant 0 : i32
    %c0_i32_0 = arith.constant 0 : i32
    %c0_i32_1 = arith.constant 0 : i32
    return %c0_i32, %c0_i32_0 : i32, i32
  }
  func.func @transform_4(%arg0: i32) -> (i32, i32) {
    %c0_i32 = arith.constant 0 : i32
    %c0_i32_0 = arith.constant 0 : i32
    return %arg0, %c0_i32 : i32, i32
  }
}

module attributes {stable_mosaic.version = 11 : i64} {
  func.func @_deconv_kernel(%arg0: i32, %arg1: memref<32x32xbf16, #tpu.memory_space<vmem>>, %arg2: memref<32x64xbf16, #tpu.memory_space<vmem>>, %arg3: memref<1x64xf32, #tpu.memory_space<vmem>>, %arg4: memref<32x64xbf16, #tpu.memory_space<vmem>>) attributes {dimension_semantics = [#tpu.dimension_semantics<parallel>], iteration_bounds = array<i64: 1>, scalar_prefetch = 0 : i64, scratch_operands = 0 : i64, tpu.core_type = #tpu.core_type<tc>, window_params = [{transform_indices = @transform_0, window_bounds = array<i64: 32, 32>}, {pipeline_mode = #tpu.pipeline_mode<synchronous>, transform_indices = @transform_1, window_bounds = array<i64: 32, 64>}, {pipeline_mode = #tpu.pipeline_mode<synchronous>, transform_indices = @transform_2, window_bounds = array<i64: 1, 64>}, {transform_indices = @transform_3, window_bounds = array<i64: 32, 64>}]} {
    %c0 = arith.constant 0 : index
    %c0_0 = arith.constant 0 : index
    %0 = vector.load %arg1[%c0, %c0_0] : memref<32x32xbf16, #tpu.memory_space<vmem>>, vector<32x32xbf16>
    %c0_1 = arith.constant 0 : index
    %c0_2 = arith.constant 0 : index
    %1 = vector.load %arg2[%c0_1, %c0_2] : memref<32x64xbf16, #tpu.memory_space<vmem>>, vector<32x64xbf16>
    %cst = arith.constant dense<0.000000e+00> : vector<32x64xf32>
    %2 = tpu.matmul %0, %1, %cst {dimension_numbers = #tpu.dot_dimension_numbers<[1], [0], [0], [1], [0, 0, 1, 1], [], []>} : vector<32x32xbf16>, vector<32x64xbf16>, vector<32x64xf32> -> vector<32x64xf32>
    %c0_3 = arith.constant 0 : index
    %c0_4 = arith.constant 0 : index
    %3 = vector.load %arg3[%c0_3, %c0_4] : memref<1x64xf32, #tpu.memory_space<vmem>>, vector<1x64xf32>
    %4 = vector.broadcast %3 : vector<1x64xf32> to vector<32x64xf32>
    %5 = arith.addf %2, %4 : vector<32x64xf32>
    %6 = arith.truncf %5 : vector<32x64xf32> to vector<32x64xbf16>
    %c0_5 = arith.constant 0 : index
    %c0_6 = arith.constant 0 : index
    %7 = vector.load %arg4[%c0_5, %c0_6] : memref<32x64xbf16, #tpu.memory_space<vmem>>, vector<32x64xbf16>
    tpu.vector_store %arg4[%c0_5, %c0_6], %6 {strides = array<i32>} : memref<32x64xbf16, #tpu.memory_space<vmem>>, vector<32x64xbf16>,
    return
  }
  func.func @transform_0(%arg0: i32) -> (i32, i32) {
    %c0_i32 = arith.constant 0 : i32
    %c0_i32_0 = arith.constant 0 : i32
    return %arg0, %c0_i32 : i32, i32
  }
  func.func @transform_1(%arg0: i32) -> (i32, i32) {
    %c0_i32 = arith.constant 0 : i32
    %c0_i32_0 = arith.constant 0 : i32
    %c0_i32_1 = arith.constant 0 : i32
    return %c0_i32, %c0_i32_0 : i32, i32
  }
  func.func @transform_2(%arg0: i32) -> (i32, i32) {
    %c0_i32 = arith.constant 0 : i32
    %c0_i32_0 = arith.constant 0 : i32
    %c0_i32_1 = arith.constant 0 : i32
    return %c0_i32, %c0_i32_0 : i32, i32
  }
  func.func @transform_3(%arg0: i32) -> (i32, i32) {
    %c0_i32 = arith.constant 0 : i32
    %c0_i32_0 = arith.constant 0 : i32
    return %arg0, %c0_i32 : i32, i32
  }
}

module attributes {stable_mosaic.version = 11 : i64} {
  func.func @_conv_kernel(%arg0: i32, %arg1: memref<128x288xbf16, #tpu.memory_space<vmem>>, %arg2: memref<288x16xbf16, #tpu.memory_space<vmem>>, %arg3: memref<1x16xf32, #tpu.memory_space<vmem>>, %arg4: memref<1x16xf32, #tpu.memory_space<vmem>>, %arg5: memref<128x16xbf16, #tpu.memory_space<vmem>>) attributes {dimension_semantics = [#tpu.dimension_semantics<parallel>], iteration_bounds = array<i64: 1>, scalar_prefetch = 0 : i64, scratch_operands = 0 : i64, tpu.core_type = #tpu.core_type<tc>, window_params = [{transform_indices = @transform_0, window_bounds = array<i64: 128, 288>}, {pipeline_mode = #tpu.pipeline_mode<synchronous>, transform_indices = @transform_1, window_bounds = array<i64: 288, 16>}, {pipeline_mode = #tpu.pipeline_mode<synchronous>, transform_indices = @transform_2, window_bounds = array<i64: 1, 16>}, {pipeline_mode = #tpu.pipeline_mode<synchronous>, transform_indices = @transform_3, window_bounds = array<i64: 1, 16>}, {transform_indices = @transform_4, window_bounds = array<i64: 128, 16>}]} {
    %c0 = arith.constant 0 : index
    %c0_0 = arith.constant 0 : index
    %0 = vector.load %arg1[%c0, %c0_0] : memref<128x288xbf16, #tpu.memory_space<vmem>>, vector<128x288xbf16>
    %c0_1 = arith.constant 0 : index
    %c0_2 = arith.constant 0 : index
    %1 = vector.load %arg2[%c0_1, %c0_2] : memref<288x16xbf16, #tpu.memory_space<vmem>>, vector<288x16xbf16>
    %cst = arith.constant dense<0.000000e+00> : vector<128x16xf32>
    %2 = tpu.matmul %0, %1, %cst {dimension_numbers = #tpu.dot_dimension_numbers<[1], [0], [0], [1], [0, 0, 1, 1], [], []>} : vector<128x288xbf16>, vector<288x16xbf16>, vector<128x16xf32> -> vector<128x16xf32>
    %c0_3 = arith.constant 0 : index
    %c0_4 = arith.constant 0 : index
    %3 = vector.load %arg3[%c0_3, %c0_4] : memref<1x16xf32, #tpu.memory_space<vmem>>, vector<1x16xf32>
    %4 = vector.broadcast %3 : vector<1x16xf32> to vector<128x16xf32>
    %5 = arith.mulf %2, %4 : vector<128x16xf32>
    %c0_5 = arith.constant 0 : index
    %c0_6 = arith.constant 0 : index
    %6 = vector.load %arg4[%c0_5, %c0_6] : memref<1x16xf32, #tpu.memory_space<vmem>>, vector<1x16xf32>
    %7 = vector.broadcast %6 : vector<1x16xf32> to vector<128x16xf32>
    %8 = arith.addf %5, %7 : vector<128x16xf32>
    %cst_7 = arith.constant 0.000000e+00 : f32
    %9 = vector.broadcast %cst_7 : f32 to vector<128x16xf32>
    %10 = arith.maximumf %8, %9 : vector<128x16xf32>
    %11 = arith.truncf %10 : vector<128x16xf32> to vector<128x16xbf16>
    %c0_8 = arith.constant 0 : index
    %c0_9 = arith.constant 0 : index
    %12 = vector.load %arg5[%c0_8, %c0_9] : memref<128x16xbf16, #tpu.memory_space<vmem>>, vector<128x16xbf16>
    tpu.vector_store %arg5[%c0_8, %c0_9], %11 {strides = array<i32>} : memref<128x16xbf16, #tpu.memory_space<vmem>>, vector<128x16xbf16>,
    return
  }
  func.func @transform_0(%arg0: i32) -> (i32, i32) {
    %c0_i32 = arith.constant 0 : i32
    %c0_i32_0 = arith.constant 0 : i32
    return %arg0, %c0_i32 : i32, i32
  }
  func.func @transform_1(%arg0: i32) -> (i32, i32) {
    %c0_i32 = arith.constant 0 : i32
    %c0_i32_0 = arith.constant 0 : i32
    %c0_i32_1 = arith.constant 0 : i32
    return %c0_i32, %c0_i32_0 : i32, i32
  }
  func.func @transform_2(%arg0: i32) -> (i32, i32) {
    %c0_i32 = arith.constant 0 : i32
    %c0_i32_0 = arith.constant 0 : i32
    %c0_i32_1 = arith.constant 0 : i32
    return %c0_i32, %c0_i32_0 : i32, i32
  }
  func.func @transform_3(%arg0: i32) -> (i32, i32) {
    %c0_i32 = arith.constant 0 : i32
    %c0_i32_0 = arith.constant 0 : i32
    %c0_i32_1 = arith.constant 0 : i32
    return %c0_i32, %c0_i32_0 : i32, i32
  }
  func.func @transform_4(%arg0: i32) -> (i32, i32) {
    %c0_i32 = arith.constant 0 : i32
    %c0_i32_0 = arith.constant 0 : i32
    return %arg0, %c0_i32 : i32, i32
  }
}

module attributes {stable_mosaic.version = 11 : i64} {
  func.func @_deconv_kernel(%arg0: i32, %arg1: memref<128x16xbf16, #tpu.memory_space<vmem>>, %arg2: memref<16x32xbf16, #tpu.memory_space<vmem>>, %arg3: memref<1x32xf32, #tpu.memory_space<vmem>>, %arg4: memref<128x32xbf16, #tpu.memory_space<vmem>>) attributes {dimension_semantics = [#tpu.dimension_semantics<parallel>], iteration_bounds = array<i64: 1>, scalar_prefetch = 0 : i64, scratch_operands = 0 : i64, tpu.core_type = #tpu.core_type<tc>, window_params = [{transform_indices = @transform_0, window_bounds = array<i64: 128, 16>}, {pipeline_mode = #tpu.pipeline_mode<synchronous>, transform_indices = @transform_1, window_bounds = array<i64: 16, 32>}, {pipeline_mode = #tpu.pipeline_mode<synchronous>, transform_indices = @transform_2, window_bounds = array<i64: 1, 32>}, {transform_indices = @transform_3, window_bounds = array<i64: 128, 32>}]} {
    %c0 = arith.constant 0 : index
    %c0_0 = arith.constant 0 : index
    %0 = vector.load %arg1[%c0, %c0_0] : memref<128x16xbf16, #tpu.memory_space<vmem>>, vector<128x16xbf16>
    %c0_1 = arith.constant 0 : index
    %c0_2 = arith.constant 0 : index
    %1 = vector.load %arg2[%c0_1, %c0_2] : memref<16x32xbf16, #tpu.memory_space<vmem>>, vector<16x32xbf16>
    %cst = arith.constant dense<0.000000e+00> : vector<128x32xf32>
    %2 = tpu.matmul %0, %1, %cst {dimension_numbers = #tpu.dot_dimension_numbers<[1], [0], [0], [1], [0, 0, 1, 1], [], []>} : vector<128x16xbf16>, vector<16x32xbf16>, vector<128x32xf32> -> vector<128x32xf32>
    %c0_3 = arith.constant 0 : index
    %c0_4 = arith.constant 0 : index
    %3 = vector.load %arg3[%c0_3, %c0_4] : memref<1x32xf32, #tpu.memory_space<vmem>>, vector<1x32xf32>
    %4 = vector.broadcast %3 : vector<1x32xf32> to vector<128x32xf32>
    %5 = arith.addf %2, %4 : vector<128x32xf32>
    %6 = arith.truncf %5 : vector<128x32xf32> to vector<128x32xbf16>
    %c0_5 = arith.constant 0 : index
    %c0_6 = arith.constant 0 : index
    %7 = vector.load %arg4[%c0_5, %c0_6] : memref<128x32xbf16, #tpu.memory_space<vmem>>, vector<128x32xbf16>
    tpu.vector_store %arg4[%c0_5, %c0_6], %6 {strides = array<i32>} : memref<128x32xbf16, #tpu.memory_space<vmem>>, vector<128x32xbf16>,
    return
  }
  func.func @transform_0(%arg0: i32) -> (i32, i32) {
    %c0_i32 = arith.constant 0 : i32
    %c0_i32_0 = arith.constant 0 : i32
    return %arg0, %c0_i32 : i32, i32
  }
  func.func @transform_1(%arg0: i32) -> (i32, i32) {
    %c0_i32 = arith.constant 0 : i32
    %c0_i32_0 = arith.constant 0 : i32
    %c0_i32_1 = arith.constant 0 : i32
    return %c0_i32, %c0_i32_0 : i32, i32
  }
  func.func @transform_2(%arg0: i32) -> (i32, i32) {
    %c0_i32 = arith.constant 0 : i32
    %c0_i32_0 = arith.constant 0 : i32
    %c0_i32_1 = arith.constant 0 : i32
    return %c0_i32, %c0_i32_0 : i32, i32
  }
  func.func @transform_3(%arg0: i32) -> (i32, i32) {
    %c0_i32 = arith.constant 0 : i32
    %c0_i32_0 = arith.constant 0 : i32
    return %arg0, %c0_i32 : i32, i32
  }
}

module attributes {stable_mosaic.version = 11 : i64} {
  func.func @_conv_kernel(%arg0: i32, %arg1: memref<512x144xbf16, #tpu.memory_space<vmem>>, %arg2: memref<144x8xbf16, #tpu.memory_space<vmem>>, %arg3: memref<1x8xf32, #tpu.memory_space<vmem>>, %arg4: memref<1x8xf32, #tpu.memory_space<vmem>>, %arg5: memref<512x8xbf16, #tpu.memory_space<vmem>>) attributes {dimension_semantics = [#tpu.dimension_semantics<parallel>], iteration_bounds = array<i64: 1>, scalar_prefetch = 0 : i64, scratch_operands = 0 : i64, tpu.core_type = #tpu.core_type<tc>, window_params = [{transform_indices = @transform_0, window_bounds = array<i64: 512, 144>}, {pipeline_mode = #tpu.pipeline_mode<synchronous>, transform_indices = @transform_1, window_bounds = array<i64: 144, 8>}, {pipeline_mode = #tpu.pipeline_mode<synchronous>, transform_indices = @transform_2, window_bounds = array<i64: 1, 8>}, {pipeline_mode = #tpu.pipeline_mode<synchronous>, transform_indices = @transform_3, window_bounds = array<i64: 1, 8>}, {transform_indices = @transform_4, window_bounds = array<i64: 512, 8>}]} {
    %c0 = arith.constant 0 : index
    %c0_0 = arith.constant 0 : index
    %0 = vector.load %arg1[%c0, %c0_0] : memref<512x144xbf16, #tpu.memory_space<vmem>>, vector<512x144xbf16>
    %c0_1 = arith.constant 0 : index
    %c0_2 = arith.constant 0 : index
    %1 = vector.load %arg2[%c0_1, %c0_2] : memref<144x8xbf16, #tpu.memory_space<vmem>>, vector<144x8xbf16>
    %cst = arith.constant dense<0.000000e+00> : vector<512x8xf32>
    %2 = tpu.matmul %0, %1, %cst {dimension_numbers = #tpu.dot_dimension_numbers<[1], [0], [0], [1], [0, 0, 1, 1], [], []>} : vector<512x144xbf16>, vector<144x8xbf16>, vector<512x8xf32> -> vector<512x8xf32>
    %c0_3 = arith.constant 0 : index
    %c0_4 = arith.constant 0 : index
    %3 = vector.load %arg3[%c0_3, %c0_4] : memref<1x8xf32, #tpu.memory_space<vmem>>, vector<1x8xf32>
    %4 = vector.broadcast %3 : vector<1x8xf32> to vector<512x8xf32>
    %5 = arith.mulf %2, %4 : vector<512x8xf32>
    %c0_5 = arith.constant 0 : index
    %c0_6 = arith.constant 0 : index
    %6 = vector.load %arg4[%c0_5, %c0_6] : memref<1x8xf32, #tpu.memory_space<vmem>>, vector<1x8xf32>
    %7 = vector.broadcast %6 : vector<1x8xf32> to vector<512x8xf32>
    %8 = arith.addf %5, %7 : vector<512x8xf32>
    %cst_7 = arith.constant 0.000000e+00 : f32
    %9 = vector.broadcast %cst_7 : f32 to vector<512x8xf32>
    %10 = arith.maximumf %8, %9 : vector<512x8xf32>
    %11 = arith.truncf %10 : vector<512x8xf32> to vector<512x8xbf16>
    %c0_8 = arith.constant 0 : index
    %c0_9 = arith.constant 0 : index
    %12 = vector.load %arg5[%c0_8, %c0_9] : memref<512x8xbf16, #tpu.memory_space<vmem>>, vector<512x8xbf16>
    tpu.vector_store %arg5[%c0_8, %c0_9], %11 {strides = array<i32>} : memref<512x8xbf16, #tpu.memory_space<vmem>>, vector<512x8xbf16>,
    return
  }
  func.func @transform_0(%arg0: i32) -> (i32, i32) {
    %c0_i32 = arith.constant 0 : i32
    %c0_i32_0 = arith.constant 0 : i32
    return %arg0, %c0_i32 : i32, i32
  }
  func.func @transform_1(%arg0: i32) -> (i32, i32) {
    %c0_i32 = arith.constant 0 : i32
    %c0_i32_0 = arith.constant 0 : i32
    %c0_i32_1 = arith.constant 0 : i32
    return %c0_i32, %c0_i32_0 : i32, i32
  }
  func.func @transform_2(%arg0: i32) -> (i32, i32) {
    %c0_i32 = arith.constant 0 : i32
    %c0_i32_0 = arith.constant 0 : i32
    %c0_i32_1 = arith.constant 0 : i32
    return %c0_i32, %c0_i32_0 : i32, i32
  }
  func.func @transform_3(%arg0: i32) -> (i32, i32) {
    %c0_i32 = arith.constant 0 : i32
    %c0_i32_0 = arith.constant 0 : i32
    %c0_i32_1 = arith.constant 0 : i32
    return %c0_i32, %c0_i32_0 : i32, i32
  }
  func.func @transform_4(%arg0: i32) -> (i32, i32) {
    %c0_i32 = arith.constant 0 : i32
    %c0_i32_0 = arith.constant 0 : i32
    return %arg0, %c0_i32 : i32, i32
  }
}

module attributes {stable_mosaic.version = 11 : i64} {
  func.func @_conv_kernel(%arg0: i32, %arg1: memref<512x8xbf16, #tpu.memory_space<vmem>>, %arg2: memref<8x2xbf16, #tpu.memory_space<vmem>>, %arg3: memref<1x2xf32, #tpu.memory_space<vmem>>, %arg4: memref<1x2xf32, #tpu.memory_space<vmem>>, %arg5: memref<512x2xf32, #tpu.memory_space<vmem>>) attributes {dimension_semantics = [#tpu.dimension_semantics<parallel>], iteration_bounds = array<i64: 1>, scalar_prefetch = 0 : i64, scratch_operands = 0 : i64, tpu.core_type = #tpu.core_type<tc>, window_params = [{transform_indices = @transform_0, window_bounds = array<i64: 512, 8>}, {pipeline_mode = #tpu.pipeline_mode<synchronous>, transform_indices = @transform_1, window_bounds = array<i64: 8, 2>}, {pipeline_mode = #tpu.pipeline_mode<synchronous>, transform_indices = @transform_2, window_bounds = array<i64: 1, 2>}, {pipeline_mode = #tpu.pipeline_mode<synchronous>, transform_indices = @transform_3, window_bounds = array<i64: 1, 2>}, {transform_indices = @transform_4, window_bounds = array<i64: 512, 2>}]} {
    %c0 = arith.constant 0 : index
    %c0_0 = arith.constant 0 : index
    %0 = vector.load %arg1[%c0, %c0_0] : memref<512x8xbf16, #tpu.memory_space<vmem>>, vector<512x8xbf16>
    %c0_1 = arith.constant 0 : index
    %c0_2 = arith.constant 0 : index
    %1 = vector.load %arg2[%c0_1, %c0_2] : memref<8x2xbf16, #tpu.memory_space<vmem>>, vector<8x2xbf16>
    %cst = arith.constant dense<0.000000e+00> : vector<512x2xf32>
    %2 = tpu.matmul %0, %1, %cst {dimension_numbers = #tpu.dot_dimension_numbers<[1], [0], [0], [1], [0, 0, 1, 1], [], []>} : vector<512x8xbf16>, vector<8x2xbf16>, vector<512x2xf32> -> vector<512x2xf32>
    %c0_3 = arith.constant 0 : index
    %c0_4 = arith.constant 0 : index
    %3 = vector.load %arg3[%c0_3, %c0_4] : memref<1x2xf32, #tpu.memory_space<vmem>>, vector<1x2xf32>
    %4 = vector.broadcast %3 : vector<1x2xf32> to vector<512x2xf32>
    %5 = arith.mulf %2, %4 : vector<512x2xf32>
    %c0_5 = arith.constant 0 : index
    %c0_6 = arith.constant 0 : index
    %6 = vector.load %arg4[%c0_5, %c0_6] : memref<1x2xf32, #tpu.memory_space<vmem>>, vector<1x2xf32>
    %7 = vector.broadcast %6 : vector<1x2xf32> to vector<512x2xf32>
    %8 = arith.addf %5, %7 : vector<512x2xf32>
    %c0_7 = arith.constant 0 : index
    %c0_8 = arith.constant 0 : index
    %9 = vector.load %arg5[%c0_7, %c0_8] : memref<512x2xf32, #tpu.memory_space<vmem>>, vector<512x2xf32>
    tpu.vector_store %arg5[%c0_7, %c0_8], %8 {strides = array<i32>} : memref<512x2xf32, #tpu.memory_space<vmem>>, vector<512x2xf32>,
    return
  }
  func.func @transform_0(%arg0: i32) -> (i32, i32) {
    %c0_i32 = arith.constant 0 : i32
    %c0_i32_0 = arith.constant 0 : i32
    return %arg0, %c0_i32 : i32, i32
  }
  func.func @transform_1(%arg0: i32) -> (i32, i32) {
    %c0_i32 = arith.constant 0 : i32
    %c0_i32_0 = arith.constant 0 : i32
    %c0_i32_1 = arith.constant 0 : i32
    return %c0_i32, %c0_i32_0 : i32, i32
  }
  func.func @transform_2(%arg0: i32) -> (i32, i32) {
    %c0_i32 = arith.constant 0 : i32
    %c0_i32_0 = arith.constant 0 : i32
    %c0_i32_1 = arith.constant 0 : i32
    return %c0_i32, %c0_i32_0 : i32, i32
  }
  func.func @transform_3(%arg0: i32) -> (i32, i32) {
    %c0_i32 = arith.constant 0 : i32
    %c0_i32_0 = arith.constant 0 : i32
    %c0_i32_1 = arith.constant 0 : i32
    return %c0_i32, %c0_i32_0 : i32, i32
  }
  func.func @transform_4(%arg0: i32) -> (i32, i32) {
    %c0_i32 = arith.constant 0 : i32
    %c0_i32_0 = arith.constant 0 : i32
    return %arg0, %c0_i32 : i32, i32
  }
}

</mosaic_0001>

<bundles_post_ra>
// kernel: truenet_forward.22
= control target key start
LH: loop header
LB: loop body
LE: loop exit
PB: predicated region body
PF: predicated region fallthrough
CT: control target
= control target key end

     0   :  { %vm340_vm0 = vcmask 1040384   ;;  %vm243_vm1 = vcmask 15360   ;;  %vm1031_vm2 = vcmask 19456   ;;  %s1979_s1 = inlined_call_operand.vmem [shape: bf16[2,3], index: 1, kind: input, shape index: {}]   ;;  %s1980_s0 = inlined_call_operand.vmem [shape: bf16[512,2], index: 0, kind: input, shape index: {}]   ;;  %s1981_s2 = inlined_call_operand.vmem [shape: f32[1,3], index: 2, kind: input, shape index: {}]   ;;  %s1982_s3 = inlined_call_operand.vmem [shape: f32[1,3], index: 3, kind: input, shape index: {}]   ;;  %s1983_s4 = inlined_call_operand.vmem [shape: bf16[512,3], index: 4, kind: output, shape index: {}]  }
   0x1   :  { %v82_v0 = vld [vmem:[%s1979_s1] sm:$0x1]  ;;  %v1399_v4 = vld [vmem:[%s1980_s0 + $0x8] sm:$0xff]   ;;  %v1401_v6 = vld [vmem:[%s1980_s0 + $0x10] sm:$0xff]  }
   0x2   :  { %1395 = vmatprep.subr.msk.bf16.mxu0 %vm340_vm0, %v82_v0  ;;  %1396 = vmatprep.subr.msk.bf16.mxu1 %vm340_vm0, %v82_v0  ;;  %v342_v1 = vsel %vm340_vm0, %v82_v0, 0  ;;  %v1397_v2 = vld [vmem:[%s1980_s0] sm:$0xff]   ;;  %v1400_v5 = vld [vmem:[%s1980_s0 + $0x88] sm:$0xff]   ;;  %v1402_v7 = vld [vmem:[%s1980_s0 + $0x90] sm:$0xff]  }
   0x3   :  { %1328 = vmatpush3.bf16.msra.mxu0 %v342_v1  ;;  %1394 = vmatpush3.bf16.msra.mxu1 %v342_v1  ;;  %v1398_v3 = vld [vmem:[%s1980_s0 + $0x80] sm:$0xff]   ;;  %v1403_v8 = vld [vmem:[%s1980_s0 + $0x18] sm:$0xff]   ;;  %v1407_v12 = vld [vmem:[%s1980_s0 + $0x28] sm:$0xff]  }
   0x4   :  { %1329 = vmatprep.mubr.msk.bf16.mxu0 %vm243_vm1, %v1397_v2  ;;  %1361 = vmatprep.mubr.msk.bf16.mxu1 %vm243_vm1, %v1398_v3  ;;  %v1404_v9 = vld [vmem:[%s1980_s0 + $0x98] sm:$0xff]   ;;  %v1405_v10 = vld [vmem:[%s1980_s0 + $0x20] sm:$0xff]   ;;  %v1408_v13 = vld [vmem:[%s1980_s0 + $0xa8] sm:$0xff]  }
   0x5   :  { %v1406_v11 = vld [vmem:[%s1980_s0 + $0xa0] sm:$0xff]   ;;  %v1409_v14 = vld [vmem:[%s1980_s0 + $0x30] sm:$0xff]   ;;  %v1411_v16 = vld [vmem:[%s1980_s0 + $0x38] sm:$0xff]  }
   0x6   :  { %1330 = vmatmul.mubr.msk.bf16.vlgmr.msra.gmra.mrb[0].mxu0 %vm243_vm1, %v1399_v4  ;;  %1362 = vmatmul.mubr.msk.bf16.vlgmr.msra.gmra.mrb[0].mxu1 %vm243_vm1, %v1400_v5  ;;  %v1410_v15 = vld [vmem:[%s1980_s0 + $0xb0] sm:$0xff]   ;;  %v1412_v17 = vld [vmem:[%s1980_s0 + $0xb8] sm:$0xff]   ;;  %v1413_v18 = vld [vmem:[%s1980_s0 + $0x40] sm:$0xff]  }
   0x7   :  { %1333 = vmatprep.mubr.msk.bf16.mxu0 %vm243_vm1, %v1401_v6  ;;  %1365 = vmatprep.mubr.msk.bf16.mxu1 %vm243_vm1, %v1402_v7  ;;  %v1414_v19 = vld [vmem:[%s1980_s0 + $0xc0] sm:$0xff]   ;;  %v1415_v20 = vld [vmem:[%s1980_s0 + $0x48] sm:$0xff]   ;;  %v1417_v22 = vld [vmem:[%s1980_s0 + $0x50] sm:$0xff]  }
   0x8   :  { %v1416_v21 = vld [vmem:[%s1980_s0 + $0xc8] sm:$0xff]   ;;  %v1418_v23 = vld [vmem:[%s1980_s0 + $0xd0] sm:$0xff]   ;;  %v1419_v24 = vld [vmem:[%s1980_s0 + $0x58] sm:$0xff]  }
   0x9   :  { %v1420_v25 = vld [vmem:[%s1980_s0 + $0xd8] sm:$0xff]   ;;  %v1421_v26 = vld [vmem:[%s1980_s0 + $0x60] sm:$0xff]   ;;  %v1423_v28 = vld [vmem:[%s1980_s0 + $0x68] sm:$0xff]  }
   0xa   :  { %v1422_v27 = vld [vmem:[%s1980_s0 + $0xe0] sm:$0xff]   ;;  %v1424_v29 = vld [vmem:[%s1980_s0 + $0xe8] sm:$0xff]   ;;  %v1425_v30 = vld [vmem:[%s1980_s0 + $0x70] sm:$0xff]  }
   0xb   :  { %v1426_v31 = vld [vmem:[%s1980_s0 + $0xf0] sm:$0xff]   ;;  %v1427_v32 = vld [vmem:[%s1980_s0 + $0x78] sm:$0xff]   ;;  %v1588_v34 = vld [vmem:[%s1981_s2] ss:$0 sm:$0xff] }
   0xc   :  { %v1428_v33 = vld [vmem:[%s1980_s0 + $0xf8] sm:$0xff]   ;;  %v1593_v36 = vld [vmem:[%s1982_s3] ss:$0 sm:$0xff] }
   0xe   :  { %1334 = vmatmul.mubr.msk.bf16.gmra.mrb[4].mxu0 %vm243_vm1, %v1403_v8  ;;  %1366 = vmatmul.mubr.msk.bf16.gmra.mrb[4].mxu1 %vm243_vm1, %v1404_v9 }
   0xf   :  { %1337 = vmatprep.mubr.msk.bf16.mxu0 %vm243_vm1, %v1405_v10  ;;  %1369 = vmatprep.mubr.msk.bf16.mxu1 %vm243_vm1, %v1406_v11 }
  0x16   :  { %1338 = vmatmul.mubr.msk.bf16.gmra.mrb[8].mxu0 %vm243_vm1, %v1407_v12  ;;  %1370 = vmatmul.mubr.msk.bf16.gmra.mrb[8].mxu1 %vm243_vm1, %v1408_v13 }
  0x17   :  { %1341 = vmatprep.mubr.msk.bf16.mxu0 %vm243_vm1, %v1409_v14  ;;  %1373 = vmatprep.mubr.msk.bf16.mxu1 %vm243_vm1, %v1410_v15 }
  0x1e   :  { %1342 = vmatmul.mubr.msk.bf16.gmra.mrb[12].mxu0 %vm243_vm1, %v1411_v16  ;;  %1374 = vmatmul.mubr.msk.bf16.gmra.mrb[12].mxu1 %vm243_vm1, %v1412_v17 }
  0x1f   :  { %1345 = vmatprep.mubr.msk.bf16.mxu0 %vm243_vm1, %v1413_v18  ;;  %1377 = vmatprep.mubr.msk.bf16.mxu1 %vm243_vm1, %v1414_v19 }
  0x26   :  { %1346 = vmatmul.mubr.msk.bf16.gmra.mrb[16].mxu0 %vm243_vm1, %v1415_v20  ;;  %1378 = vmatmul.mubr.msk.bf16.gmra.mrb[16].mxu1 %vm243_vm1, %v1416_v21 }
  0x27   :  { %1349 = vmatprep.mubr.msk.bf16.mxu0 %vm243_vm1, %v1417_v22  ;;  %1381 = vmatprep.mubr.msk.bf16.mxu1 %vm243_vm1, %v1418_v23 }
  0x2e   :  { %1350 = vmatmul.mubr.msk.bf16.gmra.mrb[20].mxu0 %vm243_vm1, %v1419_v24  ;;  %1382 = vmatmul.mubr.msk.bf16.gmra.mrb[20].mxu1 %vm243_vm1, %v1420_v25 }
  0x2f   :  { %1353 = vmatprep.mubr.msk.bf16.mxu0 %vm243_vm1, %v1421_v26  ;;  %1385 = vmatprep.mubr.msk.bf16.mxu1 %vm243_vm1, %v1422_v27 }
  0x36   :  { %1354 = vmatmul.mubr.msk.bf16.gmra.mrb[24].mxu0 %vm243_vm1, %v1423_v28  ;;  %1386 = vmatmul.mubr.msk.bf16.gmra.mrb[24].mxu1 %vm243_vm1, %v1424_v29 }
  0x37   :  { %1357 = vmatprep.mubr.msk.bf16.mxu0 %vm243_vm1, %v1425_v30  ;;  %1389 = vmatprep.mubr.msk.bf16.mxu1 %vm243_vm1, %v1426_v31 }
  0x3e   :  { %1358 = vmatmul.mubr.msk.bf16.gmra.mrb[28].mxu0 %vm243_vm1, %v1427_v32  ;;  %1390 = vmatmul.mubr.msk.bf16.gmra.mrb[28].mxu1 %vm243_vm1, %v1428_v33 }
  0xd9   :  { %v1331_v35 = vpop.f32.mrb[0].mxu0  ;;  %v1363_v38 = vpop.f32.mrb[0].mxu1 }
  0xda   :  { %v642_v37 = vmul.f32 %v1331_v35, %v1588_v34  ;;  %v378_v39 = vpop.f32.mrb[1].mxu0  ;;  %v674_v40 = vmul.f32 %v1363_v38, %v1588_v34  ;;  %v506_v42 = vpop.f32.mrb[1].mxu1 }
  0xdb   :  { %v640_v41 = vmul.f32 %v1588_v34, %v378_v39  ;;  %v1332_v43 = vpop.f32.mrb[2].mxu0  ;;  %v672_v45 = vmul.f32 %v1588_v34, %v506_v42  ;;  %v1364_v47 = vpop.f32.mrb[2].mxu1 }
  0xdc   :  { %v713_v44 = vadd.f32 %v1593_v36, %v642_v37  ;;  %v643_v46 = vmul.f32 %v1332_v43, %v1588_v34  ;;  %v381_v48 = vpop.f32.mrb[3].mxu0  ;;  %v745_v49 = vadd.f32 %v1593_v36, %v674_v40  ;;  %v675_v51 = vmul.f32 %v1364_v47, %v1588_v34  ;;  %v509_v53 = vpop.f32.mrb[3].mxu1 }
  0xdd   :  { %v711_v50 = vadd.f32 %v1593_v36, %v640_v41  ;;  %v641_v52 = vmul.f32 %v1588_v34, %v381_v48  ;;  %v743_v55 = vadd.f32 %v1593_v36, %v672_v45  ;;  %v673_v57 = vmul.f32 %v1588_v34, %v509_v53 }
  0xde   :  { %v1232_v54 = vpack.c.bf16 %v713_v44, %v713_v44  ;;  %v714_v56 = vadd.f32 %v1593_v36, %v643_v46  ;;  %v1264_v58 = vpack.c.bf16 %v745_v49, %v745_v49  ;;  %v746_v60 = vadd.f32 %v1593_v36, %v675_v51 }
  0xdf   :  { %v1230_v59 = vpack.c.bf16 %v711_v50, %v711_v50  ;;  %v712_v61 = vadd.f32 %v1593_v36, %v641_v52  ;;  %v1262_v62 = vpack.c.bf16 %v743_v55, %v743_v55  ;;  %v744_v0 = vadd.f32 %v1593_v36, %v673_v57 }
  0xe0   :  { %1034 = vst.msk [vmem:[%s1983_s4 + $0x8] sm:$0xf] %vm1031_vm2, %v1232_v54  ;;  %v1233_v63 = vpack.c.bf16 %v714_v56, %v714_v56  ;;  %1066 = vst.msk [vmem:[%s1983_s4 + $0x88] sm:$0xf] %vm1031_vm2, %v1264_v58  ;;  %v1265_v1 = vpack.c.bf16 %v746_v60, %v746_v60 }
  0xe1   :  { %1032 = vst.msk [vmem:[%s1983_s4] sm:$0xf] %vm1031_vm2, %v1230_v59  ;;  %v1231_v2 = vpack.c.bf16 %v712_v61, %v712_v61  ;;  %v1335_v3 = vpop.f32.mrb[4].mxu0  ;;  %1064 = vst.msk [vmem:[%s1983_s4 + $0x80] sm:$0xf] %vm1031_vm2, %v1262_v62  ;;  %v1263_v4 = vpack.c.bf16 %v744_v0, %v744_v0  ;;  %v1367_v6 = vpop.f32.mrb[4].mxu1 }
  0xe2   :  { %1035 = vst.msk [vmem:[%s1983_s4 + $0xc] sm:$0xf] %vm1031_vm2, %v1233_v63  ;;  %v646_v5 = vmul.f32 %v1335_v3, %v1588_v34  ;;  %v394_v7 = vpop.f32.mrb[5].mxu0  ;;  %1067 = vst.msk [vmem:[%s1983_s4 + $0x8c] sm:$0xf] %vm1031_vm2, %v1265_v1  ;;  %v678_v8 = vmul.f32 %v1367_v6, %v1588_v34  ;;  %v522_v10 = vpop.f32.mrb[5].mxu1 }
  0xe3   :  { %1033 = vst.msk [vmem:[%s1983_s4 + $0x4] sm:$0xf] %vm1031_vm2, %v1231_v2  ;;  %v644_v9 = vmul.f32 %v1588_v34, %v394_v7  ;;  %v1336_v11 = vpop.f32.mrb[6].mxu0  ;;  %1065 = vst.msk [vmem:[%s1983_s4 + $0x84] sm:$0xf] %vm1031_vm2, %v1263_v4  ;;  %v676_v13 = vmul.f32 %v1588_v34, %v522_v10  ;;  %v1368_v15 = vpop.f32.mrb[6].mxu1 }
  0xe4   :  { %v717_v12 = vadd.f32 %v1593_v36, %v646_v5  ;;  %v647_v14 = vmul.f32 %v1336_v11, %v1588_v34  ;;  %v397_v16 = vpop.f32.mrb[7].mxu0  ;;  %v749_v17 = vadd.f32 %v1593_v36, %v678_v8  ;;  %v679_v19 = vmul.f32 %v1368_v15, %v1588_v34  ;;  %v525_v21 = vpop.f32.mrb[7].mxu1 }
  0xe5   :  { %v715_v18 = vadd.f32 %v1593_v36, %v644_v9  ;;  %v645_v20 = vmul.f32 %v1588_v34, %v397_v16  ;;  %v747_v23 = vadd.f32 %v1593_v36, %v676_v13  ;;  %v677_v25 = vmul.f32 %v1588_v34, %v525_v21 }
  0xe6   :  { %v1236_v22 = vpack.c.bf16 %v717_v12, %v717_v12  ;;  %v718_v24 = vadd.f32 %v1593_v36, %v647_v14  ;;  %v1268_v26 = vpack.c.bf16 %v749_v17, %v749_v17  ;;  %v750_v28 = vadd.f32 %v1593_v36, %v679_v19 }
  0xe7   :  { %v1234_v27 = vpack.c.bf16 %v715_v18, %v715_v18  ;;  %v716_v29 = vadd.f32 %v1593_v36, %v645_v20  ;;  %v1266_v30 = vpack.c.bf16 %v747_v23, %v747_v23  ;;  %v748_v32 = vadd.f32 %v1593_v36, %v677_v25 }
  0xe8   :  { %1038 = vst.msk [vmem:[%s1983_s4 + $0x18] sm:$0xf] %vm1031_vm2, %v1236_v22  ;;  %v1237_v31 = vpack.c.bf16 %v718_v24, %v718_v24  ;;  %1070 = vst.msk [vmem:[%s1983_s4 + $0x98] sm:$0xf] %vm1031_vm2, %v1268_v26  ;;  %v1269_v33 = vpack.c.bf16 %v750_v28, %v750_v28 }
  0xe9   :  { %1036 = vst.msk [vmem:[%s1983_s4 + $0x10] sm:$0xf] %vm1031_vm2, %v1234_v27  ;;  %v1235_v35 = vpack.c.bf16 %v716_v29, %v716_v29  ;;  %v1339_v37 = vpop.f32.mrb[8].mxu0  ;;  %1068 = vst.msk [vmem:[%s1983_s4 + $0x90] sm:$0xf] %vm1031_vm2, %v1266_v30  ;;  %v1267_v38 = vpack.c.bf16 %v748_v32, %v748_v32  ;;  %v1371_v40 = vpop.f32.mrb[8].mxu1 }
  0xea   :  { %1039 = vst.msk [vmem:[%s1983_s4 + $0x1c] sm:$0xf] %vm1031_vm2, %v1237_v31  ;;  %v650_v39 = vmul.f32 %v1339_v37, %v1588_v34  ;;  %v410_v41 = vpop.f32.mrb[9].mxu0  ;;  %1071 = vst.msk [vmem:[%s1983_s4 + $0x9c] sm:$0xf] %vm1031_vm2, %v1269_v33  ;;  %v682_v42 = vmul.f32 %v1371_v40, %v1588_v34  ;;  %v538_v44 = vpop.f32.mrb[9].mxu1 }
  0xeb   :  { %1037 = vst.msk [vmem:[%s1983_s4 + $0x14] sm:$0xf] %vm1031_vm2, %v1235_v35  ;;  %v648_v43 = vmul.f32 %v1588_v34, %v410_v41  ;;  %v1340_v45 = vpop.f32.mrb[10].mxu0  ;;  %1069 = vst.msk [vmem:[%s1983_s4 + $0x94] sm:$0xf] %vm1031_vm2, %v1267_v38  ;;  %v680_v47 = vmul.f32 %v1588_v34, %v538_v44  ;;  %v1372_v49 = vpop.f32.mrb[10].mxu1 }
  0xec   :  { %v721_v46 = vadd.f32 %v1593_v36, %v650_v39  ;;  %v651_v48 = vmul.f32 %v1340_v45, %v1588_v34  ;;  %v413_v50 = vpop.f32.mrb[11].mxu0  ;;  %v753_v51 = vadd.f32 %v1593_v36, %v682_v42  ;;  %v683_v53 = vmul.f32 %v1372_v49, %v1588_v34  ;;  %v541_v55 = vpop.f32.mrb[11].mxu1 }
  0xed   :  { %v719_v52 = vadd.f32 %v1593_v36, %v648_v43  ;;  %v649_v54 = vmul.f32 %v1588_v34, %v413_v50  ;;  %v751_v57 = vadd.f32 %v1593_v36, %v680_v47  ;;  %v681_v59 = vmul.f32 %v1588_v34, %v541_v55 }
  0xee   :  { %v1240_v56 = vpack.c.bf16 %v721_v46, %v721_v46  ;;  %v722_v58 = vadd.f32 %v1593_v36, %v651_v48  ;;  %v1272_v60 = vpack.c.bf16 %v753_v51, %v753_v51  ;;  %v754_v62 = vadd.f32 %v1593_v36, %v683_v53 }
  0xef   :  { %v1238_v61 = vpack.c.bf16 %v719_v52, %v719_v52  ;;  %v720_v63 = vadd.f32 %v1593_v36, %v649_v54  ;;  %v1270_v0 = vpack.c.bf16 %v751_v57, %v751_v57  ;;  %v752_v2 = vadd.f32 %v1593_v36, %v681_v59 }
  0xf0   :  { %1042 = vst.msk [vmem:[%s1983_s4 + $0x28] sm:$0xf] %vm1031_vm2, %v1240_v56  ;;  %v1241_v1 = vpack.c.bf16 %v722_v58, %v722_v58  ;;  %1074 = vst.msk [vmem:[%s1983_s4 + $0xa8] sm:$0xf] %vm1031_vm2, %v1272_v60  ;;  %v1273_v3 = vpack.c.bf16 %v754_v62, %v754_v62 }
  0xf1   :  { %1040 = vst.msk [vmem:[%s1983_s4 + $0x20] sm:$0xf] %vm1031_vm2, %v1238_v61  ;;  %v1239_v4 = vpack.c.bf16 %v720_v63, %v720_v63  ;;  %v1343_v5 = vpop.f32.mrb[12].mxu0  ;;  %1072 = vst.msk [vmem:[%s1983_s4 + $0xa0] sm:$0xf] %vm1031_vm2, %v1270_v0  ;;  %v1271_v6 = vpack.c.bf16 %v752_v2, %v752_v2  ;;  %v1375_v8 = vpop.f32.mrb[12].mxu1 }
  0xf2   :  { %1043 = vst.msk [vmem:[%s1983_s4 + $0x2c] sm:$0xf] %vm1031_vm2, %v1241_v1  ;;  %v654_v7 = vmul.f32 %v1343_v5, %v1588_v34  ;;  %v426_v9 = vpop.f32.mrb[13].mxu0  ;;  %1075 = vst.msk [vmem:[%s1983_s4 + $0xac] sm:$0xf] %vm1031_vm2, %v1273_v3  ;;  %v686_v10 = vmul.f32 %v1375_v8, %v1588_v34  ;;  %v554_v12 = vpop.f32.mrb[13].mxu1 }
  0xf3   :  { %1041 = vst.msk [vmem:[%s1983_s4 + $0x24] sm:$0xf] %vm1031_vm2, %v1239_v4  ;;  %v652_v11 = vmul.f32 %v1588_v34, %v426_v9  ;;  %v1344_v13 = vpop.f32.mrb[14].mxu0  ;;  %1073 = vst.msk [vmem:[%s1983_s4 + $0xa4] sm:$0xf] %vm1031_vm2, %v1271_v6  ;;  %v684_v15 = vmul.f32 %v1588_v34, %v554_v12  ;;  %v1376_v17 = vpop.f32.mrb[14].mxu1 }
  0xf4   :  { %v725_v14 = vadd.f32 %v1593_v36, %v654_v7  ;;  %v655_v16 = vmul.f32 %v1344_v13, %v1588_v34  ;;  %v429_v18 = vpop.f32.mrb[15].mxu0  ;;  %v757_v19 = vadd.f32 %v1593_v36, %v686_v10  ;;  %v687_v21 = vmul.f32 %v1376_v17, %v1588_v34  ;;  %v557_v23 = vpop.f32.mrb[15].mxu1 }
  0xf5   :  { %v723_v20 = vadd.f32 %v1593_v36, %v652_v11  ;;  %v653_v22 = vmul.f32 %v1588_v34, %v429_v18  ;;  %v755_v25 = vadd.f32 %v1593_v36, %v684_v15  ;;  %v685_v27 = vmul.f32 %v1588_v34, %v557_v23 }
  0xf6   :  { %v1244_v24 = vpack.c.bf16 %v725_v14, %v725_v14  ;;  %v726_v26 = vadd.f32 %v1593_v36, %v655_v16  ;;  %v1276_v28 = vpack.c.bf16 %v757_v19, %v757_v19  ;;  %v758_v30 = vadd.f32 %v1593_v36, %v687_v21 }
  0xf7   :  { %v1242_v29 = vpack.c.bf16 %v723_v20, %v723_v20  ;;  %v724_v31 = vadd.f32 %v1593_v36, %v653_v22  ;;  %v1274_v32 = vpack.c.bf16 %v755_v25, %v755_v25  ;;  %v756_v35 = vadd.f32 %v1593_v36, %v685_v27 }
  0xf8   :  { %1046 = vst.msk [vmem:[%s1983_s4 + $0x38] sm:$0xf] %vm1031_vm2, %v1244_v24  ;;  %v1245_v33 = vpack.c.bf16 %v726_v26, %v726_v26  ;;  %1078 = vst.msk [vmem:[%s1983_s4 + $0xb8] sm:$0xf] %vm1031_vm2, %v1276_v28  ;;  %v1277_v37 = vpack.c.bf16 %v758_v30, %v758_v30 }
  0xf9   :  { %1044 = vst.msk [vmem:[%s1983_s4 + $0x30] sm:$0xf] %vm1031_vm2, %v1242_v29  ;;  %v1243_v38 = vpack.c.bf16 %v724_v31, %v724_v31  ;;  %v1347_v39 = vpop.f32.mrb[16].mxu0  ;;  %1076 = vst.msk [vmem:[%s1983_s4 + $0xb0] sm:$0xf] %vm1031_vm2, %v1274_v32  ;;  %v1275_v40 = vpack.c.bf16 %v756_v35, %v756_v35  ;;  %v1379_v42 = vpop.f32.mrb[16].mxu1 }
  0xfa   :  { %1047 = vst.msk [vmem:[%s1983_s4 + $0x3c] sm:$0xf] %vm1031_vm2, %v1245_v33  ;;  %v658_v41 = vmul.f32 %v1347_v39, %v1588_v34  ;;  %v442_v43 = vpop.f32.mrb[17].mxu0  ;;  %1079 = vst.msk [vmem:[%s1983_s4 + $0xbc] sm:$0xf] %vm1031_vm2, %v1277_v37  ;;  %v690_v44 = vmul.f32 %v1379_v42, %v1588_v34  ;;  %v570_v46 = vpop.f32.mrb[17].mxu1 }
  0xfb   :  { %1045 = vst.msk [vmem:[%s1983_s4 + $0x34] sm:$0xf] %vm1031_vm2, %v1243_v38  ;;  %v656_v45 = vmul.f32 %v1588_v34, %v442_v43  ;;  %v1348_v47 = vpop.f32.mrb[18].mxu0  ;;  %1077 = vst.msk [vmem:[%s1983_s4 + $0xb4] sm:$0xf] %vm1031_vm2, %v1275_v40  ;;  %v688_v49 = vmul.f32 %v1588_v34, %v570_v46  ;;  %v1380_v51 = vpop.f32.mrb[18].mxu1 }
  0xfc   :  { %v729_v48 = vadd.f32 %v1593_v36, %v658_v41  ;;  %v659_v50 = vmul.f32 %v1348_v47, %v1588_v34  ;;  %v445_v52 = vpop.f32.mrb[19].mxu0  ;;  %v761_v53 = vadd.f32 %v1593_v36, %v690_v44  ;;  %v691_v55 = vmul.f32 %v1380_v51, %v1588_v34  ;;  %v573_v57 = vpop.f32.mrb[19].mxu1 }
  0xfd   :  { %v727_v54 = vadd.f32 %v1593_v36, %v656_v45  ;;  %v657_v56 = vmul.f32 %v1588_v34, %v445_v52  ;;  %v759_v59 = vadd.f32 %v1593_v36, %v688_v49  ;;  %v689_v61 = vmul.f32 %v1588_v34, %v573_v57 }
  0xfe   :  { %v1248_v58 = vpack.c.bf16 %v729_v48, %v729_v48  ;;  %v730_v60 = vadd.f32 %v1593_v36, %v659_v50  ;;  %v1280_v62 = vpack.c.bf16 %v761_v53, %v761_v53  ;;  %v762_v0 = vadd.f32 %v1593_v36, %v691_v55 }
  0xff   :  { %v1246_v63 = vpack.c.bf16 %v727_v54, %v727_v54  ;;  %v728_v1 = vadd.f32 %v1593_v36, %v657_v56  ;;  %v1278_v2 = vpack.c.bf16 %v759_v59, %v759_v59  ;;  %v760_v4 = vadd.f32 %v1593_v36, %v689_v61 }
 0x100   :  { %1050 = vst.msk [vmem:[%s1983_s4 + $0x48] sm:$0xf] %vm1031_vm2, %v1248_v58  ;;  %v1249_v3 = vpack.c.bf16 %v730_v60, %v730_v60  ;;  %1082 = vst.msk [vmem:[%s1983_s4 + $0xc8] sm:$0xf] %vm1031_vm2, %v1280_v62  ;;  %v1281_v5 = vpack.c.bf16 %v762_v0, %v762_v0 }
 0x101   :  { %1048 = vst.msk [vmem:[%s1983_s4 + $0x40] sm:$0xf] %vm1031_vm2, %v1246_v63  ;;  %v1247_v6 = vpack.c.bf16 %v728_v1, %v728_v1  ;;  %v1351_v7 = vpop.f32.mrb[20].mxu0  ;;  %1080 = vst.msk [vmem:[%s1983_s4 + $0xc0] sm:$0xf] %vm1031_vm2, %v1278_v2  ;;  %v1279_v8 = vpack.c.bf16 %v760_v4, %v760_v4  ;;  %v1383_v10 = vpop.f32.mrb[20].mxu1 }
 0x102   :  { %1051 = vst.msk [vmem:[%s1983_s4 + $0x4c] sm:$0xf] %vm1031_vm2, %v1249_v3  ;;  %v662_v9 = vmul.f32 %v1351_v7, %v1588_v34  ;;  %v458_v11 = vpop.f32.mrb[21].mxu0  ;;  %1083 = vst.msk [vmem:[%s1983_s4 + $0xcc] sm:$0xf] %vm1031_vm2, %v1281_v5  ;;  %v694_v12 = vmul.f32 %v1383_v10, %v1588_v34  ;;  %v586_v14 = vpop.f32.mrb[21].mxu1 }
 0x103   :  { %1049 = vst.msk [vmem:[%s1983_s4 + $0x44] sm:$0xf] %vm1031_vm2, %v1247_v6  ;;  %v660_v13 = vmul.f32 %v1588_v34, %v458_v11  ;;  %v1352_v15 = vpop.f32.mrb[22].mxu0  ;;  %1081 = vst.msk [vmem:[%s1983_s4 + $0xc4] sm:$0xf] %vm1031_vm2, %v1279_v8  ;;  %v692_v17 = vmul.f32 %v1588_v34, %v586_v14  ;;  %v1384_v19 = vpop.f32.mrb[22].mxu1 }
 0x104   :  { %v733_v16 = vadd.f32 %v1593_v36, %v662_v9  ;;  %v663_v18 = vmul.f32 %v1352_v15, %v1588_v34  ;;  %v461_v20 = vpop.f32.mrb[23].mxu0  ;;  %v765_v21 = vadd.f32 %v1593_v36, %v694_v12  ;;  %v695_v23 = vmul.f32 %v1384_v19, %v1588_v34  ;;  %v589_v25 = vpop.f32.mrb[23].mxu1 }
 0x105   :  { %v731_v22 = vadd.f32 %v1593_v36, %v660_v13  ;;  %v661_v24 = vmul.f32 %v1588_v34, %v461_v20  ;;  %v763_v27 = vadd.f32 %v1593_v36, %v692_v17  ;;  %v693_v29 = vmul.f32 %v1588_v34, %v589_v25 }
 0x106   :  { %v1252_v26 = vpack.c.bf16 %v733_v16, %v733_v16  ;;  %v734_v28 = vadd.f32 %v1593_v36, %v663_v18  ;;  %v1284_v30 = vpack.c.bf16 %v765_v21, %v765_v21  ;;  %v766_v32 = vadd.f32 %v1593_v36, %v695_v23 }
 0x107   :  { %v1250_v31 = vpack.c.bf16 %v731_v22, %v731_v22  ;;  %v732_v33 = vadd.f32 %v1593_v36, %v661_v24  ;;  %v1282_v35 = vpack.c.bf16 %v763_v27, %v763_v27  ;;  %v764_v38 = vadd.f32 %v1593_v36, %v693_v29 }
 0x108   :  { %1054 = vst.msk [vmem:[%s1983_s4 + $0x58] sm:$0xf] %vm1031_vm2, %v1252_v26  ;;  %v1253_v37 = vpack.c.bf16 %v734_v28, %v734_v28  ;;  %1086 = vst.msk [vmem:[%s1983_s4 + $0xd8] sm:$0xf] %vm1031_vm2, %v1284_v30  ;;  %v1285_v39 = vpack.c.bf16 %v766_v32, %v766_v32 }
 0x109   :  { %1052 = vst.msk [vmem:[%s1983_s4 + $0x50] sm:$0xf] %vm1031_vm2, %v1250_v31  ;;  %v1251_v40 = vpack.c.bf16 %v732_v33, %v732_v33  ;;  %v1355_v41 = vpop.f32.mrb[24].mxu0  ;;  %1084 = vst.msk [vmem:[%s1983_s4 + $0xd0] sm:$0xf] %vm1031_vm2, %v1282_v35  ;;  %v1283_v42 = vpack.c.bf16 %v764_v38, %v764_v38  ;;  %v1387_v44 = vpop.f32.mrb[24].mxu1 }
 0x10a   :  { %1055 = vst.msk [vmem:[%s1983_s4 + $0x5c] sm:$0xf] %vm1031_vm2, %v1253_v37  ;;  %v666_v43 = vmul.f32 %v1355_v41, %v1588_v34  ;;  %v474_v45 = vpop.f32.mrb[25].mxu0  ;;  %1087 = vst.msk [vmem:[%s1983_s4 + $0xdc] sm:$0xf] %vm1031_vm2, %v1285_v39  ;;  %v698_v46 = vmul.f32 %v1387_v44, %v1588_v34  ;;  %v602_v48 = vpop.f32.mrb[25].mxu1 }
 0x10b   :  { %1053 = vst.msk [vmem:[%s1983_s4 + $0x54] sm:$0xf] %vm1031_vm2, %v1251_v40  ;;  %v664_v47 = vmul.f32 %v1588_v34, %v474_v45  ;;  %v1356_v49 = vpop.f32.mrb[26].mxu0  ;;  %1085 = vst.msk [vmem:[%s1983_s4 + $0xd4] sm:$0xf] %vm1031_vm2, %v1283_v42  ;;  %v696_v51 = vmul.f32 %v1588_v34, %v602_v48  ;;  %v1388_v53 = vpop.f32.mrb[26].mxu1 }
 0x10c   :  { %v737_v50 = vadd.f32 %v1593_v36, %v666_v43  ;;  %v667_v52 = vmul.f32 %v1356_v49, %v1588_v34  ;;  %v477_v54 = vpop.f32.mrb[27].mxu0  ;;  %v769_v55 = vadd.f32 %v1593_v36, %v698_v46  ;;  %v699_v57 = vmul.f32 %v1388_v53, %v1588_v34  ;;  %v605_v59 = vpop.f32.mrb[27].mxu1 }
 0x10d   :  { %v735_v56 = vadd.f32 %v1593_v36, %v664_v47  ;;  %v665_v58 = vmul.f32 %v1588_v34, %v477_v54  ;;  %v767_v61 = vadd.f32 %v1593_v36, %v696_v51  ;;  %v697_v63 = vmul.f32 %v1588_v34, %v605_v59 }
 0x10e   :  { %v1256_v60 = vpack.c.bf16 %v737_v50, %v737_v50  ;;  %v738_v62 = vadd.f32 %v1593_v36, %v667_v52  ;;  %v1288_v0 = vpack.c.bf16 %v769_v55, %v769_v55  ;;  %v770_v2 = vadd.f32 %v1593_v36, %v699_v57 }
 0x10f   :  { %v1254_v1 = vpack.c.bf16 %v735_v56, %v735_v56  ;;  %v736_v3 = vadd.f32 %v1593_v36, %v665_v58  ;;  %v1286_v4 = vpack.c.bf16 %v767_v61, %v767_v61  ;;  %v768_v6 = vadd.f32 %v1593_v36, %v697_v63 }
 0x110   :  { %1058 = vst.msk [vmem:[%s1983_s4 + $0x68] sm:$0xf] %vm1031_vm2, %v1256_v60  ;;  %v1257_v5 = vpack.c.bf16 %v738_v62, %v738_v62  ;;  %1090 = vst.msk [vmem:[%s1983_s4 + $0xe8] sm:$0xf] %vm1031_vm2, %v1288_v0  ;;  %v1289_v7 = vpack.c.bf16 %v770_v2, %v770_v2 }
 0x111   :  { %1056 = vst.msk [vmem:[%s1983_s4 + $0x60] sm:$0xf] %vm1031_vm2, %v1254_v1  ;;  %v1255_v8 = vpack.c.bf16 %v736_v3, %v736_v3  ;;  %v1359_v9 = vpop.f32.mrb[28].mxu0  ;;  %1088 = vst.msk [vmem:[%s1983_s4 + $0xe0] sm:$0xf] %vm1031_vm2, %v1286_v4  ;;  %v1287_v10 = vpack.c.bf16 %v768_v6, %v768_v6  ;;  %v1391_v12 = vpop.f32.mrb[28].mxu1 }
 0x112   :  { %1059 = vst.msk [vmem:[%s1983_s4 + $0x6c] sm:$0xf] %vm1031_vm2, %v1257_v5  ;;  %v670_v11 = vmul.f32 %v1359_v9, %v1588_v34  ;;  %v490_v13 = vpop.f32.mrb[29].mxu0  ;;  %1091 = vst.msk [vmem:[%s1983_s4 + $0xec] sm:$0xf] %vm1031_vm2, %v1289_v7  ;;  %v702_v14 = vmul.f32 %v1391_v12, %v1588_v34  ;;  %v618_v16 = vpop.f32.mrb[29].mxu1 }
 0x113   :  { %1057 = vst.msk [vmem:[%s1983_s4 + $0x64] sm:$0xf] %vm1031_vm2, %v1255_v8  ;;  %v668_v15 = vmul.f32 %v1588_v34, %v490_v13  ;;  %v1360_v17 = vpop.f32.mrb[30].mxu0  ;;  %1089 = vst.msk [vmem:[%s1983_s4 + $0xe4] sm:$0xf] %vm1031_vm2, %v1287_v10  ;;  %v700_v19 = vmul.f32 %v1588_v34, %v618_v16  ;;  %v1392_v21 = vpop.f32.mrb[30].mxu1 }
 0x114   :  { %v741_v18 = vadd.f32 %v1593_v36, %v670_v11  ;;  %v671_v20 = vmul.f32 %v1360_v17, %v1588_v34  ;;  %v493_v22 = vpop.f32.mrb[31].mxu0  ;;  %v773_v23 = vadd.f32 %v1593_v36, %v702_v14  ;;  %v703_v25 = vmul.f32 %v1392_v21, %v1588_v34  ;;  %v621_v27 = vpop.f32.mrb[31].mxu1 }
 0x115   :  { %v739_v24 = vadd.f32 %v1593_v36, %v668_v15  ;;  %v669_v26 = vmul.f32 %v1588_v34, %v493_v22  ;;  %v771_v29 = vadd.f32 %v1593_v36, %v700_v19  ;;  %v701_v31 = vmul.f32 %v1588_v34, %v621_v27 }
 0x116   :  { %v1260_v28 = vpack.c.bf16 %v741_v18, %v741_v18  ;;  %v742_v30 = vadd.f32 %v1593_v36, %v671_v20  ;;  %v1292_v32 = vpack.c.bf16 %v773_v23, %v773_v23  ;;  %v774_v35 = vadd.f32 %v1593_v36, %v703_v25 }
 0x117   :  { %v1258_v33 = vpack.c.bf16 %v739_v24, %v739_v24  ;;  %v740_v37 = vadd.f32 %v1593_v36, %v669_v26  ;;  %v1290_v38 = vpack.c.bf16 %v771_v29, %v771_v29  ;;  %v772_v40 = vadd.f32 %v1593_v36, %v701_v31 }
 0x118   :  { %1062 = vst.msk [vmem:[%s1983_s4 + $0x78] sm:$0xf] %vm1031_vm2, %v1260_v28  ;;  %v1261_v39 = vpack.c.bf16 %v742_v30, %v742_v30  ;;  %1094 = vst.msk [vmem:[%s1983_s4 + $0xf8] sm:$0xf] %vm1031_vm2, %v1292_v32  ;;  %v1293_v34 = vpack.c.bf16 %v774_v35, %v774_v35 }
 0x119   :  { %1060 = vst.msk [vmem:[%s1983_s4 + $0x70] sm:$0xf] %vm1031_vm2, %v1258_v33  ;;  %v1259_v41 = vpack.c.bf16 %v740_v37, %v740_v37  ;;  %1092 = vst.msk [vmem:[%s1983_s4 + $0xf0] sm:$0xf] %vm1031_vm2, %v1290_v38  ;;  %v1291_v36 = vpack.c.bf16 %v772_v40, %v772_v40 }
 0x11a   :  { %1063 = vst.msk [vmem:[%s1983_s4 + $0x7c] sm:$0xf] %vm1031_vm2, %v1261_v39  ;;  %1095 = vst.msk [vmem:[%s1983_s4 + $0xfc] sm:$0xf] %vm1031_vm2, %v1293_v34 }
 0x11b   :  { %1061 = vst.msk [vmem:[%s1983_s4 + $0x74] sm:$0xf] %vm1031_vm2, %v1259_v41  ;;  %1093 = vst.msk [vmem:[%s1983_s4 + $0xf4] sm:$0xf] %vm1031_vm2, %v1291_v36 }

// kernel: truenet_forward.23
= control target key start
LH: loop header
LB: loop body
LE: loop exit
PB: predicated region body
PF: predicated region fallthrough
CT: control target
= control target key end

     0   :  { %vm354_vm0 = vcmask 1044480   ;;  %vm355_vm1 = vcmask 1045504   ;;  %vm257_vm2 = vcmask 220160   ;;  %v1518_v1 = vmov 65535   ;;  %s2072_s1 = inlined_call_operand.vmem [shape: bf16[27,8], index: 1, kind: input, shape index: {}]   ;;  %s2073_s0 = inlined_call_operand.vmem [shape: bf16[512,27], index: 0, kind: input, shape index: {}]   ;;  %s2074_s2 = inlined_call_operand.vmem [shape: f32[1,8], index: 2, kind: input, shape index: {}]   ;;  %s2075_s3 = inlined_call_operand.vmem [shape: f32[1,8], index: 3, kind: input, shape index: {}]   ;;  %s2076_s4 = inlined_call_operand.vmem [shape: bf16[512,8], index: 4, kind: output, shape index: {}]  }
   0x1   :  { %v1484_v0 = vld [vmem:[%s2072_s1] sm:$0xff]   ;;  %v356_v2 = vsel %vm354_vm0, 4294967295, %v1518_v1  ;;  %v1485_v3 = vld [vmem:[%s2072_s1 + $0x8] sm:$0x3f]   ;;  %v1490_v10 = vld [vmem:[%s2073_s0 + $0x10] sm:$0xff]   ;;  %vm1112_vm3 = vcmask 60416  }
   0x2   :  { %1411 = vmatprep.subr.bf16.mxu0 %v1484_v0  ;;  %1479 = vmatprep.subr.bf16.mxu1 %v1484_v0  ;;  %v357_v4 = vsel %vm355_vm1, %v356_v2, 0  ;;  %v1486_v5 = vld [vmem:[%s2073_s0] sm:$0xff]   ;;  %v1488_v8 = vld [vmem:[%s2073_s0 + $0x8] sm:$0xff]   ;;  %v1491_v11 = vld [vmem:[%s2073_s0 + $0x90] sm:$0xff]  }
   0x3   :  { %1412 = vmatpush3.bf16.msra.mxu0 %v1484_v0  ;;  %1481 = vmatpush3.bf16.msra.mxu1 %v1484_v0  ;;  %v359_v6 = vand.u32 %v1485_v3, %v357_v4  ;;  %v1487_v7 = vld [vmem:[%s2073_s0 + $0x80] sm:$0xff]   ;;  %v1489_v9 = vld [vmem:[%s2073_s0 + $0x88] sm:$0xff]   ;;  %v1492_v12 = vld [vmem:[%s2073_s0 + $0x18] sm:$0xff]  }
   0x4   :  { %1415 = vmatprep.mubr.msk.bf16.mxu0 %vm257_vm2, %v1486_v5  ;;  %1447 = vmatprep.mubr.msk.bf16.mxu1 %vm257_vm2, %v1487_v7  ;;  %v1493_v13 = vld [vmem:[%s2073_s0 + $0x98] sm:$0xff]   ;;  %v1494_v14 = vld [vmem:[%s2073_s0 + $0x20] sm:$0xff]   ;;  %v1496_v16 = vld [vmem:[%s2073_s0 + $0x28] sm:$0xff]  }
   0x5   :  { %1413 = vmatprep.subr.bf16.mxu0 %v359_v6  ;;  %1480 = vmatprep.subr.bf16.mxu1 %v359_v6  ;;  %v1495_v15 = vld [vmem:[%s2073_s0 + $0xa0] sm:$0xff]   ;;  %v1497_v17 = vld [vmem:[%s2073_s0 + $0xa8] sm:$0xff]   ;;  %v1498_v18 = vld [vmem:[%s2073_s0 + $0x30] sm:$0xff]  }
   0x6   :  { %v1499_v19 = vld [vmem:[%s2073_s0 + $0xb0] sm:$0xff]   ;;  %v1500_v20 = vld [vmem:[%s2073_s0 + $0x38] sm:$0xff]   ;;  %v1502_v22 = vld [vmem:[%s2073_s0 + $0x40] sm:$0xff]  }
   0x7   :  { %1414 = vmatpush3.bf16.msra.mxu0 %v359_v6  ;;  %1482 = vmatpush3.bf16.msra.mxu1 %v359_v6  ;;  %v1501_v21 = vld [vmem:[%s2073_s0 + $0xb8] sm:$0xff]   ;;  %v1503_v23 = vld [vmem:[%s2073_s0 + $0xc0] sm:$0xff]   ;;  %v1504_v24 = vld [vmem:[%s2073_s0 + $0x48] sm:$0xff]  }
   0x8   :  { %v1505_v25 = vld [vmem:[%s2073_s0 + $0xc8] sm:$0xff]   ;;  %v1506_v26 = vld [vmem:[%s2073_s0 + $0x50] sm:$0xff]   ;;  %v1508_v28 = vld [vmem:[%s2073_s0 + $0x58] sm:$0xff]  }
   0x9   :  { %v1507_v27 = vld [vmem:[%s2073_s0 + $0xd0] sm:$0xff]   ;;  %v1509_v29 = vld [vmem:[%s2073_s0 + $0xd8] sm:$0xff]   ;;  %v1510_v30 = vld [vmem:[%s2073_s0 + $0x60] sm:$0xff]  }
   0xa   :  { %1416 = vmatmul.mubr.msk.bf16.vlgmr.msra.gmra.mrb[0].mxu0 %vm257_vm2, %v1488_v8  ;;  %1448 = vmatmul.mubr.msk.bf16.vlgmr.msra.gmra.mrb[0].mxu1 %vm257_vm2, %v1489_v9  ;;  %v1511_v31 = vld [vmem:[%s2073_s0 + $0xe0] sm:$0xff]   ;;  %v1512_v32 = vld [vmem:[%s2073_s0 + $0x68] sm:$0xff]   ;;  %v1514_v34 = vld [vmem:[%s2073_s0 + $0x70] sm:$0xff]  }
   0xb   :  { %1419 = vmatprep.mubr.msk.bf16.mxu0 %vm257_vm2, %v1490_v10  ;;  %1451 = vmatprep.mubr.msk.bf16.mxu1 %vm257_vm2, %v1491_v11  ;;  %v1513_v33 = vld [vmem:[%s2073_s0 + $0xe8] sm:$0xff]   ;;  %v1515_v35 = vld [vmem:[%s2073_s0 + $0xf0] sm:$0xff]   ;;  %v1516_v36 = vld [vmem:[%s2073_s0 + $0x78] sm:$0xff]  }
   0xc   :  { %v1517_v37 = vld [vmem:[%s2073_s0 + $0xf8] sm:$0xff]   ;;  %v1681_v38 = vld [vmem:[%s2074_s2] ss:$0 sm:$0xff] }
   0xd   :  { %v1686_v40 = vld [vmem:[%s2075_s3] ss:$0 sm:$0xff] }
  0x12   :  { %1420 = vmatmul.mubr.msk.bf16.gmra.mrb[4].mxu0 %vm257_vm2, %v1492_v12  ;;  %1452 = vmatmul.mubr.msk.bf16.gmra.mrb[4].mxu1 %vm257_vm2, %v1493_v13 }
  0x13   :  { %1423 = vmatprep.mubr.msk.bf16.mxu0 %vm257_vm2, %v1494_v14  ;;  %1455 = vmatprep.mubr.msk.bf16.mxu1 %vm257_vm2, %v1495_v15 }
  0x1a   :  { %1424 = vmatmul.mubr.msk.bf16.gmra.mrb[8].mxu0 %vm257_vm2, %v1496_v16  ;;  %1456 = vmatmul.mubr.msk.bf16.gmra.mrb[8].mxu1 %vm257_vm2, %v1497_v17 }
  0x1b   :  { %1427 = vmatprep.mubr.msk.bf16.mxu0 %vm257_vm2, %v1498_v18  ;;  %1459 = vmatprep.mubr.msk.bf16.mxu1 %vm257_vm2, %v1499_v19 }
  0x22   :  { %1428 = vmatmul.mubr.msk.bf16.gmra.mrb[12].mxu0 %vm257_vm2, %v1500_v20  ;;  %1460 = vmatmul.mubr.msk.bf16.gmra.mrb[12].mxu1 %vm257_vm2, %v1501_v21 }
  0x23   :  { %1431 = vmatprep.mubr.msk.bf16.mxu0 %vm257_vm2, %v1502_v22  ;;  %1463 = vmatprep.mubr.msk.bf16.mxu1 %vm257_vm2, %v1503_v23 }
  0x2a   :  { %1432 = vmatmul.mubr.msk.bf16.gmra.mrb[16].mxu0 %vm257_vm2, %v1504_v24  ;;  %1464 = vmatmul.mubr.msk.bf16.gmra.mrb[16].mxu1 %vm257_vm2, %v1505_v25 }
  0x2b   :  { %1435 = vmatprep.mubr.msk.bf16.mxu0 %vm257_vm2, %v1506_v26  ;;  %1467 = vmatprep.mubr.msk.bf16.mxu1 %vm257_vm2, %v1507_v27 }
  0x32   :  { %1436 = vmatmul.mubr.msk.bf16.gmra.mrb[20].mxu0 %vm257_vm2, %v1508_v28  ;;  %1468 = vmatmul.mubr.msk.bf16.gmra.mrb[20].mxu1 %vm257_vm2, %v1509_v29 }
  0x33   :  { %1439 = vmatprep.mubr.msk.bf16.mxu0 %vm257_vm2, %v1510_v30  ;;  %1471 = vmatprep.mubr.msk.bf16.mxu1 %vm257_vm2, %v1511_v31 }
  0x3a   :  { %1440 = vmatmul.mubr.msk.bf16.gmra.mrb[24].mxu0 %vm257_vm2, %v1512_v32  ;;  %1472 = vmatmul.mubr.msk.bf16.gmra.mrb[24].mxu1 %vm257_vm2, %v1513_v33 }
  0x3b   :  { %1443 = vmatprep.mubr.msk.bf16.mxu0 %vm257_vm2, %v1514_v34  ;;  %1475 = vmatprep.mubr.msk.bf16.mxu1 %vm257_vm2, %v1515_v35 }
  0x42   :  { %1444 = vmatmul.mubr.msk.bf16.gmra.mrb[28].mxu0 %vm257_vm2, %v1516_v36  ;;  %1476 = vmatmul.mubr.msk.bf16.gmra.mrb[28].mxu1 %vm257_vm2, %v1517_v37 }
  0xdd   :  { %v1417_v39 = vpop.f32.mrb[0].mxu0  ;;  %v1449_v41 = vpop.f32.mrb[0].mxu1 }
  0xde   :  { %v659_v42 = vmul.f32 %v1417_v39, %v1681_v38  ;;  %v691_v43 = vmul.f32 %v1449_v41, %v1681_v38  ;;  %v395_v44 = vpop.f32.mrb[1].mxu0  ;;  %v523_v45 = vpop.f32.mrb[1].mxu1 }
  0xdf   :  { %v657_v46 = vmul.f32 %v1681_v38, %v395_v44  ;;  %v689_v47 = vmul.f32 %v1681_v38, %v523_v45  ;;  %v1418_v48 = vpop.f32.mrb[2].mxu0  ;;  %v1450_v49 = vpop.f32.mrb[2].mxu1 }
  0xe0   :  { %v730_v50 = vadd.f32 %v1686_v40, %v659_v42  ;;  %v762_v51 = vadd.f32 %v1686_v40, %v691_v43  ;;  %v660_v52 = vmul.f32 %v1418_v48, %v1681_v38  ;;  %v692_v53 = vmul.f32 %v1450_v49, %v1681_v38  ;;  %v398_v54 = vpop.f32.mrb[3].mxu0  ;;  %v526_v55 = vpop.f32.mrb[3].mxu1 }
  0xe1   :  { %v728_v56 = vadd.f32 %v1686_v40, %v657_v46  ;;  %v760_v57 = vadd.f32 %v1686_v40, %v689_v47  ;;  %v658_v58 = vmul.f32 %v1681_v38, %v398_v54  ;;  %v690_v59 = vmul.f32 %v1681_v38, %v526_v55 }
  0xe2   :  { %v794_v60 = vmax.f32 %v730_v50, 0.0  ;;  %v826_v61 = vmax.f32 %v762_v51, 0.0  ;;  %v731_v62 = vadd.f32 %v1686_v40, %v660_v52  ;;  %v763_v63 = vadd.f32 %v1686_v40, %v692_v53 }
  0xe3   :  { %v792_v0 = vmax.f32 %v728_v56, 0.0  ;;  %v824_v1 = vmax.f32 %v760_v57, 0.0  ;;  %v729_v2 = vadd.f32 %v1686_v40, %v658_v58  ;;  %v761_v3 = vadd.f32 %v1686_v40, %v690_v59 }
  0xe4   :  { %v1315_v4 = vpack.c.bf16 %v794_v60, %v794_v60  ;;  %v1347_v5 = vpack.c.bf16 %v826_v61, %v826_v61  ;;  %v795_v6 = vmax.f32 %v731_v62, 0.0  ;;  %v827_v7 = vmax.f32 %v763_v63, 0.0 }
  0xe5   :  { %v1313_v8 = vpack.c.bf16 %v792_v0, %v792_v0  ;;  %v1345_v9 = vpack.c.bf16 %v824_v1, %v824_v1  ;;  %v793_v10 = vmax.f32 %v729_v2, 0.0  ;;  %v825_v11 = vmax.f32 %v761_v3, 0.0  ;;  %v1421_v12 = vpop.f32.mrb[4].mxu0  ;;  %v1453_v13 = vpop.f32.mrb[4].mxu1 }
  0xe6   :  { %1115 = vst.msk [vmem:[%s2076_s4 + $0x8] sm:$0xf] %vm1112_vm3, %v1315_v4  ;;  %1147 = vst.msk [vmem:[%s2076_s4 + $0x88] sm:$0xf] %vm1112_vm3, %v1347_v5  ;;  %v1316_v14 = vpack.c.bf16 %v795_v6, %v795_v6  ;;  %v1348_v15 = vpack.c.bf16 %v827_v7, %v827_v7  ;;  %v663_v16 = vmul.f32 %v1421_v12, %v1681_v38  ;;  %v411_v18 = vpop.f32.mrb[5].mxu0  ;;  %v539_v19 = vpop.f32.mrb[5].mxu1 }
  0xe7   :  { %v695_v17 = vmul.f32 %v1453_v13, %v1681_v38  ;;  %1113 = vst.msk [vmem:[%s2076_s4] sm:$0xf] %vm1112_vm3, %v1313_v8  ;;  %1145 = vst.msk [vmem:[%s2076_s4 + $0x80] sm:$0xf] %vm1112_vm3, %v1345_v9  ;;  %v1314_v20 = vpack.c.bf16 %v793_v10, %v793_v10  ;;  %v1346_v21 = vpack.c.bf16 %v825_v11, %v825_v11  ;;  %v1422_v24 = vpop.f32.mrb[6].mxu0  ;;  %v1454_v25 = vpop.f32.mrb[6].mxu1 }
  0xe8   :  { %v661_v22 = vmul.f32 %v1681_v38, %v411_v18  ;;  %v693_v23 = vmul.f32 %v1681_v38, %v539_v19  ;;  %1116 = vst.msk [vmem:[%s2076_s4 + $0xc] sm:$0xf] %vm1112_vm3, %v1316_v14  ;;  %1148 = vst.msk [vmem:[%s2076_s4 + $0x8c] sm:$0xf] %vm1112_vm3, %v1348_v15  ;;  %v734_v26 = vadd.f32 %v1686_v40, %v663_v16  ;;  %v414_v30 = vpop.f32.mrb[7].mxu0  ;;  %v542_v31 = vpop.f32.mrb[7].mxu1 }
  0xe9   :  { %v766_v27 = vadd.f32 %v1686_v40, %v695_v17  ;;  %v664_v28 = vmul.f32 %v1422_v24, %v1681_v38  ;;  %v696_v29 = vmul.f32 %v1454_v25, %v1681_v38  ;;  %1114 = vst.msk [vmem:[%s2076_s4 + $0x4] sm:$0xf] %vm1112_vm3, %v1314_v20  ;;  %1146 = vst.msk [vmem:[%s2076_s4 + $0x84] sm:$0xf] %vm1112_vm3, %v1346_v21 }
  0xea   :  { %v732_v32 = vadd.f32 %v1686_v40, %v661_v22  ;;  %v764_v33 = vadd.f32 %v1686_v40, %v693_v23  ;;  %v662_v34 = vmul.f32 %v1681_v38, %v414_v30  ;;  %v694_v35 = vmul.f32 %v1681_v38, %v542_v31 }
  0xeb   :  { %v798_v36 = vmax.f32 %v734_v26, 0.0  ;;  %v830_v37 = vmax.f32 %v766_v27, 0.0  ;;  %v735_v39 = vadd.f32 %v1686_v40, %v664_v28  ;;  %v767_v41 = vadd.f32 %v1686_v40, %v696_v29 }
  0xec   :  { %v796_v42 = vmax.f32 %v732_v32, 0.0  ;;  %v828_v43 = vmax.f32 %v764_v33, 0.0  ;;  %v733_v44 = vadd.f32 %v1686_v40, %v662_v34  ;;  %v765_v45 = vadd.f32 %v1686_v40, %v694_v35 }
  0xed   :  { %v1319_v46 = vpack.c.bf16 %v798_v36, %v798_v36  ;;  %v1351_v47 = vpack.c.bf16 %v830_v37, %v830_v37  ;;  %v799_v48 = vmax.f32 %v735_v39, 0.0  ;;  %v831_v49 = vmax.f32 %v767_v41, 0.0  ;;  %v1425_v54 = vpop.f32.mrb[8].mxu0  ;;  %v1457_v55 = vpop.f32.mrb[8].mxu1 }
  0xee   :  { %v1317_v50 = vpack.c.bf16 %v796_v42, %v796_v42  ;;  %v1349_v51 = vpack.c.bf16 %v828_v43, %v828_v43  ;;  %v797_v52 = vmax.f32 %v733_v44, 0.0  ;;  %v829_v53 = vmax.f32 %v765_v45, 0.0  ;;  %v427_v60 = vpop.f32.mrb[9].mxu0  ;;  %v555_v61 = vpop.f32.mrb[9].mxu1 }
  0xef   :  { %1119 = vst.msk [vmem:[%s2076_s4 + $0x18] sm:$0xf] %vm1112_vm3, %v1319_v46  ;;  %1151 = vst.msk [vmem:[%s2076_s4 + $0x98] sm:$0xf] %vm1112_vm3, %v1351_v47  ;;  %v1320_v56 = vpack.c.bf16 %v799_v48, %v799_v48  ;;  %v1352_v57 = vpack.c.bf16 %v831_v49, %v831_v49  ;;  %v667_v58 = vmul.f32 %v1425_v54, %v1681_v38  ;;  %v1426_v2 = vpop.f32.mrb[10].mxu0  ;;  %v1458_v3 = vpop.f32.mrb[10].mxu1 }
  0xf0   :  { %v699_v59 = vmul.f32 %v1457_v55, %v1681_v38  ;;  %1117 = vst.msk [vmem:[%s2076_s4 + $0x10] sm:$0xf] %vm1112_vm3, %v1317_v50  ;;  %1149 = vst.msk [vmem:[%s2076_s4 + $0x90] sm:$0xf] %vm1112_vm3, %v1349_v51  ;;  %v1318_v62 = vpack.c.bf16 %v797_v52, %v797_v52  ;;  %v1350_v63 = vpack.c.bf16 %v829_v53, %v829_v53  ;;  %v430_v8 = vpop.f32.mrb[11].mxu0  ;;  %v558_v9 = vpop.f32.mrb[11].mxu1 }
  0xf1   :  { %v665_v0 = vmul.f32 %v1681_v38, %v427_v60  ;;  %v697_v1 = vmul.f32 %v1681_v38, %v555_v61  ;;  %1120 = vst.msk [vmem:[%s2076_s4 + $0x1c] sm:$0xf] %vm1112_vm3, %v1320_v56  ;;  %1152 = vst.msk [vmem:[%s2076_s4 + $0x9c] sm:$0xf] %vm1112_vm3, %v1352_v57  ;;  %v738_v4 = vadd.f32 %v1686_v40, %v667_v58 }
  0xf2   :  { %v770_v5 = vadd.f32 %v1686_v40, %v699_v59  ;;  %v668_v6 = vmul.f32 %v1426_v2, %v1681_v38  ;;  %v700_v7 = vmul.f32 %v1458_v3, %v1681_v38  ;;  %1118 = vst.msk [vmem:[%s2076_s4 + $0x14] sm:$0xf] %vm1112_vm3, %v1318_v62  ;;  %1150 = vst.msk [vmem:[%s2076_s4 + $0x94] sm:$0xf] %vm1112_vm3, %v1350_v63 }
  0xf3   :  { %v736_v10 = vadd.f32 %v1686_v40, %v665_v0  ;;  %v768_v11 = vadd.f32 %v1686_v40, %v697_v1  ;;  %v666_v12 = vmul.f32 %v1681_v38, %v430_v8  ;;  %v698_v13 = vmul.f32 %v1681_v38, %v558_v9 }
  0xf4   :  { %v802_v14 = vmax.f32 %v738_v4, 0.0  ;;  %v834_v15 = vmax.f32 %v770_v5, 0.0  ;;  %v739_v16 = vadd.f32 %v1686_v40, %v668_v6  ;;  %v771_v17 = vadd.f32 %v1686_v40, %v700_v7 }
  0xf5   :  { %v800_v18 = vmax.f32 %v736_v10, 0.0  ;;  %v832_v19 = vmax.f32 %v768_v11, 0.0  ;;  %v737_v20 = vadd.f32 %v1686_v40, %v666_v12  ;;  %v769_v21 = vadd.f32 %v1686_v40, %v698_v13  ;;  %v1429_v30 = vpop.f32.mrb[12].mxu0  ;;  %v1461_v31 = vpop.f32.mrb[12].mxu1 }
  0xf6   :  { %v1323_v22 = vpack.c.bf16 %v802_v14, %v802_v14  ;;  %v1355_v23 = vpack.c.bf16 %v834_v15, %v834_v15  ;;  %v803_v24 = vmax.f32 %v739_v16, 0.0  ;;  %v835_v25 = vmax.f32 %v771_v17, 0.0  ;;  %v443_v36 = vpop.f32.mrb[13].mxu0  ;;  %v571_v37 = vpop.f32.mrb[13].mxu1 }
  0xf7   :  { %v1321_v26 = vpack.c.bf16 %v800_v18, %v800_v18  ;;  %v1353_v27 = vpack.c.bf16 %v832_v19, %v832_v19  ;;  %v801_v28 = vmax.f32 %v737_v20, 0.0  ;;  %v833_v29 = vmax.f32 %v769_v21, 0.0  ;;  %v1430_v44 = vpop.f32.mrb[14].mxu0  ;;  %v1462_v45 = vpop.f32.mrb[14].mxu1 }
  0xf8   :  { %1123 = vst.msk [vmem:[%s2076_s4 + $0x28] sm:$0xf] %vm1112_vm3, %v1323_v22  ;;  %1155 = vst.msk [vmem:[%s2076_s4 + $0xa8] sm:$0xf] %vm1112_vm3, %v1355_v23  ;;  %v1324_v32 = vpack.c.bf16 %v803_v24, %v803_v24  ;;  %v1356_v33 = vpack.c.bf16 %v835_v25, %v835_v25  ;;  %v671_v34 = vmul.f32 %v1429_v30, %v1681_v38  ;;  %v446_v50 = vpop.f32.mrb[15].mxu0  ;;  %v574_v51 = vpop.f32.mrb[15].mxu1 }
  0xf9   :  { %v703_v35 = vmul.f32 %v1461_v31, %v1681_v38  ;;  %1121 = vst.msk [vmem:[%s2076_s4 + $0x20] sm:$0xf] %vm1112_vm3, %v1321_v26  ;;  %1153 = vst.msk [vmem:[%s2076_s4 + $0xa0] sm:$0xf] %vm1112_vm3, %v1353_v27  ;;  %v1322_v39 = vpack.c.bf16 %v801_v28, %v801_v28  ;;  %v1354_v41 = vpack.c.bf16 %v833_v29, %v833_v29 }
  0xfa   :  { %v669_v42 = vmul.f32 %v1681_v38, %v443_v36  ;;  %v701_v43 = vmul.f32 %v1681_v38, %v571_v37  ;;  %1124 = vst.msk [vmem:[%s2076_s4 + $0x2c] sm:$0xf] %vm1112_vm3, %v1324_v32  ;;  %1156 = vst.msk [vmem:[%s2076_s4 + $0xac] sm:$0xf] %vm1112_vm3, %v1356_v33  ;;  %v742_v46 = vadd.f32 %v1686_v40, %v671_v34 }
  0xfb   :  { %v774_v47 = vadd.f32 %v1686_v40, %v703_v35  ;;  %v672_v48 = vmul.f32 %v1430_v44, %v1681_v38  ;;  %v704_v49 = vmul.f32 %v1462_v45, %v1681_v38  ;;  %1122 = vst.msk [vmem:[%s2076_s4 + $0x24] sm:$0xf] %vm1112_vm3, %v1322_v39  ;;  %1154 = vst.msk [vmem:[%s2076_s4 + $0xa4] sm:$0xf] %vm1112_vm3, %v1354_v41 }
  0xfc   :  { %v740_v52 = vadd.f32 %v1686_v40, %v669_v42  ;;  %v772_v53 = vadd.f32 %v1686_v40, %v701_v43  ;;  %v670_v54 = vmul.f32 %v1681_v38, %v446_v50  ;;  %v702_v55 = vmul.f32 %v1681_v38, %v574_v51 }
  0xfd   :  { %v806_v56 = vmax.f32 %v742_v46, 0.0  ;;  %v838_v57 = vmax.f32 %v774_v47, 0.0  ;;  %v743_v58 = vadd.f32 %v1686_v40, %v672_v48  ;;  %v775_v59 = vadd.f32 %v1686_v40, %v704_v49  ;;  %v1433_v8 = vpop.f32.mrb[16].mxu0  ;;  %v1465_v9 = vpop.f32.mrb[16].mxu1 }
  0xfe   :  { %v804_v60 = vmax.f32 %v740_v52, 0.0  ;;  %v836_v61 = vmax.f32 %v772_v53, 0.0  ;;  %v741_v62 = vadd.f32 %v1686_v40, %v670_v54  ;;  %v773_v63 = vadd.f32 %v1686_v40, %v702_v55  ;;  %v459_v14 = vpop.f32.mrb[17].mxu0  ;;  %v587_v15 = vpop.f32.mrb[17].mxu1 }
  0xff   :  { %v1327_v0 = vpack.c.bf16 %v806_v56, %v806_v56  ;;  %v1359_v1 = vpack.c.bf16 %v838_v57, %v838_v57  ;;  %v807_v2 = vmax.f32 %v743_v58, 0.0  ;;  %v839_v3 = vmax.f32 %v775_v59, 0.0  ;;  %v1434_v20 = vpop.f32.mrb[18].mxu0  ;;  %v1466_v21 = vpop.f32.mrb[18].mxu1 }
 0x100   :  { %v1325_v4 = vpack.c.bf16 %v804_v60, %v804_v60  ;;  %v1357_v5 = vpack.c.bf16 %v836_v61, %v836_v61  ;;  %v805_v6 = vmax.f32 %v741_v62, 0.0  ;;  %v837_v7 = vmax.f32 %v773_v63, 0.0  ;;  %v462_v26 = vpop.f32.mrb[19].mxu0  ;;  %v590_v27 = vpop.f32.mrb[19].mxu1 }
 0x101   :  { %1127 = vst.msk [vmem:[%s2076_s4 + $0x38] sm:$0xf] %vm1112_vm3, %v1327_v0  ;;  %1159 = vst.msk [vmem:[%s2076_s4 + $0xb8] sm:$0xf] %vm1112_vm3, %v1359_v1  ;;  %v1328_v10 = vpack.c.bf16 %v807_v2, %v807_v2  ;;  %v1360_v11 = vpack.c.bf16 %v839_v3, %v839_v3  ;;  %v675_v12 = vmul.f32 %v1433_v8, %v1681_v38 }
 0x102   :  { %v707_v13 = vmul.f32 %v1465_v9, %v1681_v38  ;;  %1125 = vst.msk [vmem:[%s2076_s4 + $0x30] sm:$0xf] %vm1112_vm3, %v1325_v4  ;;  %1157 = vst.msk [vmem:[%s2076_s4 + $0xb0] sm:$0xf] %vm1112_vm3, %v1357_v5  ;;  %v1326_v16 = vpack.c.bf16 %v805_v6, %v805_v6  ;;  %v1358_v17 = vpack.c.bf16 %v837_v7, %v837_v7 }
 0x103   :  { %v673_v18 = vmul.f32 %v1681_v38, %v459_v14  ;;  %v705_v19 = vmul.f32 %v1681_v38, %v587_v15  ;;  %1128 = vst.msk [vmem:[%s2076_s4 + $0x3c] sm:$0xf] %vm1112_vm3, %v1328_v10  ;;  %1160 = vst.msk [vmem:[%s2076_s4 + $0xbc] sm:$0xf] %vm1112_vm3, %v1360_v11  ;;  %v746_v22 = vadd.f32 %v1686_v40, %v675_v12 }
 0x104   :  { %v778_v23 = vadd.f32 %v1686_v40, %v707_v13  ;;  %v676_v24 = vmul.f32 %v1434_v20, %v1681_v38  ;;  %v708_v25 = vmul.f32 %v1466_v21, %v1681_v38  ;;  %1126 = vst.msk [vmem:[%s2076_s4 + $0x34] sm:$0xf] %vm1112_vm3, %v1326_v16  ;;  %1158 = vst.msk [vmem:[%s2076_s4 + $0xb4] sm:$0xf] %vm1112_vm3, %v1358_v17 }
 0x105   :  { %v744_v28 = vadd.f32 %v1686_v40, %v673_v18  ;;  %v776_v29 = vadd.f32 %v1686_v40, %v705_v19  ;;  %v674_v30 = vmul.f32 %v1681_v38, %v462_v26  ;;  %v706_v31 = vmul.f32 %v1681_v38, %v590_v27  ;;  %v1437_v50 = vpop.f32.mrb[20].mxu0  ;;  %v1469_v51 = vpop.f32.mrb[20].mxu1 }
 0x106   :  { %v810_v32 = vmax.f32 %v746_v22, 0.0  ;;  %v842_v33 = vmax.f32 %v778_v23, 0.0  ;;  %v747_v34 = vadd.f32 %v1686_v40, %v676_v24  ;;  %v779_v35 = vadd.f32 %v1686_v40, %v708_v25  ;;  %v475_v56 = vpop.f32.mrb[21].mxu0  ;;  %v603_v57 = vpop.f32.mrb[21].mxu1 }
 0x107   :  { %v808_v36 = vmax.f32 %v744_v28, 0.0  ;;  %v840_v37 = vmax.f32 %v776_v29, 0.0  ;;  %v745_v39 = vadd.f32 %v1686_v40, %v674_v30  ;;  %v777_v41 = vadd.f32 %v1686_v40, %v706_v31  ;;  %v1438_v62 = vpop.f32.mrb[22].mxu0  ;;  %v1470_v63 = vpop.f32.mrb[22].mxu1 }
 0x108   :  { %v1331_v42 = vpack.c.bf16 %v810_v32, %v810_v32  ;;  %v1363_v43 = vpack.c.bf16 %v842_v33, %v842_v33  ;;  %v811_v44 = vmax.f32 %v747_v34, 0.0  ;;  %v843_v45 = vmax.f32 %v779_v35, 0.0  ;;  %v478_v4 = vpop.f32.mrb[23].mxu0  ;;  %v606_v5 = vpop.f32.mrb[23].mxu1 }
 0x109   :  { %v1329_v46 = vpack.c.bf16 %v808_v36, %v808_v36  ;;  %v1361_v47 = vpack.c.bf16 %v840_v37, %v840_v37  ;;  %v809_v48 = vmax.f32 %v745_v39, 0.0  ;;  %v841_v49 = vmax.f32 %v777_v41, 0.0 }
 0x10a   :  { %1131 = vst.msk [vmem:[%s2076_s4 + $0x48] sm:$0xf] %vm1112_vm3, %v1331_v42  ;;  %1163 = vst.msk [vmem:[%s2076_s4 + $0xc8] sm:$0xf] %vm1112_vm3, %v1363_v43  ;;  %v1332_v52 = vpack.c.bf16 %v811_v44, %v811_v44  ;;  %v1364_v53 = vpack.c.bf16 %v843_v45, %v843_v45  ;;  %v679_v54 = vmul.f32 %v1437_v50, %v1681_v38 }
 0x10b   :  { %v711_v55 = vmul.f32 %v1469_v51, %v1681_v38  ;;  %1129 = vst.msk [vmem:[%s2076_s4 + $0x40] sm:$0xf] %vm1112_vm3, %v1329_v46  ;;  %1161 = vst.msk [vmem:[%s2076_s4 + $0xc0] sm:$0xf] %vm1112_vm3, %v1361_v47  ;;  %v1330_v58 = vpack.c.bf16 %v809_v48, %v809_v48  ;;  %v1362_v59 = vpack.c.bf16 %v841_v49, %v841_v49 }
 0x10c   :  { %v677_v60 = vmul.f32 %v1681_v38, %v475_v56  ;;  %v709_v61 = vmul.f32 %v1681_v38, %v603_v57  ;;  %1132 = vst.msk [vmem:[%s2076_s4 + $0x4c] sm:$0xf] %vm1112_vm3, %v1332_v52  ;;  %1164 = vst.msk [vmem:[%s2076_s4 + $0xcc] sm:$0xf] %vm1112_vm3, %v1364_v53  ;;  %v750_v0 = vadd.f32 %v1686_v40, %v679_v54 }
 0x10d   :  { %v782_v1 = vadd.f32 %v1686_v40, %v711_v55  ;;  %v680_v2 = vmul.f32 %v1438_v62, %v1681_v38  ;;  %v712_v3 = vmul.f32 %v1470_v63, %v1681_v38  ;;  %1130 = vst.msk [vmem:[%s2076_s4 + $0x44] sm:$0xf] %vm1112_vm3, %v1330_v58  ;;  %1162 = vst.msk [vmem:[%s2076_s4 + $0xc4] sm:$0xf] %vm1112_vm3, %v1362_v59  ;;  %v1441_v26 = vpop.f32.mrb[24].mxu0  ;;  %v1473_v27 = vpop.f32.mrb[24].mxu1 }
 0x10e   :  { %v748_v6 = vadd.f32 %v1686_v40, %v677_v60  ;;  %v780_v7 = vadd.f32 %v1686_v40, %v709_v61  ;;  %v678_v8 = vmul.f32 %v1681_v38, %v478_v4  ;;  %v710_v9 = vmul.f32 %v1681_v38, %v606_v5  ;;  %v491_v32 = vpop.f32.mrb[25].mxu0  ;;  %v619_v33 = vpop.f32.mrb[25].mxu1 }
 0x10f   :  { %v814_v10 = vmax.f32 %v750_v0, 0.0  ;;  %v846_v11 = vmax.f32 %v782_v1, 0.0  ;;  %v751_v12 = vadd.f32 %v1686_v40, %v680_v2  ;;  %v783_v13 = vadd.f32 %v1686_v40, %v712_v3  ;;  %v1442_v39 = vpop.f32.mrb[26].mxu0  ;;  %v1474_v41 = vpop.f32.mrb[26].mxu1 }
 0x110   :  { %v812_v14 = vmax.f32 %v748_v6, 0.0  ;;  %v844_v15 = vmax.f32 %v780_v7, 0.0  ;;  %v749_v16 = vadd.f32 %v1686_v40, %v678_v8  ;;  %v781_v17 = vadd.f32 %v1686_v40, %v710_v9  ;;  %v494_v46 = vpop.f32.mrb[27].mxu0  ;;  %v622_v47 = vpop.f32.mrb[27].mxu1 }
 0x111   :  { %v1335_v18 = vpack.c.bf16 %v814_v10, %v814_v10  ;;  %v1367_v19 = vpack.c.bf16 %v846_v11, %v846_v11  ;;  %v815_v20 = vmax.f32 %v751_v12, 0.0  ;;  %v847_v21 = vmax.f32 %v783_v13, 0.0 }
 0x112   :  { %v1333_v22 = vpack.c.bf16 %v812_v14, %v812_v14  ;;  %v1365_v23 = vpack.c.bf16 %v844_v15, %v844_v15  ;;  %v813_v24 = vmax.f32 %v749_v16, 0.0  ;;  %v845_v25 = vmax.f32 %v781_v17, 0.0 }
 0x113   :  { %1135 = vst.msk [vmem:[%s2076_s4 + $0x58] sm:$0xf] %vm1112_vm3, %v1335_v18  ;;  %1167 = vst.msk [vmem:[%s2076_s4 + $0xd8] sm:$0xf] %vm1112_vm3, %v1367_v19  ;;  %v1336_v28 = vpack.c.bf16 %v815_v20, %v815_v20  ;;  %v1368_v29 = vpack.c.bf16 %v847_v21, %v847_v21  ;;  %v683_v30 = vmul.f32 %v1441_v26, %v1681_v38 }
 0x114   :  { %v715_v31 = vmul.f32 %v1473_v27, %v1681_v38  ;;  %1133 = vst.msk [vmem:[%s2076_s4 + $0x50] sm:$0xf] %vm1112_vm3, %v1333_v22  ;;  %1165 = vst.msk [vmem:[%s2076_s4 + $0xd0] sm:$0xf] %vm1112_vm3, %v1365_v23  ;;  %v1334_v34 = vpack.c.bf16 %v813_v24, %v813_v24  ;;  %v1366_v35 = vpack.c.bf16 %v845_v25, %v845_v25 }
 0x115   :  { %v681_v36 = vmul.f32 %v1681_v38, %v491_v32  ;;  %v713_v37 = vmul.f32 %v1681_v38, %v619_v33  ;;  %1136 = vst.msk [vmem:[%s2076_s4 + $0x5c] sm:$0xf] %vm1112_vm3, %v1336_v28  ;;  %1168 = vst.msk [vmem:[%s2076_s4 + $0xdc] sm:$0xf] %vm1112_vm3, %v1368_v29  ;;  %v754_v42 = vadd.f32 %v1686_v40, %v683_v30  ;;  %v1445_v4 = vpop.f32.mrb[28].mxu0  ;;  %v1477_v5 = vpop.f32.mrb[28].mxu1 }
 0x116   :  { %v786_v43 = vadd.f32 %v1686_v40, %v715_v31  ;;  %v684_v44 = vmul.f32 %v1442_v39, %v1681_v38  ;;  %v716_v45 = vmul.f32 %v1474_v41, %v1681_v38  ;;  %1134 = vst.msk [vmem:[%s2076_s4 + $0x54] sm:$0xf] %vm1112_vm3, %v1334_v34  ;;  %1166 = vst.msk [vmem:[%s2076_s4 + $0xd4] sm:$0xf] %vm1112_vm3, %v1366_v35  ;;  %v507_v10 = vpop.f32.mrb[29].mxu0  ;;  %v635_v11 = vpop.f32.mrb[29].mxu1 }
 0x117   :  { %v752_v48 = vadd.f32 %v1686_v40, %v681_v36  ;;  %v784_v49 = vadd.f32 %v1686_v40, %v713_v37  ;;  %v682_v50 = vmul.f32 %v1681_v38, %v494_v46  ;;  %v714_v51 = vmul.f32 %v1681_v38, %v622_v47  ;;  %v1446_v16 = vpop.f32.mrb[30].mxu0  ;;  %v1478_v17 = vpop.f32.mrb[30].mxu1 }
 0x118   :  { %v818_v52 = vmax.f32 %v754_v42, 0.0  ;;  %v850_v53 = vmax.f32 %v786_v43, 0.0  ;;  %v755_v54 = vadd.f32 %v1686_v40, %v684_v44  ;;  %v787_v55 = vadd.f32 %v1686_v40, %v716_v45  ;;  %v510_v22 = vpop.f32.mrb[31].mxu0  ;;  %v638_v23 = vpop.f32.mrb[31].mxu1 }
 0x119   :  { %v816_v56 = vmax.f32 %v752_v48, 0.0  ;;  %v848_v57 = vmax.f32 %v784_v49, 0.0  ;;  %v753_v58 = vadd.f32 %v1686_v40, %v682_v50  ;;  %v785_v59 = vadd.f32 %v1686_v40, %v714_v51 }
 0x11a   :  { %v1339_v60 = vpack.c.bf16 %v818_v52, %v818_v52  ;;  %v1371_v61 = vpack.c.bf16 %v850_v53, %v850_v53  ;;  %v819_v62 = vmax.f32 %v755_v54, 0.0  ;;  %v851_v63 = vmax.f32 %v787_v55, 0.0 }
 0x11b   :  { %v1337_v0 = vpack.c.bf16 %v816_v56, %v816_v56  ;;  %v1369_v1 = vpack.c.bf16 %v848_v57, %v848_v57  ;;  %v817_v2 = vmax.f32 %v753_v58, 0.0  ;;  %v849_v3 = vmax.f32 %v785_v59, 0.0 }
 0x11c   :  { %1139 = vst.msk [vmem:[%s2076_s4 + $0x68] sm:$0xf] %vm1112_vm3, %v1339_v60  ;;  %1171 = vst.msk [vmem:[%s2076_s4 + $0xe8] sm:$0xf] %vm1112_vm3, %v1371_v61  ;;  %v1340_v6 = vpack.c.bf16 %v819_v62, %v819_v62  ;;  %v1372_v7 = vpack.c.bf16 %v851_v63, %v851_v63  ;;  %v687_v8 = vmul.f32 %v1445_v4, %v1681_v38 }
 0x11d   :  { %v719_v9 = vmul.f32 %v1477_v5, %v1681_v38  ;;  %1137 = vst.msk [vmem:[%s2076_s4 + $0x60] sm:$0xf] %vm1112_vm3, %v1337_v0  ;;  %1169 = vst.msk [vmem:[%s2076_s4 + $0xe0] sm:$0xf] %vm1112_vm3, %v1369_v1  ;;  %v1338_v12 = vpack.c.bf16 %v817_v2, %v817_v2  ;;  %v1370_v13 = vpack.c.bf16 %v849_v3, %v849_v3 }
 0x11e   :  { %v685_v14 = vmul.f32 %v1681_v38, %v507_v10  ;;  %v717_v15 = vmul.f32 %v1681_v38, %v635_v11  ;;  %1140 = vst.msk [vmem:[%s2076_s4 + $0x6c] sm:$0xf] %vm1112_vm3, %v1340_v6  ;;  %1172 = vst.msk [vmem:[%s2076_s4 + $0xec] sm:$0xf] %vm1112_vm3, %v1372_v7  ;;  %v758_v18 = vadd.f32 %v1686_v40, %v687_v8 }
 0x11f   :  { %v790_v19 = vadd.f32 %v1686_v40, %v719_v9  ;;  %v688_v20 = vmul.f32 %v1446_v16, %v1681_v38  ;;  %v720_v21 = vmul.f32 %v1478_v17, %v1681_v38  ;;  %1138 = vst.msk [vmem:[%s2076_s4 + $0x64] sm:$0xf] %vm1112_vm3, %v1338_v12  ;;  %1170 = vst.msk [vmem:[%s2076_s4 + $0xe4] sm:$0xf] %vm1112_vm3, %v1370_v13 }
 0x120   :  { %v756_v24 = vadd.f32 %v1686_v40, %v685_v14  ;;  %v788_v25 = vadd.f32 %v1686_v40, %v717_v15  ;;  %v686_v26 = vmul.f32 %v1681_v38, %v510_v22  ;;  %v718_v27 = vmul.f32 %v1681_v38, %v638_v23 }
 0x121   :  { %v822_v28 = vmax.f32 %v758_v18, 0.0  ;;  %v854_v29 = vmax.f32 %v790_v19, 0.0  ;;  %v759_v30 = vadd.f32 %v1686_v40, %v688_v20  ;;  %v791_v31 = vadd.f32 %v1686_v40, %v720_v21 }
 0x122   :  { %v820_v32 = vmax.f32 %v756_v24, 0.0  ;;  %v852_v33 = vmax.f32 %v788_v25, 0.0  ;;  %v757_v34 = vadd.f32 %v1686_v40, %v686_v26  ;;  %v789_v35 = vadd.f32 %v1686_v40, %v718_v27 }
 0x123   :  { %v1343_v36 = vpack.c.bf16 %v822_v28, %v822_v28  ;;  %v1375_v37 = vpack.c.bf16 %v854_v29, %v854_v29  ;;  %v823_v39 = vmax.f32 %v759_v30, 0.0  ;;  %v855_v41 = vmax.f32 %v791_v31, 0.0 }
 0x124   :  { %v1341_v42 = vpack.c.bf16 %v820_v32, %v820_v32  ;;  %v1373_v43 = vpack.c.bf16 %v852_v33, %v852_v33  ;;  %v821_v44 = vmax.f32 %v757_v34, 0.0  ;;  %v853_v38 = vmax.f32 %v789_v35, 0.0 }
 0x125   :  { %1143 = vst.msk [vmem:[%s2076_s4 + $0x78] sm:$0xf] %vm1112_vm3, %v1343_v36  ;;  %1175 = vst.msk [vmem:[%s2076_s4 + $0xf8] sm:$0xf] %vm1112_vm3, %v1375_v37  ;;  %v1344_v45 = vpack.c.bf16 %v823_v39, %v823_v39  ;;  %v1376_v40 = vpack.c.bf16 %v855_v41, %v855_v41 }
 0x126   :  { %1141 = vst.msk [vmem:[%s2076_s4 + $0x70] sm:$0xf] %vm1112_vm3, %v1341_v42  ;;  %1173 = vst.msk [vmem:[%s2076_s4 + $0xf0] sm:$0xf] %vm1112_vm3, %v1373_v43  ;;  %v1342_v46 = vpack.c.bf16 %v821_v44, %v821_v44  ;;  %v1374_v47 = vpack.c.bf16 %v853_v38, %v853_v38 }
 0x127   :  { %1144 = vst.msk [vmem:[%s2076_s4 + $0x7c] sm:$0xf] %vm1112_vm3, %v1344_v45  ;;  %1176 = vst.msk [vmem:[%s2076_s4 + $0xfc] sm:$0xf] %vm1112_vm3, %v1376_v40 }
 0x128   :  { %1142 = vst.msk [vmem:[%s2076_s4 + $0x74] sm:$0xf] %vm1112_vm3, %v1342_v46  ;;  %1174 = vst.msk [vmem:[%s2076_s4 + $0xf4] sm:$0xf] %vm1112_vm3, %v1374_v47 }

// kernel: truenet_forward.24
= control target key start
LH: loop header
LB: loop body
LE: loop exit
PB: predicated region body
PF: predicated region fallthrough
CT: control target
= control target key end

     0   :  { %vm278_vm0 = vcmask 588800   ;;  %vm375_vm1 = vcmask 1043456   ;;  %vm1130_vm2 = vcmask 60416   ;;  %s2120_s1 = inlined_call_operand.vmem [shape: bf16[72,8], index: 1, kind: input, shape index: {}]   ;;  %s2121_s0 = inlined_call_operand.vmem [shape: bf16[512,72], index: 0, kind: input, shape index: {}]   ;;  %s2122_s2 = inlined_call_operand.vmem [shape: f32[1,8], index: 2, kind: input, shape index: {}]   ;;  %s2123_s3 = inlined_call_operand.vmem [shape: f32[1,8], index: 3, kind: input, shape index: {}]   ;;  %s2124_s4 = inlined_call_operand.vmem [shape: bf16[512,8], index: 4, kind: output, shape index: {}]  }
   0x1   :  { %v1521_v0 = vld [vmem:[%s2120_s1] sm:$0xff]   ;;  %v1522_v1 = vld [vmem:[%s2120_s1 + $0x8] sm:$0xff]   ;;  %v1523_v2 = vld [vmem:[%s2120_s1 + $0x10] sm:$0xff]  }
   0x2   :  { %1435 = vmatprep.subr.bf16.mxu0 %v1521_v0  ;;  %1509 = vmatprep.subr.bf16.mxu1 %v1521_v0  ;;  %v1526_v3 = vld [vmem:[%s2121_s0] sm:$0xff]   ;;  %v1524_v5 = vld [vmem:[%s2120_s1 + $0x18] sm:$0xff]   ;;  %v1528_v8 = vld [vmem:[%s2121_s0 + $0x8] sm:$0xff]  }
   0x3   :  { %1436 = vmatpush3.bf16.msra.mxu0 %v1521_v0  ;;  %1514 = vmatpush3.bf16.msra.mxu1 %v1521_v0  ;;  %v1527_v4 = vld [vmem:[%s2121_s0 + $0x80] sm:$0xff]   ;;  %v1529_v9 = vld [vmem:[%s2121_s0 + $0x88] sm:$0xff]   ;;  %v1530_v10 = vld [vmem:[%s2121_s0 + $0x10] sm:$0xff]  }
   0x4   :  { %1437 = vmatprep.subr.bf16.mxu0 %v1522_v1  ;;  %1510 = vmatprep.subr.bf16.mxu1 %v1522_v1  ;;  %v1525_v6 = vld [vmem:[%s2120_s1 + $0x20] ss:$0 sps:$4 sm:$0xff]   ;;  %v1531_v11 = vld [vmem:[%s2121_s0 + $0x90] sm:$0xff]   ;;  %v1532_v12 = vld [vmem:[%s2121_s0 + $0x18] sm:$0xff]  }
   0x5   :  { %1445 = vmatprep.mubr.msk.bf16.mxu0 %vm278_vm0, %v1526_v3  ;;  %1477 = vmatprep.mubr.msk.bf16.mxu1 %vm278_vm0, %v1527_v4  ;;  %v377_v7 = vsel %vm375_vm1, %v1525_v6, 0  ;;  %v1533_v13 = vld [vmem:[%s2121_s0 + $0x98] sm:$0xff]   ;;  %v1534_v14 = vld [vmem:[%s2121_s0 + $0x20] sm:$0xff]   ;;  %v1536_v16 = vld [vmem:[%s2121_s0 + $0x28] sm:$0xff]  }
   0x6   :  { %v1535_v15 = vld [vmem:[%s2121_s0 + $0xa0] sm:$0xff]   ;;  %v1537_v17 = vld [vmem:[%s2121_s0 + $0xa8] sm:$0xff]   ;;  %v1538_v18 = vld [vmem:[%s2121_s0 + $0x30] sm:$0xff]  }
   0x7   :  { %1438 = vmatpush3.bf16.msra.mxu0 %v1522_v1  ;;  %1515 = vmatpush3.bf16.msra.mxu1 %v1522_v1  ;;  %v1539_v19 = vld [vmem:[%s2121_s0 + $0xb0] sm:$0xff]   ;;  %v1540_v20 = vld [vmem:[%s2121_s0 + $0x38] sm:$0xff]   ;;  %v1542_v22 = vld [vmem:[%s2121_s0 + $0x40] sm:$0xff]  }
   0x8   :  { %1439 = vmatprep.subr.bf16.mxu0 %v1523_v2  ;;  %1511 = vmatprep.subr.bf16.mxu1 %v1523_v2  ;;  %v1541_v21 = vld [vmem:[%s2121_s0 + $0xb8] sm:$0xff]   ;;  %v1543_v23 = vld [vmem:[%s2121_s0 + $0xc0] sm:$0xff]   ;;  %v1544_v24 = vld [vmem:[%s2121_s0 + $0x48] sm:$0xff]  }
   0x9   :  { %v1545_v25 = vld [vmem:[%s2121_s0 + $0xc8] sm:$0xff]   ;;  %v1546_v26 = vld [vmem:[%s2121_s0 + $0x50] sm:$0xff]   ;;  %v1548_v28 = vld [vmem:[%s2121_s0 + $0x58] sm:$0xff]  }
   0xa   :  { %v1547_v27 = vld [vmem:[%s2121_s0 + $0xd0] sm:$0xff]   ;;  %v1549_v29 = vld [vmem:[%s2121_s0 + $0xd8] sm:$0xff]   ;;  %v1550_v30 = vld [vmem:[%s2121_s0 + $0x60] sm:$0xff]  }
   0xb   :  { %1440 = vmatpush3.bf16.msra.mxu0 %v1523_v2  ;;  %1516 = vmatpush3.bf16.msra.mxu1 %v1523_v2  ;;  %v1551_v31 = vld [vmem:[%s2121_s0 + $0xe0] sm:$0xff]   ;;  %v1552_v32 = vld [vmem:[%s2121_s0 + $0x68] sm:$0xff]   ;;  %v1554_v34 = vld [vmem:[%s2121_s0 + $0x70] sm:$0xff]  }
   0xc   :  { %1441 = vmatprep.subr.bf16.mxu0 %v1524_v5  ;;  %1512 = vmatprep.subr.bf16.mxu1 %v1524_v5  ;;  %v1553_v33 = vld [vmem:[%s2121_s0 + $0xe8] sm:$0xff]   ;;  %v1555_v35 = vld [vmem:[%s2121_s0 + $0xf0] sm:$0xff]   ;;  %v1556_v36 = vld [vmem:[%s2121_s0 + $0x78] sm:$0xff]  }
   0xd   :  { %v1557_v37 = vld [vmem:[%s2121_s0 + $0xf8] sm:$0xff]   ;;  %v1729_v38 = vld [vmem:[%s2122_s2] ss:$0 sm:$0xff] }
   0xe   :  { %v1734_v40 = vld [vmem:[%s2123_s3] ss:$0 sm:$0xff] }
   0xf   :  { %1442 = vmatpush3.bf16.msra.mxu0 %v1524_v5  ;;  %1517 = vmatpush3.bf16.msra.mxu1 %v1524_v5 }
  0x10   :  { %1519 = vmatprep.subr.msk.bf16.mxu0 %vm375_vm1, %v1525_v6  ;;  %1520 = vmatprep.subr.msk.bf16.mxu1 %vm375_vm1, %v1525_v6 }
  0x13   :  { %1444 = vmatpush3.bf16.msra.mxu0 %v377_v7  ;;  %1518 = vmatpush3.bf16.msra.mxu1 %v377_v7 }
  0x16   :  { %1446 = vmatmul.mubr.msk.bf16.vlgmr.msra.gmra.mrb[0].mxu0 %vm278_vm0, %v1528_v8  ;;  %1478 = vmatmul.mubr.msk.bf16.vlgmr.msra.gmra.mrb[0].mxu1 %vm278_vm0, %v1529_v9 }
  0x17   :  { %1449 = vmatprep.mubr.msk.bf16.mxu0 %vm278_vm0, %v1530_v10  ;;  %1481 = vmatprep.mubr.msk.bf16.mxu1 %vm278_vm0, %v1531_v11 }
  0x1e   :  { %1450 = vmatmul.mubr.msk.bf16.gmra.mrb[4].mxu0 %vm278_vm0, %v1532_v12  ;;  %1482 = vmatmul.mubr.msk.bf16.gmra.mrb[4].mxu1 %vm278_vm0, %v1533_v13 }
  0x1f   :  { %1453 = vmatprep.mubr.msk.bf16.mxu0 %vm278_vm0, %v1534_v14  ;;  %1485 = vmatprep.mubr.msk.bf16.mxu1 %vm278_vm0, %v1535_v15 }
  0x26   :  { %1454 = vmatmul.mubr.msk.bf16.gmra.mrb[8].mxu0 %vm278_vm0, %v1536_v16  ;;  %1486 = vmatmul.mubr.msk.bf16.gmra.mrb[8].mxu1 %vm278_vm0, %v1537_v17 }
  0x27   :  { %1457 = vmatprep.mubr.msk.bf16.mxu0 %vm278_vm0, %v1538_v18  ;;  %1489 = vmatprep.mubr.msk.bf16.mxu1 %vm278_vm0, %v1539_v19 }
  0x2e   :  { %1458 = vmatmul.mubr.msk.bf16.gmra.mrb[12].mxu0 %vm278_vm0, %v1540_v20  ;;  %1490 = vmatmul.mubr.msk.bf16.gmra.mrb[12].mxu1 %vm278_vm0, %v1541_v21 }
  0x2f   :  { %1461 = vmatprep.mubr.msk.bf16.mxu0 %vm278_vm0, %v1542_v22  ;;  %1493 = vmatprep.mubr.msk.bf16.mxu1 %vm278_vm0, %v1543_v23 }
  0x36   :  { %1462 = vmatmul.mubr.msk.bf16.gmra.mrb[16].mxu0 %vm278_vm0, %v1544_v24  ;;  %1494 = vmatmul.mubr.msk.bf16.gmra.mrb[16].mxu1 %vm278_vm0, %v1545_v25 }
  0x37   :  { %1465 = vmatprep.mubr.msk.bf16.mxu0 %vm278_vm0, %v1546_v26  ;;  %1497 = vmatprep.mubr.msk.bf16.mxu1 %vm278_vm0, %v1547_v27 }
  0x3e   :  { %1466 = vmatmul.mubr.msk.bf16.gmra.mrb[20].mxu0 %vm278_vm0, %v1548_v28  ;;  %1498 = vmatmul.mubr.msk.bf16.gmra.mrb[20].mxu1 %vm278_vm0, %v1549_v29 }
  0x3f   :  { %1469 = vmatprep.mubr.msk.bf16.mxu0 %vm278_vm0, %v1550_v30  ;;  %1501 = vmatprep.mubr.msk.bf16.mxu1 %vm278_vm0, %v1551_v31 }
  0x46   :  { %1470 = vmatmul.mubr.msk.bf16.gmra.mrb[24].mxu0 %vm278_vm0, %v1552_v32  ;;  %1502 = vmatmul.mubr.msk.bf16.gmra.mrb[24].mxu1 %vm278_vm0, %v1553_v33 }
  0x47   :  { %1473 = vmatprep.mubr.msk.bf16.mxu0 %vm278_vm0, %v1554_v34  ;;  %1505 = vmatprep.mubr.msk.bf16.mxu1 %vm278_vm0, %v1555_v35 }
  0x4e   :  { %1474 = vmatmul.mubr.msk.bf16.gmra.mrb[28].mxu0 %vm278_vm0, %v1556_v36  ;;  %1506 = vmatmul.mubr.msk.bf16.gmra.mrb[28].mxu1 %vm278_vm0, %v1557_v37 }
  0xe9   :  { %v1447_v39 = vpop.f32.mrb[0].mxu0  ;;  %v1479_v41 = vpop.f32.mrb[0].mxu1 }
  0xea   :  { %v677_v42 = vmul.f32 %v1447_v39, %v1729_v38  ;;  %v709_v43 = vmul.f32 %v1479_v41, %v1729_v38  ;;  %v413_v44 = vpop.f32.mrb[1].mxu0  ;;  %v541_v45 = vpop.f32.mrb[1].mxu1 }
  0xeb   :  { %v675_v46 = vmul.f32 %v1729_v38, %v413_v44  ;;  %v707_v47 = vmul.f32 %v1729_v38, %v541_v45  ;;  %v1448_v48 = vpop.f32.mrb[2].mxu0  ;;  %v1480_v49 = vpop.f32.mrb[2].mxu1 }
  0xec   :  { %v748_v50 = vadd.f32 %v1734_v40, %v677_v42  ;;  %v780_v51 = vadd.f32 %v1734_v40, %v709_v43  ;;  %v678_v52 = vmul.f32 %v1448_v48, %v1729_v38  ;;  %v710_v53 = vmul.f32 %v1480_v49, %v1729_v38  ;;  %v416_v54 = vpop.f32.mrb[3].mxu0  ;;  %v544_v55 = vpop.f32.mrb[3].mxu1 }
  0xed   :  { %v746_v56 = vadd.f32 %v1734_v40, %v675_v46  ;;  %v778_v57 = vadd.f32 %v1734_v40, %v707_v47  ;;  %v676_v58 = vmul.f32 %v1729_v38, %v416_v54  ;;  %v708_v59 = vmul.f32 %v1729_v38, %v544_v55 }
  0xee   :  { %v812_v60 = vmax.f32 %v748_v50, 0.0  ;;  %v844_v61 = vmax.f32 %v780_v51, 0.0  ;;  %v749_v62 = vadd.f32 %v1734_v40, %v678_v52  ;;  %v781_v63 = vadd.f32 %v1734_v40, %v710_v53 }
  0xef   :  { %v810_v0 = vmax.f32 %v746_v56, 0.0  ;;  %v842_v1 = vmax.f32 %v778_v57, 0.0  ;;  %v747_v2 = vadd.f32 %v1734_v40, %v676_v58  ;;  %v779_v3 = vadd.f32 %v1734_v40, %v708_v59 }
  0xf0   :  { %v1336_v4 = vpack.c.bf16 %v812_v60, %v812_v60  ;;  %v1368_v5 = vpack.c.bf16 %v844_v61, %v844_v61  ;;  %v813_v6 = vmax.f32 %v749_v62, 0.0  ;;  %v845_v7 = vmax.f32 %v781_v63, 0.0 }
  0xf1   :  { %v1334_v8 = vpack.c.bf16 %v810_v0, %v810_v0  ;;  %v1366_v9 = vpack.c.bf16 %v842_v1, %v842_v1  ;;  %v811_v10 = vmax.f32 %v747_v2, 0.0  ;;  %v843_v11 = vmax.f32 %v779_v3, 0.0  ;;  %v1451_v12 = vpop.f32.mrb[4].mxu0  ;;  %v1483_v13 = vpop.f32.mrb[4].mxu1 }
  0xf2   :  { %1133 = vst.msk [vmem:[%s2124_s4 + $0x8] sm:$0xf] %vm1130_vm2, %v1336_v4  ;;  %1165 = vst.msk [vmem:[%s2124_s4 + $0x88] sm:$0xf] %vm1130_vm2, %v1368_v5  ;;  %v1337_v14 = vpack.c.bf16 %v813_v6, %v813_v6  ;;  %v1369_v15 = vpack.c.bf16 %v845_v7, %v845_v7  ;;  %v681_v16 = vmul.f32 %v1451_v12, %v1729_v38  ;;  %v429_v18 = vpop.f32.mrb[5].mxu0  ;;  %v557_v19 = vpop.f32.mrb[5].mxu1 }
  0xf3   :  { %v713_v17 = vmul.f32 %v1483_v13, %v1729_v38  ;;  %1131 = vst.msk [vmem:[%s2124_s4] sm:$0xf] %vm1130_vm2, %v1334_v8  ;;  %1163 = vst.msk [vmem:[%s2124_s4 + $0x80] sm:$0xf] %vm1130_vm2, %v1366_v9  ;;  %v1335_v20 = vpack.c.bf16 %v811_v10, %v811_v10  ;;  %v1367_v21 = vpack.c.bf16 %v843_v11, %v843_v11  ;;  %v1452_v24 = vpop.f32.mrb[6].mxu0  ;;  %v1484_v25 = vpop.f32.mrb[6].mxu1 }
  0xf4   :  { %v679_v22 = vmul.f32 %v1729_v38, %v429_v18  ;;  %v711_v23 = vmul.f32 %v1729_v38, %v557_v19  ;;  %1134 = vst.msk [vmem:[%s2124_s4 + $0xc] sm:$0xf] %vm1130_vm2, %v1337_v14  ;;  %1166 = vst.msk [vmem:[%s2124_s4 + $0x8c] sm:$0xf] %vm1130_vm2, %v1369_v15  ;;  %v752_v26 = vadd.f32 %v1734_v40, %v681_v16  ;;  %v432_v30 = vpop.f32.mrb[7].mxu0  ;;  %v560_v31 = vpop.f32.mrb[7].mxu1 }
  0xf5   :  { %v784_v27 = vadd.f32 %v1734_v40, %v713_v17  ;;  %v682_v28 = vmul.f32 %v1452_v24, %v1729_v38  ;;  %v714_v29 = vmul.f32 %v1484_v25, %v1729_v38  ;;  %1132 = vst.msk [vmem:[%s2124_s4 + $0x4] sm:$0xf] %vm1130_vm2, %v1335_v20  ;;  %1164 = vst.msk [vmem:[%s2124_s4 + $0x84] sm:$0xf] %vm1130_vm2, %v1367_v21 }
  0xf6   :  { %v750_v32 = vadd.f32 %v1734_v40, %v679_v22  ;;  %v782_v33 = vadd.f32 %v1734_v40, %v711_v23  ;;  %v680_v34 = vmul.f32 %v1729_v38, %v432_v30  ;;  %v712_v35 = vmul.f32 %v1729_v38, %v560_v31 }
  0xf7   :  { %v816_v36 = vmax.f32 %v752_v26, 0.0  ;;  %v848_v37 = vmax.f32 %v784_v27, 0.0  ;;  %v753_v39 = vadd.f32 %v1734_v40, %v682_v28  ;;  %v785_v41 = vadd.f32 %v1734_v40, %v714_v29 }
  0xf8   :  { %v814_v42 = vmax.f32 %v750_v32, 0.0  ;;  %v846_v43 = vmax.f32 %v782_v33, 0.0  ;;  %v751_v44 = vadd.f32 %v1734_v40, %v680_v34  ;;  %v783_v45 = vadd.f32 %v1734_v40, %v712_v35 }
  0xf9   :  { %v1340_v46 = vpack.c.bf16 %v816_v36, %v816_v36  ;;  %v1372_v47 = vpack.c.bf16 %v848_v37, %v848_v37  ;;  %v817_v48 = vmax.f32 %v753_v39, 0.0  ;;  %v849_v49 = vmax.f32 %v785_v41, 0.0  ;;  %v1455_v54 = vpop.f32.mrb[8].mxu0  ;;  %v1487_v55 = vpop.f32.mrb[8].mxu1 }
  0xfa   :  { %v1338_v50 = vpack.c.bf16 %v814_v42, %v814_v42  ;;  %v1370_v51 = vpack.c.bf16 %v846_v43, %v846_v43  ;;  %v815_v52 = vmax.f32 %v751_v44, 0.0  ;;  %v847_v53 = vmax.f32 %v783_v45, 0.0  ;;  %v445_v60 = vpop.f32.mrb[9].mxu0  ;;  %v573_v61 = vpop.f32.mrb[9].mxu1 }
  0xfb   :  { %1137 = vst.msk [vmem:[%s2124_s4 + $0x18] sm:$0xf] %vm1130_vm2, %v1340_v46  ;;  %1169 = vst.msk [vmem:[%s2124_s4 + $0x98] sm:$0xf] %vm1130_vm2, %v1372_v47  ;;  %v1341_v56 = vpack.c.bf16 %v817_v48, %v817_v48  ;;  %v1373_v57 = vpack.c.bf16 %v849_v49, %v849_v49  ;;  %v685_v58 = vmul.f32 %v1455_v54, %v1729_v38  ;;  %v1456_v2 = vpop.f32.mrb[10].mxu0  ;;  %v1488_v3 = vpop.f32.mrb[10].mxu1 }
  0xfc   :  { %v717_v59 = vmul.f32 %v1487_v55, %v1729_v38  ;;  %1135 = vst.msk [vmem:[%s2124_s4 + $0x10] sm:$0xf] %vm1130_vm2, %v1338_v50  ;;  %1167 = vst.msk [vmem:[%s2124_s4 + $0x90] sm:$0xf] %vm1130_vm2, %v1370_v51  ;;  %v1339_v62 = vpack.c.bf16 %v815_v52, %v815_v52  ;;  %v1371_v63 = vpack.c.bf16 %v847_v53, %v847_v53  ;;  %v448_v8 = vpop.f32.mrb[11].mxu0  ;;  %v576_v9 = vpop.f32.mrb[11].mxu1 }
  0xfd   :  { %v683_v0 = vmul.f32 %v1729_v38, %v445_v60  ;;  %v715_v1 = vmul.f32 %v1729_v38, %v573_v61  ;;  %1138 = vst.msk [vmem:[%s2124_s4 + $0x1c] sm:$0xf] %vm1130_vm2, %v1341_v56  ;;  %1170 = vst.msk [vmem:[%s2124_s4 + $0x9c] sm:$0xf] %vm1130_vm2, %v1373_v57  ;;  %v756_v4 = vadd.f32 %v1734_v40, %v685_v58 }
  0xfe   :  { %v788_v5 = vadd.f32 %v1734_v40, %v717_v59  ;;  %v686_v6 = vmul.f32 %v1456_v2, %v1729_v38  ;;  %v718_v7 = vmul.f32 %v1488_v3, %v1729_v38  ;;  %1136 = vst.msk [vmem:[%s2124_s4 + $0x14] sm:$0xf] %vm1130_vm2, %v1339_v62  ;;  %1168 = vst.msk [vmem:[%s2124_s4 + $0x94] sm:$0xf] %vm1130_vm2, %v1371_v63 }
  0xff   :  { %v754_v10 = vadd.f32 %v1734_v40, %v683_v0  ;;  %v786_v11 = vadd.f32 %v1734_v40, %v715_v1  ;;  %v684_v12 = vmul.f32 %v1729_v38, %v448_v8  ;;  %v716_v13 = vmul.f32 %v1729_v38, %v576_v9 }
 0x100   :  { %v820_v14 = vmax.f32 %v756_v4, 0.0  ;;  %v852_v15 = vmax.f32 %v788_v5, 0.0  ;;  %v757_v16 = vadd.f32 %v1734_v40, %v686_v6  ;;  %v789_v17 = vadd.f32 %v1734_v40, %v718_v7 }
 0x101   :  { %v818_v18 = vmax.f32 %v754_v10, 0.0  ;;  %v850_v19 = vmax.f32 %v786_v11, 0.0  ;;  %v755_v20 = vadd.f32 %v1734_v40, %v684_v12  ;;  %v787_v21 = vadd.f32 %v1734_v40, %v716_v13  ;;  %v1459_v30 = vpop.f32.mrb[12].mxu0  ;;  %v1491_v31 = vpop.f32.mrb[12].mxu1 }
 0x102   :  { %v1344_v22 = vpack.c.bf16 %v820_v14, %v820_v14  ;;  %v1376_v23 = vpack.c.bf16 %v852_v15, %v852_v15  ;;  %v821_v24 = vmax.f32 %v757_v16, 0.0  ;;  %v853_v25 = vmax.f32 %v789_v17, 0.0  ;;  %v461_v36 = vpop.f32.mrb[13].mxu0  ;;  %v589_v37 = vpop.f32.mrb[13].mxu1 }
 0x103   :  { %v1342_v26 = vpack.c.bf16 %v818_v18, %v818_v18  ;;  %v1374_v27 = vpack.c.bf16 %v850_v19, %v850_v19  ;;  %v819_v28 = vmax.f32 %v755_v20, 0.0  ;;  %v851_v29 = vmax.f32 %v787_v21, 0.0  ;;  %v1460_v44 = vpop.f32.mrb[14].mxu0  ;;  %v1492_v45 = vpop.f32.mrb[14].mxu1 }
 0x104   :  { %1141 = vst.msk [vmem:[%s2124_s4 + $0x28] sm:$0xf] %vm1130_vm2, %v1344_v22  ;;  %1173 = vst.msk [vmem:[%s2124_s4 + $0xa8] sm:$0xf] %vm1130_vm2, %v1376_v23  ;;  %v1345_v32 = vpack.c.bf16 %v821_v24, %v821_v24  ;;  %v1377_v33 = vpack.c.bf16 %v853_v25, %v853_v25  ;;  %v689_v34 = vmul.f32 %v1459_v30, %v1729_v38  ;;  %v464_v50 = vpop.f32.mrb[15].mxu0  ;;  %v592_v51 = vpop.f32.mrb[15].mxu1 }
 0x105   :  { %v721_v35 = vmul.f32 %v1491_v31, %v1729_v38  ;;  %1139 = vst.msk [vmem:[%s2124_s4 + $0x20] sm:$0xf] %vm1130_vm2, %v1342_v26  ;;  %1171 = vst.msk [vmem:[%s2124_s4 + $0xa0] sm:$0xf] %vm1130_vm2, %v1374_v27  ;;  %v1343_v39 = vpack.c.bf16 %v819_v28, %v819_v28  ;;  %v1375_v41 = vpack.c.bf16 %v851_v29, %v851_v29 }
 0x106   :  { %v687_v42 = vmul.f32 %v1729_v38, %v461_v36  ;;  %v719_v43 = vmul.f32 %v1729_v38, %v589_v37  ;;  %1142 = vst.msk [vmem:[%s2124_s4 + $0x2c] sm:$0xf] %vm1130_vm2, %v1345_v32  ;;  %1174 = vst.msk [vmem:[%s2124_s4 + $0xac] sm:$0xf] %vm1130_vm2, %v1377_v33  ;;  %v760_v46 = vadd.f32 %v1734_v40, %v689_v34 }
 0x107   :  { %v792_v47 = vadd.f32 %v1734_v40, %v721_v35  ;;  %v690_v48 = vmul.f32 %v1460_v44, %v1729_v38  ;;  %v722_v49 = vmul.f32 %v1492_v45, %v1729_v38  ;;  %1140 = vst.msk [vmem:[%s2124_s4 + $0x24] sm:$0xf] %vm1130_vm2, %v1343_v39  ;;  %1172 = vst.msk [vmem:[%s2124_s4 + $0xa4] sm:$0xf] %vm1130_vm2, %v1375_v41 }
 0x108   :  { %v758_v52 = vadd.f32 %v1734_v40, %v687_v42  ;;  %v790_v53 = vadd.f32 %v1734_v40, %v719_v43  ;;  %v688_v54 = vmul.f32 %v1729_v38, %v464_v50  ;;  %v720_v55 = vmul.f32 %v1729_v38, %v592_v51 }
 0x109   :  { %v824_v56 = vmax.f32 %v760_v46, 0.0  ;;  %v856_v57 = vmax.f32 %v792_v47, 0.0  ;;  %v761_v58 = vadd.f32 %v1734_v40, %v690_v48  ;;  %v793_v59 = vadd.f32 %v1734_v40, %v722_v49  ;;  %v1463_v8 = vpop.f32.mrb[16].mxu0  ;;  %v1495_v9 = vpop.f32.mrb[16].mxu1 }
 0x10a   :  { %v822_v60 = vmax.f32 %v758_v52, 0.0  ;;  %v854_v61 = vmax.f32 %v790_v53, 0.0  ;;  %v759_v62 = vadd.f32 %v1734_v40, %v688_v54  ;;  %v791_v63 = vadd.f32 %v1734_v40, %v720_v55  ;;  %v477_v14 = vpop.f32.mrb[17].mxu0  ;;  %v605_v15 = vpop.f32.mrb[17].mxu1 }
 0x10b   :  { %v1348_v0 = vpack.c.bf16 %v824_v56, %v824_v56  ;;  %v1380_v1 = vpack.c.bf16 %v856_v57, %v856_v57  ;;  %v825_v2 = vmax.f32 %v761_v58, 0.0  ;;  %v857_v3 = vmax.f32 %v793_v59, 0.0  ;;  %v1464_v20 = vpop.f32.mrb[18].mxu0  ;;  %v1496_v21 = vpop.f32.mrb[18].mxu1 }
 0x10c   :  { %v1346_v4 = vpack.c.bf16 %v822_v60, %v822_v60  ;;  %v1378_v5 = vpack.c.bf16 %v854_v61, %v854_v61  ;;  %v823_v6 = vmax.f32 %v759_v62, 0.0  ;;  %v855_v7 = vmax.f32 %v791_v63, 0.0  ;;  %v480_v26 = vpop.f32.mrb[19].mxu0  ;;  %v608_v27 = vpop.f32.mrb[19].mxu1 }
 0x10d   :  { %1145 = vst.msk [vmem:[%s2124_s4 + $0x38] sm:$0xf] %vm1130_vm2, %v1348_v0  ;;  %1177 = vst.msk [vmem:[%s2124_s4 + $0xb8] sm:$0xf] %vm1130_vm2, %v1380_v1  ;;  %v1349_v10 = vpack.c.bf16 %v825_v2, %v825_v2  ;;  %v1381_v11 = vpack.c.bf16 %v857_v3, %v857_v3  ;;  %v693_v12 = vmul.f32 %v1463_v8, %v1729_v38 }
 0x10e   :  { %v725_v13 = vmul.f32 %v1495_v9, %v1729_v38  ;;  %1143 = vst.msk [vmem:[%s2124_s4 + $0x30] sm:$0xf] %vm1130_vm2, %v1346_v4  ;;  %1175 = vst.msk [vmem:[%s2124_s4 + $0xb0] sm:$0xf] %vm1130_vm2, %v1378_v5  ;;  %v1347_v16 = vpack.c.bf16 %v823_v6, %v823_v6  ;;  %v1379_v17 = vpack.c.bf16 %v855_v7, %v855_v7 }
 0x10f   :  { %v691_v18 = vmul.f32 %v1729_v38, %v477_v14  ;;  %v723_v19 = vmul.f32 %v1729_v38, %v605_v15  ;;  %1146 = vst.msk [vmem:[%s2124_s4 + $0x3c] sm:$0xf] %vm1130_vm2, %v1349_v10  ;;  %1178 = vst.msk [vmem:[%s2124_s4 + $0xbc] sm:$0xf] %vm1130_vm2, %v1381_v11  ;;  %v764_v22 = vadd.f32 %v1734_v40, %v693_v12 }
 0x110   :  { %v796_v23 = vadd.f32 %v1734_v40, %v725_v13  ;;  %v694_v24 = vmul.f32 %v1464_v20, %v1729_v38  ;;  %v726_v25 = vmul.f32 %v1496_v21, %v1729_v38  ;;  %1144 = vst.msk [vmem:[%s2124_s4 + $0x34] sm:$0xf] %vm1130_vm2, %v1347_v16  ;;  %1176 = vst.msk [vmem:[%s2124_s4 + $0xb4] sm:$0xf] %vm1130_vm2, %v1379_v17 }
 0x111   :  { %v762_v28 = vadd.f32 %v1734_v40, %v691_v18  ;;  %v794_v29 = vadd.f32 %v1734_v40, %v723_v19  ;;  %v692_v30 = vmul.f32 %v1729_v38, %v480_v26  ;;  %v724_v31 = vmul.f32 %v1729_v38, %v608_v27  ;;  %v1467_v50 = vpop.f32.mrb[20].mxu0  ;;  %v1499_v51 = vpop.f32.mrb[20].mxu1 }
 0x112   :  { %v828_v32 = vmax.f32 %v764_v22, 0.0  ;;  %v860_v33 = vmax.f32 %v796_v23, 0.0  ;;  %v765_v34 = vadd.f32 %v1734_v40, %v694_v24  ;;  %v797_v35 = vadd.f32 %v1734_v40, %v726_v25  ;;  %v493_v56 = vpop.f32.mrb[21].mxu0  ;;  %v621_v57 = vpop.f32.mrb[21].mxu1 }
 0x113   :  { %v826_v36 = vmax.f32 %v762_v28, 0.0  ;;  %v858_v37 = vmax.f32 %v794_v29, 0.0  ;;  %v763_v39 = vadd.f32 %v1734_v40, %v692_v30  ;;  %v795_v41 = vadd.f32 %v1734_v40, %v724_v31  ;;  %v1468_v62 = vpop.f32.mrb[22].mxu0  ;;  %v1500_v63 = vpop.f32.mrb[22].mxu1 }
 0x114   :  { %v1352_v42 = vpack.c.bf16 %v828_v32, %v828_v32  ;;  %v1384_v43 = vpack.c.bf16 %v860_v33, %v860_v33  ;;  %v829_v44 = vmax.f32 %v765_v34, 0.0  ;;  %v861_v45 = vmax.f32 %v797_v35, 0.0  ;;  %v496_v4 = vpop.f32.mrb[23].mxu0  ;;  %v624_v5 = vpop.f32.mrb[23].mxu1 }
 0x115   :  { %v1350_v46 = vpack.c.bf16 %v826_v36, %v826_v36  ;;  %v1382_v47 = vpack.c.bf16 %v858_v37, %v858_v37  ;;  %v827_v48 = vmax.f32 %v763_v39, 0.0  ;;  %v859_v49 = vmax.f32 %v795_v41, 0.0 }
 0x116   :  { %1149 = vst.msk [vmem:[%s2124_s4 + $0x48] sm:$0xf] %vm1130_vm2, %v1352_v42  ;;  %1181 = vst.msk [vmem:[%s2124_s4 + $0xc8] sm:$0xf] %vm1130_vm2, %v1384_v43  ;;  %v1353_v52 = vpack.c.bf16 %v829_v44, %v829_v44  ;;  %v1385_v53 = vpack.c.bf16 %v861_v45, %v861_v45  ;;  %v697_v54 = vmul.f32 %v1467_v50, %v1729_v38 }
 0x117   :  { %v729_v55 = vmul.f32 %v1499_v51, %v1729_v38  ;;  %1147 = vst.msk [vmem:[%s2124_s4 + $0x40] sm:$0xf] %vm1130_vm2, %v1350_v46  ;;  %1179 = vst.msk [vmem:[%s2124_s4 + $0xc0] sm:$0xf] %vm1130_vm2, %v1382_v47  ;;  %v1351_v58 = vpack.c.bf16 %v827_v48, %v827_v48  ;;  %v1383_v59 = vpack.c.bf16 %v859_v49, %v859_v49 }
 0x118   :  { %v695_v60 = vmul.f32 %v1729_v38, %v493_v56  ;;  %v727_v61 = vmul.f32 %v1729_v38, %v621_v57  ;;  %1150 = vst.msk [vmem:[%s2124_s4 + $0x4c] sm:$0xf] %vm1130_vm2, %v1353_v52  ;;  %1182 = vst.msk [vmem:[%s2124_s4 + $0xcc] sm:$0xf] %vm1130_vm2, %v1385_v53  ;;  %v768_v0 = vadd.f32 %v1734_v40, %v697_v54 }
 0x119   :  { %v800_v1 = vadd.f32 %v1734_v40, %v729_v55  ;;  %v698_v2 = vmul.f32 %v1468_v62, %v1729_v38  ;;  %v730_v3 = vmul.f32 %v1500_v63, %v1729_v38  ;;  %1148 = vst.msk [vmem:[%s2124_s4 + $0x44] sm:$0xf] %vm1130_vm2, %v1351_v58  ;;  %1180 = vst.msk [vmem:[%s2124_s4 + $0xc4] sm:$0xf] %vm1130_vm2, %v1383_v59  ;;  %v1471_v26 = vpop.f32.mrb[24].mxu0  ;;  %v1503_v27 = vpop.f32.mrb[24].mxu1 }
 0x11a   :  { %v766_v6 = vadd.f32 %v1734_v40, %v695_v60  ;;  %v798_v7 = vadd.f32 %v1734_v40, %v727_v61  ;;  %v696_v8 = vmul.f32 %v1729_v38, %v496_v4  ;;  %v728_v9 = vmul.f32 %v1729_v38, %v624_v5  ;;  %v509_v32 = vpop.f32.mrb[25].mxu0  ;;  %v637_v33 = vpop.f32.mrb[25].mxu1 }
 0x11b   :  { %v832_v10 = vmax.f32 %v768_v0, 0.0  ;;  %v864_v11 = vmax.f32 %v800_v1, 0.0  ;;  %v769_v12 = vadd.f32 %v1734_v40, %v698_v2  ;;  %v801_v13 = vadd.f32 %v1734_v40, %v730_v3  ;;  %v1472_v39 = vpop.f32.mrb[26].mxu0  ;;  %v1504_v41 = vpop.f32.mrb[26].mxu1 }
 0x11c   :  { %v830_v14 = vmax.f32 %v766_v6, 0.0  ;;  %v862_v15 = vmax.f32 %v798_v7, 0.0  ;;  %v767_v16 = vadd.f32 %v1734_v40, %v696_v8  ;;  %v799_v17 = vadd.f32 %v1734_v40, %v728_v9  ;;  %v512_v46 = vpop.f32.mrb[27].mxu0  ;;  %v640_v47 = vpop.f32.mrb[27].mxu1 }
 0x11d   :  { %v1356_v18 = vpack.c.bf16 %v832_v10, %v832_v10  ;;  %v1388_v19 = vpack.c.bf16 %v864_v11, %v864_v11  ;;  %v833_v20 = vmax.f32 %v769_v12, 0.0  ;;  %v865_v21 = vmax.f32 %v801_v13, 0.0 }
 0x11e   :  { %v1354_v22 = vpack.c.bf16 %v830_v14, %v830_v14  ;;  %v1386_v23 = vpack.c.bf16 %v862_v15, %v862_v15  ;;  %v831_v24 = vmax.f32 %v767_v16, 0.0  ;;  %v863_v25 = vmax.f32 %v799_v17, 0.0 }
 0x11f   :  { %1153 = vst.msk [vmem:[%s2124_s4 + $0x58] sm:$0xf] %vm1130_vm2, %v1356_v18  ;;  %1185 = vst.msk [vmem:[%s2124_s4 + $0xd8] sm:$0xf] %vm1130_vm2, %v1388_v19  ;;  %v1357_v28 = vpack.c.bf16 %v833_v20, %v833_v20  ;;  %v1389_v29 = vpack.c.bf16 %v865_v21, %v865_v21  ;;  %v701_v30 = vmul.f32 %v1471_v26, %v1729_v38 }
 0x120   :  { %v733_v31 = vmul.f32 %v1503_v27, %v1729_v38  ;;  %1151 = vst.msk [vmem:[%s2124_s4 + $0x50] sm:$0xf] %vm1130_vm2, %v1354_v22  ;;  %1183 = vst.msk [vmem:[%s2124_s4 + $0xd0] sm:$0xf] %vm1130_vm2, %v1386_v23  ;;  %v1355_v34 = vpack.c.bf16 %v831_v24, %v831_v24  ;;  %v1387_v35 = vpack.c.bf16 %v863_v25, %v863_v25 }
 0x121   :  { %v699_v36 = vmul.f32 %v1729_v38, %v509_v32  ;;  %v731_v37 = vmul.f32 %v1729_v38, %v637_v33  ;;  %1154 = vst.msk [vmem:[%s2124_s4 + $0x5c] sm:$0xf] %vm1130_vm2, %v1357_v28  ;;  %1186 = vst.msk [vmem:[%s2124_s4 + $0xdc] sm:$0xf] %vm1130_vm2, %v1389_v29  ;;  %v772_v42 = vadd.f32 %v1734_v40, %v701_v30  ;;  %v1475_v4 = vpop.f32.mrb[28].mxu0  ;;  %v1507_v5 = vpop.f32.mrb[28].mxu1 }
 0x122   :  { %v804_v43 = vadd.f32 %v1734_v40, %v733_v31  ;;  %v702_v44 = vmul.f32 %v1472_v39, %v1729_v38  ;;  %v734_v45 = vmul.f32 %v1504_v41, %v1729_v38  ;;  %1152 = vst.msk [vmem:[%s2124_s4 + $0x54] sm:$0xf] %vm1130_vm2, %v1355_v34  ;;  %1184 = vst.msk [vmem:[%s2124_s4 + $0xd4] sm:$0xf] %vm1130_vm2, %v1387_v35  ;;  %v525_v10 = vpop.f32.mrb[29].mxu0  ;;  %v653_v11 = vpop.f32.mrb[29].mxu1 }
 0x123   :  { %v770_v48 = vadd.f32 %v1734_v40, %v699_v36  ;;  %v802_v49 = vadd.f32 %v1734_v40, %v731_v37  ;;  %v700_v50 = vmul.f32 %v1729_v38, %v512_v46  ;;  %v732_v51 = vmul.f32 %v1729_v38, %v640_v47  ;;  %v1476_v16 = vpop.f32.mrb[30].mxu0  ;;  %v1508_v17 = vpop.f32.mrb[30].mxu1 }
 0x124   :  { %v836_v52 = vmax.f32 %v772_v42, 0.0  ;;  %v868_v53 = vmax.f32 %v804_v43, 0.0  ;;  %v773_v54 = vadd.f32 %v1734_v40, %v702_v44  ;;  %v805_v55 = vadd.f32 %v1734_v40, %v734_v45  ;;  %v528_v22 = vpop.f32.mrb[31].mxu0  ;;  %v656_v23 = vpop.f32.mrb[31].mxu1 }
 0x125   :  { %v834_v56 = vmax.f32 %v770_v48, 0.0  ;;  %v866_v57 = vmax.f32 %v802_v49, 0.0  ;;  %v771_v58 = vadd.f32 %v1734_v40, %v700_v50  ;;  %v803_v59 = vadd.f32 %v1734_v40, %v732_v51 }
 0x126   :  { %v1360_v60 = vpack.c.bf16 %v836_v52, %v836_v52  ;;  %v1392_v61 = vpack.c.bf16 %v868_v53, %v868_v53  ;;  %v837_v62 = vmax.f32 %v773_v54, 0.0  ;;  %v869_v63 = vmax.f32 %v805_v55, 0.0 }
 0x127   :  { %v1358_v0 = vpack.c.bf16 %v834_v56, %v834_v56  ;;  %v1390_v1 = vpack.c.bf16 %v866_v57, %v866_v57  ;;  %v835_v2 = vmax.f32 %v771_v58, 0.0  ;;  %v867_v3 = vmax.f32 %v803_v59, 0.0 }
 0x128   :  { %1157 = vst.msk [vmem:[%s2124_s4 + $0x68] sm:$0xf] %vm1130_vm2, %v1360_v60  ;;  %1189 = vst.msk [vmem:[%s2124_s4 + $0xe8] sm:$0xf] %vm1130_vm2, %v1392_v61  ;;  %v1361_v6 = vpack.c.bf16 %v837_v62, %v837_v62  ;;  %v1393_v7 = vpack.c.bf16 %v869_v63, %v869_v63  ;;  %v705_v8 = vmul.f32 %v1475_v4, %v1729_v38 }
 0x129   :  { %v737_v9 = vmul.f32 %v1507_v5, %v1729_v38  ;;  %1155 = vst.msk [vmem:[%s2124_s4 + $0x60] sm:$0xf] %vm1130_vm2, %v1358_v0  ;;  %1187 = vst.msk [vmem:[%s2124_s4 + $0xe0] sm:$0xf] %vm1130_vm2, %v1390_v1  ;;  %v1359_v12 = vpack.c.bf16 %v835_v2, %v835_v2  ;;  %v1391_v13 = vpack.c.bf16 %v867_v3, %v867_v3 }
 0x12a   :  { %v703_v14 = vmul.f32 %v1729_v38, %v525_v10  ;;  %v735_v15 = vmul.f32 %v1729_v38, %v653_v11  ;;  %1158 = vst.msk [vmem:[%s2124_s4 + $0x6c] sm:$0xf] %vm1130_vm2, %v1361_v6  ;;  %1190 = vst.msk [vmem:[%s2124_s4 + $0xec] sm:$0xf] %vm1130_vm2, %v1393_v7  ;;  %v776_v18 = vadd.f32 %v1734_v40, %v705_v8 }
 0x12b   :  { %v808_v19 = vadd.f32 %v1734_v40, %v737_v9  ;;  %v706_v20 = vmul.f32 %v1476_v16, %v1729_v38  ;;  %v738_v21 = vmul.f32 %v1508_v17, %v1729_v38  ;;  %1156 = vst.msk [vmem:[%s2124_s4 + $0x64] sm:$0xf] %vm1130_vm2, %v1359_v12  ;;  %1188 = vst.msk [vmem:[%s2124_s4 + $0xe4] sm:$0xf] %vm1130_vm2, %v1391_v13 }
 0x12c   :  { %v774_v24 = vadd.f32 %v1734_v40, %v703_v14  ;;  %v806_v25 = vadd.f32 %v1734_v40, %v735_v15  ;;  %v704_v26 = vmul.f32 %v1729_v38, %v528_v22  ;;  %v736_v27 = vmul.f32 %v1729_v38, %v656_v23 }
 0x12d   :  { %v840_v28 = vmax.f32 %v776_v18, 0.0  ;;  %v872_v29 = vmax.f32 %v808_v19, 0.0  ;;  %v777_v30 = vadd.f32 %v1734_v40, %v706_v20  ;;  %v809_v31 = vadd.f32 %v1734_v40, %v738_v21 }
 0x12e   :  { %v838_v32 = vmax.f32 %v774_v24, 0.0  ;;  %v870_v33 = vmax.f32 %v806_v25, 0.0  ;;  %v775_v34 = vadd.f32 %v1734_v40, %v704_v26  ;;  %v807_v35 = vadd.f32 %v1734_v40, %v736_v27 }
 0x12f   :  { %v1364_v36 = vpack.c.bf16 %v840_v28, %v840_v28  ;;  %v1396_v37 = vpack.c.bf16 %v872_v29, %v872_v29  ;;  %v841_v39 = vmax.f32 %v777_v30, 0.0  ;;  %v873_v41 = vmax.f32 %v809_v31, 0.0 }
 0x130   :  { %v1362_v42 = vpack.c.bf16 %v838_v32, %v838_v32  ;;  %v1394_v43 = vpack.c.bf16 %v870_v33, %v870_v33  ;;  %v839_v44 = vmax.f32 %v775_v34, 0.0  ;;  %v871_v38 = vmax.f32 %v807_v35, 0.0 }
 0x131   :  { %1161 = vst.msk [vmem:[%s2124_s4 + $0x78] sm:$0xf] %vm1130_vm2, %v1364_v36  ;;  %1193 = vst.msk [vmem:[%s2124_s4 + $0xf8] sm:$0xf] %vm1130_vm2, %v1396_v37  ;;  %v1365_v45 = vpack.c.bf16 %v841_v39, %v841_v39  ;;  %v1397_v40 = vpack.c.bf16 %v873_v41, %v873_v41 }
 0x132   :  { %1159 = vst.msk [vmem:[%s2124_s4 + $0x70] sm:$0xf] %vm1130_vm2, %v1362_v42  ;;  %1191 = vst.msk [vmem:[%s2124_s4 + $0xf0] sm:$0xf] %vm1130_vm2, %v1394_v43  ;;  %v1363_v46 = vpack.c.bf16 %v839_v44, %v839_v44  ;;  %v1395_v47 = vpack.c.bf16 %v871_v38, %v871_v38 }
 0x133   :  { %1162 = vst.msk [vmem:[%s2124_s4 + $0x7c] sm:$0xf] %vm1130_vm2, %v1365_v45  ;;  %1194 = vst.msk [vmem:[%s2124_s4 + $0xfc] sm:$0xf] %vm1130_vm2, %v1397_v40 }
 0x134   :  { %1160 = vst.msk [vmem:[%s2124_s4 + $0x74] sm:$0xf] %vm1130_vm2, %v1363_v46  ;;  %1192 = vst.msk [vmem:[%s2124_s4 + $0xf4] sm:$0xf] %vm1130_vm2, %v1395_v47 }

// kernel: truenet_forward.25
= control target key start
LH: loop header
LB: loop body
LE: loop exit
PB: predicated region body
PF: predicated region fallthrough
CT: control target
= control target key end

     0   :  { %s158_s22 = smov 120   ;;  %vm136_vm0 = vcmask 60416   ;;  %s369_s0 = inlined_call_operand.vmem [shape: bf16[16,2,8,16], index: 0, kind: input, shape index: {}]   ;;  %s370_s1 = inlined_call_operand.vmem [shape: bf16[16,8,8], index: 1, kind: output, shape index: {}]  }
   0x1   :  { %v12_v0 = vld [vmem:[%s369_s0 + $0x10] sm:$0xf]  ;;  %v13_v1 = vld [vmem:[%s369_s0 + $0x14] sm:$0xf]  ;;  %v8_v2 = vld [vmem:[%s369_s0] sm:$0xf] }
   0x2   :  { %v178_v3 = vmax.bf16 %v13_v1, %v12_v0  ;;  %v9_v4 = vld [vmem:[%s369_s0 + $0x4] sm:$0xf]  ;;  %v14_v5 = vld [vmem:[%s369_s0 + $0x18] sm:$0xf]  ;;  %v15_v6 = vld [vmem:[%s369_s0 + $0x1c] sm:$0xf] }
   0x3   :  { %v189_v7 = vmax.bf16 %v9_v4, %v8_v2  ;;  %v10_v8 = vld [vmem:[%s369_s0 + $0x8] sm:$0xf]  ;;  %v11_v9 = vld [vmem:[%s369_s0 + $0xc] sm:$0xf]  ;;  %v199_v10 = vmax.bf16 %v15_v6, %v14_v5  ;;  %v16_v14 = vld [vmem:[%s369_s0 + $0x20] sm:$0xf] }
   0x4   :  { %76 = vrot.lane.b32.xlu1 %v178_v3, %s158_s22  ;;  %v203_v11 = vmax.bf16 %v11_v9, %v10_v8  ;;  %v18_v12 = vld [vmem:[%s369_s0 + $0x28] sm:$0xf]  ;;  %v19_v13 = vld [vmem:[%s369_s0 + $0x2c] sm:$0xf]  ;;  %v17_v15 = vld [vmem:[%s369_s0 + $0x24] sm:$0xf] }
   0x5   :  { %72 = vrot.lane.b32.xlu0 %v189_v7, %s158_s22  ;;  %v219_v16 = vmax.bf16 %v19_v13, %v18_v12  ;;  %v223_v17 = vmax.bf16 %v17_v15, %v16_v14  ;;  %v22_v18 = vld [vmem:[%s369_s0 + $0x38] sm:$0xf]  ;;  %v23_v19 = vld [vmem:[%s369_s0 + $0x3c] sm:$0xf]  ;;  %v20_v20 = vld [vmem:[%s369_s0 + $0x30] sm:$0xf] }
   0x6   :  { %v21_v21 = vld [vmem:[%s369_s0 + $0x34] sm:$0xf]  ;;  %v47_v22 = vmax.bf16 %v23_v19, %v22_v18  ;;  %v26_v24 = vld [vmem:[%s369_s0 + $0x48] sm:$0xf]  ;;  %v27_v25 = vld [vmem:[%s369_s0 + $0x4c] sm:$0xf] }
   0x7   :  { %v46_v23 = vmax.bf16 %v21_v21, %v20_v20  ;;  %v24_v26 = vld [vmem:[%s369_s0 + $0x40] sm:$0xf]  ;;  %v25_v27 = vld [vmem:[%s369_s0 + $0x44] sm:$0xf]  ;;  %v49_v28 = vmax.bf16 %v27_v25, %v26_v24  ;;  %v30_v30 = vld [vmem:[%s369_s0 + $0x58] sm:$0xf] }
   0x8   :  { %78 = vrot.lane.b32.xlu1 %v199_v10, %s158_s22  ;;  %v48_v29 = vmax.bf16 %v25_v27, %v24_v26  ;;  %v31_v31 = vld [vmem:[%s369_s0 + $0x5c] sm:$0xf]  ;;  %v28_v32 = vld [vmem:[%s369_s0 + $0x50] sm:$0xf]  ;;  %v29_v33 = vld [vmem:[%s369_s0 + $0x54] sm:$0xf] }
   0x9   :  { %74 = vrot.lane.b32.xlu0 %v203_v11, %s158_s22  ;;  %v51_v34 = vmax.bf16 %v31_v31, %v30_v30  ;;  %v50_v35 = vmax.bf16 %v29_v33, %v28_v32  ;;  %v34_v36 = vld [vmem:[%s369_s0 + $0x68] sm:$0xf]  ;;  %v35_v37 = vld [vmem:[%s369_s0 + $0x6c] sm:$0xf]  ;;  %v32_v38 = vld [vmem:[%s369_s0 + $0x60] sm:$0xf] }
   0xa   :  { %v33_v39 = vld [vmem:[%s369_s0 + $0x64] sm:$0xf]  ;;  %v53_v40 = vmax.bf16 %v35_v37, %v34_v36  ;;  %v38_v42 = vld [vmem:[%s369_s0 + $0x78] sm:$0xf]  ;;  %v39_v43 = vld [vmem:[%s369_s0 + $0x7c] sm:$0xf] }
   0xb   :  { %v52_v41 = vmax.bf16 %v33_v39, %v32_v38  ;;  %v36_v44 = vld [vmem:[%s369_s0 + $0x70] sm:$0xf]  ;;  %v37_v45 = vld [vmem:[%s369_s0 + $0x74] sm:$0xf]  ;;  %v55_v46 = vmax.bf16 %v39_v43, %v38_v42 }
   0xc   :  { %82 = vrot.lane.b32.xlu1 %v219_v16, %s158_s22  ;;  %v54_v47 = vmax.bf16 %v37_v45, %v36_v44 }
   0xd   :  { %80 = vrot.lane.b32.xlu0 %v223_v17, %s158_s22 }
  0x10   :  { %86 = vrot.lane.b32.xlu1 %v47_v22, %s158_s22 }
  0x11   :  { %84 = vrot.lane.b32.xlu0 %v46_v23, %s158_s22 }
  0x14   :  { %90 = vrot.lane.b32.xlu1 %v49_v28, %s158_s22 }
  0x15   :  { %88 = vrot.lane.b32.xlu0 %v48_v29, %s158_s22 }
  0x18   :  { %94 = vrot.lane.b32.xlu1 %v51_v34, %s158_s22 }
  0x19   :  { %92 = vrot.lane.b32.xlu0 %v50_v35, %s158_s22 }
  0x1c   :  { %98 = vrot.lane.b32.xlu1 %v53_v40, %s158_s22 }
  0x1d   :  { %96 = vrot.lane.b32.xlu0 %v52_v41, %s158_s22 }
  0x20   :  { %102 = vrot.lane.b32.xlu1 %v55_v46, %s158_s22 }
  0x21   :  { %100 = vrot.lane.b32.xlu0 %v54_v47, %s158_s22 }
  0x76   :  { %v77_v48 = vpop.permute.xlu1 %76 }
  0x77   :  { %v122_v49 = vmax.bf16 %v77_v48, %v178_v3  ;;  %v73_v50 = vpop.permute.xlu0 %72 }
  0x78   :  { %v120_v51 = vmax.bf16 %v73_v50, %v189_v7 }
  0x79   :  { %139 = vst.msk [vmem:[%s370_s1 + $0x8] sm:$0xf] %vm136_vm0, %v122_v49 }
  0x7a   :  { %137 = vst.msk [vmem:[%s370_s1] sm:$0xf] %vm136_vm0, %v120_v51  ;;  %v79_v52 = vpop.permute.xlu1 %78 }
  0x7b   :  { %v123_v53 = vmax.bf16 %v79_v52, %v199_v10  ;;  %v75_v54 = vpop.permute.xlu0 %74 }
  0x7c   :  { %v121_v55 = vmax.bf16 %v75_v54, %v203_v11 }
  0x7d   :  { %140 = vst.msk [vmem:[%s370_s1 + $0xc] sm:$0xf] %vm136_vm0, %v123_v53 }
  0x7e   :  { %138 = vst.msk [vmem:[%s370_s1 + $0x4] sm:$0xf] %vm136_vm0, %v121_v55  ;;  %v83_v56 = vpop.permute.xlu1 %82 }
  0x7f   :  { %v125_v57 = vmax.bf16 %v83_v56, %v219_v16  ;;  %v81_v58 = vpop.permute.xlu0 %80 }
  0x80   :  { %v124_v59 = vmax.bf16 %v81_v58, %v223_v17 }
  0x81   :  { %142 = vst.msk [vmem:[%s370_s1 + $0x14] sm:$0xf] %vm136_vm0, %v125_v57 }
  0x82   :  { %141 = vst.msk [vmem:[%s370_s1 + $0x10] sm:$0xf] %vm136_vm0, %v124_v59  ;;  %v87_v60 = vpop.permute.xlu1 %86 }
  0x83   :  { %v127_v61 = vmax.bf16 %v87_v60, %v47_v22  ;;  %v85_v62 = vpop.permute.xlu0 %84 }
  0x84   :  { %v126_v63 = vmax.bf16 %v85_v62, %v46_v23 }
  0x85   :  { %144 = vst.msk [vmem:[%s370_s1 + $0x1c] sm:$0xf] %vm136_vm0, %v127_v61 }
  0x86   :  { %143 = vst.msk [vmem:[%s370_s1 + $0x18] sm:$0xf] %vm136_vm0, %v126_v63  ;;  %v91_v0 = vpop.permute.xlu1 %90 }
  0x87   :  { %v129_v1 = vmax.bf16 %v91_v0, %v49_v28  ;;  %v89_v2 = vpop.permute.xlu0 %88 }
  0x88   :  { %v128_v3 = vmax.bf16 %v89_v2, %v48_v29 }
  0x89   :  { %146 = vst.msk [vmem:[%s370_s1 + $0x24] sm:$0xf] %vm136_vm0, %v129_v1 }
  0x8a   :  { %145 = vst.msk [vmem:[%s370_s1 + $0x20] sm:$0xf] %vm136_vm0, %v128_v3  ;;  %v95_v4 = vpop.permute.xlu1 %94 }
  0x8b   :  { %v131_v5 = vmax.bf16 %v95_v4, %v51_v34  ;;  %v93_v6 = vpop.permute.xlu0 %92 }
  0x8c   :  { %v130_v7 = vmax.bf16 %v93_v6, %v50_v35 }
  0x8d   :  { %148 = vst.msk [vmem:[%s370_s1 + $0x2c] sm:$0xf] %vm136_vm0, %v131_v5 }
  0x8e   :  { %147 = vst.msk [vmem:[%s370_s1 + $0x28] sm:$0xf] %vm136_vm0, %v130_v7  ;;  %v99_v8 = vpop.permute.xlu1 %98 }
  0x8f   :  { %v133_v9 = vmax.bf16 %v99_v8, %v53_v40  ;;  %v97_v10 = vpop.permute.xlu0 %96 }
  0x90   :  { %v132_v11 = vmax.bf16 %v97_v10, %v52_v41 }
  0x91   :  { %150 = vst.msk [vmem:[%s370_s1 + $0x34] sm:$0xf] %vm136_vm0, %v133_v9 }
  0x92   :  { %149 = vst.msk [vmem:[%s370_s1 + $0x30] sm:$0xf] %vm136_vm0, %v132_v11  ;;  %v103_v12 = vpop.permute.xlu1 %102 }
  0x93   :  { %v135_v13 = vmax.bf16 %v103_v12, %v55_v46  ;;  %v101_v14 = vpop.permute.xlu0 %100 }
  0x94   :  { %v134_v15 = vmax.bf16 %v101_v14, %v54_v47 }
  0x95   :  { %152 = vst.msk [vmem:[%s370_s1 + $0x3c] sm:$0xf] %vm136_vm0, %v135_v13 }
  0x96   :  { %151 = vst.msk [vmem:[%s370_s1 + $0x38] sm:$0xf] %vm136_vm0, %v134_v15 }

// kernel: truenet_forward.28
= control target key start
LH: loop header
LB: loop body
LE: loop exit
PB: predicated region body
PF: predicated region fallthrough
CT: control target
= control target key end

     0   :  { %s86_s22 = smov 112   ;;  %vm72_vm0 = vcmask 123904   ;;  %s177_s0 = inlined_call_operand.vmem [shape: bf16[8,2,4,32], index: 0, kind: input, shape index: {}]   ;;  %s178_s1 = inlined_call_operand.vmem [shape: bf16[8,4,16], index: 1, kind: output, shape index: {}]  }
   0x1   :  { %v12_v0 = vld [vmem:[%s177_s0 + $0x8] sm:$0x3]  ;;  %v13_v1 = vld [vmem:[%s177_s0 + $0xa] sm:$0x3]  ;;  %v8_v2 = vld [vmem:[%s177_s0] sm:$0x3] }
   0x2   :  { %v26_v3 = vmax.bf16 %v13_v1, %v12_v0  ;;  %v9_v4 = vld [vmem:[%s177_s0 + $0x2] sm:$0x3]  ;;  %v14_v5 = vld [vmem:[%s177_s0 + $0xc] sm:$0x3]  ;;  %v15_v6 = vld [vmem:[%s177_s0 + $0xe] sm:$0x3] }
   0x3   :  { %v24_v7 = vmax.bf16 %v9_v4, %v8_v2  ;;  %v10_v8 = vld [vmem:[%s177_s0 + $0x4] sm:$0x3]  ;;  %v11_v9 = vld [vmem:[%s177_s0 + $0x6] sm:$0x3]  ;;  %v27_v10 = vmax.bf16 %v15_v6, %v14_v5  ;;  %v18_v12 = vld [vmem:[%s177_s0 + $0x14] sm:$0x3] }
   0x4   :  { %44 = vrot.lane.b32.xlu1 %v26_v3, %s86_s22  ;;  %v25_v11 = vmax.bf16 %v11_v9, %v10_v8  ;;  %v19_v13 = vld [vmem:[%s177_s0 + $0x16] sm:$0x3]  ;;  %v16_v14 = vld [vmem:[%s177_s0 + $0x10] sm:$0x3]  ;;  %v17_v15 = vld [vmem:[%s177_s0 + $0x12] sm:$0x3] }
   0x5   :  { %40 = vrot.lane.b32.xlu0 %v24_v7, %s86_s22  ;;  %v29_v16 = vmax.bf16 %v19_v13, %v18_v12  ;;  %v28_v17 = vmax.bf16 %v17_v15, %v16_v14  ;;  %v22_v18 = vld [vmem:[%s177_s0 + $0x1c] sm:$0x3]  ;;  %v23_v19 = vld [vmem:[%s177_s0 + $0x1e] sm:$0x3]  ;;  %v20_v20 = vld [vmem:[%s177_s0 + $0x18] sm:$0x3] }
   0x6   :  { %v21_v21 = vld [vmem:[%s177_s0 + $0x1a] sm:$0x3]  ;;  %v31_v22 = vmax.bf16 %v23_v19, %v22_v18 }
   0x7   :  { %v30_v23 = vmax.bf16 %v21_v21, %v20_v20 }
   0x8   :  { %46 = vrot.lane.b32.xlu1 %v27_v10, %s86_s22 }
   0x9   :  { %42 = vrot.lane.b32.xlu0 %v25_v11, %s86_s22 }
   0xc   :  { %50 = vrot.lane.b32.xlu1 %v29_v16, %s86_s22 }
   0xd   :  { %48 = vrot.lane.b32.xlu0 %v28_v17, %s86_s22 }
  0x10   :  { %54 = vrot.lane.b32.xlu1 %v31_v22, %s86_s22 }
  0x11   :  { %52 = vrot.lane.b32.xlu0 %v30_v23, %s86_s22 }
  0x76   :  { %v45_v24 = vpop.permute.xlu1 %44 }
  0x77   :  { %v66_v25 = vmax.bf16 %v45_v24, %v26_v3  ;;  %v41_v26 = vpop.permute.xlu0 %40 }
  0x78   :  { %v64_v27 = vmax.bf16 %v41_v26, %v24_v7 }
  0x79   :  { %75 = vst.msk [vmem:[%s178_s1 + $0x4] sm:$0x3] %vm72_vm0, %v66_v25 }
  0x7a   :  { %73 = vst.msk [vmem:[%s178_s1] sm:$0x3] %vm72_vm0, %v64_v27  ;;  %v47_v28 = vpop.permute.xlu1 %46 }
  0x7b   :  { %v67_v29 = vmax.bf16 %v47_v28, %v27_v10  ;;  %v43_v30 = vpop.permute.xlu0 %42 }
  0x7c   :  { %v65_v31 = vmax.bf16 %v43_v30, %v25_v11 }
  0x7d   :  { %76 = vst.msk [vmem:[%s178_s1 + $0x6] sm:$0x3] %vm72_vm0, %v67_v29 }
  0x7e   :  { %74 = vst.msk [vmem:[%s178_s1 + $0x2] sm:$0x3] %vm72_vm0, %v65_v31  ;;  %v51_v32 = vpop.permute.xlu1 %50 }
  0x7f   :  { %v69_v33 = vmax.bf16 %v51_v32, %v29_v16  ;;  %v49_v34 = vpop.permute.xlu0 %48 }
  0x80   :  { %v68_v35 = vmax.bf16 %v49_v34, %v28_v17 }
  0x81   :  { %78 = vst.msk [vmem:[%s178_s1 + $0xa] sm:$0x3] %vm72_vm0, %v69_v33 }
  0x82   :  { %77 = vst.msk [vmem:[%s178_s1 + $0x8] sm:$0x3] %vm72_vm0, %v68_v35  ;;  %v55_v36 = vpop.permute.xlu1 %54 }
  0x83   :  { %v71_v37 = vmax.bf16 %v55_v36, %v31_v22  ;;  %v53_v38 = vpop.permute.xlu0 %52 }
  0x84   :  { %v70_v39 = vmax.bf16 %v53_v38, %v30_v23 }
  0x85   :  { %80 = vst.msk [vmem:[%s178_s1 + $0xe] sm:$0x3] %vm72_vm0, %v71_v37 }
  0x86   :  { %79 = vst.msk [vmem:[%s178_s1 + $0xc] sm:$0x3] %vm72_vm0, %v70_v39 }

// kernel: truenet_forward.26
= control target key start
LH: loop header
LB: loop body
LE: loop exit
PB: predicated region body
PF: predicated region fallthrough
CT: control target
= control target key end

     0   :  { %vm110_vm0 = vcmask 588800   ;;  %vm135_vm1 = vcmask 1043456   ;;  %vm362_vm2 = vcmask 125952   ;;  %s680_s1 = inlined_call_operand.vmem [shape: bf16[72,16], index: 1, kind: input, shape index: {}]   ;;  %s681_s0 = inlined_call_operand.vmem [shape: bf16[128,72], index: 0, kind: input, shape index: {}]   ;;  %s682_s2 = inlined_call_operand.vmem [shape: f32[1,16], index: 2, kind: input, shape index: {}]   ;;  %s683_s3 = inlined_call_operand.vmem [shape: f32[1,16], index: 3, kind: input, shape index: {}]   ;;  %s684_s4 = inlined_call_operand.vmem [shape: bf16[128,16], index: 4, kind: output, shape index: {}]  }
   0x1   :  { %v489_v0 = vld [vmem:[%s680_s1] sm:$0xff]   ;;  %v490_v1 = vld [vmem:[%s680_s1 + $0x8] sm:$0xff]   ;;  %v491_v2 = vld [vmem:[%s680_s1 + $0x10] sm:$0xff]  }
   0x2   :  { %451 = vmatprep.subr.bf16.mxu0 %v489_v0  ;;  %477 = vmatprep.subr.bf16.mxu1 %v489_v0  ;;  %v494_v3 = vld [vmem:[%s681_s0] sm:$0xff]   ;;  %v492_v5 = vld [vmem:[%s680_s1 + $0x18] sm:$0xff]   ;;  %v496_v8 = vld [vmem:[%s681_s0 + $0x8] sm:$0xff]  }
   0x3   :  { %452 = vmatpush3.bf16.msra.mxu0 %v489_v0  ;;  %482 = vmatpush3.bf16.msra.mxu1 %v489_v0  ;;  %v495_v4 = vld [vmem:[%s681_s0 + $0x20] sm:$0xff]   ;;  %v497_v9 = vld [vmem:[%s681_s0 + $0x28] sm:$0xff]   ;;  %v498_v10 = vld [vmem:[%s681_s0 + $0x10] sm:$0xff]  }
   0x4   :  { %453 = vmatprep.subr.bf16.mxu0 %v490_v1  ;;  %478 = vmatprep.subr.bf16.mxu1 %v490_v1  ;;  %v493_v6 = vld [vmem:[%s680_s1 + $0x20] ss:$0 sps:$4 sm:$0xff]   ;;  %v499_v11 = vld [vmem:[%s681_s0 + $0x30] sm:$0xff]   ;;  %v500_v12 = vld [vmem:[%s681_s0 + $0x18] sm:$0xff]  }
   0x5   :  { %461 = vmatprep.mubr.msk.bf16.mxu0 %vm110_vm0, %v494_v3  ;;  %469 = vmatprep.mubr.msk.bf16.mxu1 %vm110_vm0, %v495_v4  ;;  %v137_v7 = vsel %vm135_vm1, %v493_v6, 0  ;;  %v501_v13 = vld [vmem:[%s681_s0 + $0x38] sm:$0xff]   ;;  %v577_v14 = vld [vmem:[%s682_s2] ss:$0 sm:$0xff] }
   0x6   :  { %v582_v16 = vld [vmem:[%s683_s3] ss:$0 sm:$0xff] }
   0x7   :  { %454 = vmatpush3.bf16.msra.mxu0 %v490_v1  ;;  %483 = vmatpush3.bf16.msra.mxu1 %v490_v1 }
   0x8   :  { %455 = vmatprep.subr.bf16.mxu0 %v491_v2  ;;  %479 = vmatprep.subr.bf16.mxu1 %v491_v2 }
   0xb   :  { %456 = vmatpush3.bf16.msra.mxu0 %v491_v2  ;;  %484 = vmatpush3.bf16.msra.mxu1 %v491_v2 }
   0xc   :  { %457 = vmatprep.subr.bf16.mxu0 %v492_v5  ;;  %480 = vmatprep.subr.bf16.mxu1 %v492_v5 }
   0xf   :  { %458 = vmatpush3.bf16.msra.mxu0 %v492_v5  ;;  %485 = vmatpush3.bf16.msra.mxu1 %v492_v5 }
  0x10   :  { %487 = vmatprep.subr.msk.bf16.mxu0 %vm135_vm1, %v493_v6  ;;  %488 = vmatprep.subr.msk.bf16.mxu1 %vm135_vm1, %v493_v6 }
  0x13   :  { %460 = vmatpush3.bf16.msra.mxu0 %v137_v7  ;;  %486 = vmatpush3.bf16.msra.mxu1 %v137_v7 }
  0x16   :  { %462 = vmatmul.mubr.msk.bf16.vlgmr.msra.gmra.mrb[0].mxu0 %vm110_vm0, %v496_v8  ;;  %470 = vmatmul.mubr.msk.bf16.vlgmr.msra.gmra.mrb[0].mxu1 %vm110_vm0, %v497_v9 }
  0x17   :  { %465 = vmatprep.mubr.msk.bf16.mxu0 %vm110_vm0, %v498_v10  ;;  %473 = vmatprep.mubr.msk.bf16.mxu1 %vm110_vm0, %v499_v11 }
  0x1e   :  { %466 = vmatmul.mubr.msk.bf16.gmra.mrb[4].mxu0 %vm110_vm0, %v500_v12  ;;  %474 = vmatmul.mubr.msk.bf16.gmra.mrb[4].mxu1 %vm110_vm0, %v501_v13 }
  0xe9   :  { %v463_v15 = vpop.f32.mrb[0].mxu0  ;;  %v471_v17 = vpop.f32.mrb[0].mxu1 }
  0xea   :  { %v245_v18 = vmul.f32 %v463_v15, %v577_v14  ;;  %v253_v19 = vmul.f32 %v471_v17, %v577_v14  ;;  %v173_v20 = vpop.f32.mrb[1].mxu0  ;;  %v205_v21 = vpop.f32.mrb[1].mxu1 }
  0xeb   :  { %v243_v22 = vmul.f32 %v577_v14, %v173_v20  ;;  %v251_v23 = vmul.f32 %v577_v14, %v205_v21  ;;  %v464_v24 = vpop.f32.mrb[2].mxu0  ;;  %v472_v25 = vpop.f32.mrb[2].mxu1 }
  0xec   :  { %v268_v26 = vadd.f32 %v582_v16, %v245_v18  ;;  %v276_v27 = vadd.f32 %v582_v16, %v253_v19  ;;  %v246_v28 = vmul.f32 %v464_v24, %v577_v14  ;;  %v254_v29 = vmul.f32 %v472_v25, %v577_v14  ;;  %v176_v30 = vpop.f32.mrb[3].mxu0  ;;  %v208_v31 = vpop.f32.mrb[3].mxu1 }
  0xed   :  { %v266_v32 = vadd.f32 %v582_v16, %v243_v22  ;;  %v274_v33 = vadd.f32 %v582_v16, %v251_v23  ;;  %v244_v34 = vmul.f32 %v577_v14, %v176_v30  ;;  %v252_v35 = vmul.f32 %v577_v14, %v208_v31 }
  0xee   :  { %v284_v36 = vmax.f32 %v268_v26, 0.0  ;;  %v292_v37 = vmax.f32 %v276_v27, 0.0  ;;  %v269_v38 = vadd.f32 %v582_v16, %v246_v28  ;;  %v277_v39 = vadd.f32 %v582_v16, %v254_v29 }
  0xef   :  { %v282_v40 = vmax.f32 %v266_v32, 0.0  ;;  %v290_v41 = vmax.f32 %v274_v33, 0.0  ;;  %v267_v42 = vadd.f32 %v582_v16, %v244_v34  ;;  %v275_v43 = vadd.f32 %v582_v16, %v252_v35 }
  0xf0   :  { %v424_v44 = vpack.c.bf16 %v284_v36, %v284_v36  ;;  %v432_v45 = vpack.c.bf16 %v292_v37, %v292_v37  ;;  %v285_v46 = vmax.f32 %v269_v38, 0.0  ;;  %v293_v47 = vmax.f32 %v277_v39, 0.0 }
  0xf1   :  { %v422_v48 = vpack.c.bf16 %v282_v40, %v282_v40  ;;  %v430_v49 = vpack.c.bf16 %v290_v41, %v290_v41  ;;  %v283_v50 = vmax.f32 %v267_v42, 0.0  ;;  %v291_v51 = vmax.f32 %v275_v43, 0.0  ;;  %v467_v52 = vpop.f32.mrb[4].mxu0  ;;  %v475_v53 = vpop.f32.mrb[4].mxu1 }
  0xf2   :  { %365 = vst.msk [vmem:[%s684_s4 + $0x8] sm:$0xf] %vm362_vm2, %v424_v44  ;;  %373 = vst.msk [vmem:[%s684_s4 + $0x28] sm:$0xf] %vm362_vm2, %v432_v45  ;;  %v425_v54 = vpack.c.bf16 %v285_v46, %v285_v46  ;;  %v433_v55 = vpack.c.bf16 %v293_v47, %v293_v47  ;;  %v249_v56 = vmul.f32 %v467_v52, %v577_v14  ;;  %v189_v58 = vpop.f32.mrb[5].mxu0  ;;  %v221_v59 = vpop.f32.mrb[5].mxu1 }
  0xf3   :  { %v257_v57 = vmul.f32 %v475_v53, %v577_v14  ;;  %363 = vst.msk [vmem:[%s684_s4] sm:$0xf] %vm362_vm2, %v422_v48  ;;  %371 = vst.msk [vmem:[%s684_s4 + $0x20] sm:$0xf] %vm362_vm2, %v430_v49  ;;  %v423_v60 = vpack.c.bf16 %v283_v50, %v283_v50  ;;  %v431_v61 = vpack.c.bf16 %v291_v51, %v291_v51  ;;  %v468_v0 = vpop.f32.mrb[6].mxu0  ;;  %v476_v1 = vpop.f32.mrb[6].mxu1 }
  0xf4   :  { %v247_v62 = vmul.f32 %v577_v14, %v189_v58  ;;  %v255_v63 = vmul.f32 %v577_v14, %v221_v59  ;;  %366 = vst.msk [vmem:[%s684_s4 + $0xc] sm:$0xf] %vm362_vm2, %v425_v54  ;;  %374 = vst.msk [vmem:[%s684_s4 + $0x2c] sm:$0xf] %vm362_vm2, %v433_v55  ;;  %v272_v2 = vadd.f32 %v582_v16, %v249_v56  ;;  %v192_v6 = vpop.f32.mrb[7].mxu0  ;;  %v224_v7 = vpop.f32.mrb[7].mxu1 }
  0xf5   :  { %v280_v3 = vadd.f32 %v582_v16, %v257_v57  ;;  %v250_v4 = vmul.f32 %v468_v0, %v577_v14  ;;  %v258_v5 = vmul.f32 %v476_v1, %v577_v14  ;;  %364 = vst.msk [vmem:[%s684_s4 + $0x4] sm:$0xf] %vm362_vm2, %v423_v60  ;;  %372 = vst.msk [vmem:[%s684_s4 + $0x24] sm:$0xf] %vm362_vm2, %v431_v61 }
  0xf6   :  { %v270_v8 = vadd.f32 %v582_v16, %v247_v62  ;;  %v278_v9 = vadd.f32 %v582_v16, %v255_v63  ;;  %v248_v10 = vmul.f32 %v577_v14, %v192_v6  ;;  %v256_v11 = vmul.f32 %v577_v14, %v224_v7 }
  0xf7   :  { %v288_v12 = vmax.f32 %v272_v2, 0.0  ;;  %v296_v13 = vmax.f32 %v280_v3, 0.0  ;;  %v273_v15 = vadd.f32 %v582_v16, %v250_v4  ;;  %v281_v17 = vadd.f32 %v582_v16, %v258_v5 }
  0xf8   :  { %v286_v18 = vmax.f32 %v270_v8, 0.0  ;;  %v294_v19 = vmax.f32 %v278_v9, 0.0  ;;  %v271_v20 = vadd.f32 %v582_v16, %v248_v10  ;;  %v279_v21 = vadd.f32 %v582_v16, %v256_v11 }
  0xf9   :  { %v428_v22 = vpack.c.bf16 %v288_v12, %v288_v12  ;;  %v436_v23 = vpack.c.bf16 %v296_v13, %v296_v13  ;;  %v289_v24 = vmax.f32 %v273_v15, 0.0  ;;  %v297_v25 = vmax.f32 %v281_v17, 0.0 }
  0xfa   :  { %v426_v26 = vpack.c.bf16 %v286_v18, %v286_v18  ;;  %v434_v27 = vpack.c.bf16 %v294_v19, %v294_v19  ;;  %v287_v28 = vmax.f32 %v271_v20, 0.0  ;;  %v295_v14 = vmax.f32 %v279_v21, 0.0 }
  0xfb   :  { %369 = vst.msk [vmem:[%s684_s4 + $0x18] sm:$0xf] %vm362_vm2, %v428_v22  ;;  %377 = vst.msk [vmem:[%s684_s4 + $0x38] sm:$0xf] %vm362_vm2, %v436_v23  ;;  %v429_v29 = vpack.c.bf16 %v289_v24, %v289_v24  ;;  %v437_v16 = vpack.c.bf16 %v297_v25, %v297_v25 }
  0xfc   :  { %367 = vst.msk [vmem:[%s684_s4 + $0x10] sm:$0xf] %vm362_vm2, %v426_v26  ;;  %375 = vst.msk [vmem:[%s684_s4 + $0x30] sm:$0xf] %vm362_vm2, %v434_v27  ;;  %v427_v30 = vpack.c.bf16 %v287_v28, %v287_v28  ;;  %v435_v31 = vpack.c.bf16 %v295_v14, %v295_v14 }
  0xfd   :  { %370 = vst.msk [vmem:[%s684_s4 + $0x1c] sm:$0xf] %vm362_vm2, %v429_v29  ;;  %378 = vst.msk [vmem:[%s684_s4 + $0x3c] sm:$0xf] %vm362_vm2, %v437_v16 }
  0xfe   :  { %368 = vst.msk [vmem:[%s684_s4 + $0x14] sm:$0xf] %vm362_vm2, %v427_v30  ;;  %376 = vst.msk [vmem:[%s684_s4 + $0x34] sm:$0xf] %vm362_vm2, %v435_v31 }

// kernel: truenet_forward.27
= control target key start
LH: loop header
LB: loop body
LE: loop exit
PB: predicated region body
PF: predicated region fallthrough
CT: control target
= control target key end

     0   :  { %v566_v0 = vmov 0   ;;  %vm178_vm0 = vcmask 130048   ;;  %vm426_vm1 = vcmask 125952   ;;  %s781_s1 = inlined_call_operand.vmem [shape: bf16[144,16], index: 1, kind: input, shape index: {}]   ;;  %s782_s0 = inlined_call_operand.vmem [shape: bf16[128,144], index: 0, kind: input, shape index: {}]   ;;  %s783_s2 = inlined_call_operand.vmem [shape: f32[1,16], index: 2, kind: input, shape index: {}]   ;;  %s784_s3 = inlined_call_operand.vmem [shape: f32[1,16], index: 3, kind: input, shape index: {}]   ;;  %s785_s4 = inlined_call_operand.vmem [shape: bf16[128,16], index: 4, kind: output, shape index: {}]  }
   0x1   :  { %203 = vmatprep.subr.bf16.mxu0 %v566_v0  ;;  %514 = vmatprep.subr.bf16.mxu1 %v566_v0  ;;  %v533_v1 = vld [vmem:[%s781_s1] sm:$0xff]   ;;  %v534_v2 = vld [vmem:[%s781_s1 + $0x8] sm:$0xff]   ;;  %v535_v3 = vld [vmem:[%s781_s1 + $0x10] sm:$0xff]  }
   0x2   :  { %204 = vmatpush1.bf16.msra.mxu0 %v533_v1  ;;  %523 = vmatpush1.bf16.msra.mxu1 %v533_v1  ;;  %v536_v4 = vld [vmem:[%s781_s1 + $0x18] sm:$0xff]   ;;  %v544_v5 = vld [vmem:[%s782_s0 + $0x4] ss:$8 sps:$4 sm:$0xff]   ;;  %v539_v9 = vld [vmem:[%s781_s1 + $0x30] sm:$0xff]  }
   0x3   :  { %205 = vmatprep.subr.bf16.mxu0 %v566_v0  ;;  %515 = vmatprep.subr.bf16.mxu1 %v566_v0  ;;  %v547_v6 = vld [vmem:[%s782_s0 + $0x44] ss:$8 sps:$4 sm:$0xff]   ;;  %v540_v10 = vld [vmem:[%s781_s1 + $0x38] sm:$0xff]   ;;  %v542_v12 = vld [vmem:[%s782_s0] ss:$8 sps:$4 sm:$0xff]  }
   0x4   :  { %472 = vmatprep.mubr.msk.bf16.mxu0 %vm178_vm0, %v544_v5  ;;  %476 = vmatprep.mubr.msk.bf16.mxu1 %vm178_vm0, %v547_v6  ;;  %v537_v7 = vld [vmem:[%s781_s1 + $0x20] sm:$0xff]   ;;  %v538_v8 = vld [vmem:[%s781_s1 + $0x28] sm:$0xff]   ;;  %v548_v14 = vld [vmem:[%s782_s0 + $0x14] ss:$8 sps:$4 sm:$0xff]  }
   0x5   :  { %v541_v11 = vld [vmem:[%s781_s1 + $0x40] sm:$0xff]   ;;  %v550_v15 = vld [vmem:[%s782_s0 + $0x54] ss:$8 sps:$4 sm:$0xff]   ;;  %v552_v16 = vld [vmem:[%s782_s0 + $0x10] ss:$8 sps:$4 sm:$0xff]  }
   0x6   :  { %206 = vmatpush1.bf16.msra.mxu0 %v534_v2  ;;  %524 = vmatpush1.bf16.msra.mxu1 %v534_v2  ;;  %v545_v13 = vld [vmem:[%s782_s0 + $0x40] ss:$8 sps:$4 sm:$0xff]   ;;  %v553_v17 = vld [vmem:[%s782_s0 + $0x50] ss:$8 sps:$4 sm:$0xff]   ;;  %v554_v18 = vld [vmem:[%s782_s0 + $0x24] ss:$8 sps:$4 sm:$0xff]  }
   0x7   :  { %207 = vmatprep.subr.bf16.mxu0 %v566_v0  ;;  %516 = vmatprep.subr.bf16.mxu1 %v566_v0  ;;  %v556_v19 = vld [vmem:[%s782_s0 + $0x64] ss:$8 sps:$4 sm:$0xff]   ;;  %v558_v20 = vld [vmem:[%s782_s0 + $0x20] ss:$8 sps:$4 sm:$0xff]   ;;  %v560_v22 = vld [vmem:[%s782_s0 + $0x34] ss:$8 sps:$4 sm:$0xff]  }
   0x8   :  { %v559_v21 = vld [vmem:[%s782_s0 + $0x60] ss:$8 sps:$4 sm:$0xff]   ;;  %v562_v23 = vld [vmem:[%s782_s0 + $0x74] ss:$8 sps:$4 sm:$0xff]   ;;  %v564_v24 = vld [vmem:[%s782_s0 + $0x30] ss:$8 sps:$4 sm:$0xff]  }
   0x9   :  { %v565_v25 = vld [vmem:[%s782_s0 + $0x70] ss:$8 sps:$4 sm:$0xff]   ;;  %v678_v26 = vld [vmem:[%s783_s2] ss:$0 sm:$0xff] }
   0xa   :  { %208 = vmatpush1.bf16.msra.mxu0 %v535_v3  ;;  %525 = vmatpush1.bf16.msra.mxu1 %v535_v3  ;;  %v683_v28 = vld [vmem:[%s784_s3] ss:$0 sm:$0xff] }
   0xb   :  { %209 = vmatprep.subr.bf16.mxu0 %v566_v0  ;;  %517 = vmatprep.subr.bf16.mxu1 %v566_v0 }
   0xe   :  { %210 = vmatpush1.bf16.msra.mxu0 %v536_v4  ;;  %526 = vmatpush1.bf16.msra.mxu1 %v536_v4 }
   0xf   :  { %211 = vmatprep.subr.bf16.mxu0 %v566_v0  ;;  %518 = vmatprep.subr.bf16.mxu1 %v566_v0 }
  0x12   :  { %212 = vmatpush1.bf16.msra.mxu0 %v537_v7  ;;  %527 = vmatpush1.bf16.msra.mxu1 %v537_v7 }
  0x13   :  { %213 = vmatprep.subr.bf16.mxu0 %v566_v0  ;;  %519 = vmatprep.subr.bf16.mxu1 %v566_v0 }
  0x16   :  { %214 = vmatpush1.bf16.msra.mxu0 %v538_v8  ;;  %528 = vmatpush1.bf16.msra.mxu1 %v538_v8 }
  0x17   :  { %215 = vmatprep.subr.bf16.mxu0 %v566_v0  ;;  %520 = vmatprep.subr.bf16.mxu1 %v566_v0 }
  0x1a   :  { %216 = vmatpush1.bf16.msra.mxu0 %v539_v9  ;;  %529 = vmatpush1.bf16.msra.mxu1 %v539_v9 }
  0x1b   :  { %217 = vmatprep.subr.bf16.mxu0 %v566_v0  ;;  %521 = vmatprep.subr.bf16.mxu1 %v566_v0 }
  0x1e   :  { %218 = vmatpush1.bf16.msra.mxu0 %v540_v10  ;;  %530 = vmatpush1.bf16.msra.mxu1 %v540_v10 }
  0x1f   :  { %219 = vmatprep.subr.bf16.mxu0 %v566_v0  ;;  %522 = vmatprep.subr.bf16.mxu1 %v566_v0 }
  0x22   :  { %220 = vmatpush1.bf16.msra.mxu0 %v541_v11  ;;  %531 = vmatpush1.bf16.msra.mxu1 %v541_v11 }
  0x25   :  { %236 = vmatmul.mubr.bf16.vlgmr.msra.gmra.mrb[0].mxu0 %v542_v12  ;;  %268 = vmatmul.mubr.bf16.vlgmr.msra.gmra.mrb[0].mxu1 %v545_v13 }
  0x26   :  { %473 = vmatprep.mubr.msk.bf16.mxu0 %vm178_vm0, %v548_v14  ;;  %477 = vmatprep.mubr.msk.bf16.mxu1 %vm178_vm0, %v550_v15 }
  0x2d   :  { %244 = vmatmul.mubr.bf16.gmra.mrb[4].mxu0 %v552_v16  ;;  %276 = vmatmul.mubr.bf16.gmra.mrb[4].mxu1 %v553_v17 }
  0x2e   :  { %474 = vmatprep.mubr.msk.bf16.mxu0 %vm178_vm0, %v554_v18  ;;  %478 = vmatprep.mubr.msk.bf16.mxu1 %vm178_vm0, %v556_v19 }
  0x35   :  { %252 = vmatmul.mubr.bf16.gmra.mrb[8].mxu0 %v558_v20  ;;  %284 = vmatmul.mubr.bf16.gmra.mrb[8].mxu1 %v559_v21 }
  0x36   :  { %475 = vmatprep.mubr.msk.bf16.mxu0 %vm178_vm0, %v560_v22  ;;  %479 = vmatprep.mubr.msk.bf16.mxu1 %vm178_vm0, %v562_v23 }
  0x3d   :  { %260 = vmatmul.mubr.bf16.gmra.mrb[12].mxu0 %v564_v24  ;;  %292 = vmatmul.mubr.bf16.gmra.mrb[12].mxu1 %v565_v25 }
  0xf8   :  { %v237_v27 = vpop.f32.mrb[0].mxu0  ;;  %v269_v29 = vpop.f32.mrb[0].mxu1 }
  0xf9   :  { %v307_v30 = vmul.f32 %v678_v26, %v237_v27  ;;  %v315_v31 = vmul.f32 %v678_v26, %v269_v29  ;;  %v239_v32 = vpop.f32.mrb[1].mxu0  ;;  %v271_v33 = vpop.f32.mrb[1].mxu1 }
  0xfa   :  { %v240_v34 = vpop.f32.mrb[2].mxu0  ;;  %v272_v35 = vpop.f32.mrb[2].mxu1 }
  0xfb   :  { %v330_v36 = vadd.f32 %v683_v28, %v307_v30  ;;  %v338_v37 = vadd.f32 %v683_v28, %v315_v31  ;;  %v308_v38 = vmul.f32 %v678_v26, %v240_v34  ;;  %v316_v39 = vmul.f32 %v678_v26, %v272_v35  ;;  %v242_v40 = vpop.f32.mrb[3].mxu0  ;;  %v274_v41 = vpop.f32.mrb[3].mxu1 }
  0xfd   :  { %v346_v42 = vmax.f32 %v330_v36, 0.0  ;;  %v354_v43 = vmax.f32 %v338_v37, 0.0  ;;  %v331_v44 = vadd.f32 %v683_v28, %v308_v38  ;;  %v339_v45 = vadd.f32 %v683_v28, %v316_v39 }
  0xff   :  { %v498_v46 = vpack.c.bf16 %v346_v42, %v346_v42  ;;  %v506_v47 = vpack.c.bf16 %v354_v43, %v354_v43  ;;  %v347_v48 = vmax.f32 %v331_v44, 0.0  ;;  %v355_v49 = vmax.f32 %v339_v45, 0.0 }
 0x100   :  { %v245_v50 = vpop.f32.mrb[4].mxu0  ;;  %v277_v51 = vpop.f32.mrb[4].mxu1 }
 0x101   :  { %427 = vst.msk [vmem:[%s785_s4] sm:$0xf] %vm426_vm1, %v498_v46  ;;  %435 = vst.msk [vmem:[%s785_s4 + $0x20] sm:$0xf] %vm426_vm1, %v506_v47  ;;  %v499_v52 = vpack.c.bf16 %v347_v48, %v347_v48  ;;  %v507_v53 = vpack.c.bf16 %v355_v49, %v355_v49  ;;  %v309_v54 = vmul.f32 %v678_v26, %v245_v50  ;;  %v247_v56 = vpop.f32.mrb[5].mxu0  ;;  %v279_v57 = vpop.f32.mrb[5].mxu1 }
 0x102   :  { %v317_v55 = vmul.f32 %v678_v26, %v277_v51  ;;  %v248_v58 = vpop.f32.mrb[6].mxu0  ;;  %v280_v59 = vpop.f32.mrb[6].mxu1 }
 0x103   :  { %428 = vst.msk [vmem:[%s785_s4 + $0x4] sm:$0xf] %vm426_vm1, %v499_v52  ;;  %436 = vst.msk [vmem:[%s785_s4 + $0x24] sm:$0xf] %vm426_vm1, %v507_v53  ;;  %v332_v60 = vadd.f32 %v683_v28, %v309_v54  ;;  %v310_v62 = vmul.f32 %v678_v26, %v248_v58  ;;  %v318_v63 = vmul.f32 %v678_v26, %v280_v59  ;;  %v250_v0 = vpop.f32.mrb[7].mxu0  ;;  %v282_v1 = vpop.f32.mrb[7].mxu1 }
 0x104   :  { %v340_v61 = vadd.f32 %v683_v28, %v317_v55 }
 0x105   :  { %v348_v2 = vmax.f32 %v332_v60, 0.0  ;;  %v333_v4 = vadd.f32 %v683_v28, %v310_v62  ;;  %v341_v5 = vadd.f32 %v683_v28, %v318_v63 }
 0x106   :  { %v356_v3 = vmax.f32 %v340_v61, 0.0 }
 0x107   :  { %v500_v6 = vpack.c.bf16 %v348_v2, %v348_v2  ;;  %v349_v8 = vmax.f32 %v333_v4, 0.0  ;;  %v357_v9 = vmax.f32 %v341_v5, 0.0 }
 0x108   :  { %v508_v7 = vpack.c.bf16 %v356_v3, %v356_v3  ;;  %v253_v10 = vpop.f32.mrb[8].mxu0  ;;  %v285_v11 = vpop.f32.mrb[8].mxu1 }
 0x109   :  { %429 = vst.msk [vmem:[%s785_s4 + $0x8] sm:$0xf] %vm426_vm1, %v500_v6  ;;  %v501_v12 = vpack.c.bf16 %v349_v8, %v349_v8  ;;  %v509_v13 = vpack.c.bf16 %v357_v9, %v357_v9  ;;  %v311_v14 = vmul.f32 %v678_v26, %v253_v10  ;;  %v319_v15 = vmul.f32 %v678_v26, %v285_v11  ;;  %v255_v16 = vpop.f32.mrb[9].mxu0  ;;  %v287_v17 = vpop.f32.mrb[9].mxu1 }
 0x10a   :  { %437 = vst.msk [vmem:[%s785_s4 + $0x28] sm:$0xf] %vm426_vm1, %v508_v7  ;;  %v256_v18 = vpop.f32.mrb[10].mxu0  ;;  %v288_v19 = vpop.f32.mrb[10].mxu1 }
 0x10b   :  { %430 = vst.msk [vmem:[%s785_s4 + $0xc] sm:$0xf] %vm426_vm1, %v501_v12  ;;  %438 = vst.msk [vmem:[%s785_s4 + $0x2c] sm:$0xf] %vm426_vm1, %v509_v13  ;;  %v334_v20 = vadd.f32 %v683_v28, %v311_v14  ;;  %v342_v21 = vadd.f32 %v683_v28, %v319_v15  ;;  %v312_v22 = vmul.f32 %v678_v26, %v256_v18  ;;  %v258_v24 = vpop.f32.mrb[11].mxu0  ;;  %v290_v25 = vpop.f32.mrb[11].mxu1 }
 0x10c   :  { %v320_v23 = vmul.f32 %v678_v26, %v288_v19 }
 0x10d   :  { %v350_v27 = vmax.f32 %v334_v20, 0.0  ;;  %v358_v29 = vmax.f32 %v342_v21, 0.0  ;;  %v335_v30 = vadd.f32 %v683_v28, %v312_v22 }
 0x10e   :  { %v343_v31 = vadd.f32 %v683_v28, %v320_v23 }
 0x10f   :  { %v502_v32 = vpack.c.bf16 %v350_v27, %v350_v27  ;;  %v510_v33 = vpack.c.bf16 %v358_v29, %v358_v29  ;;  %v351_v34 = vmax.f32 %v335_v30, 0.0 }
 0x110   :  { %v359_v35 = vmax.f32 %v343_v31, 0.0  ;;  %v261_v36 = vpop.f32.mrb[12].mxu0  ;;  %v293_v37 = vpop.f32.mrb[12].mxu1 }
 0x111   :  { %431 = vst.msk [vmem:[%s785_s4 + $0x10] sm:$0xf] %vm426_vm1, %v502_v32  ;;  %439 = vst.msk [vmem:[%s785_s4 + $0x30] sm:$0xf] %vm426_vm1, %v510_v33  ;;  %v503_v38 = vpack.c.bf16 %v351_v34, %v351_v34  ;;  %v313_v40 = vmul.f32 %v678_v26, %v261_v36  ;;  %v321_v41 = vmul.f32 %v678_v26, %v293_v37  ;;  %v263_v42 = vpop.f32.mrb[13].mxu0  ;;  %v295_v43 = vpop.f32.mrb[13].mxu1 }
 0x112   :  { %v511_v39 = vpack.c.bf16 %v359_v35, %v359_v35  ;;  %v264_v44 = vpop.f32.mrb[14].mxu0  ;;  %v296_v45 = vpop.f32.mrb[14].mxu1 }
 0x113   :  { %432 = vst.msk [vmem:[%s785_s4 + $0x14] sm:$0xf] %vm426_vm1, %v503_v38  ;;  %v336_v46 = vadd.f32 %v683_v28, %v313_v40  ;;  %v344_v47 = vadd.f32 %v683_v28, %v321_v41  ;;  %v314_v48 = vmul.f32 %v678_v26, %v264_v44  ;;  %v322_v49 = vmul.f32 %v678_v26, %v296_v45  ;;  %v266_v50 = vpop.f32.mrb[15].mxu0  ;;  %v298_v51 = vpop.f32.mrb[15].mxu1 }
 0x114   :  { %440 = vst.msk [vmem:[%s785_s4 + $0x34] sm:$0xf] %vm426_vm1, %v511_v39 }
 0x115   :  { %v352_v52 = vmax.f32 %v336_v46, 0.0  ;;  %v360_v53 = vmax.f32 %v344_v47, 0.0  ;;  %v337_v54 = vadd.f32 %v683_v28, %v314_v48  ;;  %v345_v55 = vadd.f32 %v683_v28, %v322_v49 }
 0x117   :  { %v504_v56 = vpack.c.bf16 %v352_v52, %v352_v52  ;;  %v512_v57 = vpack.c.bf16 %v360_v53, %v360_v53  ;;  %v353_v58 = vmax.f32 %v337_v54, 0.0  ;;  %v361_v59 = vmax.f32 %v345_v55, 0.0 }
 0x119   :  { %433 = vst.msk [vmem:[%s785_s4 + $0x18] sm:$0xf] %vm426_vm1, %v504_v56  ;;  %441 = vst.msk [vmem:[%s785_s4 + $0x38] sm:$0xf] %vm426_vm1, %v512_v57  ;;  %v505_v26 = vpack.c.bf16 %v353_v58, %v353_v58  ;;  %v513_v60 = vpack.c.bf16 %v361_v59, %v361_v59 }
 0x11b   :  { %434 = vst.msk [vmem:[%s785_s4 + $0x1c] sm:$0xf] %vm426_vm1, %v505_v26  ;;  %442 = vst.msk [vmem:[%s785_s4 + $0x3c] sm:$0xf] %vm426_vm1, %v513_v60 }

// kernel: truenet_forward.29
= control target key start
LH: loop header
LB: loop body
LE: loop exit
PB: predicated region body
PF: predicated region fallthrough
CT: control target
= control target key end

     0   :  { %v278_v0 = vmov 0   ;;  %vm112_vm0 = vcmask 130048   ;;  %vm210_vm1 = vcmask 257024   ;;  %s361_s1 = inlined_call_operand.vmem [shape: bf16[144,32], index: 1, kind: input, shape index: {}]   ;;  %s362_s0 = inlined_call_operand.vmem [shape: bf16[32,144], index: 0, kind: input, shape index: {}]   ;;  %s363_s2 = inlined_call_operand.vmem [shape: f32[1,32], index: 2, kind: input, shape index: {}]   ;;  %s364_s3 = inlined_call_operand.vmem [shape: f32[1,32], index: 3, kind: input, shape index: {}]   ;;  %s365_s4 = inlined_call_operand.vmem [shape: bf16[32,32], index: 4, kind: output, shape index: {}]  }
   0x1   :  { %119 = vmatprep.subr.bf16.mxu0 %v278_v0  ;;  %244 = vmatprep.subr.bf16.mxu1 %v278_v0  ;;  %v263_v1 = vld [vmem:[%s361_s1] sm:$0xff]   ;;  %v264_v2 = vld [vmem:[%s361_s1 + $0x8] sm:$0xff]   ;;  %v265_v3 = vld [vmem:[%s361_s1 + $0x10] sm:$0xff]  }
   0x2   :  { %120 = vmatpush1.bf16.msra.mxu0 %v263_v1  ;;  %253 = vmatpush1.bf16.msra.mxu1 %v263_v1  ;;  %v266_v4 = vld [vmem:[%s361_s1 + $0x18] sm:$0xff]   ;;  %v274_v5 = vld [vmem:[%s362_s0 + $0x4] ss:$8 sps:$4 sm:$0xff]   ;;  %v269_v9 = vld [vmem:[%s361_s1 + $0x30] sm:$0xff]  }
   0x3   :  { %121 = vmatprep.subr.bf16.mxu0 %v278_v0  ;;  %245 = vmatprep.subr.bf16.mxu1 %v278_v0  ;;  %v277_v6 = vld [vmem:[%s362_s0 + $0x14] ss:$8 sps:$4 sm:$0xff]   ;;  %v267_v7 = vld [vmem:[%s361_s1 + $0x20] sm:$0xff]   ;;  %v268_v8 = vld [vmem:[%s361_s1 + $0x28] sm:$0xff]  }
   0x4   :  { %232 = vmatprep.mubr.msk.bf16.mxu0 %vm112_vm0, %v274_v5  ;;  %233 = vmatprep.mubr.msk.bf16.mxu1 %vm112_vm0, %v277_v6  ;;  %v270_v10 = vld [vmem:[%s361_s1 + $0x38] sm:$0xff]   ;;  %v271_v11 = vld [vmem:[%s361_s1 + $0x40] sm:$0xff]  }
   0x5   :  { %v272_v12 = vld [vmem:[%s362_s0] ss:$8 sps:$4 sm:$0xff]   ;;  %v275_v13 = vld [vmem:[%s362_s0 + $0x10] ss:$8 sps:$4 sm:$0xff]  }
   0x6   :  { %122 = vmatpush1.bf16.msra.mxu0 %v264_v2  ;;  %254 = vmatpush1.bf16.msra.mxu1 %v264_v2  ;;  %v234_v14 = vld [vmem:[%s363_s2] ss:$0 sm:$0xff] }
   0x7   :  { %123 = vmatprep.subr.bf16.mxu0 %v278_v0  ;;  %246 = vmatprep.subr.bf16.mxu1 %v278_v0  ;;  %v235_v16 = vld [vmem:[%s364_s3] ss:$0 sm:$0xff] }
   0xa   :  { %124 = vmatpush1.bf16.msra.mxu0 %v265_v3  ;;  %255 = vmatpush1.bf16.msra.mxu1 %v265_v3 }
   0xb   :  { %125 = vmatprep.subr.bf16.mxu0 %v278_v0  ;;  %247 = vmatprep.subr.bf16.mxu1 %v278_v0 }
   0xe   :  { %126 = vmatpush1.bf16.msra.mxu0 %v266_v4  ;;  %256 = vmatpush1.bf16.msra.mxu1 %v266_v4 }
   0xf   :  { %127 = vmatprep.subr.bf16.mxu0 %v278_v0  ;;  %248 = vmatprep.subr.bf16.mxu1 %v278_v0 }
  0x12   :  { %128 = vmatpush1.bf16.msra.mxu0 %v267_v7  ;;  %257 = vmatpush1.bf16.msra.mxu1 %v267_v7 }
  0x13   :  { %129 = vmatprep.subr.bf16.mxu0 %v278_v0  ;;  %249 = vmatprep.subr.bf16.mxu1 %v278_v0 }
  0x16   :  { %130 = vmatpush1.bf16.msra.mxu0 %v268_v8  ;;  %258 = vmatpush1.bf16.msra.mxu1 %v268_v8 }
  0x17   :  { %131 = vmatprep.subr.bf16.mxu0 %v278_v0  ;;  %250 = vmatprep.subr.bf16.mxu1 %v278_v0 }
  0x1a   :  { %132 = vmatpush1.bf16.msra.mxu0 %v269_v9  ;;  %259 = vmatpush1.bf16.msra.mxu1 %v269_v9 }
  0x1b   :  { %133 = vmatprep.subr.bf16.mxu0 %v278_v0  ;;  %251 = vmatprep.subr.bf16.mxu1 %v278_v0 }
  0x1e   :  { %134 = vmatpush1.bf16.msra.mxu0 %v270_v10  ;;  %260 = vmatpush1.bf16.msra.mxu1 %v270_v10 }
  0x1f   :  { %135 = vmatprep.subr.bf16.mxu0 %v278_v0  ;;  %252 = vmatprep.subr.bf16.mxu1 %v278_v0 }
  0x22   :  { %136 = vmatpush1.bf16.msra.mxu0 %v271_v11  ;;  %261 = vmatpush1.bf16.msra.mxu1 %v271_v11 }
  0x25   :  { %152 = vmatmul.mubr.bf16.vlgmr.msra.gmra.mrb[0].mxu0 %v272_v12  ;;  %160 = vmatmul.mubr.bf16.vlgmr.msra.gmra.mrb[0].mxu1 %v275_v13 }
  0xf8   :  { %v153_v15 = vpop.f32.mrb[0].mxu0  ;;  %v161_v17 = vpop.f32.mrb[0].mxu1 }
  0xf9   :  { %v175_v18 = vmul.f32 %v234_v14, %v153_v15  ;;  %v177_v19 = vmul.f32 %v234_v14, %v161_v17  ;;  %v155_v20 = vpop.f32.mrb[1].mxu0  ;;  %v163_v21 = vpop.f32.mrb[1].mxu1 }
  0xfa   :  { %v156_v22 = vpop.f32.mrb[2].mxu0  ;;  %v164_v23 = vpop.f32.mrb[2].mxu1 }
  0xfb   :  { %v186_v24 = vadd.f32 %v235_v16, %v175_v18  ;;  %v188_v25 = vadd.f32 %v235_v16, %v177_v19  ;;  %v176_v26 = vmul.f32 %v234_v14, %v156_v22  ;;  %v178_v27 = vmul.f32 %v234_v14, %v164_v23  ;;  %v158_v28 = vpop.f32.mrb[3].mxu0  ;;  %v166_v29 = vpop.f32.mrb[3].mxu1 }
  0xfd   :  { %v190_v30 = vmax.f32 %v186_v24, 0.0  ;;  %v192_v31 = vmax.f32 %v188_v25, 0.0  ;;  %v187_v32 = vadd.f32 %v235_v16, %v176_v26  ;;  %v189_v33 = vadd.f32 %v235_v16, %v178_v27 }
  0xff   :  { %v240_v34 = vpack.c.bf16 %v190_v30, %v190_v30  ;;  %v242_v35 = vpack.c.bf16 %v192_v31, %v192_v31  ;;  %v191_v36 = vmax.f32 %v187_v32, 0.0  ;;  %v193_v37 = vmax.f32 %v189_v33, 0.0 }
 0x101   :  { %211 = vst.msk [vmem:[%s365_s4] sm:$0xf] %vm210_vm1, %v240_v34  ;;  %213 = vst.msk [vmem:[%s365_s4 + $0x8] sm:$0xf] %vm210_vm1, %v242_v35  ;;  %v241_v38 = vpack.c.bf16 %v191_v36, %v191_v36  ;;  %v243_v39 = vpack.c.bf16 %v193_v37, %v193_v37 }
 0x103   :  { %212 = vst.msk [vmem:[%s365_s4 + $0x4] sm:$0xf] %vm210_vm1, %v241_v38  ;;  %214 = vst.msk [vmem:[%s365_s4 + $0xc] sm:$0xf] %vm210_vm1, %v243_v39 }

// kernel: truenet_forward.31
= control target key start
LH: loop header
LB: loop body
LE: loop exit
PB: predicated region body
PF: predicated region fallthrough
CT: control target
= control target key end

     0   :  { %s50_s22 = smov 96   ;;  %vm40_vm0 = vcmask 253952   ;;  %s97_s0 = inlined_call_operand.vmem [shape: bf16[4,2,2,64], index: 0, kind: input, shape index: {}]   ;;  %s98_s1 = inlined_call_operand.vmem [shape: bf16[4,2,32], index: 1, kind: output, shape index: {}]  }
   0x1   :  { %v12_v0 = vld [vmem:[%s97_s0 + $0x4] sm:$0x1]  ;;  %v13_v1 = vld [vmem:[%s97_s0 + $0x5] sm:$0x1]  ;;  %v8_v2 = vld [vmem:[%s97_s0] sm:$0x1] }
   0x2   :  { %v18_v3 = vmax.bf16 %v13_v1, %v12_v0  ;;  %v9_v4 = vld [vmem:[%s97_s0 + $0x1] sm:$0x1]  ;;  %v14_v5 = vld [vmem:[%s97_s0 + $0x6] sm:$0x1]  ;;  %v15_v6 = vld [vmem:[%s97_s0 + $0x7] sm:$0x1] }
   0x3   :  { %v16_v7 = vmax.bf16 %v9_v4, %v8_v2  ;;  %v10_v8 = vld [vmem:[%s97_s0 + $0x2] sm:$0x1]  ;;  %v11_v9 = vld [vmem:[%s97_s0 + $0x3] sm:$0x1]  ;;  %v19_v10 = vmax.bf16 %v15_v6, %v14_v5 }
   0x4   :  { %28 = vrot.lane.b32.xlu1 %v18_v3, %s50_s22  ;;  %v17_v11 = vmax.bf16 %v11_v9, %v10_v8 }
   0x5   :  { %24 = vrot.lane.b32.xlu0 %v16_v7, %s50_s22 }
   0x8   :  { %30 = vrot.lane.b32.xlu1 %v19_v10, %s50_s22 }
   0x9   :  { %26 = vrot.lane.b32.xlu0 %v17_v11, %s50_s22 }
  0x76   :  { %v29_v12 = vpop.permute.xlu1 %28 }
  0x77   :  { %v38_v13 = vmax.bf16 %v29_v12, %v18_v3  ;;  %v25_v14 = vpop.permute.xlu0 %24 }
  0x78   :  { %v36_v15 = vmax.bf16 %v25_v14, %v16_v7 }
  0x79   :  { %43 = vst.msk [vmem:[%s98_s1 + $0x2] sm:$0x1] %vm40_vm0, %v38_v13 }
  0x7a   :  { %41 = vst.msk [vmem:[%s98_s1] sm:$0x1] %vm40_vm0, %v36_v15  ;;  %v31_v16 = vpop.permute.xlu1 %30 }
  0x7b   :  { %v39_v17 = vmax.bf16 %v31_v16, %v19_v10  ;;  %v27_v18 = vpop.permute.xlu0 %26 }
  0x7c   :  { %v37_v19 = vmax.bf16 %v27_v18, %v17_v11 }
  0x7d   :  { %44 = vst.msk [vmem:[%s98_s1 + $0x3] sm:$0x1] %vm40_vm0, %v39_v17 }
  0x7e   :  { %42 = vst.msk [vmem:[%s98_s1 + $0x1] sm:$0x1] %vm40_vm0, %v37_v19 }

// kernel: truenet_forward.30
= control target key start
LH: loop header
LB: loop body
LE: loop exit
PB: predicated region body
PF: predicated region fallthrough
CT: control target
= control target key end

     0   :  { %vm200_vm0 = vcmask 261120   ;;  %vm347_vm1 = vcmask 257024   ;;  %s577_s1 = inlined_call_operand.vmem [shape: bf16[288,32], index: 1, kind: input, shape index: {}]   ;;  %s578_s0 = inlined_call_operand.vmem [shape: bf16[32,288], index: 0, kind: input, shape index: {}]   ;;  %s579_s2 = inlined_call_operand.vmem [shape: f32[1,32], index: 2, kind: input, shape index: {}]   ;;  %s580_s3 = inlined_call_operand.vmem [shape: f32[1,32], index: 3, kind: input, shape index: {}]   ;;  %s581_s4 = inlined_call_operand.vmem [shape: bf16[32,32], index: 4, kind: output, shape index: {}]  }
   0x1   :  { %v432_v0 = vld [vmem:[%s577_s1 + $0x40] sm:$0xff]   ;;  %v434_v2 = vld [vmem:[%s577_s1 + $0x48] sm:$0xff]   ;;  %v436_v4 = vld [vmem:[%s577_s1 + $0x50] sm:$0xff]  }
   0x2   :  { %v433_v1 = vld [vmem:[%s577_s1] sm:$0xff]   ;;  %392 = vmatprep.subr.bf16.mxu0 %v432_v0  ;;  %v435_v3 = vld [vmem:[%s577_s1 + $0x8] sm:$0xff]   ;;  %v437_v5 = vld [vmem:[%s577_s1 + $0x10] sm:$0xff]  }
   0x3   :  { %393 = vmatpush3.bf16.msra.mxu0 %v433_v1  ;;  %v438_v6 = vld [vmem:[%s577_s1 + $0x58] sm:$0xff]   ;;  %v440_v8 = vld [vmem:[%s577_s1 + $0x60] sm:$0xff]   ;;  %v442_v11 = vld [vmem:[%s577_s1 + $0x68] sm:$0xff]  }
   0x4   :  { %394 = vmatprep.subr.bf16.mxu0 %v434_v2  ;;  %v439_v7 = vld [vmem:[%s577_s1 + $0x18] sm:$0xff]   ;;  %v446_v9 = vld [vmem:[%s577_s1 + $0x80] sm:$0xff]   ;;  %v443_v12 = vld [vmem:[%s577_s1 + $0x28] sm:$0xff]  }
   0x5   :  { %v441_v10 = vld [vmem:[%s577_s1 + $0x20] sm:$0xff]   ;;  %424 = vmatprep.subr.bf16.mxu1 %v446_v9  ;;  %v449_v13 = vld [vmem:[%s577_s1 + $0x88] sm:$0xff]   ;;  %v444_v14 = vld [vmem:[%s577_s1 + $0x70] sm:$0xff]  }
   0x6   :  { %425 = vmatpush3.bf16.msra.mxu1 %v446_v9  ;;  %v452_v15 = vld [vmem:[%s578_s0 + $0x4] ss:$12 sps:$4 sm:$0xff]   ;;  %v453_v16 = vld [vmem:[%s578_s0 + $0x8] ss:$12 sps:$4 sm:$0xff]   ;;  %v454_v17 = vld [vmem:[%s578_s0 + $0x20] ss:$12 sps:$4 sm:$0xff]  }
   0x7   :  { %395 = vmatpush3.bf16.msra.mxu0 %v435_v3  ;;  %426 = vmatprep.subr.bf16.mxu1 %v449_v13  ;;  %v445_v18 = vld [vmem:[%s577_s1 + $0x30] sm:$0xff]   ;;  %v447_v19 = vld [vmem:[%s577_s1 + $0x78] sm:$0xff]   ;;  %v450_v21 = vld [vmem:[%s578_s0] ss:$12 sps:$4 sm:$0xff]  }
   0x8   :  { %396 = vmatprep.subr.bf16.mxu0 %v436_v4  ;;  %239 = vmatprep.mubr.bf16.mxu0 %v452_v15  ;;  %v448_v20 = vld [vmem:[%s577_s1 + $0x38] sm:$0xff]   ;;  %v382_v33 = vld [vmem:[%s579_s2] ss:$0 sm:$0xff] }
   0x9   :  { %428 = vmatprep.mubr.msk.bf16.mxu1 %vm200_vm0, %v453_v16  ;;  %v455_v22 = vld [vmem:[%s578_s0 + $0x1c] ss:$12 sps:$4 sm:$0xff]   ;;  %v457_v23 = vld [vmem:[%s578_s0 + $0x18] ss:$12 sps:$4 sm:$0xff]   ;;  %v383_v36 = vld [vmem:[%s580_s3] ss:$0 sm:$0xff] }
   0xa   :  { %427 = vmatpush3.bf16.msra.mxu1 %v449_v13 }
   0xb   :  { %397 = vmatpush3.bf16.msra.mxu0 %v437_v5 }
   0xc   :  { %398 = vmatprep.subr.bf16.mxu0 %v438_v6 }
   0xd   :  { %429 = vmatmul.mubr.msk.bf16.vlgmr.msra.gmra.mrb[0].mxu1 %vm200_vm0, %v454_v17 }
   0xf   :  { %399 = vmatpush3.bf16.msra.mxu0 %v439_v7 }
  0x10   :  { %400 = vmatprep.subr.bf16.mxu0 %v440_v8 }
  0x13   :  { %401 = vmatpush3.bf16.msra.mxu0 %v441_v10 }
  0x14   :  { %402 = vmatprep.subr.bf16.mxu0 %v442_v11 }
  0x17   :  { %403 = vmatpush3.bf16.msra.mxu0 %v443_v12 }
  0x18   :  { %404 = vmatprep.subr.bf16.mxu0 %v444_v14 }
  0x1b   :  { %405 = vmatpush3.bf16.msra.mxu0 %v445_v18 }
  0x1c   :  { %406 = vmatprep.subr.bf16.mxu0 %v447_v19 }
  0x1f   :  { %407 = vmatpush3.bf16.msra.mxu0 %v448_v20 }
  0x22   :  { %240 = vmatmul.mubr.bf16.vlgmr.msra.gmra.mrb[0].mxu0 %v450_v21 }
  0x23   :  { %247 = vmatprep.mubr.bf16.mxu0 %v455_v22 }
  0x2a   :  { %248 = vmatmul.mubr.bf16.gmra.mrb[4].mxu0 %v457_v23 }
  0xe0   :  { %v430_v24 = vpop.f32.mrb[0].mxu1 }
  0xe1   :  { %v290_v25 = vpop.f32.mrb[1].mxu1 }
  0xe2   :  { %v431_v26 = vpop.f32.mrb[2].mxu1 }
  0xe3   :  { %v293_v27 = vpop.f32.mrb[3].mxu1 }
  0xf5   :  { %v408_v28 = vpop.f32.mrb[0].mxu0 }
  0xf6   :  { %v409_v29 = vpop.f32.mrb[1].mxu0 }
  0xf7   :  { %v410_v30 = vadd.f32 %v409_v29, %v408_v28  ;;  %v411_v31 = vpop.f32.mrb[2].mxu0 }
  0xf8   :  { %v412_v32 = vpop.f32.mrb[3].mxu0 }
  0xf9   :  { %v413_v34 = vadd.f32 %v412_v32, %v411_v31  ;;  %v291_v35 = vadd.f32 %v410_v30, %v290_v25 }
  0xfb   :  { %v312_v37 = vmul.f32 %v382_v33, %v291_v35  ;;  %v294_v38 = vadd.f32 %v413_v34, %v293_v27 }
  0xfd   :  { %v323_v39 = vadd.f32 %v383_v36, %v312_v37  ;;  %v313_v40 = vmul.f32 %v382_v33, %v294_v38  ;;  %v414_v41 = vpop.f32.mrb[4].mxu0 }
  0xfe   :  { %v415_v42 = vpop.f32.mrb[5].mxu0 }
  0xff   :  { %v327_v43 = vmax.f32 %v323_v39, 0.0  ;;  %v324_v44 = vadd.f32 %v383_v36, %v313_v40  ;;  %v416_v45 = vadd.f32 %v415_v42, %v414_v41  ;;  %v417_v46 = vpop.f32.mrb[6].mxu0 }
 0x100   :  { %v418_v47 = vpop.f32.mrb[7].mxu0 }
 0x101   :  { %v388_v48 = vpack.c.bf16 %v327_v43, %v327_v43  ;;  %v328_v49 = vmax.f32 %v324_v44, 0.0  ;;  %v299_v50 = vadd.f32 %v430_v24, %v416_v45  ;;  %v419_v51 = vadd.f32 %v418_v47, %v417_v46 }
 0x103   :  { %348 = vst.msk [vmem:[%s581_s4] sm:$0xf] %vm347_vm1, %v388_v48  ;;  %v389_v52 = vpack.c.bf16 %v328_v49, %v328_v49  ;;  %v314_v53 = vmul.f32 %v382_v33, %v299_v50  ;;  %v302_v54 = vadd.f32 %v431_v26, %v419_v51 }
 0x105   :  { %349 = vst.msk [vmem:[%s581_s4 + $0x4] sm:$0xf] %vm347_vm1, %v389_v52  ;;  %v325_v55 = vadd.f32 %v383_v36, %v314_v53  ;;  %v315_v56 = vmul.f32 %v382_v33, %v302_v54 }
 0x107   :  { %v329_v57 = vmax.f32 %v325_v55, 0.0  ;;  %v326_v58 = vadd.f32 %v383_v36, %v315_v56 }
 0x109   :  { %v390_v59 = vpack.c.bf16 %v329_v57, %v329_v57  ;;  %v330_v60 = vmax.f32 %v326_v58, 0.0 }
 0x10b   :  { %350 = vst.msk [vmem:[%s581_s4 + $0x8] sm:$0xf] %vm347_vm1, %v390_v59  ;;  %v391_v61 = vpack.c.bf16 %v330_v60, %v330_v60 }
 0x10d   :  { %351 = vst.msk [vmem:[%s581_s4 + $0xc] sm:$0xf] %vm347_vm1, %v391_v61 }

// kernel: tile.18
= control target key start
LH: loop header
LB: loop body
LE: loop exit
PB: predicated region body
PF: predicated region fallthrough
CT: control target
= control target key end

     0   :  { %s22_s0 = inlined_call_operand.vmem [shape: f32[32], index: 0, kind: input, shape index: {}]   ;;  %s23_s1 = inlined_call_operand.vmem [shape: f32[4,32], index: 1, kind: output, shape index: {}]  }
   0x1   :  { %v4_v0 = vld [vmem:[%s22_s0] ss:$0 sm:$0xff] }
   0x2   :  { %5 = vst [vmem:[%s23_s1] sm:$0xf] %v4_v0 }

// kernel: tile.19
= control target key start
LH: loop header
LB: loop body
LE: loop exit
PB: predicated region body
PF: predicated region fallthrough
CT: control target
= control target key end

     0   :  { %vm7_vm0 = vcmask 261120   ;;  %s37_s8 = smov 32   ;;  %s38_s9 = smov 64   ;;  %vm13_vm1 = vcmask 1048320   ;;  %vm19_vm2 = vcmask 785920   ;;  %vm25_vm3 = vcmask 523520   ;;  %s55_s0 = inlined_call_operand.vmem [shape: f32[4,32], index: 0, kind: input, shape index: {}]   ;;  %s56_s1 = inlined_call_operand.vmem [shape: f32[1,128], index: 1, kind: output, shape index: {}]  }
   0x1   :  { %v4_v0 = vld [vmem:[%s55_s0] sm:$0xf]  ;;  %s36_s0 = smov 96  }
   0x2   :  { %5 = vst [vmem:[#allocation1] sm:$0xf] %v4_v0 }
   0x9   :  { %v10_v1 = vld [vmem:[#allocation1 + $0x3] sm:$0x1]   ;;  %v22_v2 = vld [vmem:[#allocation1 + $0x1] sm:$0x1]   ;;  %v6_v3 = vld [vmem:[#allocation1] sm:$0x1]  }
   0xa   :  { %11 = vrot.lane.b32.xlu0 %v10_v1, %s36_s0  ;;  %23 = vrot.lane.b32.xlu1 %v22_v2, %s37_s8  ;;  %v16_v4 = vld [vmem:[#allocation1 + $0x2] sm:$0x1]   ;;  %8 = vst.msk [vmem:[#allocation0] sm:$0x1] %vm7_vm0, %v6_v3  }
   0xe   :  { %17 = vrot.lane.b32.xlu0 %v16_v4, %s38_s9 }
  0x7c   :  { %v12_v5 = vpop.permute.xlu0 %11   ;;  %v24_v6 = vpop.permute.xlu1 %23  }
  0x7d   :  { %14 = vst.msk [vmem:[#allocation0] sm:$0x1] %vm13_vm1, %v12_v5  }
  0x80   :  { %v18_v7 = vpop.permute.xlu0 %17  }
  0x81   :  { %20 = vst.msk [vmem:[#allocation0] sm:$0x1] %vm19_vm2, %v18_v7  }
  0x82   :  { %26 = vst.msk [vmem:[#allocation0] sm:$0x1] %vm25_vm3, %v24_v6  }
  0x89   :  { %v30_v8 = vld [vmem:[#allocation0] sm:$0x1] }
  0x8a   :  { %32 = vst [vmem:[%s56_s1] sm:$0x1] %v30_v8 }

// kernel: truenet_forward.33
= control target key start
LH: loop header
LB: loop body
LE: loop exit
PB: predicated region body
PF: predicated region fallthrough
CT: control target
= control target key end

     0   :  { %v622_v36 = vmov 0.0   ;;  %vm623_vm0 = vmmov 0   ;;  %vm326_vm1 = vcmask 523264   ;;  %vm468_vm2 = vcmask 519168   ;;  %s775_s1 = inlined_call_operand.vmem [shape: bf16[576,64], index: 1, kind: input, shape index: {}]   ;;  %s776_s0 = inlined_call_operand.vmem [shape: bf16[8,576], index: 0, kind: input, shape index: {}]   ;;  %s777_s2 = inlined_call_operand.vmem [shape: f32[1,64], index: 2, kind: input, shape index: {}]   ;;  %s778_s3 = inlined_call_operand.vmem [shape: f32[1,64], index: 3, kind: input, shape index: {}]   ;;  %s779_s4 = inlined_call_operand.vmem [shape: bf16[8,64], index: 4, kind: output, shape index: {}]  }
   0x1   :  { %v581_v0 = vld [vmem:[%s775_s1 + $0x40] sm:$0xff]   ;;  %v585_v4 = vld [vmem:[%s775_s1 + $0x48] sm:$0xff]   ;;  %v589_v8 = vld [vmem:[%s775_s1 + $0x50] sm:$0xff]  }
   0x2   :  { %v582_v1 = vld [vmem:[%s775_s1 + $0xc0] sm:$0xff]   ;;  %518 = vmatprep.subr.bf16.mxu0 %v581_v0  ;;  %v586_v5 = vld [vmem:[%s775_s1 + $0xc8] sm:$0xff]   ;;  %v590_v9 = vld [vmem:[%s775_s1 + $0xd0] sm:$0xff]  }
   0x3   :  { %v583_v2 = vld [vmem:[%s775_s1] sm:$0xff]   ;;  %540 = vmatprep.subr.bf16.mxu1 %v582_v1  ;;  %v587_v6 = vld [vmem:[%s775_s1 + $0x8] sm:$0xff]   ;;  %v591_v10 = vld [vmem:[%s775_s1 + $0x10] sm:$0xff]  }
   0x4   :  { %v584_v3 = vld [vmem:[%s775_s1 + $0x80] sm:$0xff]   ;;  %519 = vmatpush3.bf16.msra.mxu0 %v583_v2  ;;  %v588_v7 = vld [vmem:[%s775_s1 + $0x88] sm:$0xff]   ;;  %v592_v11 = vld [vmem:[%s775_s1 + $0x90] sm:$0xff]  }
   0x5   :  { %541 = vmatpush3.bf16.msra.mxu1 %v584_v3  ;;  %520 = vmatprep.subr.bf16.mxu0 %v585_v4  ;;  %v593_v12 = vld [vmem:[%s775_s1 + $0x58] sm:$0xff]   ;;  %v597_v16 = vld [vmem:[%s775_s1 + $0x60] sm:$0xff]   ;;  %v601_v20 = vld [vmem:[%s775_s1 + $0x68] sm:$0xff]  }
   0x6   :  { %542 = vmatprep.subr.bf16.mxu1 %v586_v5  ;;  %v594_v13 = vld [vmem:[%s775_s1 + $0xd8] sm:$0xff]   ;;  %v598_v17 = vld [vmem:[%s775_s1 + $0xe0] sm:$0xff]   ;;  %v602_v21 = vld [vmem:[%s775_s1 + $0xe8] sm:$0xff]  }
   0x7   :  { %v595_v14 = vld [vmem:[%s775_s1 + $0x18] sm:$0xff]   ;;  %v599_v18 = vld [vmem:[%s775_s1 + $0x20] sm:$0xff]   ;;  %v603_v22 = vld [vmem:[%s775_s1 + $0x28] sm:$0xff]  }
   0x8   :  { %521 = vmatpush3.bf16.msra.mxu0 %v587_v6  ;;  %v596_v15 = vld [vmem:[%s775_s1 + $0x98] sm:$0xff]   ;;  %v600_v19 = vld [vmem:[%s775_s1 + $0xa0] sm:$0xff]   ;;  %v604_v23 = vld [vmem:[%s775_s1 + $0xa8] sm:$0xff]  }
   0x9   :  { %543 = vmatpush3.bf16.msra.mxu1 %v588_v7  ;;  %522 = vmatprep.subr.bf16.mxu0 %v589_v8  ;;  %v605_v24 = vld [vmem:[%s775_s1 + $0x70] sm:$0xff]   ;;  %v609_v28 = vld [vmem:[%s775_s1 + $0x78] sm:$0xff]   ;;  %v18_v32 = vld [vmem:[%s776_s0] sm:$0xff] }
   0xa   :  { %544 = vmatprep.subr.bf16.mxu1 %v590_v9  ;;  %v606_v25 = vld [vmem:[%s775_s1 + $0xf0] sm:$0xff]   ;;  %v610_v29 = vld [vmem:[%s775_s1 + $0xf8] sm:$0xff]   ;;  %v474_v33 = vcombine.low %v18_v32, %v18_v32  ;;  %v475_v34 = vcombine.high %v18_v32, %v18_v32  ;;  %v19_v35 = vld [vmem:[%s776_s0 + $0x8] sm:$0xff] }
   0xb   :  { %v607_v26 = vld [vmem:[%s775_s1 + $0x30] sm:$0xff]   ;;  %v611_v30 = vld [vmem:[%s775_s1 + $0x38] sm:$0xff]   ;;  %v476_v37 = vcombine.low %v19_v35, %v19_v35  ;;  %v477_v38 = vcombine.high %v19_v35, %v19_v35  ;;  %v618_v39 = vld [vmem:[%s775_s1 + $0x100] sm:$0xff]  }
   0xc   :  { %523 = vmatpush3.bf16.msra.mxu0 %v591_v10  ;;  %v608_v27 = vld [vmem:[%s775_s1 + $0xb0] sm:$0xff]   ;;  %v612_v31 = vld [vmem:[%s775_s1 + $0xb8] sm:$0xff]   ;;  %362 = vmatprep.mubr.bf16.mxu0 %v475_v34  ;;  %v619_v40 = vld [vmem:[%s775_s1 + $0x108] sm:$0xff]  }
   0xd   :  { %545 = vmatpush3.bf16.msra.mxu1 %v592_v11  ;;  %524 = vmatprep.subr.bf16.mxu0 %v593_v12  ;;  %v620_v41 = vld [vmem:[%s775_s1 + $0x110] sm:$0xff]   ;;  %v621_v42 = vld [vmem:[%s775_s1 + $0x118] sm:$0xff]   ;;  %v516_v56 = vld [vmem:[%s777_s2] ss:$0 sm:$0xff] }
   0xe   :  { %546 = vmatprep.subr.bf16.mxu1 %v594_v13  ;;  %402 = vmatprep.mubr.bf16.mxu1 %v477_v38  ;;  %v615_v43 = vld [vmem:[%s776_s0 + $0x10] ss:$0 sps:$4 sm:$0xff]   ;;  %v517_v59 = vld [vmem:[%s778_s3] ss:$0 sm:$0xff] }
  0x10   :  { %525 = vmatpush3.bf16.msra.mxu0 %v595_v14 }
  0x11   :  { %547 = vmatpush3.bf16.msra.mxu1 %v596_v15  ;;  %526 = vmatprep.subr.bf16.mxu0 %v597_v16 }
  0x12   :  { %548 = vmatprep.subr.bf16.mxu1 %v598_v17 }
  0x14   :  { %527 = vmatpush3.bf16.msra.mxu0 %v599_v18 }
  0x15   :  { %549 = vmatpush3.bf16.msra.mxu1 %v600_v19  ;;  %528 = vmatprep.subr.bf16.mxu0 %v601_v20 }
  0x16   :  { %550 = vmatprep.subr.bf16.mxu1 %v602_v21 }
  0x18   :  { %529 = vmatpush3.bf16.msra.mxu0 %v603_v22 }
  0x19   :  { %551 = vmatpush3.bf16.msra.mxu1 %v604_v23  ;;  %530 = vmatprep.subr.bf16.mxu0 %v605_v24 }
  0x1a   :  { %552 = vmatprep.subr.bf16.mxu1 %v606_v25 }
  0x1c   :  { %531 = vmatpush3.bf16.msra.mxu0 %v607_v26 }
  0x1d   :  { %553 = vmatpush3.bf16.msra.mxu1 %v608_v27  ;;  %532 = vmatprep.subr.bf16.mxu0 %v609_v28 }
  0x1e   :  { %554 = vmatprep.subr.bf16.mxu1 %v610_v29 }
  0x20   :  { %533 = vmatpush3.bf16.msra.mxu0 %v611_v30 }
  0x21   :  { %555 = vmatpush3.bf16.msra.mxu1 %v612_v31  ;;  %567 = vmatprep.subr.bf16.mxu0 %v622_v36 }
  0x23   :  { %363 = vmatmul.mubr.bf16.vlgmr.msra.gmra.mrb[0].mxu0 %v474_v33 }
  0x24   :  { %403 = vmatmul.mubr.bf16.vlgmr.msra.gmra.mrb[0].mxu1 %v476_v37  ;;  %568 = vmatpush3.bf16.msra.mxu0 %v618_v39 }
  0x25   :  { %569 = vmatprep.subr.bf16.mxu0 %v622_v36  ;;  %575 = vmatprep.mubr.msk.bf16.mxu0 %vm623_vm0, %v622_v36 }
  0x28   :  { %570 = vmatpush3.bf16.msra.mxu0 %v619_v40 }
  0x29   :  { %571 = vmatprep.subr.bf16.mxu0 %v622_v36 }
  0x2c   :  { %572 = vmatpush3.bf16.msra.mxu0 %v620_v41 }
  0x2d   :  { %573 = vmatprep.subr.bf16.mxu0 %v622_v36 }
  0x30   :  { %574 = vmatpush3.bf16.msra.mxu0 %v621_v42 }
  0x33   :  { %576 = vmatmul.mubr.msk.bf16.vlgmr.msra.gmra.mrb[4].mxu0 %vm326_vm1, %v615_v43 }
  0xf6   :  { %v534_v44 = vpop.f32.mrb[0].mxu0 }
  0xf7   :  { %v556_v45 = vpop.f32.mrb[0].mxu1  ;;  %v535_v46 = vpop.f32.mrb[1].mxu0 }
  0xf8   :  { %v536_v47 = vadd.f32 %v535_v46, %v534_v44  ;;  %v557_v48 = vpop.f32.mrb[1].mxu1  ;;  %v537_v49 = vpop.f32.mrb[2].mxu0 }
  0xf9   :  { %v558_v50 = vadd.f32 %v557_v48, %v556_v45  ;;  %v538_v51 = vpop.f32.mrb[3].mxu0  ;;  %v559_v52 = vpop.f32.mrb[2].mxu1 }
  0xfa   :  { %v560_v53 = vpop.f32.mrb[3].mxu1 }
  0xfb   :  { %v405_v54 = vadd.f32 %v558_v50, %v536_v47 }
 0x106   :  { %v444_v55 = vpop.f32.mrb[4].mxu0 }
 0x107   :  { %v445_v57 = vadd.f32 %v444_v55, %v405_v54  ;;  %v577_v58 = vpop.f32.mrb[5].mxu0 }
 0x108   :  { %v447_v60 = vpop.f32.mrb[6].mxu0 }
 0x109   :  { %v457_v61 = vmul.f32 %v516_v56, %v445_v57  ;;  %v578_v62 = vpop.f32.mrb[7].mxu0 }
 0x10b   :  { %v465_v63 = vadd.f32 %v517_v59, %v457_v61 }
 0x10d   :  { %v466_v0 = vmax.f32 %v465_v63, 0.0 }
 0x10f   :  { %v467_v1 = vpack.c.bf16 %v466_v0, %v466_v0 }
 0x111   :  { %469 = vst.msk [vmem:[%s779_s4] sm:$0xf] %vm468_vm2, %v467_v1 }

// kernel: truenet_forward.32
= control target key start
LH: loop header
LB: loop body
LE: loop exit
PB: predicated region body
PF: predicated region fallthrough
CT: control target
= control target key end

     0   :  { %v362_v1 = vmov 0.0   ;;  %vm363_vm0 = vmmov 0   ;;  %vm174_vm1 = vcmask 261120   ;;  %vm276_vm2 = vcmask 519168   ;;  %s458_s1 = inlined_call_operand.vmem [shape: bf16[288,64], index: 1, kind: input, shape index: {}]   ;;  %s459_s0 = inlined_call_operand.vmem [shape: bf16[8,288], index: 0, kind: input, shape index: {}]   ;;  %s460_s2 = inlined_call_operand.vmem [shape: f32[1,64], index: 2, kind: input, shape index: {}]   ;;  %s461_s3 = inlined_call_operand.vmem [shape: f32[1,64], index: 3, kind: input, shape index: {}]   ;;  %s462_s4 = inlined_call_operand.vmem [shape: bf16[8,64], index: 4, kind: output, shape index: {}]  }
   0x1   :  { %v341_v0 = vld [vmem:[%s458_s1 + $0x40] sm:$0xff]   ;;  %331 = vmatprep.subr.bf16.mxu1 %v362_v1  ;;  %335 = vmatprep.mubr.msk.bf16.mxu1 %vm363_vm0, %v362_v1  ;;  %v343_v3 = vld [vmem:[%s458_s1 + $0x48] sm:$0xff]   ;;  %v345_v5 = vld [vmem:[%s458_s1 + $0x50] sm:$0xff]  }
   0x2   :  { %v342_v2 = vld [vmem:[%s458_s1] sm:$0xff]   ;;  %306 = vmatprep.subr.bf16.mxu0 %v341_v0  ;;  %v344_v4 = vld [vmem:[%s458_s1 + $0x8] sm:$0xff]   ;;  %v346_v6 = vld [vmem:[%s458_s1 + $0x10] sm:$0xff]  }
   0x3   :  { %307 = vmatpush3.bf16.msra.mxu0 %v342_v2  ;;  %v347_v7 = vld [vmem:[%s458_s1 + $0x58] sm:$0xff]   ;;  %v349_v9 = vld [vmem:[%s458_s1 + $0x60] sm:$0xff]   ;;  %v351_v12 = vld [vmem:[%s458_s1 + $0x68] sm:$0xff]  }
   0x4   :  { %308 = vmatprep.subr.bf16.mxu0 %v343_v3  ;;  %v348_v8 = vld [vmem:[%s458_s1 + $0x18] sm:$0xff]   ;;  %v355_v10 = vld [vmem:[%s458_s1 + $0x80] sm:$0xff]   ;;  %v358_v13 = vld [vmem:[%s458_s1 + $0x88] sm:$0xff]  }
   0x5   :  { %v350_v11 = vld [vmem:[%s458_s1 + $0x20] sm:$0xff]   ;;  %332 = vmatpush3.bf16.msra.mxu1 %v355_v10  ;;  %v352_v15 = vld [vmem:[%s458_s1 + $0x28] sm:$0xff]   ;;  %v353_v18 = vld [vmem:[%s458_s1 + $0x70] sm:$0xff]  }
   0x6   :  { %333 = vmatprep.subr.bf16.mxu1 %v362_v1  ;;  %v18_v14 = vld [vmem:[%s459_s0] sm:$0xff]  ;;  %v361_v17 = vld [vmem:[%s459_s0 + $0x8] ss:$0 sps:$4 sm:$0xff]   ;;  %v354_v19 = vld [vmem:[%s458_s1 + $0x30] sm:$0xff]  }
   0x7   :  { %309 = vmatpush3.bf16.msra.mxu0 %v344_v4  ;;  %v283_v16 = vcombine.high %v18_v14, %v18_v14  ;;  %v356_v20 = vld [vmem:[%s458_s1 + $0x78] sm:$0xff]   ;;  %v282_v22 = vcombine.low %v18_v14, %v18_v14  ;;  %v304_v31 = vld [vmem:[%s460_s2] ss:$0 sm:$0xff] }
   0x8   :  { %310 = vmatprep.subr.bf16.mxu0 %v345_v5  ;;  %v357_v21 = vld [vmem:[%s458_s1 + $0x38] sm:$0xff]   ;;  %v305_v34 = vld [vmem:[%s461_s3] ss:$0 sm:$0xff] }
   0x9   :  { %334 = vmatpush3.bf16.msra.mxu1 %v358_v13  ;;  %210 = vmatprep.mubr.bf16.mxu0 %v283_v16 }
   0xb   :  { %311 = vmatpush3.bf16.msra.mxu0 %v346_v6 }
   0xc   :  { %312 = vmatprep.subr.bf16.mxu0 %v347_v7  ;;  %336 = vmatmul.mubr.msk.bf16.vlgmr.msra.gmra.mrb[0].mxu1 %vm174_vm1, %v361_v17 }
   0xf   :  { %313 = vmatpush3.bf16.msra.mxu0 %v348_v8 }
  0x10   :  { %314 = vmatprep.subr.bf16.mxu0 %v349_v9 }
  0x13   :  { %315 = vmatpush3.bf16.msra.mxu0 %v350_v11 }
  0x14   :  { %316 = vmatprep.subr.bf16.mxu0 %v351_v12 }
  0x17   :  { %317 = vmatpush3.bf16.msra.mxu0 %v352_v15 }
  0x18   :  { %318 = vmatprep.subr.bf16.mxu0 %v353_v18 }
  0x1b   :  { %319 = vmatpush3.bf16.msra.mxu0 %v354_v19 }
  0x1c   :  { %320 = vmatprep.subr.bf16.mxu0 %v356_v20 }
  0x1f   :  { %321 = vmatpush3.bf16.msra.mxu0 %v357_v21 }
  0x22   :  { %211 = vmatmul.mubr.bf16.vlgmr.msra.gmra.mrb[0].mxu0 %v282_v22 }
  0xdf   :  { %v252_v23 = vpop.f32.mrb[0].mxu1 }
  0xe0   :  { %v337_v24 = vpop.f32.mrb[1].mxu1 }
  0xe1   :  { %v255_v25 = vpop.f32.mrb[2].mxu1 }
  0xe2   :  { %v338_v26 = vpop.f32.mrb[3].mxu1 }
  0xf5   :  { %v322_v27 = vpop.f32.mrb[0].mxu0 }
  0xf6   :  { %v323_v28 = vpop.f32.mrb[1].mxu0 }
  0xf7   :  { %v324_v29 = vadd.f32 %v323_v28, %v322_v27  ;;  %v325_v30 = vpop.f32.mrb[2].mxu0 }
  0xf8   :  { %v326_v32 = vpop.f32.mrb[3].mxu0 }
  0xf9   :  { %v253_v33 = vadd.f32 %v324_v29, %v252_v23 }
  0xfb   :  { %v265_v35 = vmul.f32 %v304_v31, %v253_v33 }
  0xfd   :  { %v273_v36 = vadd.f32 %v305_v34, %v265_v35 }
  0xff   :  { %v274_v37 = vmax.f32 %v273_v36, 0.0 }
 0x101   :  { %v275_v38 = vpack.c.bf16 %v274_v37, %v274_v37 }
 0x103   :  { %277 = vst.msk [vmem:[%s462_s4] sm:$0xf] %vm276_vm2, %v275_v38 }

// kernel: truenet_forward.34
= control target key start
LH: loop header
LB: loop body
LE: loop exit
PB: predicated region body
PF: predicated region fallthrough
CT: control target
= control target key end

     0   :  { %v134_v0 = vmov 0.0   ;;  %vm135_vm0 = vmmov 0   ;;  %vm55_vm1 = vcmask 523264   ;;  %s177_s1 = inlined_call_operand.vmem [shape: bf16[64,128], index: 1, kind: input, shape index: {}]   ;;  %s178_s0 = inlined_call_operand.vmem [shape: bf16[8,64], index: 0, kind: input, shape index: {}]   ;;  %s179_s2 = inlined_call_operand.vmem [shape: f32[1,128], index: 2, kind: input, shape index: {}]   ;;  %s180_s3 = inlined_call_operand.vmem [shape: bf16[8,128], index: 3, kind: output, shape index: {}]  }
   0x1   :  { %116 = vmatprep.subr.bf16.mxu0 %v134_v0  ;;  %v130_v1 = vld [vmem:[%s177_s1] sm:$0xff]   ;;  %124 = vmatprep.mubr.msk.bf16.mxu0 %vm135_vm0, %v134_v0  ;;  %v131_v2 = vld [vmem:[%s177_s1 + $0x8] sm:$0xff]   ;;  %v132_v3 = vld [vmem:[%s177_s1 + $0x10] sm:$0xff]  }
   0x2   :  { %117 = vmatpush3.bf16.msra.mxu0 %v130_v1  ;;  %v133_v4 = vld [vmem:[%s177_s1 + $0x18] sm:$0xff]   ;;  %v15_v5 = vld [vmem:[%s178_s0] sm:$0xf] }
   0x3   :  { %118 = vmatprep.subr.bf16.mxu0 %v134_v0  ;;  %v105_v6 = vld [vmem:[%s179_s2] ss:$0 sm:$0xff] }
   0x6   :  { %119 = vmatpush3.bf16.msra.mxu0 %v131_v2 }
   0x7   :  { %120 = vmatprep.subr.bf16.mxu0 %v134_v0 }
   0xa   :  { %121 = vmatpush3.bf16.msra.mxu0 %v132_v3 }
   0xb   :  { %122 = vmatprep.subr.bf16.mxu0 %v134_v0 }
   0xe   :  { %123 = vmatpush3.bf16.msra.mxu0 %v133_v4 }
  0x11   :  { %125 = vmatmul.mubr.msk.bf16.vlgmr.msra.gmra.mrb[0].mxu0 %vm55_vm1, %v15_v5 }
  0xe4   :  { %v93_v7 = vpop.f32.mrb[0].mxu0 }
  0xe5   :  { %v94_v8 = vadd.f32 %v105_v6, %v93_v7  ;;  %v126_v9 = vpop.f32.mrb[1].mxu0 }
  0xe6   :  { %v96_v10 = vpop.f32.mrb[2].mxu0 }
  0xe7   :  { %v99_v11 = vpack.c.bf16 %v94_v8, %v94_v8  ;;  %v127_v12 = vpop.f32.mrb[3].mxu0 }
  0xe9   :  { %100 = vst [vmem:[%s180_s3] sm:$0xf] %v99_v11 }

// kernel: tile.23
= control target key start
LH: loop header
LB: loop body
LE: loop exit
PB: predicated region body
PF: predicated region fallthrough
CT: control target
= control target key end

     0   :  { %s22_s0 = inlined_call_operand.vmem [shape: f32[16], index: 0, kind: input, shape index: {}]   ;;  %s23_s1 = inlined_call_operand.vmem [shape: f32[4,16], index: 1, kind: output, shape index: {}]  }
   0x1   :  { %v4_v0 = vld [vmem:[%s22_s0] ss:$0 sm:$0xff] }
   0x2   :  { %5 = vst [vmem:[%s23_s1] sm:$0xf] %v4_v0 }

// kernel: tile.24
= control target key start
LH: loop header
LB: loop body
LE: loop exit
PB: predicated region body
PF: predicated region fallthrough
CT: control target
= control target key end

     0   :  { %vm7_vm0 = vcmask 130048   ;;  %s37_s8 = smov 16   ;;  %s38_s9 = smov 32   ;;  %vm13_vm1 = vcmask 523648   ;;  %vm19_vm2 = vcmask 392448   ;;  %vm25_vm3 = vcmask 261248   ;;  %s55_s0 = inlined_call_operand.vmem [shape: f32[4,16], index: 0, kind: input, shape index: {}]   ;;  %s56_s1 = inlined_call_operand.vmem [shape: f32[1,64], index: 1, kind: output, shape index: {}]  }
   0x1   :  { %v4_v0 = vld [vmem:[%s55_s0] sm:$0xf]  ;;  %s36_s0 = smov 48  }
   0x2   :  { %5 = vst [vmem:[#allocation1] sm:$0xf] %v4_v0 }
   0x9   :  { %v10_v1 = vld [vmem:[#allocation1 + $0x3] sm:$0x1]   ;;  %v22_v2 = vld [vmem:[#allocation1 + $0x1] sm:$0x1]   ;;  %v6_v3 = vld [vmem:[#allocation1] sm:$0x1]  }
   0xa   :  { %11 = vrot.lane.b32.xlu0 %v10_v1, %s36_s0  ;;  %23 = vrot.lane.b32.xlu1 %v22_v2, %s37_s8  ;;  %v16_v4 = vld [vmem:[#allocation1 + $0x2] sm:$0x1]   ;;  %8 = vst.msk [vmem:[#allocation0] sm:$0x1] %vm7_vm0, %v6_v3  }
   0xe   :  { %17 = vrot.lane.b32.xlu0 %v16_v4, %s38_s9 }
  0x7c   :  { %v12_v5 = vpop.permute.xlu0 %11   ;;  %v24_v6 = vpop.permute.xlu1 %23  }
  0x7d   :  { %14 = vst.msk [vmem:[#allocation0] sm:$0x1] %vm13_vm1, %v12_v5  }
  0x80   :  { %v18_v7 = vpop.permute.xlu0 %17  }
  0x81   :  { %20 = vst.msk [vmem:[#allocation0] sm:$0x1] %vm19_vm2, %v18_v7  }
  0x82   :  { %26 = vst.msk [vmem:[#allocation0] sm:$0x1] %vm25_vm3, %v24_v6  }
  0x89   :  { %v30_v8 = vld [vmem:[#allocation0] sm:$0x1] }
  0x8a   :  { %32 = vst [vmem:[%s56_s1] sm:$0x1] %v30_v8 }

// kernel: truenet_forward.37
= control target key start
LH: loop header
LB: loop body
LE: loop exit
PB: predicated region body
PF: predicated region fallthrough
CT: control target
= control target key end

     0   :  { %vm52_vm0 = vcmask 261120   ;;  %vm124_vm1 = vcmask 519168   ;;  %s211_s1 = inlined_call_operand.vmem [shape: bf16[32,64], index: 1, kind: input, shape index: {}]   ;;  %s212_s0 = inlined_call_operand.vmem [shape: bf16[32,32], index: 0, kind: input, shape index: {}]   ;;  %s213_s2 = inlined_call_operand.vmem [shape: f32[1,64], index: 2, kind: input, shape index: {}]   ;;  %s214_s3 = inlined_call_operand.vmem [shape: bf16[32,64], index: 3, kind: output, shape index: {}]  }
   0x1   :  { %v160_v0 = vld [vmem:[%s211_s1] sm:$0xff]   ;;  %v161_v1 = vld [vmem:[%s211_s1 + $0x8] sm:$0xff]  }
   0x2   :  { %152 = vmatprep.subr.bf16.mxu0 %v160_v0  ;;  %v162_v2 = vld [vmem:[%s212_s0] sm:$0xff]   ;;  %v163_v3 = vld [vmem:[%s212_s0 + $0x8] sm:$0xff]  }
   0x3   :  { %153 = vmatpush3.bf16.msra.mxu0 %v160_v0  ;;  %156 = vmatprep.mubr.msk.bf16.mxu0 %vm52_vm0, %v162_v2  ;;  %v133_v4 = vld [vmem:[%s213_s2] ss:$0 sm:$0xff] }
   0x4   :  { %154 = vmatprep.subr.bf16.mxu0 %v161_v1 }
   0x7   :  { %155 = vmatpush3.bf16.msra.mxu0 %v161_v1 }
   0xa   :  { %157 = vmatmul.mubr.msk.bf16.vlgmr.msra.gmra.mrb[0].mxu0 %vm52_vm0, %v163_v3 }
  0xdd   :  { %v158_v5 = vpop.f32.mrb[0].mxu0 }
  0xde   :  { %v102_v6 = vadd.f32 %v158_v5, %v133_v4  ;;  %v93_v7 = vpop.f32.mrb[1].mxu0 }
  0xdf   :  { %v94_v8 = vadd.f32 %v133_v4, %v93_v7  ;;  %v159_v9 = vpop.f32.mrb[2].mxu0 }
  0xe0   :  { %v146_v10 = vpack.c.bf16 %v102_v6, %v102_v6  ;;  %v105_v11 = vadd.f32 %v159_v9, %v133_v4  ;;  %v96_v12 = vpop.f32.mrb[3].mxu0 }
  0xe1   :  { %v144_v13 = vpack.c.bf16 %v94_v8, %v94_v8  ;;  %v97_v14 = vadd.f32 %v133_v4, %v96_v12 }
  0xe2   :  { %127 = vst.msk [vmem:[%s214_s3 + $0x8] sm:$0xf] %vm124_vm1, %v146_v10  ;;  %v147_v15 = vpack.c.bf16 %v105_v11, %v105_v11 }
  0xe3   :  { %125 = vst.msk [vmem:[%s214_s3] sm:$0xf] %vm124_vm1, %v144_v13  ;;  %v145_v16 = vpack.c.bf16 %v97_v14, %v97_v14 }
  0xe4   :  { %128 = vst.msk [vmem:[%s214_s3 + $0xc] sm:$0xf] %vm124_vm1, %v147_v15 }
  0xe5   :  { %126 = vst.msk [vmem:[%s214_s3 + $0x4] sm:$0xf] %vm124_vm1, %v145_v16 }

// kernel: truenet_forward.35
= control target key start
LH: loop header
LB: loop body
LE: loop exit
PB: predicated region body
PF: predicated region fallthrough
CT: control target
= control target key end

     0   :  { %vm368_vm0 = vcmask 523264   ;;  %vm564_vm1 = vcmask 257024   ;;  %s936_s1 = inlined_call_operand.vmem [shape: bf16[576,32], index: 1, kind: input, shape index: {}]   ;;  %s937_s0 = inlined_call_operand.vmem [shape: bf16[32,576], index: 0, kind: input, shape index: {}]   ;;  %s938_s2 = inlined_call_operand.vmem [shape: f32[1,32], index: 2, kind: input, shape index: {}]   ;;  %s939_s3 = inlined_call_operand.vmem [shape: f32[1,32], index: 3, kind: input, shape index: {}]   ;;  %s940_s4 = inlined_call_operand.vmem [shape: bf16[32,32], index: 4, kind: output, shape index: {}]  }
   0x1   :  { %v705_v0 = vld [vmem:[%s936_s1 + $0x40] sm:$0xff]   ;;  %v709_v4 = vld [vmem:[%s936_s1 + $0x48] sm:$0xff]   ;;  %v713_v8 = vld [vmem:[%s936_s1 + $0x50] sm:$0xff]  }
   0x2   :  { %v706_v1 = vld [vmem:[%s936_s1 + $0xc0] sm:$0xff]   ;;  %631 = vmatprep.subr.bf16.mxu0 %v705_v0  ;;  %v710_v5 = vld [vmem:[%s936_s1 + $0xc8] sm:$0xff]   ;;  %v714_v9 = vld [vmem:[%s936_s1 + $0xd0] sm:$0xff]  }
   0x3   :  { %v707_v2 = vld [vmem:[%s936_s1] sm:$0xff]   ;;  %659 = vmatprep.subr.bf16.mxu1 %v706_v1  ;;  %v711_v6 = vld [vmem:[%s936_s1 + $0x8] sm:$0xff]   ;;  %v715_v10 = vld [vmem:[%s936_s1 + $0x10] sm:$0xff]  }
   0x4   :  { %v708_v3 = vld [vmem:[%s936_s1 + $0x80] sm:$0xff]   ;;  %632 = vmatpush3.bf16.msra.mxu0 %v707_v2  ;;  %v712_v7 = vld [vmem:[%s936_s1 + $0x88] sm:$0xff]   ;;  %v716_v11 = vld [vmem:[%s936_s1 + $0x90] sm:$0xff]  }
   0x5   :  { %660 = vmatpush3.bf16.msra.mxu1 %v708_v3  ;;  %633 = vmatprep.subr.bf16.mxu0 %v709_v4  ;;  %v717_v12 = vld [vmem:[%s936_s1 + $0x58] sm:$0xff]   ;;  %v721_v16 = vld [vmem:[%s936_s1 + $0x60] sm:$0xff]   ;;  %v725_v20 = vld [vmem:[%s936_s1 + $0x68] sm:$0xff]  }
   0x6   :  { %661 = vmatprep.subr.bf16.mxu1 %v710_v5  ;;  %v718_v13 = vld [vmem:[%s936_s1 + $0xd8] sm:$0xff]   ;;  %v722_v17 = vld [vmem:[%s936_s1 + $0xe0] sm:$0xff]   ;;  %v726_v21 = vld [vmem:[%s936_s1 + $0xe8] sm:$0xff]  }
   0x7   :  { %v719_v14 = vld [vmem:[%s936_s1 + $0x18] sm:$0xff]   ;;  %v723_v18 = vld [vmem:[%s936_s1 + $0x20] sm:$0xff]   ;;  %v727_v22 = vld [vmem:[%s936_s1 + $0x28] sm:$0xff]  }
   0x8   :  { %634 = vmatpush3.bf16.msra.mxu0 %v711_v6  ;;  %v720_v15 = vld [vmem:[%s936_s1 + $0x98] sm:$0xff]   ;;  %v724_v19 = vld [vmem:[%s936_s1 + $0xa0] sm:$0xff]   ;;  %v728_v23 = vld [vmem:[%s936_s1 + $0xa8] sm:$0xff]  }
   0x9   :  { %662 = vmatpush3.bf16.msra.mxu1 %v712_v7  ;;  %635 = vmatprep.subr.bf16.mxu0 %v713_v8  ;;  %v729_v24 = vld [vmem:[%s936_s1 + $0x70] sm:$0xff]   ;;  %v733_v28 = vld [vmem:[%s936_s1 + $0x78] sm:$0xff]   ;;  %v742_v35 = vld [vmem:[%s937_s0 + $0xc] ss:$20 sps:$4 sm:$0xff]  }
   0xa   :  { %663 = vmatprep.subr.bf16.mxu1 %v714_v9  ;;  %v730_v25 = vld [vmem:[%s936_s1 + $0xf0] sm:$0xff]   ;;  %v734_v29 = vld [vmem:[%s936_s1 + $0xf8] sm:$0xff]   ;;  %v743_v36 = vld [vmem:[%s936_s1 + $0x100] sm:$0xff]   ;;  %456 = vmatprep.mubr.bf16.mxu1 %v742_v35 }
   0xb   :  { %v731_v26 = vld [vmem:[%s936_s1 + $0x30] sm:$0xff]   ;;  %v735_v30 = vld [vmem:[%s936_s1 + $0x38] sm:$0xff]   ;;  %v744_v37 = vld [vmem:[%s936_s1 + $0x108] sm:$0xff]  }
   0xc   :  { %636 = vmatpush3.bf16.msra.mxu0 %v715_v10  ;;  %v732_v27 = vld [vmem:[%s936_s1 + $0xb0] sm:$0xff]   ;;  %v736_v31 = vld [vmem:[%s936_s1 + $0xb8] sm:$0xff]   ;;  %v745_v38 = vld [vmem:[%s937_s0 + $0x2c] ss:$20 sps:$4 sm:$0xff]  }
   0xd   :  { %664 = vmatpush3.bf16.msra.mxu1 %v716_v11  ;;  %637 = vmatprep.subr.bf16.mxu0 %v717_v12  ;;  %v737_v32 = vld [vmem:[%s937_s0] ss:$20 sps:$4 sm:$0xff]   ;;  %v739_v33 = vld [vmem:[%s937_s0 + $0x4] ss:$20 sps:$4 sm:$0xff]   ;;  %v740_v34 = vld [vmem:[%s937_s0 + $0x8] ss:$20 sps:$4 sm:$0xff]  }
   0xe   :  { %665 = vmatprep.subr.bf16.mxu1 %v718_v13  ;;  %407 = vmatprep.mubr.bf16.mxu0 %v739_v33  ;;  %v747_v39 = vld [vmem:[%s937_s0 + $0x34] ss:$20 sps:$4 sm:$0xff]   ;;  %v750_v42 = vld [vmem:[%s937_s0 + $0x30] ss:$20 sps:$4 sm:$0xff]   ;;  %v752_v44 = vld [vmem:[%s936_s1 + $0x118] sm:$0xff]  }
   0xf   :  { %v749_v40 = vld [vmem:[%s937_s0 + $0x28] ss:$20 sps:$4 sm:$0xff]   ;;  %v751_v41 = vld [vmem:[%s936_s1 + $0x110] sm:$0xff]   ;;  %v754_v45 = vld [vmem:[%s937_s0 + $0x38] ss:$20 sps:$4 sm:$0xff]  }
  0x10   :  { %638 = vmatpush3.bf16.msra.mxu0 %v719_v14  ;;  %v753_v43 = vld [vmem:[%s937_s0 + $0x10] ss:$20 sps:$4 sm:$0xff]   ;;  %v621_v11 = vld [vmem:[%s938_s2] ss:$0 sm:$0xff] }
  0x11   :  { %666 = vmatpush3.bf16.msra.mxu1 %v720_v15  ;;  %639 = vmatprep.subr.bf16.mxu0 %v721_v16  ;;  %v622_v14 = vld [vmem:[%s939_s3] ss:$0 sm:$0xff] }
  0x12   :  { %667 = vmatprep.subr.bf16.mxu1 %v722_v17 }
  0x14   :  { %640 = vmatpush3.bf16.msra.mxu0 %v723_v18 }
  0x15   :  { %668 = vmatpush3.bf16.msra.mxu1 %v724_v19  ;;  %641 = vmatprep.subr.bf16.mxu0 %v725_v20 }
  0x16   :  { %669 = vmatprep.subr.bf16.mxu1 %v726_v21 }
  0x18   :  { %642 = vmatpush3.bf16.msra.mxu0 %v727_v22 }
  0x19   :  { %670 = vmatpush3.bf16.msra.mxu1 %v728_v23  ;;  %643 = vmatprep.subr.bf16.mxu0 %v729_v24 }
  0x1a   :  { %671 = vmatprep.subr.bf16.mxu1 %v730_v25 }
  0x1c   :  { %644 = vmatpush3.bf16.msra.mxu0 %v731_v26 }
  0x1d   :  { %672 = vmatpush3.bf16.msra.mxu1 %v732_v27  ;;  %645 = vmatprep.subr.bf16.mxu0 %v733_v28 }
  0x1e   :  { %673 = vmatprep.subr.bf16.mxu1 %v734_v29 }
  0x20   :  { %646 = vmatpush3.bf16.msra.mxu0 %v735_v30 }
  0x21   :  { %674 = vmatpush3.bf16.msra.mxu1 %v736_v31  ;;  %693 = vmatprep.subr.bf16.mxu0 %v743_v36 }
  0x23   :  { %408 = vmatmul.mubr.bf16.vlgmr.msra.gmra.mrb[0].mxu0 %v737_v32 }
  0x24   :  { %457 = vmatmul.mubr.bf16.vlgmr.msra.gmra.mrb[0].mxu1 %v740_v34  ;;  %694 = vmatpush3.bf16.msra.mxu0 %v743_v36 }
  0x25   :  { %695 = vmatprep.subr.bf16.mxu0 %v744_v37  ;;  %415 = vmatprep.mubr.bf16.mxu0 %v745_v38 }
  0x26   :  { %464 = vmatprep.mubr.bf16.mxu1 %v747_v39 }
  0x28   :  { %696 = vmatpush3.bf16.msra.mxu0 %v744_v37 }
  0x29   :  { %697 = vmatprep.subr.bf16.mxu0 %v751_v41 }
  0x2b   :  { %416 = vmatmul.mubr.bf16.gmra.mrb[4].mxu0 %v749_v40 }
  0x2c   :  { %465 = vmatmul.mubr.bf16.gmra.mrb[4].mxu1 %v750_v42  ;;  %701 = vmatprep.mubr.msk.bf16.mxu0 %vm368_vm0, %v753_v43 }
  0x2d   :  { %698 = vmatpush3.bf16.msra.mxu0 %v751_v41 }
  0x2e   :  { %699 = vmatprep.subr.bf16.mxu0 %v752_v44 }
  0x31   :  { %700 = vmatpush3.bf16.msra.mxu0 %v752_v44 }
  0x34   :  { %702 = vmatmul.mubr.msk.bf16.vlgmr.msra.gmra.mrb[8].mxu0 %vm368_vm0, %v754_v45 }
  0xf6   :  { %v647_v46 = vpop.f32.mrb[0].mxu0 }
  0xf7   :  { %v675_v47 = vpop.f32.mrb[0].mxu1  ;;  %v648_v48 = vpop.f32.mrb[1].mxu0 }
  0xf8   :  { %v649_v49 = vadd.f32 %v648_v48, %v647_v46  ;;  %v676_v50 = vpop.f32.mrb[1].mxu1  ;;  %v650_v51 = vpop.f32.mrb[2].mxu0 }
  0xf9   :  { %v677_v52 = vadd.f32 %v676_v50, %v675_v47  ;;  %v678_v53 = vpop.f32.mrb[2].mxu1  ;;  %v651_v54 = vpop.f32.mrb[3].mxu0 }
  0xfa   :  { %v652_v55 = vadd.f32 %v651_v54, %v650_v51  ;;  %v679_v56 = vpop.f32.mrb[3].mxu1 }
  0xfb   :  { %v680_v57 = vadd.f32 %v679_v56, %v678_v53  ;;  %v459_v58 = vadd.f32 %v677_v52, %v649_v49 }
  0xfd   :  { %v462_v59 = vadd.f32 %v680_v57, %v652_v55 }
  0xfe   :  { %v653_v60 = vpop.f32.mrb[4].mxu0 }
  0xff   :  { %v681_v61 = vpop.f32.mrb[4].mxu1  ;;  %v654_v62 = vpop.f32.mrb[5].mxu0 }
 0x100   :  { %v655_v63 = vadd.f32 %v654_v62, %v653_v60  ;;  %v682_v0 = vpop.f32.mrb[5].mxu1  ;;  %v656_v1 = vpop.f32.mrb[6].mxu0 }
 0x101   :  { %v683_v2 = vadd.f32 %v682_v0, %v681_v61  ;;  %v684_v3 = vpop.f32.mrb[6].mxu1  ;;  %v657_v4 = vpop.f32.mrb[7].mxu0 }
 0x102   :  { %v658_v5 = vadd.f32 %v657_v4, %v656_v1  ;;  %v685_v6 = vpop.f32.mrb[7].mxu1 }
 0x103   :  { %v686_v7 = vadd.f32 %v685_v6, %v684_v3  ;;  %v467_v8 = vadd.f32 %v683_v2, %v655_v63 }
 0x105   :  { %v470_v9 = vadd.f32 %v686_v7, %v658_v5 }
 0x107   :  { %v703_v10 = vpop.f32.mrb[8].mxu0 }
 0x108   :  { %v516_v12 = vadd.f32 %v703_v10, %v467_v8  ;;  %v507_v13 = vpop.f32.mrb[9].mxu0 }
 0x109   :  { %v508_v15 = vadd.f32 %v507_v13, %v459_v58  ;;  %v704_v16 = vpop.f32.mrb[10].mxu0 }
 0x10a   :  { %v531_v17 = vmul.f32 %v621_v11, %v516_v12  ;;  %v519_v18 = vadd.f32 %v704_v16, %v470_v9  ;;  %v510_v19 = vpop.f32.mrb[11].mxu0 }
 0x10b   :  { %v529_v20 = vmul.f32 %v621_v11, %v508_v15  ;;  %v511_v21 = vadd.f32 %v510_v19, %v462_v59 }
 0x10c   :  { %v542_v22 = vadd.f32 %v622_v14, %v531_v17  ;;  %v532_v23 = vmul.f32 %v621_v11, %v519_v18 }
 0x10d   :  { %v540_v24 = vadd.f32 %v622_v14, %v529_v20  ;;  %v530_v25 = vmul.f32 %v621_v11, %v511_v21 }
 0x10e   :  { %v546_v26 = vmax.f32 %v542_v22, 0.0  ;;  %v543_v27 = vadd.f32 %v622_v14, %v532_v23 }
 0x10f   :  { %v544_v28 = vmax.f32 %v540_v24, 0.0  ;;  %v541_v29 = vadd.f32 %v622_v14, %v530_v25 }
 0x110   :  { %v629_v30 = vpack.c.bf16 %v546_v26, %v546_v26  ;;  %v547_v31 = vmax.f32 %v543_v27, 0.0 }
 0x111   :  { %v627_v32 = vpack.c.bf16 %v544_v28, %v544_v28  ;;  %v545_v33 = vmax.f32 %v541_v29, 0.0 }
 0x112   :  { %567 = vst.msk [vmem:[%s940_s4 + $0x8] sm:$0xf] %vm564_vm1, %v629_v30  ;;  %v630_v34 = vpack.c.bf16 %v547_v31, %v547_v31 }
 0x113   :  { %565 = vst.msk [vmem:[%s940_s4] sm:$0xf] %vm564_vm1, %v627_v32  ;;  %v628_v35 = vpack.c.bf16 %v545_v33, %v545_v33 }
 0x114   :  { %568 = vst.msk [vmem:[%s940_s4 + $0xc] sm:$0xf] %vm564_vm1, %v630_v34 }
 0x115   :  { %566 = vst.msk [vmem:[%s940_s4 + $0x4] sm:$0xf] %vm564_vm1, %v628_v35 }

// kernel: tile.28
= control target key start
LH: loop header
LB: loop body
LE: loop exit
PB: predicated region body
PF: predicated region fallthrough
CT: control target
= control target key end

     0   :  { %s22_s0 = inlined_call_operand.vmem [shape: f32[8], index: 0, kind: input, shape index: {}]   ;;  %s23_s1 = inlined_call_operand.vmem [shape: f32[4,8], index: 1, kind: output, shape index: {}]  }
   0x1   :  { %v4_v0 = vld [vmem:[%s22_s0] ss:$0 sm:$0xff] }
   0x2   :  { %5 = vst [vmem:[%s23_s1] sm:$0xf] %v4_v0 }

// kernel: tile.29
= control target key start
LH: loop header
LB: loop body
LE: loop exit
PB: predicated region body
PF: predicated region fallthrough
CT: control target
= control target key end

     0   :  { %vm7_vm0 = vcmask 64512   ;;  %s37_s8 = smov 8   ;;  %s38_s9 = smov 16   ;;  %vm13_vm1 = vcmask 261312   ;;  %vm19_vm2 = vcmask 195712   ;;  %vm25_vm3 = vcmask 130112   ;;  %s55_s0 = inlined_call_operand.vmem [shape: f32[4,8], index: 0, kind: input, shape index: {}]   ;;  %s56_s1 = inlined_call_operand.vmem [shape: f32[1,32], index: 1, kind: output, shape index: {}]  }
   0x1   :  { %v4_v0 = vld [vmem:[%s55_s0] sm:$0xf]  ;;  %s36_s0 = smov 24  }
   0x2   :  { %5 = vst [vmem:[#allocation1] sm:$0xf] %v4_v0 }
   0x9   :  { %v10_v1 = vld [vmem:[#allocation1 + $0x3] sm:$0x1]   ;;  %v22_v2 = vld [vmem:[#allocation1 + $0x1] sm:$0x1]   ;;  %v6_v3 = vld [vmem:[#allocation1] sm:$0x1]  }
   0xa   :  { %11 = vrot.lane.b32.xlu0 %v10_v1, %s36_s0  ;;  %23 = vrot.lane.b32.xlu1 %v22_v2, %s37_s8  ;;  %v16_v4 = vld [vmem:[#allocation1 + $0x2] sm:$0x1]   ;;  %8 = vst.msk [vmem:[#allocation0] sm:$0x1] %vm7_vm0, %v6_v3  }
   0xe   :  { %17 = vrot.lane.b32.xlu0 %v16_v4, %s38_s9 }
  0x7c   :  { %v12_v5 = vpop.permute.xlu0 %11   ;;  %v24_v6 = vpop.permute.xlu1 %23  }
  0x7d   :  { %14 = vst.msk [vmem:[#allocation0] sm:$0x1] %vm13_vm1, %v12_v5  }
  0x80   :  { %v18_v7 = vpop.permute.xlu0 %17  }
  0x81   :  { %20 = vst.msk [vmem:[#allocation0] sm:$0x1] %vm19_vm2, %v18_v7  }
  0x82   :  { %26 = vst.msk [vmem:[#allocation0] sm:$0x1] %vm25_vm3, %v24_v6  }
  0x89   :  { %v30_v8 = vld [vmem:[#allocation0] sm:$0x1] }
  0x8a   :  { %32 = vst [vmem:[%s56_s1] sm:$0x1] %v30_v8 }

// kernel: truenet_forward.38
= control target key start
LH: loop header
LB: loop body
LE: loop exit
PB: predicated region body
PF: predicated region fallthrough
CT: control target
= control target key end

     0   :  { %vm314_vm0 = vcmask 261120   ;;  %vm659_vm1 = vcmask 125952   ;;  %s1201_s1 = inlined_call_operand.vmem [shape: bf16[288,16], index: 1, kind: input, shape index: {}]   ;;  %s1202_s0 = inlined_call_operand.vmem [shape: bf16[128,288], index: 0, kind: input, shape index: {}]   ;;  %s1203_s2 = inlined_call_operand.vmem [shape: f32[1,16], index: 2, kind: input, shape index: {}]   ;;  %s1204_s3 = inlined_call_operand.vmem [shape: f32[1,16], index: 3, kind: input, shape index: {}]   ;;  %s1205_s4 = inlined_call_operand.vmem [shape: bf16[128,16], index: 4, kind: output, shape index: {}]  }
   0x1   :  { %v874_v0 = vld [vmem:[%s1201_s1 + $0x40] sm:$0xff]   ;;  %v876_v2 = vld [vmem:[%s1201_s1 + $0x48] sm:$0xff]   ;;  %v878_v4 = vld [vmem:[%s1201_s1 + $0x50] sm:$0xff]  }
   0x2   :  { %v875_v1 = vld [vmem:[%s1201_s1] sm:$0xff]   ;;  %764 = vmatprep.subr.bf16.mxu0 %v874_v0  ;;  %858 = vmatprep.subr.bf16.mxu1 %v874_v0  ;;  %v877_v3 = vld [vmem:[%s1201_s1 + $0x8] sm:$0xff]   ;;  %v879_v5 = vld [vmem:[%s1201_s1 + $0x10] sm:$0xff]  }
   0x3   :  { %765 = vmatpush3.bf16.msra.mxu0 %v875_v1  ;;  %866 = vmatpush3.bf16.msra.mxu1 %v875_v1  ;;  %v880_v6 = vld [vmem:[%s1201_s1 + $0x58] sm:$0xff]   ;;  %v882_v8 = vld [vmem:[%s1201_s1 + $0x60] sm:$0xff]   ;;  %v884_v10 = vld [vmem:[%s1201_s1 + $0x68] sm:$0xff]  }
   0x4   :  { %766 = vmatprep.subr.bf16.mxu0 %v876_v2  ;;  %859 = vmatprep.subr.bf16.mxu1 %v876_v2  ;;  %v881_v7 = vld [vmem:[%s1201_s1 + $0x18] sm:$0xff]   ;;  %v883_v9 = vld [vmem:[%s1201_s1 + $0x20] sm:$0xff]   ;;  %v885_v13 = vld [vmem:[%s1201_s1 + $0x28] sm:$0xff]  }
   0x5   :  { %v892_v11 = vld [vmem:[%s1202_s0 + $0x4] ss:$12 sps:$4 sm:$0xff]   ;;  %v895_v12 = vld [vmem:[%s1202_s0 + $0x94] ss:$12 sps:$4 sm:$0xff]   ;;  %v888_v16 = vld [vmem:[%s1201_s1 + $0x78] sm:$0xff]  }
   0x6   :  { %v886_v14 = vld [vmem:[%s1201_s1 + $0x70] sm:$0xff]   ;;  %371 = vmatprep.mubr.bf16.mxu0 %v892_v11  ;;  %419 = vmatprep.mubr.bf16.mxu1 %v895_v12  ;;  %v889_v17 = vld [vmem:[%s1201_s1 + $0x38] sm:$0xff]   ;;  %v890_v18 = vld [vmem:[%s1202_s0] ss:$12 sps:$4 sm:$0xff]  }
   0x7   :  { %767 = vmatpush3.bf16.msra.mxu0 %v877_v3  ;;  %867 = vmatpush3.bf16.msra.mxu1 %v877_v3  ;;  %v887_v15 = vld [vmem:[%s1201_s1 + $0x30] sm:$0xff]   ;;  %v896_v19 = vld [vmem:[%s1201_s1 + $0x80] sm:$0xff]   ;;  %v897_v21 = vld [vmem:[%s1202_s0 + $0x1c] ss:$12 sps:$4 sm:$0xff]  }
   0x8   :  { %768 = vmatprep.subr.bf16.mxu0 %v878_v4  ;;  %860 = vmatprep.subr.bf16.mxu1 %v878_v4  ;;  %v893_v20 = vld [vmem:[%s1202_s0 + $0x90] ss:$12 sps:$4 sm:$0xff]   ;;  %v899_v22 = vld [vmem:[%s1202_s0 + $0xac] ss:$12 sps:$4 sm:$0xff]   ;;  %v902_v25 = vld [vmem:[%s1202_s0 + $0xa8] ss:$12 sps:$4 sm:$0xff]  }
   0x9   :  { %v903_v23 = vld [vmem:[%s1201_s1 + $0x88] sm:$0xff]   ;;  %v901_v24 = vld [vmem:[%s1202_s0 + $0x18] ss:$12 sps:$4 sm:$0xff]   ;;  %v904_v26 = vld [vmem:[%s1202_s0 + $0x34] ss:$12 sps:$4 sm:$0xff]  }
   0xa   :  { %v906_v27 = vld [vmem:[%s1202_s0 + $0x8] ss:$12 sps:$4 sm:$0xff]   ;;  %v907_v28 = vld [vmem:[%s1202_s0 + $0x30] ss:$12 sps:$4 sm:$0xff]   ;;  %v908_v29 = vld [vmem:[%s1202_s0 + $0x20] ss:$12 sps:$4 sm:$0xff]  }
   0xb   :  { %769 = vmatpush3.bf16.msra.mxu0 %v879_v5  ;;  %868 = vmatpush3.bf16.msra.mxu1 %v879_v5  ;;  %v909_v30 = vld [vmem:[%s1202_s0 + $0x4c] ss:$12 sps:$4 sm:$0xff]   ;;  %v912_v32 = vld [vmem:[%s1202_s0 + $0x48] ss:$12 sps:$4 sm:$0xff]   ;;  %v913_v33 = vld [vmem:[%s1202_s0 + $0x50] ss:$12 sps:$4 sm:$0xff]  }
   0xc   :  { %770 = vmatprep.subr.bf16.mxu0 %v880_v6  ;;  %861 = vmatprep.subr.bf16.mxu1 %v880_v6  ;;  %v911_v31 = vld [vmem:[%s1202_s0 + $0x38] ss:$12 sps:$4 sm:$0xff]   ;;  %v916_v35 = vld [vmem:[%s1202_s0 + $0x68] ss:$12 sps:$4 sm:$0xff]   ;;  %v917_v36 = vld [vmem:[%s1202_s0 + $0x60] ss:$12 sps:$4 sm:$0xff]  }
   0xd   :  { %v914_v34 = vld [vmem:[%s1202_s0 + $0x64] ss:$12 sps:$4 sm:$0xff]   ;;  %v918_v37 = vld [vmem:[%s1202_s0 + $0x80] ss:$12 sps:$4 sm:$0xff]   ;;  %v919_v38 = vld [vmem:[%s1202_s0 + $0x7c] ss:$12 sps:$4 sm:$0xff]  }
   0xe   :  { %v921_v39 = vld [vmem:[%s1202_s0 + $0x98] ss:$12 sps:$4 sm:$0xff]   ;;  %v923_v41 = vld [vmem:[%s1202_s0 + $0xb0] ss:$12 sps:$4 sm:$0xff]   ;;  %v1094_v4 = vld [vmem:[%s1203_s2] ss:$0 sm:$0xff] }
   0xf   :  { %771 = vmatpush3.bf16.msra.mxu0 %v881_v7  ;;  %869 = vmatpush3.bf16.msra.mxu1 %v881_v7  ;;  %v922_v40 = vld [vmem:[%s1202_s0 + $0x78] ss:$12 sps:$4 sm:$0xff]  }
  0x10   :  { %772 = vmatprep.subr.bf16.mxu0 %v882_v8  ;;  %862 = vmatprep.subr.bf16.mxu1 %v882_v8  ;;  %v1099_v8 = vld [vmem:[%s1204_s3] ss:$0 sm:$0xff] }
  0x13   :  { %773 = vmatpush3.bf16.msra.mxu0 %v883_v9  ;;  %870 = vmatpush3.bf16.msra.mxu1 %v883_v9 }
  0x14   :  { %774 = vmatprep.subr.bf16.mxu0 %v884_v10  ;;  %863 = vmatprep.subr.bf16.mxu1 %v884_v10 }
  0x17   :  { %775 = vmatpush3.bf16.msra.mxu0 %v885_v13  ;;  %871 = vmatpush3.bf16.msra.mxu1 %v885_v13 }
  0x18   :  { %776 = vmatprep.subr.bf16.mxu0 %v886_v14  ;;  %864 = vmatprep.subr.bf16.mxu1 %v886_v14 }
  0x1b   :  { %777 = vmatpush3.bf16.msra.mxu0 %v887_v15  ;;  %872 = vmatpush3.bf16.msra.mxu1 %v887_v15 }
  0x1c   :  { %778 = vmatprep.subr.bf16.mxu0 %v888_v16  ;;  %865 = vmatprep.subr.bf16.mxu1 %v888_v16 }
  0x1f   :  { %779 = vmatpush3.bf16.msra.mxu0 %v889_v17  ;;  %873 = vmatpush3.bf16.msra.mxu1 %v889_v17 }
  0x20   :  { %838 = vmatprep.subr.bf16.mxu1 %v896_v19 }
  0x22   :  { %372 = vmatmul.mubr.bf16.vlgmr.msra.gmra.mrb[0].mxu0 %v890_v18  ;;  %420 = vmatmul.mubr.bf16.vlgmr.msra.gmra.mrb[0].mxu1 %v893_v20 }
  0x23   :  { %839 = vmatpush3.bf16.msra.mxu1 %v896_v19  ;;  %379 = vmatprep.mubr.bf16.mxu0 %v897_v21 }
  0x24   :  { %427 = vmatprep.mubr.bf16.mxu1 %v899_v22  ;;  %840 = vmatprep.subr.bf16.mxu1 %v903_v23 }
  0x27   :  { %841 = vmatpush3.bf16.msra.mxu1 %v903_v23 }
  0x2a   :  { %380 = vmatmul.mubr.bf16.gmra.mrb[4].mxu0 %v901_v24  ;;  %428 = vmatmul.mubr.bf16.gmra.mrb[4].mxu1 %v902_v25 }
  0x2b   :  { %387 = vmatprep.mubr.bf16.mxu0 %v904_v26  ;;  %842 = vmatprep.mubr.msk.bf16.mxu1 %vm314_vm0, %v906_v27 }
  0x32   :  { %388 = vmatmul.mubr.bf16.gmra.mrb[8].mxu0 %v907_v28  ;;  %843 = vmatmul.mubr.msk.bf16.vlgmr.msra.gmra.mrb[8].mxu1 %vm314_vm0, %v908_v29 }
  0x33   :  { %395 = vmatprep.mubr.bf16.mxu0 %v909_v30  ;;  %846 = vmatprep.mubr.msk.bf16.mxu1 %vm314_vm0, %v911_v31 }
  0x3a   :  { %396 = vmatmul.mubr.bf16.gmra.mrb[12].mxu0 %v912_v32  ;;  %847 = vmatmul.mubr.msk.bf16.gmra.mrb[12].mxu1 %vm314_vm0, %v913_v33 }
  0x3b   :  { %403 = vmatprep.mubr.bf16.mxu0 %v914_v34  ;;  %850 = vmatprep.mubr.msk.bf16.mxu1 %vm314_vm0, %v916_v35 }
  0x42   :  { %404 = vmatmul.mubr.bf16.gmra.mrb[16].mxu0 %v917_v36  ;;  %851 = vmatmul.mubr.msk.bf16.gmra.mrb[16].mxu1 %vm314_vm0, %v918_v37 }
  0x43   :  { %411 = vmatprep.mubr.bf16.mxu0 %v919_v38  ;;  %854 = vmatprep.mubr.msk.bf16.mxu1 %vm314_vm0, %v921_v39 }
  0x4a   :  { %412 = vmatmul.mubr.bf16.gmra.mrb[20].mxu0 %v922_v40  ;;  %855 = vmatmul.mubr.msk.bf16.gmra.mrb[20].mxu1 %vm314_vm0, %v923_v41 }
  0xf5   :  { %v780_v42 = vpop.f32.mrb[0].mxu0  ;;  %v816_v43 = vpop.f32.mrb[0].mxu1 }
  0xf6   :  { %v781_v44 = vpop.f32.mrb[1].mxu0  ;;  %v817_v45 = vpop.f32.mrb[1].mxu1 }
  0xf7   :  { %v782_v46 = vadd.f32 %v781_v44, %v780_v42  ;;  %v1083_v47 = vadd.f32 %v817_v45, %v816_v43  ;;  %v783_v48 = vpop.f32.mrb[2].mxu0  ;;  %v819_v49 = vpop.f32.mrb[2].mxu1 }
  0xf8   :  { %v784_v50 = vpop.f32.mrb[3].mxu0  ;;  %v820_v51 = vpop.f32.mrb[3].mxu1 }
  0xf9   :  { %v785_v52 = vadd.f32 %v784_v50, %v783_v48  ;;  %v1085_v53 = vadd.f32 %v820_v51, %v819_v49 }
  0xfd   :  { %v786_v54 = vpop.f32.mrb[4].mxu0  ;;  %v822_v55 = vpop.f32.mrb[4].mxu1 }
  0xfe   :  { %v787_v56 = vpop.f32.mrb[5].mxu0  ;;  %v823_v57 = vpop.f32.mrb[5].mxu1 }
  0xff   :  { %v788_v58 = vadd.f32 %v787_v56, %v786_v54  ;;  %v1087_v59 = vadd.f32 %v823_v57, %v822_v55  ;;  %v789_v60 = vpop.f32.mrb[6].mxu0  ;;  %v825_v61 = vpop.f32.mrb[6].mxu1 }
 0x100   :  { %v790_v62 = vpop.f32.mrb[7].mxu0  ;;  %v826_v63 = vpop.f32.mrb[7].mxu1 }
 0x101   :  { %v791_v0 = vadd.f32 %v790_v62, %v789_v60  ;;  %v1089_v1 = vadd.f32 %v826_v63, %v825_v61 }
 0x105   :  { %v792_v2 = vpop.f32.mrb[8].mxu0  ;;  %v844_v3 = vpop.f32.mrb[8].mxu1 }
 0x106   :  { %v479_v5 = vadd.f32 %v844_v3, %v788_v58  ;;  %v793_v6 = vpop.f32.mrb[9].mxu0  ;;  %v470_v7 = vpop.f32.mrb[9].mxu1 }
 0x107   :  { %v794_v9 = vadd.f32 %v793_v6, %v792_v2  ;;  %v471_v10 = vadd.f32 %v782_v46, %v470_v7  ;;  %v795_v11 = vpop.f32.mrb[10].mxu0  ;;  %v845_v12 = vpop.f32.mrb[10].mxu1 }
 0x108   :  { %v542_v13 = vmul.f32 %v1094_v4, %v479_v5  ;;  %v482_v14 = vadd.f32 %v845_v12, %v791_v0  ;;  %v796_v15 = vpop.f32.mrb[11].mxu0  ;;  %v473_v16 = vpop.f32.mrb[11].mxu1 }
 0x109   :  { %v540_v17 = vmul.f32 %v1094_v4, %v471_v10  ;;  %v797_v18 = vadd.f32 %v796_v15, %v795_v11  ;;  %v474_v19 = vadd.f32 %v785_v52, %v473_v16 }
 0x10a   :  { %v565_v20 = vadd.f32 %v1099_v8, %v542_v13  ;;  %v543_v21 = vmul.f32 %v1094_v4, %v482_v14 }
 0x10b   :  { %v563_v22 = vadd.f32 %v1099_v8, %v540_v17  ;;  %v541_v23 = vmul.f32 %v1094_v4, %v474_v19 }
 0x10c   :  { %v581_v24 = vmax.f32 %v565_v20, 0.0  ;;  %v566_v25 = vadd.f32 %v1099_v8, %v543_v21 }
 0x10d   :  { %v579_v26 = vmax.f32 %v563_v22, 0.0  ;;  %v564_v27 = vadd.f32 %v1099_v8, %v541_v23  ;;  %v798_v28 = vpop.f32.mrb[12].mxu0  ;;  %v848_v29 = vpop.f32.mrb[12].mxu1 }
 0x10e   :  { %v750_v30 = vpack.c.bf16 %v581_v24, %v581_v24  ;;  %v582_v31 = vmax.f32 %v566_v25, 0.0  ;;  %v799_v32 = vpop.f32.mrb[13].mxu0  ;;  %v486_v33 = vpop.f32.mrb[13].mxu1 }
 0x10f   :  { %v748_v34 = vpack.c.bf16 %v579_v26, %v579_v26  ;;  %v580_v35 = vmax.f32 %v564_v27, 0.0  ;;  %v800_v36 = vadd.f32 %v799_v32, %v798_v28  ;;  %v487_v37 = vadd.f32 %v794_v9, %v486_v33  ;;  %v801_v38 = vpop.f32.mrb[14].mxu0  ;;  %v849_v39 = vpop.f32.mrb[14].mxu1 }
 0x110   :  { %662 = vst.msk [vmem:[%s1205_s4 + $0x8] sm:$0xf] %vm659_vm1, %v750_v30  ;;  %v751_v40 = vpack.c.bf16 %v582_v31, %v582_v31  ;;  %v802_v41 = vpop.f32.mrb[15].mxu0  ;;  %v489_v42 = vpop.f32.mrb[15].mxu1 }
 0x111   :  { %660 = vst.msk [vmem:[%s1205_s4] sm:$0xf] %vm659_vm1, %v748_v34  ;;  %v749_v43 = vpack.c.bf16 %v580_v35, %v580_v35  ;;  %v495_v44 = vadd.f32 %v848_v29, %v800_v36  ;;  %v544_v45 = vmul.f32 %v1094_v4, %v487_v37  ;;  %v803_v46 = vadd.f32 %v802_v41, %v801_v38 }
 0x112   :  { %663 = vst.msk [vmem:[%s1205_s4 + $0xc] sm:$0xf] %vm659_vm1, %v751_v40  ;;  %v490_v48 = vadd.f32 %v797_v18, %v489_v42 }
 0x113   :  { %661 = vst.msk [vmem:[%s1205_s4 + $0x4] sm:$0xf] %vm659_vm1, %v749_v43  ;;  %v546_v49 = vmul.f32 %v1094_v4, %v495_v44  ;;  %v567_v50 = vadd.f32 %v1099_v8, %v544_v45  ;;  %v498_v51 = vadd.f32 %v849_v39, %v803_v46 }
 0x114   :  { %v545_v52 = vmul.f32 %v1094_v4, %v490_v48 }
 0x115   :  { %v569_v54 = vadd.f32 %v1099_v8, %v546_v49  ;;  %v583_v55 = vmax.f32 %v567_v50, 0.0  ;;  %v547_v56 = vmul.f32 %v1094_v4, %v498_v51  ;;  %v804_v57 = vpop.f32.mrb[16].mxu0  ;;  %v852_v58 = vpop.f32.mrb[16].mxu1 }
 0x116   :  { %v568_v60 = vadd.f32 %v1099_v8, %v545_v52  ;;  %v805_v61 = vpop.f32.mrb[17].mxu0  ;;  %v502_v62 = vpop.f32.mrb[17].mxu1 }
 0x117   :  { %v585_v63 = vmax.f32 %v569_v54, 0.0  ;;  %v752_v0 = vpack.c.bf16 %v583_v55, %v583_v55  ;;  %v570_v2 = vadd.f32 %v1099_v8, %v547_v56  ;;  %v806_v3 = vadd.f32 %v805_v61, %v804_v57  ;;  %v807_v5 = vpop.f32.mrb[18].mxu0  ;;  %v853_v6 = vpop.f32.mrb[18].mxu1 }
 0x118   :  { %v584_v7 = vmax.f32 %v568_v60, 0.0  ;;  %v808_v9 = vpop.f32.mrb[19].mxu0  ;;  %v505_v10 = vpop.f32.mrb[19].mxu1 }
 0x119   :  { %v754_v11 = vpack.c.bf16 %v585_v63, %v585_v63  ;;  %664 = vst.msk [vmem:[%s1205_s4 + $0x10] sm:$0xf] %vm659_vm1, %v752_v0  ;;  %v586_v12 = vmax.f32 %v570_v2, 0.0  ;;  %v503_v13 = vadd.f32 %v806_v3, %v502_v62  ;;  %v809_v14 = vadd.f32 %v808_v9, %v807_v5 }
 0x11a   :  { %v753_v15 = vpack.c.bf16 %v584_v7, %v584_v7 }
 0x11b   :  { %666 = vst.msk [vmem:[%s1205_s4 + $0x18] sm:$0xf] %vm659_vm1, %v754_v11  ;;  %v755_v16 = vpack.c.bf16 %v586_v12, %v586_v12  ;;  %v548_v17 = vmul.f32 %v1094_v4, %v503_v13  ;;  %v506_v18 = vadd.f32 %v809_v14, %v505_v10 }
 0x11c   :  { %665 = vst.msk [vmem:[%s1205_s4 + $0x14] sm:$0xf] %vm659_vm1, %v753_v15 }
 0x11d   :  { %667 = vst.msk [vmem:[%s1205_s4 + $0x1c] sm:$0xf] %vm659_vm1, %v755_v16  ;;  %v571_v19 = vadd.f32 %v1099_v8, %v548_v17  ;;  %v549_v20 = vmul.f32 %v1094_v4, %v506_v18  ;;  %v810_v21 = vpop.f32.mrb[20].mxu0  ;;  %v856_v22 = vpop.f32.mrb[20].mxu1 }
 0x11e   :  { %v527_v23 = vadd.f32 %v856_v22, %v1087_v59  ;;  %v811_v24 = vpop.f32.mrb[21].mxu0  ;;  %v518_v25 = vpop.f32.mrb[21].mxu1 }
 0x11f   :  { %v587_v26 = vmax.f32 %v571_v19, 0.0  ;;  %v572_v27 = vadd.f32 %v1099_v8, %v549_v20  ;;  %v812_v28 = vadd.f32 %v811_v24, %v810_v21  ;;  %v519_v29 = vadd.f32 %v1083_v47, %v518_v25  ;;  %v813_v30 = vpop.f32.mrb[22].mxu0  ;;  %v857_v31 = vpop.f32.mrb[22].mxu1 }
 0x120   :  { %v554_v32 = vmul.f32 %v1094_v4, %v527_v23  ;;  %v530_v33 = vadd.f32 %v857_v31, %v1089_v1  ;;  %v814_v34 = vpop.f32.mrb[23].mxu0  ;;  %v521_v35 = vpop.f32.mrb[23].mxu1 }
 0x121   :  { %v756_v36 = vpack.c.bf16 %v587_v26, %v587_v26  ;;  %v588_v37 = vmax.f32 %v572_v27, 0.0  ;;  %v511_v38 = vadd.f32 %v852_v58, %v812_v28  ;;  %v552_v59 = vmul.f32 %v1094_v4, %v519_v29 }
 0x122   :  { %v577_v39 = vadd.f32 %v1099_v8, %v554_v32  ;;  %v555_v40 = vmul.f32 %v1094_v4, %v530_v33  ;;  %v815_v41 = vadd.f32 %v814_v34, %v813_v30  ;;  %v522_v47 = vadd.f32 %v1085_v53, %v521_v35 }
 0x123   :  { %668 = vst.msk [vmem:[%s1205_s4 + $0x20] sm:$0xf] %vm659_vm1, %v756_v36  ;;  %v757_v1 = vpack.c.bf16 %v588_v37, %v588_v37  ;;  %v550_v42 = vmul.f32 %v1094_v4, %v511_v38  ;;  %v575_v43 = vadd.f32 %v1099_v8, %v552_v59 }
 0x124   :  { %v593_v44 = vmax.f32 %v577_v39, 0.0  ;;  %v578_v45 = vadd.f32 %v1099_v8, %v555_v40  ;;  %v514_v46 = vadd.f32 %v853_v6, %v815_v41  ;;  %v553_v48 = vmul.f32 %v1094_v4, %v522_v47 }
 0x125   :  { %669 = vst.msk [vmem:[%s1205_s4 + $0x24] sm:$0xf] %vm659_vm1, %v757_v1  ;;  %v573_v53 = vadd.f32 %v1099_v8, %v550_v42  ;;  %v591_v49 = vmax.f32 %v575_v43, 0.0 }
 0x126   :  { %v762_v50 = vpack.c.bf16 %v593_v44, %v593_v44  ;;  %v594_v51 = vmax.f32 %v578_v45, 0.0  ;;  %v551_v52 = vmul.f32 %v1094_v4, %v514_v46  ;;  %v576_v54 = vadd.f32 %v1099_v8, %v553_v48 }
 0x127   :  { %v589_v55 = vmax.f32 %v573_v53, 0.0  ;;  %v760_v56 = vpack.c.bf16 %v591_v49, %v591_v49 }
 0x128   :  { %674 = vst.msk [vmem:[%s1205_s4 + $0x38] sm:$0xf] %vm659_vm1, %v762_v50  ;;  %v763_v57 = vpack.c.bf16 %v594_v51, %v594_v51  ;;  %v574_v58 = vadd.f32 %v1099_v8, %v551_v52  ;;  %v592_v60 = vmax.f32 %v576_v54, 0.0 }
 0x129   :  { %v758_v61 = vpack.c.bf16 %v589_v55, %v589_v55  ;;  %672 = vst.msk [vmem:[%s1205_s4 + $0x30] sm:$0xf] %vm659_vm1, %v760_v56 }
 0x12a   :  { %675 = vst.msk [vmem:[%s1205_s4 + $0x3c] sm:$0xf] %vm659_vm1, %v763_v57  ;;  %v590_v4 = vmax.f32 %v574_v58, 0.0  ;;  %v761_v62 = vpack.c.bf16 %v592_v60, %v592_v60 }
 0x12b   :  { %670 = vst.msk [vmem:[%s1205_s4 + $0x28] sm:$0xf] %vm659_vm1, %v758_v61 }
 0x12c   :  { %v759_v8 = vpack.c.bf16 %v590_v4, %v590_v4  ;;  %673 = vst.msk [vmem:[%s1205_s4 + $0x34] sm:$0xf] %vm659_vm1, %v761_v62 }
 0x12e   :  { %671 = vst.msk [vmem:[%s1205_s4 + $0x2c] sm:$0xf] %vm659_vm1, %v759_v8 }

// kernel: truenet_forward.40
= control target key start
LH: loop header
LB: loop body
LE: loop exit
PB: predicated region body
PF: predicated region fallthrough
CT: control target
= control target key end

     0   :  { %vm86_vm0 = vcmask 130048   ;;  %vm272_vm1 = vcmask 257024   ;;  %s503_s1 = inlined_call_operand.vmem [shape: bf16[16,32], index: 1, kind: input, shape index: {}]   ;;  %s504_s0 = inlined_call_operand.vmem [shape: bf16[128,16], index: 0, kind: input, shape index: {}]   ;;  %s505_s2 = inlined_call_operand.vmem [shape: f32[1,32], index: 2, kind: input, shape index: {}]   ;;  %s506_s3 = inlined_call_operand.vmem [shape: bf16[128,32], index: 3, kind: output, shape index: {}]  }
   0x1   :  { %v372_v0 = vld [vmem:[%s503_s1] sm:$0xff]   ;;  %v375_v3 = vld [vmem:[%s504_s0 + $0x8] sm:$0xff]   ;;  %v377_v5 = vld [vmem:[%s504_s0 + $0x10] sm:$0xff]  }
   0x2   :  { %v373_v1 = vld [vmem:[%s504_s0] sm:$0xff]   ;;  %352 = vmatprep.subr.bf16.mxu0 %v372_v0  ;;  %370 = vmatprep.subr.bf16.mxu1 %v372_v0  ;;  %v376_v4 = vld [vmem:[%s504_s0 + $0x28] sm:$0xff]   ;;  %v378_v6 = vld [vmem:[%s504_s0 + $0x30] sm:$0xff]  }
   0x3   :  { %v374_v2 = vld [vmem:[%s504_s0 + $0x20] sm:$0xff]   ;;  %353 = vmatpush3.bf16.msra.mxu0 %v372_v0  ;;  %371 = vmatpush3.bf16.msra.mxu1 %v372_v0  ;;  %v379_v7 = vld [vmem:[%s504_s0 + $0x18] sm:$0xff]  }
   0x4   :  { %354 = vmatprep.mubr.msk.bf16.mxu0 %vm86_vm0, %v373_v1  ;;  %362 = vmatprep.mubr.msk.bf16.mxu1 %vm86_vm0, %v374_v2  ;;  %v380_v8 = vld [vmem:[%s504_s0 + $0x38] sm:$0xff]   ;;  %v293_v9 = vld [vmem:[%s505_s2] ss:$0 sm:$0xff] }
   0x6   :  { %355 = vmatmul.mubr.msk.bf16.vlgmr.msra.gmra.mrb[0].mxu0 %vm86_vm0, %v375_v3  ;;  %363 = vmatmul.mubr.msk.bf16.vlgmr.msra.gmra.mrb[0].mxu1 %vm86_vm0, %v376_v4 }
   0x7   :  { %358 = vmatprep.mubr.msk.bf16.mxu0 %vm86_vm0, %v377_v5  ;;  %366 = vmatprep.mubr.msk.bf16.mxu1 %vm86_vm0, %v378_v6 }
   0xe   :  { %359 = vmatmul.mubr.msk.bf16.gmra.mrb[4].mxu0 %vm86_vm0, %v379_v7  ;;  %367 = vmatmul.mubr.msk.bf16.gmra.mrb[4].mxu1 %vm86_vm0, %v380_v8 }
  0xd9   :  { %v356_v10 = vpop.f32.mrb[0].mxu0  ;;  %v364_v11 = vpop.f32.mrb[0].mxu1 }
  0xda   :  { %v154_v12 = vadd.f32 %v356_v10, %v293_v9  ;;  %v186_v13 = vadd.f32 %v364_v11, %v293_v9  ;;  %v145_v14 = vpop.f32.mrb[1].mxu0  ;;  %v177_v15 = vpop.f32.mrb[1].mxu1 }
  0xdb   :  { %v146_v16 = vadd.f32 %v293_v9, %v145_v14  ;;  %v178_v17 = vadd.f32 %v293_v9, %v177_v15  ;;  %v357_v18 = vpop.f32.mrb[2].mxu0  ;;  %v365_v19 = vpop.f32.mrb[2].mxu1 }
  0xdc   :  { %v329_v20 = vpack.c.bf16 %v154_v12, %v154_v12  ;;  %v337_v21 = vpack.c.bf16 %v186_v13, %v186_v13  ;;  %v157_v22 = vadd.f32 %v357_v18, %v293_v9  ;;  %v189_v23 = vadd.f32 %v365_v19, %v293_v9  ;;  %v148_v24 = vpop.f32.mrb[3].mxu0  ;;  %v180_v25 = vpop.f32.mrb[3].mxu1 }
  0xdd   :  { %v327_v26 = vpack.c.bf16 %v146_v16, %v146_v16  ;;  %v335_v27 = vpack.c.bf16 %v178_v17, %v178_v17  ;;  %v149_v28 = vadd.f32 %v293_v9, %v148_v24  ;;  %v181_v29 = vadd.f32 %v293_v9, %v180_v25 }
  0xde   :  { %275 = vst.msk [vmem:[%s506_s3 + $0x8] sm:$0xf] %vm272_vm1, %v329_v20  ;;  %283 = vst.msk [vmem:[%s506_s3 + $0x28] sm:$0xf] %vm272_vm1, %v337_v21  ;;  %v330_v30 = vpack.c.bf16 %v157_v22, %v157_v22  ;;  %v338_v31 = vpack.c.bf16 %v189_v23, %v189_v23 }
  0xdf   :  { %273 = vst.msk [vmem:[%s506_s3] sm:$0xf] %vm272_vm1, %v327_v26  ;;  %281 = vst.msk [vmem:[%s506_s3 + $0x20] sm:$0xf] %vm272_vm1, %v335_v27  ;;  %v328_v32 = vpack.c.bf16 %v149_v28, %v149_v28  ;;  %v336_v33 = vpack.c.bf16 %v181_v29, %v181_v29 }
  0xe0   :  { %276 = vst.msk [vmem:[%s506_s3 + $0xc] sm:$0xf] %vm272_vm1, %v330_v30  ;;  %284 = vst.msk [vmem:[%s506_s3 + $0x2c] sm:$0xf] %vm272_vm1, %v338_v31 }
  0xe1   :  { %274 = vst.msk [vmem:[%s506_s3 + $0x4] sm:$0xf] %vm272_vm1, %v328_v32  ;;  %282 = vst.msk [vmem:[%s506_s3 + $0x24] sm:$0xf] %vm272_vm1, %v336_v33  ;;  %v360_v34 = vpop.f32.mrb[4].mxu0  ;;  %v368_v35 = vpop.f32.mrb[4].mxu1 }
  0xe2   :  { %v170_v36 = vadd.f32 %v360_v34, %v293_v9  ;;  %v202_v37 = vadd.f32 %v368_v35, %v293_v9  ;;  %v161_v38 = vpop.f32.mrb[5].mxu0  ;;  %v193_v39 = vpop.f32.mrb[5].mxu1 }
  0xe3   :  { %v162_v40 = vadd.f32 %v293_v9, %v161_v38  ;;  %v194_v41 = vadd.f32 %v293_v9, %v193_v39  ;;  %v361_v42 = vpop.f32.mrb[6].mxu0  ;;  %v369_v43 = vpop.f32.mrb[6].mxu1 }
  0xe4   :  { %v333_v44 = vpack.c.bf16 %v170_v36, %v170_v36  ;;  %v341_v45 = vpack.c.bf16 %v202_v37, %v202_v37  ;;  %v173_v46 = vadd.f32 %v361_v42, %v293_v9  ;;  %v205_v47 = vadd.f32 %v369_v43, %v293_v9  ;;  %v164_v48 = vpop.f32.mrb[7].mxu0  ;;  %v196_v49 = vpop.f32.mrb[7].mxu1 }
  0xe5   :  { %v331_v50 = vpack.c.bf16 %v162_v40, %v162_v40  ;;  %v339_v51 = vpack.c.bf16 %v194_v41, %v194_v41  ;;  %v165_v52 = vadd.f32 %v293_v9, %v164_v48  ;;  %v197_v53 = vadd.f32 %v293_v9, %v196_v49 }
  0xe6   :  { %279 = vst.msk [vmem:[%s506_s3 + $0x18] sm:$0xf] %vm272_vm1, %v333_v44  ;;  %287 = vst.msk [vmem:[%s506_s3 + $0x38] sm:$0xf] %vm272_vm1, %v341_v45  ;;  %v334_v54 = vpack.c.bf16 %v173_v46, %v173_v46  ;;  %v342_v55 = vpack.c.bf16 %v205_v47, %v205_v47 }
  0xe7   :  { %277 = vst.msk [vmem:[%s506_s3 + $0x10] sm:$0xf] %vm272_vm1, %v331_v50  ;;  %285 = vst.msk [vmem:[%s506_s3 + $0x30] sm:$0xf] %vm272_vm1, %v339_v51  ;;  %v332_v56 = vpack.c.bf16 %v165_v52, %v165_v52  ;;  %v340_v57 = vpack.c.bf16 %v197_v53, %v197_v53 }
  0xe8   :  { %280 = vst.msk [vmem:[%s506_s3 + $0x1c] sm:$0xf] %vm272_vm1, %v334_v54  ;;  %288 = vst.msk [vmem:[%s506_s3 + $0x3c] sm:$0xf] %vm272_vm1, %v342_v55 }
  0xe9   :  { %278 = vst.msk [vmem:[%s506_s3 + $0x14] sm:$0xf] %vm272_vm1, %v332_v56  ;;  %286 = vst.msk [vmem:[%s506_s3 + $0x34] sm:$0xf] %vm272_vm1, %v340_v57 }

// kernel: truenet_forward.43
= control target key start
LH: loop header
LB: loop body
LE: loop exit
PB: predicated region body
PF: predicated region fallthrough
CT: control target
= control target key end

     0   :  { %vm340_vm0 = vcmask 1043456   ;;  %vm243_vm1 = vcmask 64512   ;;  %vm775_vm2 = vcmask 15360   ;;  %s1595_s1 = inlined_call_operand.vmem [shape: bf16[8,2], index: 1, kind: input, shape index: {}]   ;;  %s1596_s0 = inlined_call_operand.vmem [shape: bf16[512,8], index: 0, kind: input, shape index: {}]   ;;  %s1597_s2 = inlined_call_operand.vmem [shape: f32[1,2], index: 2, kind: input, shape index: {}]   ;;  %s1598_s3 = inlined_call_operand.vmem [shape: f32[1,2], index: 3, kind: input, shape index: {}]   ;;  %s1599_s4 = inlined_call_operand.vmem [shape: f32[512,2], index: 4, kind: output, shape index: {}]  }
   0x1   :  { %v82_v0 = vld [vmem:[%s1595_s1] sm:$0xf]  ;;  %v1015_v4 = vld [vmem:[%s1596_s0 + $0x8] sm:$0xff]   ;;  %v1017_v6 = vld [vmem:[%s1596_s0 + $0x10] sm:$0xff]  }
   0x2   :  { %1011 = vmatprep.subr.msk.bf16.mxu0 %vm340_vm0, %v82_v0  ;;  %1012 = vmatprep.subr.msk.bf16.mxu1 %vm340_vm0, %v82_v0  ;;  %v342_v1 = vsel %vm340_vm0, %v82_v0, 0  ;;  %v1013_v2 = vld [vmem:[%s1596_s0] sm:$0xff]   ;;  %v1016_v5 = vld [vmem:[%s1596_s0 + $0x88] sm:$0xff]   ;;  %v1018_v7 = vld [vmem:[%s1596_s0 + $0x90] sm:$0xff]  }
   0x3   :  { %944 = vmatpush3.bf16.msra.mxu0 %v342_v1  ;;  %1010 = vmatpush3.bf16.msra.mxu1 %v342_v1  ;;  %v1014_v3 = vld [vmem:[%s1596_s0 + $0x80] sm:$0xff]   ;;  %v1019_v8 = vld [vmem:[%s1596_s0 + $0x18] sm:$0xff]   ;;  %v1023_v12 = vld [vmem:[%s1596_s0 + $0x28] sm:$0xff]  }
   0x4   :  { %945 = vmatprep.mubr.msk.bf16.mxu0 %vm243_vm1, %v1013_v2  ;;  %977 = vmatprep.mubr.msk.bf16.mxu1 %vm243_vm1, %v1014_v3  ;;  %v1020_v9 = vld [vmem:[%s1596_s0 + $0x98] sm:$0xff]   ;;  %v1021_v10 = vld [vmem:[%s1596_s0 + $0x20] sm:$0xff]   ;;  %v1024_v13 = vld [vmem:[%s1596_s0 + $0xa8] sm:$0xff]  }
   0x5   :  { %v1022_v11 = vld [vmem:[%s1596_s0 + $0xa0] sm:$0xff]   ;;  %v1025_v14 = vld [vmem:[%s1596_s0 + $0x30] sm:$0xff]   ;;  %v1027_v16 = vld [vmem:[%s1596_s0 + $0x38] sm:$0xff]  }
   0x6   :  { %946 = vmatmul.mubr.msk.bf16.vlgmr.msra.gmra.mrb[0].mxu0 %vm243_vm1, %v1015_v4  ;;  %978 = vmatmul.mubr.msk.bf16.vlgmr.msra.gmra.mrb[0].mxu1 %vm243_vm1, %v1016_v5  ;;  %v1026_v15 = vld [vmem:[%s1596_s0 + $0xb0] sm:$0xff]   ;;  %v1028_v17 = vld [vmem:[%s1596_s0 + $0xb8] sm:$0xff]   ;;  %v1029_v18 = vld [vmem:[%s1596_s0 + $0x40] sm:$0xff]  }
   0x7   :  { %949 = vmatprep.mubr.msk.bf16.mxu0 %vm243_vm1, %v1017_v6  ;;  %981 = vmatprep.mubr.msk.bf16.mxu1 %vm243_vm1, %v1018_v7  ;;  %v1030_v19 = vld [vmem:[%s1596_s0 + $0xc0] sm:$0xff]   ;;  %v1031_v20 = vld [vmem:[%s1596_s0 + $0x48] sm:$0xff]   ;;  %v1033_v22 = vld [vmem:[%s1596_s0 + $0x50] sm:$0xff]  }
   0x8   :  { %v1032_v21 = vld [vmem:[%s1596_s0 + $0xc8] sm:$0xff]   ;;  %v1034_v23 = vld [vmem:[%s1596_s0 + $0xd0] sm:$0xff]   ;;  %v1035_v24 = vld [vmem:[%s1596_s0 + $0x58] sm:$0xff]  }
   0x9   :  { %v1036_v25 = vld [vmem:[%s1596_s0 + $0xd8] sm:$0xff]   ;;  %v1037_v26 = vld [vmem:[%s1596_s0 + $0x60] sm:$0xff]   ;;  %v1039_v28 = vld [vmem:[%s1596_s0 + $0x68] sm:$0xff]  }
   0xa   :  { %v1038_v27 = vld [vmem:[%s1596_s0 + $0xe0] sm:$0xff]   ;;  %v1040_v29 = vld [vmem:[%s1596_s0 + $0xe8] sm:$0xff]   ;;  %v1041_v30 = vld [vmem:[%s1596_s0 + $0x70] sm:$0xff]  }
   0xb   :  { %v1042_v31 = vld [vmem:[%s1596_s0 + $0xf0] sm:$0xff]   ;;  %v1043_v32 = vld [vmem:[%s1596_s0 + $0x78] sm:$0xff]   ;;  %v1204_v34 = vld [vmem:[%s1597_s2] ss:$0 sm:$0xff] }
   0xc   :  { %v1044_v33 = vld [vmem:[%s1596_s0 + $0xf8] sm:$0xff]   ;;  %v1209_v36 = vld [vmem:[%s1598_s3] ss:$0 sm:$0xff] }
   0xe   :  { %950 = vmatmul.mubr.msk.bf16.gmra.mrb[4].mxu0 %vm243_vm1, %v1019_v8  ;;  %982 = vmatmul.mubr.msk.bf16.gmra.mrb[4].mxu1 %vm243_vm1, %v1020_v9 }
   0xf   :  { %953 = vmatprep.mubr.msk.bf16.mxu0 %vm243_vm1, %v1021_v10  ;;  %985 = vmatprep.mubr.msk.bf16.mxu1 %vm243_vm1, %v1022_v11 }
  0x16   :  { %954 = vmatmul.mubr.msk.bf16.gmra.mrb[8].mxu0 %vm243_vm1, %v1023_v12  ;;  %986 = vmatmul.mubr.msk.bf16.gmra.mrb[8].mxu1 %vm243_vm1, %v1024_v13 }
  0x17   :  { %957 = vmatprep.mubr.msk.bf16.mxu0 %vm243_vm1, %v1025_v14  ;;  %989 = vmatprep.mubr.msk.bf16.mxu1 %vm243_vm1, %v1026_v15 }
  0x1e   :  { %958 = vmatmul.mubr.msk.bf16.gmra.mrb[12].mxu0 %vm243_vm1, %v1027_v16  ;;  %990 = vmatmul.mubr.msk.bf16.gmra.mrb[12].mxu1 %vm243_vm1, %v1028_v17 }
  0x1f   :  { %961 = vmatprep.mubr.msk.bf16.mxu0 %vm243_vm1, %v1029_v18  ;;  %993 = vmatprep.mubr.msk.bf16.mxu1 %vm243_vm1, %v1030_v19 }
  0x26   :  { %962 = vmatmul.mubr.msk.bf16.gmra.mrb[16].mxu0 %vm243_vm1, %v1031_v20  ;;  %994 = vmatmul.mubr.msk.bf16.gmra.mrb[16].mxu1 %vm243_vm1, %v1032_v21 }
  0x27   :  { %965 = vmatprep.mubr.msk.bf16.mxu0 %vm243_vm1, %v1033_v22  ;;  %997 = vmatprep.mubr.msk.bf16.mxu1 %vm243_vm1, %v1034_v23 }
  0x2e   :  { %966 = vmatmul.mubr.msk.bf16.gmra.mrb[20].mxu0 %vm243_vm1, %v1035_v24  ;;  %998 = vmatmul.mubr.msk.bf16.gmra.mrb[20].mxu1 %vm243_vm1, %v1036_v25 }
  0x2f   :  { %969 = vmatprep.mubr.msk.bf16.mxu0 %vm243_vm1, %v1037_v26  ;;  %1001 = vmatprep.mubr.msk.bf16.mxu1 %vm243_vm1, %v1038_v27 }
  0x36   :  { %970 = vmatmul.mubr.msk.bf16.gmra.mrb[24].mxu0 %vm243_vm1, %v1039_v28  ;;  %1002 = vmatmul.mubr.msk.bf16.gmra.mrb[24].mxu1 %vm243_vm1, %v1040_v29 }
  0x37   :  { %973 = vmatprep.mubr.msk.bf16.mxu0 %vm243_vm1, %v1041_v30  ;;  %1005 = vmatprep.mubr.msk.bf16.mxu1 %vm243_vm1, %v1042_v31 }
  0x3e   :  { %974 = vmatmul.mubr.msk.bf16.gmra.mrb[28].mxu0 %vm243_vm1, %v1043_v32  ;;  %1006 = vmatmul.mubr.msk.bf16.gmra.mrb[28].mxu1 %vm243_vm1, %v1044_v33 }
  0xd9   :  { %v947_v35 = vpop.f32.mrb[0].mxu0  ;;  %v979_v38 = vpop.f32.mrb[0].mxu1 }
  0xda   :  { %v642_v37 = vmul.f32 %v947_v35, %v1204_v34  ;;  %v378_v39 = vpop.f32.mrb[1].mxu0  ;;  %v674_v40 = vmul.f32 %v979_v38, %v1204_v34  ;;  %v506_v42 = vpop.f32.mrb[1].mxu1 }
  0xdb   :  { %v640_v41 = vmul.f32 %v1204_v34, %v378_v39  ;;  %v948_v43 = vpop.f32.mrb[2].mxu0  ;;  %v672_v45 = vmul.f32 %v1204_v34, %v506_v42  ;;  %v980_v47 = vpop.f32.mrb[2].mxu1 }
  0xdc   :  { %v713_v44 = vadd.f32 %v1209_v36, %v642_v37  ;;  %v643_v46 = vmul.f32 %v948_v43, %v1204_v34  ;;  %v381_v48 = vpop.f32.mrb[3].mxu0  ;;  %v745_v49 = vadd.f32 %v1209_v36, %v674_v40  ;;  %v675_v51 = vmul.f32 %v980_v47, %v1204_v34  ;;  %v509_v53 = vpop.f32.mrb[3].mxu1 }
  0xdd   :  { %v711_v50 = vadd.f32 %v1209_v36, %v640_v41  ;;  %v641_v52 = vmul.f32 %v1204_v34, %v381_v48  ;;  %v743_v54 = vadd.f32 %v1209_v36, %v672_v45  ;;  %v673_v56 = vmul.f32 %v1204_v34, %v509_v53 }
  0xde   :  { %778 = vst.msk [vmem:[%s1599_s4 + $0x10] sm:$0xff] %vm775_vm2, %v713_v44  ;;  %v714_v55 = vadd.f32 %v1209_v36, %v643_v46  ;;  %810 = vst.msk [vmem:[%s1599_s4 + $0x110] sm:$0xff] %vm775_vm2, %v745_v49  ;;  %v746_v57 = vadd.f32 %v1209_v36, %v675_v51 }
  0xdf   :  { %776 = vst.msk [vmem:[%s1599_s4] sm:$0xff] %vm775_vm2, %v711_v50  ;;  %v712_v58 = vadd.f32 %v1209_v36, %v641_v52  ;;  %808 = vst.msk [vmem:[%s1599_s4 + $0x100] sm:$0xff] %vm775_vm2, %v743_v54  ;;  %v744_v59 = vadd.f32 %v1209_v36, %v673_v56 }
  0xe0   :  { %779 = vst.msk [vmem:[%s1599_s4 + $0x18] sm:$0xff] %vm775_vm2, %v714_v55  ;;  %811 = vst.msk [vmem:[%s1599_s4 + $0x118] sm:$0xff] %vm775_vm2, %v746_v57 }
  0xe1   :  { %777 = vst.msk [vmem:[%s1599_s4 + $0x8] sm:$0xff] %vm775_vm2, %v712_v58  ;;  %v951_v60 = vpop.f32.mrb[4].mxu0  ;;  %809 = vst.msk [vmem:[%s1599_s4 + $0x108] sm:$0xff] %vm775_vm2, %v744_v59  ;;  %v983_v62 = vpop.f32.mrb[4].mxu1 }
  0xe2   :  { %v646_v61 = vmul.f32 %v951_v60, %v1204_v34  ;;  %v394_v63 = vpop.f32.mrb[5].mxu0  ;;  %v678_v0 = vmul.f32 %v983_v62, %v1204_v34  ;;  %v522_v2 = vpop.f32.mrb[5].mxu1 }
  0xe3   :  { %v644_v1 = vmul.f32 %v1204_v34, %v394_v63  ;;  %v952_v3 = vpop.f32.mrb[6].mxu0  ;;  %v676_v5 = vmul.f32 %v1204_v34, %v522_v2  ;;  %v984_v7 = vpop.f32.mrb[6].mxu1 }
  0xe4   :  { %v717_v4 = vadd.f32 %v1209_v36, %v646_v61  ;;  %v647_v6 = vmul.f32 %v952_v3, %v1204_v34  ;;  %v397_v8 = vpop.f32.mrb[7].mxu0  ;;  %v749_v9 = vadd.f32 %v1209_v36, %v678_v0  ;;  %v679_v11 = vmul.f32 %v984_v7, %v1204_v34  ;;  %v525_v13 = vpop.f32.mrb[7].mxu1 }
  0xe5   :  { %v715_v10 = vadd.f32 %v1209_v36, %v644_v1  ;;  %v645_v12 = vmul.f32 %v1204_v34, %v397_v8  ;;  %v747_v14 = vadd.f32 %v1209_v36, %v676_v5  ;;  %v677_v16 = vmul.f32 %v1204_v34, %v525_v13 }
  0xe6   :  { %782 = vst.msk [vmem:[%s1599_s4 + $0x30] sm:$0xff] %vm775_vm2, %v717_v4  ;;  %v718_v15 = vadd.f32 %v1209_v36, %v647_v6  ;;  %814 = vst.msk [vmem:[%s1599_s4 + $0x130] sm:$0xff] %vm775_vm2, %v749_v9  ;;  %v750_v17 = vadd.f32 %v1209_v36, %v679_v11 }
  0xe7   :  { %780 = vst.msk [vmem:[%s1599_s4 + $0x20] sm:$0xff] %vm775_vm2, %v715_v10  ;;  %v716_v18 = vadd.f32 %v1209_v36, %v645_v12  ;;  %812 = vst.msk [vmem:[%s1599_s4 + $0x120] sm:$0xff] %vm775_vm2, %v747_v14  ;;  %v748_v19 = vadd.f32 %v1209_v36, %v677_v16 }
  0xe8   :  { %783 = vst.msk [vmem:[%s1599_s4 + $0x38] sm:$0xff] %vm775_vm2, %v718_v15  ;;  %815 = vst.msk [vmem:[%s1599_s4 + $0x138] sm:$0xff] %vm775_vm2, %v750_v17 }
  0xe9   :  { %781 = vst.msk [vmem:[%s1599_s4 + $0x28] sm:$0xff] %vm775_vm2, %v716_v18  ;;  %v955_v20 = vpop.f32.mrb[8].mxu0  ;;  %813 = vst.msk [vmem:[%s1599_s4 + $0x128] sm:$0xff] %vm775_vm2, %v748_v19  ;;  %v987_v22 = vpop.f32.mrb[8].mxu1 }
  0xea   :  { %v650_v21 = vmul.f32 %v955_v20, %v1204_v34  ;;  %v410_v23 = vpop.f32.mrb[9].mxu0  ;;  %v682_v24 = vmul.f32 %v987_v22, %v1204_v34  ;;  %v538_v26 = vpop.f32.mrb[9].mxu1 }
  0xeb   :  { %v648_v25 = vmul.f32 %v1204_v34, %v410_v23  ;;  %v956_v27 = vpop.f32.mrb[10].mxu0  ;;  %v680_v29 = vmul.f32 %v1204_v34, %v538_v26  ;;  %v988_v31 = vpop.f32.mrb[10].mxu1 }
  0xec   :  { %v721_v28 = vadd.f32 %v1209_v36, %v650_v21  ;;  %v651_v30 = vmul.f32 %v956_v27, %v1204_v34  ;;  %v413_v32 = vpop.f32.mrb[11].mxu0  ;;  %v753_v33 = vadd.f32 %v1209_v36, %v682_v24  ;;  %v683_v37 = vmul.f32 %v988_v31, %v1204_v34  ;;  %v541_v39 = vpop.f32.mrb[11].mxu1 }
  0xed   :  { %v719_v35 = vadd.f32 %v1209_v36, %v648_v25  ;;  %v649_v38 = vmul.f32 %v1204_v34, %v413_v32  ;;  %v751_v40 = vadd.f32 %v1209_v36, %v680_v29  ;;  %v681_v42 = vmul.f32 %v1204_v34, %v541_v39 }
  0xee   :  { %786 = vst.msk [vmem:[%s1599_s4 + $0x50] sm:$0xff] %vm775_vm2, %v721_v28  ;;  %v722_v41 = vadd.f32 %v1209_v36, %v651_v30  ;;  %818 = vst.msk [vmem:[%s1599_s4 + $0x150] sm:$0xff] %vm775_vm2, %v753_v33  ;;  %v754_v43 = vadd.f32 %v1209_v36, %v683_v37 }
  0xef   :  { %784 = vst.msk [vmem:[%s1599_s4 + $0x40] sm:$0xff] %vm775_vm2, %v719_v35  ;;  %v720_v44 = vadd.f32 %v1209_v36, %v649_v38  ;;  %816 = vst.msk [vmem:[%s1599_s4 + $0x140] sm:$0xff] %vm775_vm2, %v751_v40  ;;  %v752_v45 = vadd.f32 %v1209_v36, %v681_v42 }
  0xf0   :  { %787 = vst.msk [vmem:[%s1599_s4 + $0x58] sm:$0xff] %vm775_vm2, %v722_v41  ;;  %819 = vst.msk [vmem:[%s1599_s4 + $0x158] sm:$0xff] %vm775_vm2, %v754_v43 }
  0xf1   :  { %785 = vst.msk [vmem:[%s1599_s4 + $0x48] sm:$0xff] %vm775_vm2, %v720_v44  ;;  %v959_v46 = vpop.f32.mrb[12].mxu0  ;;  %817 = vst.msk [vmem:[%s1599_s4 + $0x148] sm:$0xff] %vm775_vm2, %v752_v45  ;;  %v991_v48 = vpop.f32.mrb[12].mxu1 }
  0xf2   :  { %v654_v47 = vmul.f32 %v959_v46, %v1204_v34  ;;  %v426_v49 = vpop.f32.mrb[13].mxu0  ;;  %v686_v50 = vmul.f32 %v991_v48, %v1204_v34  ;;  %v554_v52 = vpop.f32.mrb[13].mxu1 }
  0xf3   :  { %v652_v51 = vmul.f32 %v1204_v34, %v426_v49  ;;  %v960_v53 = vpop.f32.mrb[14].mxu0  ;;  %v684_v55 = vmul.f32 %v1204_v34, %v554_v52  ;;  %v992_v57 = vpop.f32.mrb[14].mxu1 }
  0xf4   :  { %v725_v54 = vadd.f32 %v1209_v36, %v654_v47  ;;  %v655_v56 = vmul.f32 %v960_v53, %v1204_v34  ;;  %v429_v58 = vpop.f32.mrb[15].mxu0  ;;  %v757_v59 = vadd.f32 %v1209_v36, %v686_v50  ;;  %v687_v61 = vmul.f32 %v992_v57, %v1204_v34  ;;  %v557_v63 = vpop.f32.mrb[15].mxu1 }
  0xf5   :  { %v723_v60 = vadd.f32 %v1209_v36, %v652_v51  ;;  %v653_v62 = vmul.f32 %v1204_v34, %v429_v58  ;;  %v755_v0 = vadd.f32 %v1209_v36, %v684_v55  ;;  %v685_v2 = vmul.f32 %v1204_v34, %v557_v63 }
  0xf6   :  { %790 = vst.msk [vmem:[%s1599_s4 + $0x70] sm:$0xff] %vm775_vm2, %v725_v54  ;;  %v726_v1 = vadd.f32 %v1209_v36, %v655_v56  ;;  %822 = vst.msk [vmem:[%s1599_s4 + $0x170] sm:$0xff] %vm775_vm2, %v757_v59  ;;  %v758_v3 = vadd.f32 %v1209_v36, %v687_v61 }
  0xf7   :  { %788 = vst.msk [vmem:[%s1599_s4 + $0x60] sm:$0xff] %vm775_vm2, %v723_v60  ;;  %v724_v4 = vadd.f32 %v1209_v36, %v653_v62  ;;  %820 = vst.msk [vmem:[%s1599_s4 + $0x160] sm:$0xff] %vm775_vm2, %v755_v0  ;;  %v756_v5 = vadd.f32 %v1209_v36, %v685_v2 }
  0xf8   :  { %791 = vst.msk [vmem:[%s1599_s4 + $0x78] sm:$0xff] %vm775_vm2, %v726_v1  ;;  %823 = vst.msk [vmem:[%s1599_s4 + $0x178] sm:$0xff] %vm775_vm2, %v758_v3 }
  0xf9   :  { %789 = vst.msk [vmem:[%s1599_s4 + $0x68] sm:$0xff] %vm775_vm2, %v724_v4  ;;  %v963_v6 = vpop.f32.mrb[16].mxu0  ;;  %821 = vst.msk [vmem:[%s1599_s4 + $0x168] sm:$0xff] %vm775_vm2, %v756_v5  ;;  %v995_v8 = vpop.f32.mrb[16].mxu1 }
  0xfa   :  { %v658_v7 = vmul.f32 %v963_v6, %v1204_v34  ;;  %v442_v9 = vpop.f32.mrb[17].mxu0  ;;  %v690_v10 = vmul.f32 %v995_v8, %v1204_v34  ;;  %v570_v12 = vpop.f32.mrb[17].mxu1 }
  0xfb   :  { %v656_v11 = vmul.f32 %v1204_v34, %v442_v9  ;;  %v964_v13 = vpop.f32.mrb[18].mxu0  ;;  %v688_v15 = vmul.f32 %v1204_v34, %v570_v12  ;;  %v996_v17 = vpop.f32.mrb[18].mxu1 }
  0xfc   :  { %v729_v14 = vadd.f32 %v1209_v36, %v658_v7  ;;  %v659_v16 = vmul.f32 %v964_v13, %v1204_v34  ;;  %v445_v18 = vpop.f32.mrb[19].mxu0  ;;  %v761_v19 = vadd.f32 %v1209_v36, %v690_v10  ;;  %v691_v21 = vmul.f32 %v996_v17, %v1204_v34  ;;  %v573_v23 = vpop.f32.mrb[19].mxu1 }
  0xfd   :  { %v727_v20 = vadd.f32 %v1209_v36, %v656_v11  ;;  %v657_v22 = vmul.f32 %v1204_v34, %v445_v18  ;;  %v759_v24 = vadd.f32 %v1209_v36, %v688_v15  ;;  %v689_v26 = vmul.f32 %v1204_v34, %v573_v23 }
  0xfe   :  { %794 = vst.msk [vmem:[%s1599_s4 + $0x90] sm:$0xff] %vm775_vm2, %v729_v14  ;;  %v730_v25 = vadd.f32 %v1209_v36, %v659_v16  ;;  %826 = vst.msk [vmem:[%s1599_s4 + $0x190] sm:$0xff] %vm775_vm2, %v761_v19  ;;  %v762_v27 = vadd.f32 %v1209_v36, %v691_v21 }
  0xff   :  { %792 = vst.msk [vmem:[%s1599_s4 + $0x80] sm:$0xff] %vm775_vm2, %v727_v20  ;;  %v728_v28 = vadd.f32 %v1209_v36, %v657_v22  ;;  %824 = vst.msk [vmem:[%s1599_s4 + $0x180] sm:$0xff] %vm775_vm2, %v759_v24  ;;  %v760_v29 = vadd.f32 %v1209_v36, %v689_v26 }
 0x100   :  { %795 = vst.msk [vmem:[%s1599_s4 + $0x98] sm:$0xff] %vm775_vm2, %v730_v25  ;;  %827 = vst.msk [vmem:[%s1599_s4 + $0x198] sm:$0xff] %vm775_vm2, %v762_v27 }
 0x101   :  { %793 = vst.msk [vmem:[%s1599_s4 + $0x88] sm:$0xff] %vm775_vm2, %v728_v28  ;;  %v967_v30 = vpop.f32.mrb[20].mxu0  ;;  %825 = vst.msk [vmem:[%s1599_s4 + $0x188] sm:$0xff] %vm775_vm2, %v760_v29  ;;  %v999_v32 = vpop.f32.mrb[20].mxu1 }
 0x102   :  { %v662_v31 = vmul.f32 %v967_v30, %v1204_v34  ;;  %v458_v33 = vpop.f32.mrb[21].mxu0  ;;  %v694_v35 = vmul.f32 %v999_v32, %v1204_v34  ;;  %v586_v38 = vpop.f32.mrb[21].mxu1 }
 0x103   :  { %v660_v37 = vmul.f32 %v1204_v34, %v458_v33  ;;  %v968_v39 = vpop.f32.mrb[22].mxu0  ;;  %v692_v41 = vmul.f32 %v1204_v34, %v586_v38  ;;  %v1000_v43 = vpop.f32.mrb[22].mxu1 }
 0x104   :  { %v733_v40 = vadd.f32 %v1209_v36, %v662_v31  ;;  %v663_v42 = vmul.f32 %v968_v39, %v1204_v34  ;;  %v461_v44 = vpop.f32.mrb[23].mxu0  ;;  %v765_v45 = vadd.f32 %v1209_v36, %v694_v35  ;;  %v695_v47 = vmul.f32 %v1000_v43, %v1204_v34  ;;  %v589_v49 = vpop.f32.mrb[23].mxu1 }
 0x105   :  { %v731_v46 = vadd.f32 %v1209_v36, %v660_v37  ;;  %v661_v48 = vmul.f32 %v1204_v34, %v461_v44  ;;  %v763_v50 = vadd.f32 %v1209_v36, %v692_v41  ;;  %v693_v52 = vmul.f32 %v1204_v34, %v589_v49 }
 0x106   :  { %798 = vst.msk [vmem:[%s1599_s4 + $0xb0] sm:$0xff] %vm775_vm2, %v733_v40  ;;  %v734_v51 = vadd.f32 %v1209_v36, %v663_v42  ;;  %830 = vst.msk [vmem:[%s1599_s4 + $0x1b0] sm:$0xff] %vm775_vm2, %v765_v45  ;;  %v766_v53 = vadd.f32 %v1209_v36, %v695_v47 }
 0x107   :  { %796 = vst.msk [vmem:[%s1599_s4 + $0xa0] sm:$0xff] %vm775_vm2, %v731_v46  ;;  %v732_v54 = vadd.f32 %v1209_v36, %v661_v48  ;;  %828 = vst.msk [vmem:[%s1599_s4 + $0x1a0] sm:$0xff] %vm775_vm2, %v763_v50  ;;  %v764_v55 = vadd.f32 %v1209_v36, %v693_v52 }
 0x108   :  { %799 = vst.msk [vmem:[%s1599_s4 + $0xb8] sm:$0xff] %vm775_vm2, %v734_v51  ;;  %831 = vst.msk [vmem:[%s1599_s4 + $0x1b8] sm:$0xff] %vm775_vm2, %v766_v53 }
 0x109   :  { %797 = vst.msk [vmem:[%s1599_s4 + $0xa8] sm:$0xff] %vm775_vm2, %v732_v54  ;;  %v971_v56 = vpop.f32.mrb[24].mxu0  ;;  %829 = vst.msk [vmem:[%s1599_s4 + $0x1a8] sm:$0xff] %vm775_vm2, %v764_v55  ;;  %v1003_v58 = vpop.f32.mrb[24].mxu1 }
 0x10a   :  { %v666_v57 = vmul.f32 %v971_v56, %v1204_v34  ;;  %v474_v59 = vpop.f32.mrb[25].mxu0  ;;  %v698_v60 = vmul.f32 %v1003_v58, %v1204_v34  ;;  %v602_v62 = vpop.f32.mrb[25].mxu1 }
 0x10b   :  { %v664_v61 = vmul.f32 %v1204_v34, %v474_v59  ;;  %v972_v63 = vpop.f32.mrb[26].mxu0  ;;  %v696_v1 = vmul.f32 %v1204_v34, %v602_v62  ;;  %v1004_v3 = vpop.f32.mrb[26].mxu1 }
 0x10c   :  { %v737_v0 = vadd.f32 %v1209_v36, %v666_v57  ;;  %v667_v2 = vmul.f32 %v972_v63, %v1204_v34  ;;  %v477_v4 = vpop.f32.mrb[27].mxu0  ;;  %v769_v5 = vadd.f32 %v1209_v36, %v698_v60  ;;  %v699_v7 = vmul.f32 %v1004_v3, %v1204_v34  ;;  %v605_v9 = vpop.f32.mrb[27].mxu1 }
 0x10d   :  { %v735_v6 = vadd.f32 %v1209_v36, %v664_v61  ;;  %v665_v8 = vmul.f32 %v1204_v34, %v477_v4  ;;  %v767_v10 = vadd.f32 %v1209_v36, %v696_v1  ;;  %v697_v12 = vmul.f32 %v1204_v34, %v605_v9 }
 0x10e   :  { %802 = vst.msk [vmem:[%s1599_s4 + $0xd0] sm:$0xff] %vm775_vm2, %v737_v0  ;;  %v738_v11 = vadd.f32 %v1209_v36, %v667_v2  ;;  %834 = vst.msk [vmem:[%s1599_s4 + $0x1d0] sm:$0xff] %vm775_vm2, %v769_v5  ;;  %v770_v13 = vadd.f32 %v1209_v36, %v699_v7 }
 0x10f   :  { %800 = vst.msk [vmem:[%s1599_s4 + $0xc0] sm:$0xff] %vm775_vm2, %v735_v6  ;;  %v736_v14 = vadd.f32 %v1209_v36, %v665_v8  ;;  %832 = vst.msk [vmem:[%s1599_s4 + $0x1c0] sm:$0xff] %vm775_vm2, %v767_v10  ;;  %v768_v15 = vadd.f32 %v1209_v36, %v697_v12 }
 0x110   :  { %803 = vst.msk [vmem:[%s1599_s4 + $0xd8] sm:$0xff] %vm775_vm2, %v738_v11  ;;  %835 = vst.msk [vmem:[%s1599_s4 + $0x1d8] sm:$0xff] %vm775_vm2, %v770_v13 }
 0x111   :  { %801 = vst.msk [vmem:[%s1599_s4 + $0xc8] sm:$0xff] %vm775_vm2, %v736_v14  ;;  %v975_v16 = vpop.f32.mrb[28].mxu0  ;;  %833 = vst.msk [vmem:[%s1599_s4 + $0x1c8] sm:$0xff] %vm775_vm2, %v768_v15  ;;  %v1007_v18 = vpop.f32.mrb[28].mxu1 }
 0x112   :  { %v670_v17 = vmul.f32 %v975_v16, %v1204_v34  ;;  %v490_v19 = vpop.f32.mrb[29].mxu0  ;;  %v702_v20 = vmul.f32 %v1007_v18, %v1204_v34  ;;  %v618_v22 = vpop.f32.mrb[29].mxu1 }
 0x113   :  { %v668_v21 = vmul.f32 %v1204_v34, %v490_v19  ;;  %v976_v23 = vpop.f32.mrb[30].mxu0  ;;  %v700_v25 = vmul.f32 %v1204_v34, %v618_v22  ;;  %v1008_v27 = vpop.f32.mrb[30].mxu1 }
 0x114   :  { %v741_v24 = vadd.f32 %v1209_v36, %v670_v17  ;;  %v671_v26 = vmul.f32 %v976_v23, %v1204_v34  ;;  %v493_v28 = vpop.f32.mrb[31].mxu0  ;;  %v773_v29 = vadd.f32 %v1209_v36, %v702_v20  ;;  %v703_v31 = vmul.f32 %v1008_v27, %v1204_v34  ;;  %v621_v33 = vpop.f32.mrb[31].mxu1 }
 0x115   :  { %v739_v30 = vadd.f32 %v1209_v36, %v668_v21  ;;  %v669_v32 = vmul.f32 %v1204_v34, %v493_v28  ;;  %v771_v35 = vadd.f32 %v1209_v36, %v700_v25  ;;  %v701_v38 = vmul.f32 %v1204_v34, %v621_v33 }
 0x116   :  { %806 = vst.msk [vmem:[%s1599_s4 + $0xf0] sm:$0xff] %vm775_vm2, %v741_v24  ;;  %v742_v37 = vadd.f32 %v1209_v36, %v671_v26  ;;  %838 = vst.msk [vmem:[%s1599_s4 + $0x1f0] sm:$0xff] %vm775_vm2, %v773_v29  ;;  %v774_v39 = vadd.f32 %v1209_v36, %v703_v31 }
 0x117   :  { %804 = vst.msk [vmem:[%s1599_s4 + $0xe0] sm:$0xff] %vm775_vm2, %v739_v30  ;;  %v740_v40 = vadd.f32 %v1209_v36, %v669_v32  ;;  %836 = vst.msk [vmem:[%s1599_s4 + $0x1e0] sm:$0xff] %vm775_vm2, %v771_v35  ;;  %v772_v34 = vadd.f32 %v1209_v36, %v701_v38 }
 0x118   :  { %807 = vst.msk [vmem:[%s1599_s4 + $0xf8] sm:$0xff] %vm775_vm2, %v742_v37  ;;  %839 = vst.msk [vmem:[%s1599_s4 + $0x1f8] sm:$0xff] %vm775_vm2, %v774_v39 }
 0x119   :  { %805 = vst.msk [vmem:[%s1599_s4 + $0xe8] sm:$0xff] %vm775_vm2, %v740_v40  ;;  %837 = vst.msk [vmem:[%s1599_s4 + $0x1e8] sm:$0xff] %vm775_vm2, %v772_v34 }

// kernel: truenet_forward.41
= control target key start
LH: loop header
LB: loop body
LE: loop exit
PB: predicated region body
PF: predicated region fallthrough
CT: control target
= control target key end

     0   :  { %v1718_v0 = vmov 0   ;;  %vm442_vm0 = vcmask 130048   ;;  %vm1290_vm1 = vcmask 60416   ;;  %s2389_s1 = inlined_call_operand.vmem [shape: bf16[144,8], index: 1, kind: input, shape index: {}]   ;;  %s2390_s0 = inlined_call_operand.vmem [shape: bf16[512,144], index: 0, kind: input, shape index: {}]   ;;  %s2391_s2 = inlined_call_operand.vmem [shape: f32[1,8], index: 2, kind: input, shape index: {}]   ;;  %s2392_s3 = inlined_call_operand.vmem [shape: f32[1,8], index: 3, kind: input, shape index: {}]   ;;  %s2393_s4 = inlined_call_operand.vmem [shape: bf16[512,8], index: 4, kind: output, shape index: {}]  }
   0x1   :  { %539 = vmatprep.subr.bf16.mxu0 %v1718_v0  ;;  %1594 = vmatprep.subr.bf16.mxu1 %v1718_v0  ;;  %v1613_v1 = vld [vmem:[%s2389_s1] sm:$0xff]   ;;  %v1614_v2 = vld [vmem:[%s2389_s1 + $0x8] sm:$0xff]   ;;  %v1615_v3 = vld [vmem:[%s2389_s1 + $0x10] sm:$0xff]  }
   0x2   :  { %540 = vmatpush1.bf16.msra.mxu0 %v1613_v1  ;;  %1603 = vmatpush1.bf16.msra.mxu1 %v1613_v1  ;;  %v1616_v4 = vld [vmem:[%s2389_s1 + $0x18] sm:$0xff]   ;;  %v1624_v5 = vld [vmem:[%s2390_s0 + $0x4] ss:$8 sps:$4 sm:$0xff]   ;;  %v1619_v9 = vld [vmem:[%s2389_s1 + $0x30] sm:$0xff]  }
   0x3   :  { %541 = vmatprep.subr.bf16.mxu0 %v1718_v0  ;;  %1595 = vmatprep.subr.bf16.mxu1 %v1718_v0  ;;  %v1627_v6 = vld [vmem:[%s2390_s0 + $0x104] ss:$8 sps:$4 sm:$0xff]   ;;  %v1620_v10 = vld [vmem:[%s2389_s1 + $0x38] sm:$0xff]   ;;  %v1622_v12 = vld [vmem:[%s2390_s0] ss:$8 sps:$4 sm:$0xff]  }
   0x4   :  { %1432 = vmatprep.mubr.msk.bf16.mxu0 %vm442_vm0, %v1624_v5  ;;  %1448 = vmatprep.mubr.msk.bf16.mxu1 %vm442_vm0, %v1627_v6  ;;  %v1617_v7 = vld [vmem:[%s2389_s1 + $0x20] sm:$0xff]   ;;  %v1618_v8 = vld [vmem:[%s2389_s1 + $0x28] sm:$0xff]   ;;  %v1628_v14 = vld [vmem:[%s2390_s0 + $0x14] ss:$8 sps:$4 sm:$0xff]  }
   0x5   :  { %v1621_v11 = vld [vmem:[%s2389_s1 + $0x40] sm:$0xff]   ;;  %v1630_v15 = vld [vmem:[%s2390_s0 + $0x114] ss:$8 sps:$4 sm:$0xff]   ;;  %v1632_v16 = vld [vmem:[%s2390_s0 + $0x10] ss:$8 sps:$4 sm:$0xff]  }
   0x6   :  { %542 = vmatpush1.bf16.msra.mxu0 %v1614_v2  ;;  %1604 = vmatpush1.bf16.msra.mxu1 %v1614_v2  ;;  %v1625_v13 = vld [vmem:[%s2390_s0 + $0x100] ss:$8 sps:$4 sm:$0xff]   ;;  %v1633_v17 = vld [vmem:[%s2390_s0 + $0x110] ss:$8 sps:$4 sm:$0xff]   ;;  %v1634_v18 = vld [vmem:[%s2390_s0 + $0x24] ss:$8 sps:$4 sm:$0xff]  }
   0x7   :  { %543 = vmatprep.subr.bf16.mxu0 %v1718_v0  ;;  %1596 = vmatprep.subr.bf16.mxu1 %v1718_v0  ;;  %v1636_v19 = vld [vmem:[%s2390_s0 + $0x124] ss:$8 sps:$4 sm:$0xff]   ;;  %v1638_v20 = vld [vmem:[%s2390_s0 + $0x20] ss:$8 sps:$4 sm:$0xff]   ;;  %v1640_v22 = vld [vmem:[%s2390_s0 + $0x34] ss:$8 sps:$4 sm:$0xff]  }
   0x8   :  { %v1639_v21 = vld [vmem:[%s2390_s0 + $0x120] ss:$8 sps:$4 sm:$0xff]   ;;  %v1642_v23 = vld [vmem:[%s2390_s0 + $0x134] ss:$8 sps:$4 sm:$0xff]   ;;  %v1644_v24 = vld [vmem:[%s2390_s0 + $0x30] ss:$8 sps:$4 sm:$0xff]  }
   0x9   :  { %v1645_v25 = vld [vmem:[%s2390_s0 + $0x130] ss:$8 sps:$4 sm:$0xff]   ;;  %v1646_v26 = vld [vmem:[%s2390_s0 + $0x44] ss:$8 sps:$4 sm:$0xff]   ;;  %v1650_v28 = vld [vmem:[%s2390_s0 + $0x40] ss:$8 sps:$4 sm:$0xff]  }
   0xa   :  { %544 = vmatpush1.bf16.msra.mxu0 %v1615_v3  ;;  %1605 = vmatpush1.bf16.msra.mxu1 %v1615_v3  ;;  %v1648_v27 = vld [vmem:[%s2390_s0 + $0x144] ss:$8 sps:$4 sm:$0xff]   ;;  %v1651_v29 = vld [vmem:[%s2390_s0 + $0x140] ss:$8 sps:$4 sm:$0xff]   ;;  %v1652_v30 = vld [vmem:[%s2390_s0 + $0x54] ss:$8 sps:$4 sm:$0xff]  }
   0xb   :  { %545 = vmatprep.subr.bf16.mxu0 %v1718_v0  ;;  %1597 = vmatprep.subr.bf16.mxu1 %v1718_v0  ;;  %v1654_v31 = vld [vmem:[%s2390_s0 + $0x154] ss:$8 sps:$4 sm:$0xff]   ;;  %v1656_v32 = vld [vmem:[%s2390_s0 + $0x50] ss:$8 sps:$4 sm:$0xff]   ;;  %v1658_v34 = vld [vmem:[%s2390_s0 + $0x64] ss:$8 sps:$4 sm:$0xff]  }
   0xc   :  { %v1657_v33 = vld [vmem:[%s2390_s0 + $0x150] ss:$8 sps:$4 sm:$0xff]   ;;  %v1660_v35 = vld [vmem:[%s2390_s0 + $0x164] ss:$8 sps:$4 sm:$0xff]   ;;  %v1662_v36 = vld [vmem:[%s2390_s0 + $0x60] ss:$8 sps:$4 sm:$0xff]  }
   0xd   :  { %v1663_v37 = vld [vmem:[%s2390_s0 + $0x160] ss:$8 sps:$4 sm:$0xff]   ;;  %v1664_v38 = vld [vmem:[%s2390_s0 + $0x74] ss:$8 sps:$4 sm:$0xff]   ;;  %v1668_v40 = vld [vmem:[%s2390_s0 + $0x70] ss:$8 sps:$4 sm:$0xff]  }
   0xe   :  { %546 = vmatpush1.bf16.msra.mxu0 %v1616_v4  ;;  %1606 = vmatpush1.bf16.msra.mxu1 %v1616_v4  ;;  %v1666_v39 = vld [vmem:[%s2390_s0 + $0x174] ss:$8 sps:$4 sm:$0xff]   ;;  %v1669_v41 = vld [vmem:[%s2390_s0 + $0x170] ss:$8 sps:$4 sm:$0xff]   ;;  %v1670_v42 = vld [vmem:[%s2390_s0 + $0x84] ss:$8 sps:$4 sm:$0xff]  }
   0xf   :  { %547 = vmatprep.subr.bf16.mxu0 %v1718_v0  ;;  %1598 = vmatprep.subr.bf16.mxu1 %v1718_v0  ;;  %v1672_v43 = vld [vmem:[%s2390_s0 + $0x184] ss:$8 sps:$4 sm:$0xff]   ;;  %v1674_v44 = vld [vmem:[%s2390_s0 + $0x80] ss:$8 sps:$4 sm:$0xff]   ;;  %v1676_v46 = vld [vmem:[%s2390_s0 + $0x94] ss:$8 sps:$4 sm:$0xff]  }
  0x10   :  { %v1675_v45 = vld [vmem:[%s2390_s0 + $0x180] ss:$8 sps:$4 sm:$0xff]   ;;  %v1678_v47 = vld [vmem:[%s2390_s0 + $0x194] ss:$8 sps:$4 sm:$0xff]   ;;  %v1680_v48 = vld [vmem:[%s2390_s0 + $0x90] ss:$8 sps:$4 sm:$0xff]  }
  0x11   :  { %v1681_v49 = vld [vmem:[%s2390_s0 + $0x190] ss:$8 sps:$4 sm:$0xff]   ;;  %v1682_v50 = vld [vmem:[%s2390_s0 + $0xa4] ss:$8 sps:$4 sm:$0xff]   ;;  %v1686_v52 = vld [vmem:[%s2390_s0 + $0xa0] ss:$8 sps:$4 sm:$0xff]  }
  0x12   :  { %548 = vmatpush1.bf16.msra.mxu0 %v1617_v7  ;;  %1607 = vmatpush1.bf16.msra.mxu1 %v1617_v7  ;;  %v1684_v51 = vld [vmem:[%s2390_s0 + $0x1a4] ss:$8 sps:$4 sm:$0xff]   ;;  %v1687_v53 = vld [vmem:[%s2390_s0 + $0x1a0] ss:$8 sps:$4 sm:$0xff]   ;;  %v1688_v54 = vld [vmem:[%s2390_s0 + $0xb4] ss:$8 sps:$4 sm:$0xff]  }
  0x13   :  { %549 = vmatprep.subr.bf16.mxu0 %v1718_v0  ;;  %1599 = vmatprep.subr.bf16.mxu1 %v1718_v0  ;;  %v1690_v55 = vld [vmem:[%s2390_s0 + $0x1b4] ss:$8 sps:$4 sm:$0xff]   ;;  %v1692_v56 = vld [vmem:[%s2390_s0 + $0xb0] ss:$8 sps:$4 sm:$0xff]   ;;  %v1694_v58 = vld [vmem:[%s2390_s0 + $0xc4] ss:$8 sps:$4 sm:$0xff]  }
  0x14   :  { %v1693_v57 = vld [vmem:[%s2390_s0 + $0x1b0] ss:$8 sps:$4 sm:$0xff]   ;;  %v1696_v59 = vld [vmem:[%s2390_s0 + $0x1c4] ss:$8 sps:$4 sm:$0xff]   ;;  %v1698_v60 = vld [vmem:[%s2390_s0 + $0xc0] ss:$8 sps:$4 sm:$0xff]  }
  0x15   :  { %v1699_v61 = vld [vmem:[%s2390_s0 + $0x1c0] ss:$8 sps:$4 sm:$0xff]   ;;  %v1700_v62 = vld [vmem:[%s2390_s0 + $0xd4] ss:$8 sps:$4 sm:$0xff]   ;;  %v1705_v1 = vld [vmem:[%s2390_s0 + $0x1d0] ss:$8 sps:$4 sm:$0xff]  }
  0x16   :  { %550 = vmatpush1.bf16.msra.mxu0 %v1618_v8  ;;  %1608 = vmatpush1.bf16.msra.mxu1 %v1618_v8  ;;  %v1702_v63 = vld [vmem:[%s2390_s0 + $0x1d4] ss:$8 sps:$4 sm:$0xff]   ;;  %v1706_v2 = vld [vmem:[%s2390_s0 + $0xe4] ss:$8 sps:$4 sm:$0xff]   ;;  %v1710_v4 = vld [vmem:[%s2390_s0 + $0xe0] ss:$8 sps:$4 sm:$0xff]  }
  0x17   :  { %551 = vmatprep.subr.bf16.mxu0 %v1718_v0  ;;  %1600 = vmatprep.subr.bf16.mxu1 %v1718_v0  ;;  %v1708_v3 = vld [vmem:[%s2390_s0 + $0x1e4] ss:$8 sps:$4 sm:$0xff]   ;;  %v1711_v5 = vld [vmem:[%s2390_s0 + $0x1e0] ss:$8 sps:$4 sm:$0xff]   ;;  %v1712_v6 = vld [vmem:[%s2390_s0 + $0xf4] ss:$8 sps:$4 sm:$0xff]  }
  0x18   :  { %v1714_v7 = vld [vmem:[%s2390_s0 + $0x1f4] ss:$8 sps:$4 sm:$0xff]   ;;  %v1716_v8 = vld [vmem:[%s2390_s0 + $0xf0] ss:$8 sps:$4 sm:$0xff]  }
  0x1a   :  { %552 = vmatpush1.bf16.msra.mxu0 %v1619_v9  ;;  %1609 = vmatpush1.bf16.msra.mxu1 %v1619_v9  ;;  %v1717_v9 = vld [vmem:[%s2390_s0 + $0x1f0] ss:$8 sps:$4 sm:$0xff]  }
  0x1b   :  { %553 = vmatprep.subr.bf16.mxu0 %v1718_v0  ;;  %1601 = vmatprep.subr.bf16.mxu1 %v1718_v0 }
  0x1e   :  { %554 = vmatpush1.bf16.msra.mxu0 %v1620_v10  ;;  %1610 = vmatpush1.bf16.msra.mxu1 %v1620_v10  ;;  %v1998_v10 = vld [vmem:[%s2391_s2] ss:$0 sm:$0xff] }
  0x1f   :  { %555 = vmatprep.subr.bf16.mxu0 %v1718_v0  ;;  %1602 = vmatprep.subr.bf16.mxu1 %v1718_v0  ;;  %v1704_v0 = vld [vmem:[%s2390_s0 + $0xd0] ss:$8 sps:$4 sm:$0xff]  }
  0x22   :  { %556 = vmatpush1.bf16.msra.mxu0 %v1621_v11  ;;  %1611 = vmatpush1.bf16.msra.mxu1 %v1621_v11 }
  0x25   :  { %572 = vmatmul.mubr.bf16.vlgmr.msra.gmra.mrb[0].mxu0 %v1622_v12  ;;  %700 = vmatmul.mubr.bf16.vlgmr.msra.gmra.mrb[0].mxu1 %v1625_v13  ;;  %v2003_v12 = vld [vmem:[%s2392_s3] ss:$0 sm:$0xff] }
  0x26   :  { %1433 = vmatprep.mubr.msk.bf16.mxu0 %vm442_vm0, %v1628_v14  ;;  %1449 = vmatprep.mubr.msk.bf16.mxu1 %vm442_vm0, %v1630_v15 }
  0x2d   :  { %580 = vmatmul.mubr.bf16.gmra.mrb[4].mxu0 %v1632_v16  ;;  %708 = vmatmul.mubr.bf16.gmra.mrb[4].mxu1 %v1633_v17 }
  0x2e   :  { %1434 = vmatprep.mubr.msk.bf16.mxu0 %vm442_vm0, %v1634_v18  ;;  %1450 = vmatprep.mubr.msk.bf16.mxu1 %vm442_vm0, %v1636_v19 }
  0x35   :  { %588 = vmatmul.mubr.bf16.gmra.mrb[8].mxu0 %v1638_v20  ;;  %716 = vmatmul.mubr.bf16.gmra.mrb[8].mxu1 %v1639_v21 }
  0x36   :  { %1435 = vmatprep.mubr.msk.bf16.mxu0 %vm442_vm0, %v1640_v22  ;;  %1451 = vmatprep.mubr.msk.bf16.mxu1 %vm442_vm0, %v1642_v23 }
  0x3d   :  { %596 = vmatmul.mubr.bf16.gmra.mrb[12].mxu0 %v1644_v24  ;;  %724 = vmatmul.mubr.bf16.gmra.mrb[12].mxu1 %v1645_v25 }
  0x3e   :  { %1436 = vmatprep.mubr.msk.bf16.mxu0 %vm442_vm0, %v1646_v26  ;;  %1452 = vmatprep.mubr.msk.bf16.mxu1 %vm442_vm0, %v1648_v27 }
  0x45   :  { %604 = vmatmul.mubr.bf16.gmra.mrb[16].mxu0 %v1650_v28  ;;  %732 = vmatmul.mubr.bf16.gmra.mrb[16].mxu1 %v1651_v29 }
  0x46   :  { %1437 = vmatprep.mubr.msk.bf16.mxu0 %vm442_vm0, %v1652_v30  ;;  %1453 = vmatprep.mubr.msk.bf16.mxu1 %vm442_vm0, %v1654_v31 }
  0x4d   :  { %612 = vmatmul.mubr.bf16.gmra.mrb[20].mxu0 %v1656_v32  ;;  %740 = vmatmul.mubr.bf16.gmra.mrb[20].mxu1 %v1657_v33 }
  0x4e   :  { %1438 = vmatprep.mubr.msk.bf16.mxu0 %vm442_vm0, %v1658_v34  ;;  %1454 = vmatprep.mubr.msk.bf16.mxu1 %vm442_vm0, %v1660_v35 }
  0x55   :  { %620 = vmatmul.mubr.bf16.gmra.mrb[24].mxu0 %v1662_v36  ;;  %748 = vmatmul.mubr.bf16.gmra.mrb[24].mxu1 %v1663_v37 }
  0x56   :  { %1439 = vmatprep.mubr.msk.bf16.mxu0 %vm442_vm0, %v1664_v38  ;;  %1455 = vmatprep.mubr.msk.bf16.mxu1 %vm442_vm0, %v1666_v39 }
  0x5d   :  { %628 = vmatmul.mubr.bf16.gmra.mrb[28].mxu0 %v1668_v40  ;;  %756 = vmatmul.mubr.bf16.gmra.mrb[28].mxu1 %v1669_v41 }
  0x5e   :  { %1440 = vmatprep.mubr.msk.bf16.mxu0 %vm442_vm0, %v1670_v42  ;;  %1456 = vmatprep.mubr.msk.bf16.mxu1 %vm442_vm0, %v1672_v43 }
  0x65   :  { %636 = vmatmul.mubr.bf16.gmra.mrb[32].mxu0 %v1674_v44  ;;  %764 = vmatmul.mubr.bf16.gmra.mrb[32].mxu1 %v1675_v45 }
  0x66   :  { %1441 = vmatprep.mubr.msk.bf16.mxu0 %vm442_vm0, %v1676_v46  ;;  %1457 = vmatprep.mubr.msk.bf16.mxu1 %vm442_vm0, %v1678_v47 }
  0x6d   :  { %644 = vmatmul.mubr.bf16.gmra.mrb[36].mxu0 %v1680_v48  ;;  %772 = vmatmul.mubr.bf16.gmra.mrb[36].mxu1 %v1681_v49 }
  0x6e   :  { %1442 = vmatprep.mubr.msk.bf16.mxu0 %vm442_vm0, %v1682_v50  ;;  %1458 = vmatprep.mubr.msk.bf16.mxu1 %vm442_vm0, %v1684_v51 }
  0x75   :  { %652 = vmatmul.mubr.bf16.gmra.mrb[40].mxu0 %v1686_v52  ;;  %780 = vmatmul.mubr.bf16.gmra.mrb[40].mxu1 %v1687_v53 }
  0x76   :  { %1443 = vmatprep.mubr.msk.bf16.mxu0 %vm442_vm0, %v1688_v54  ;;  %1459 = vmatprep.mubr.msk.bf16.mxu1 %vm442_vm0, %v1690_v55 }
  0x7d   :  { %660 = vmatmul.mubr.bf16.gmra.mrb[44].mxu0 %v1692_v56  ;;  %788 = vmatmul.mubr.bf16.gmra.mrb[44].mxu1 %v1693_v57 }
  0x7e   :  { %1444 = vmatprep.mubr.msk.bf16.mxu0 %vm442_vm0, %v1694_v58  ;;  %1460 = vmatprep.mubr.msk.bf16.mxu1 %vm442_vm0, %v1696_v59 }
  0x85   :  { %668 = vmatmul.mubr.bf16.gmra.mrb[48].mxu0 %v1698_v60  ;;  %796 = vmatmul.mubr.bf16.gmra.mrb[48].mxu1 %v1699_v61 }
  0x86   :  { %1445 = vmatprep.mubr.msk.bf16.mxu0 %vm442_vm0, %v1700_v62  ;;  %1461 = vmatprep.mubr.msk.bf16.mxu1 %vm442_vm0, %v1702_v63 }
  0x8d   :  { %676 = vmatmul.mubr.bf16.gmra.mrb[52].mxu0 %v1704_v0  ;;  %804 = vmatmul.mubr.bf16.gmra.mrb[52].mxu1 %v1705_v1 }
  0x8e   :  { %1446 = vmatprep.mubr.msk.bf16.mxu0 %vm442_vm0, %v1706_v2  ;;  %1462 = vmatprep.mubr.msk.bf16.mxu1 %vm442_vm0, %v1708_v3 }
  0x95   :  { %684 = vmatmul.mubr.bf16.gmra.mrb[56].mxu0 %v1710_v4  ;;  %812 = vmatmul.mubr.bf16.gmra.mrb[56].mxu1 %v1711_v5 }
  0x96   :  { %1447 = vmatprep.mubr.msk.bf16.mxu0 %vm442_vm0, %v1712_v6  ;;  %1463 = vmatprep.mubr.msk.bf16.mxu1 %vm442_vm0, %v1714_v7 }
  0x9d   :  { %692 = vmatmul.mubr.bf16.gmra.mrb[60].mxu0 %v1716_v8  ;;  %820 = vmatmul.mubr.bf16.gmra.mrb[60].mxu1 %v1717_v9 }
  0xf8   :  { %v573_v11 = vpop.f32.mrb[0].mxu0  ;;  %v701_v13 = vpop.f32.mrb[0].mxu1 }
  0xf9   :  { %v835_v14 = vmul.f32 %v1998_v10, %v573_v11  ;;  %v867_v15 = vmul.f32 %v1998_v10, %v701_v13  ;;  %v575_v16 = vpop.f32.mrb[1].mxu0  ;;  %v703_v17 = vpop.f32.mrb[1].mxu1 }
  0xfa   :  { %v576_v18 = vpop.f32.mrb[2].mxu0  ;;  %v704_v19 = vpop.f32.mrb[2].mxu1 }
  0xfb   :  { %v906_v20 = vadd.f32 %v2003_v12, %v835_v14  ;;  %v938_v21 = vadd.f32 %v2003_v12, %v867_v15  ;;  %v836_v22 = vmul.f32 %v1998_v10, %v576_v18  ;;  %v868_v23 = vmul.f32 %v1998_v10, %v704_v19  ;;  %v578_v24 = vpop.f32.mrb[3].mxu0  ;;  %v706_v25 = vpop.f32.mrb[3].mxu1 }
  0xfd   :  { %v970_v26 = vmax.f32 %v906_v20, 0.0  ;;  %v1002_v27 = vmax.f32 %v938_v21, 0.0  ;;  %v907_v28 = vadd.f32 %v2003_v12, %v836_v22  ;;  %v939_v29 = vadd.f32 %v2003_v12, %v868_v23 }
  0xff   :  { %v1530_v30 = vpack.c.bf16 %v970_v26, %v970_v26  ;;  %v1562_v31 = vpack.c.bf16 %v1002_v27, %v1002_v27  ;;  %v971_v32 = vmax.f32 %v907_v28, 0.0  ;;  %v1003_v33 = vmax.f32 %v939_v29, 0.0 }
 0x100   :  { %v581_v34 = vpop.f32.mrb[4].mxu0  ;;  %v709_v35 = vpop.f32.mrb[4].mxu1 }
 0x101   :  { %1291 = vst.msk [vmem:[%s2393_s4] sm:$0xf] %vm1290_vm1, %v1530_v30  ;;  %1323 = vst.msk [vmem:[%s2393_s4 + $0x80] sm:$0xf] %vm1290_vm1, %v1562_v31  ;;  %v1531_v36 = vpack.c.bf16 %v971_v32, %v971_v32  ;;  %v1563_v37 = vpack.c.bf16 %v1003_v33, %v1003_v33  ;;  %v837_v38 = vmul.f32 %v1998_v10, %v581_v34  ;;  %v583_v40 = vpop.f32.mrb[5].mxu0  ;;  %v711_v41 = vpop.f32.mrb[5].mxu1 }
 0x102   :  { %v869_v39 = vmul.f32 %v1998_v10, %v709_v35  ;;  %v584_v42 = vpop.f32.mrb[6].mxu0  ;;  %v712_v43 = vpop.f32.mrb[6].mxu1 }
 0x103   :  { %1292 = vst.msk [vmem:[%s2393_s4 + $0x4] sm:$0xf] %vm1290_vm1, %v1531_v36  ;;  %1324 = vst.msk [vmem:[%s2393_s4 + $0x84] sm:$0xf] %vm1290_vm1, %v1563_v37  ;;  %v908_v44 = vadd.f32 %v2003_v12, %v837_v38  ;;  %v838_v46 = vmul.f32 %v1998_v10, %v584_v42  ;;  %v870_v47 = vmul.f32 %v1998_v10, %v712_v43  ;;  %v586_v48 = vpop.f32.mrb[7].mxu0  ;;  %v714_v49 = vpop.f32.mrb[7].mxu1 }
 0x104   :  { %v940_v45 = vadd.f32 %v2003_v12, %v869_v39 }
 0x105   :  { %v972_v50 = vmax.f32 %v908_v44, 0.0  ;;  %v909_v52 = vadd.f32 %v2003_v12, %v838_v46  ;;  %v941_v53 = vadd.f32 %v2003_v12, %v870_v47 }
 0x106   :  { %v1004_v51 = vmax.f32 %v940_v45, 0.0 }
 0x107   :  { %v1532_v54 = vpack.c.bf16 %v972_v50, %v972_v50  ;;  %v973_v56 = vmax.f32 %v909_v52, 0.0  ;;  %v1005_v57 = vmax.f32 %v941_v53, 0.0 }
 0x108   :  { %v1564_v55 = vpack.c.bf16 %v1004_v51, %v1004_v51  ;;  %v589_v58 = vpop.f32.mrb[8].mxu0  ;;  %v717_v59 = vpop.f32.mrb[8].mxu1 }
 0x109   :  { %1293 = vst.msk [vmem:[%s2393_s4 + $0x8] sm:$0xf] %vm1290_vm1, %v1532_v54  ;;  %v1533_v60 = vpack.c.bf16 %v973_v56, %v973_v56  ;;  %v1565_v61 = vpack.c.bf16 %v1005_v57, %v1005_v57  ;;  %v839_v62 = vmul.f32 %v1998_v10, %v589_v58  ;;  %v871_v63 = vmul.f32 %v1998_v10, %v717_v59  ;;  %v591_v0 = vpop.f32.mrb[9].mxu0  ;;  %v719_v1 = vpop.f32.mrb[9].mxu1 }
 0x10a   :  { %1325 = vst.msk [vmem:[%s2393_s4 + $0x88] sm:$0xf] %vm1290_vm1, %v1564_v55  ;;  %v592_v2 = vpop.f32.mrb[10].mxu0  ;;  %v720_v3 = vpop.f32.mrb[10].mxu1 }
 0x10b   :  { %1294 = vst.msk [vmem:[%s2393_s4 + $0xc] sm:$0xf] %vm1290_vm1, %v1533_v60  ;;  %1326 = vst.msk [vmem:[%s2393_s4 + $0x8c] sm:$0xf] %vm1290_vm1, %v1565_v61  ;;  %v910_v4 = vadd.f32 %v2003_v12, %v839_v62  ;;  %v942_v5 = vadd.f32 %v2003_v12, %v871_v63  ;;  %v840_v6 = vmul.f32 %v1998_v10, %v592_v2  ;;  %v594_v8 = vpop.f32.mrb[11].mxu0  ;;  %v722_v9 = vpop.f32.mrb[11].mxu1 }
 0x10c   :  { %v872_v7 = vmul.f32 %v1998_v10, %v720_v3 }
 0x10d   :  { %v974_v11 = vmax.f32 %v910_v4, 0.0  ;;  %v1006_v13 = vmax.f32 %v942_v5, 0.0  ;;  %v911_v14 = vadd.f32 %v2003_v12, %v840_v6 }
 0x10e   :  { %v943_v15 = vadd.f32 %v2003_v12, %v872_v7 }
 0x10f   :  { %v1534_v16 = vpack.c.bf16 %v974_v11, %v974_v11  ;;  %v1566_v17 = vpack.c.bf16 %v1006_v13, %v1006_v13  ;;  %v975_v18 = vmax.f32 %v911_v14, 0.0 }
 0x110   :  { %v1007_v19 = vmax.f32 %v943_v15, 0.0  ;;  %v597_v20 = vpop.f32.mrb[12].mxu0  ;;  %v725_v21 = vpop.f32.mrb[12].mxu1 }
 0x111   :  { %1295 = vst.msk [vmem:[%s2393_s4 + $0x10] sm:$0xf] %vm1290_vm1, %v1534_v16  ;;  %1327 = vst.msk [vmem:[%s2393_s4 + $0x90] sm:$0xf] %vm1290_vm1, %v1566_v17  ;;  %v1535_v22 = vpack.c.bf16 %v975_v18, %v975_v18  ;;  %v841_v24 = vmul.f32 %v1998_v10, %v597_v20  ;;  %v873_v25 = vmul.f32 %v1998_v10, %v725_v21  ;;  %v599_v26 = vpop.f32.mrb[13].mxu0  ;;  %v727_v27 = vpop.f32.mrb[13].mxu1 }
 0x112   :  { %v1567_v23 = vpack.c.bf16 %v1007_v19, %v1007_v19  ;;  %v600_v28 = vpop.f32.mrb[14].mxu0  ;;  %v728_v29 = vpop.f32.mrb[14].mxu1 }
 0x113   :  { %1296 = vst.msk [vmem:[%s2393_s4 + $0x14] sm:$0xf] %vm1290_vm1, %v1535_v22  ;;  %v912_v30 = vadd.f32 %v2003_v12, %v841_v24  ;;  %v944_v31 = vadd.f32 %v2003_v12, %v873_v25  ;;  %v842_v32 = vmul.f32 %v1998_v10, %v600_v28  ;;  %v874_v33 = vmul.f32 %v1998_v10, %v728_v29  ;;  %v602_v34 = vpop.f32.mrb[15].mxu0  ;;  %v730_v35 = vpop.f32.mrb[15].mxu1 }
 0x114   :  { %1328 = vst.msk [vmem:[%s2393_s4 + $0x94] sm:$0xf] %vm1290_vm1, %v1567_v23 }
 0x115   :  { %v976_v36 = vmax.f32 %v912_v30, 0.0  ;;  %v1008_v37 = vmax.f32 %v944_v31, 0.0  ;;  %v913_v38 = vadd.f32 %v2003_v12, %v842_v32  ;;  %v945_v39 = vadd.f32 %v2003_v12, %v874_v33 }
 0x117   :  { %v1536_v40 = vpack.c.bf16 %v976_v36, %v976_v36  ;;  %v1568_v41 = vpack.c.bf16 %v1008_v37, %v1008_v37  ;;  %v977_v42 = vmax.f32 %v913_v38, 0.0  ;;  %v1009_v43 = vmax.f32 %v945_v39, 0.0 }
 0x118   :  { %v605_v44 = vpop.f32.mrb[16].mxu0  ;;  %v733_v45 = vpop.f32.mrb[16].mxu1 }
 0x119   :  { %1297 = vst.msk [vmem:[%s2393_s4 + $0x18] sm:$0xf] %vm1290_vm1, %v1536_v40  ;;  %1329 = vst.msk [vmem:[%s2393_s4 + $0x98] sm:$0xf] %vm1290_vm1, %v1568_v41  ;;  %v1537_v46 = vpack.c.bf16 %v977_v42, %v977_v42  ;;  %v1569_v47 = vpack.c.bf16 %v1009_v43, %v1009_v43  ;;  %v843_v48 = vmul.f32 %v1998_v10, %v605_v44  ;;  %v607_v50 = vpop.f32.mrb[17].mxu0  ;;  %v735_v51 = vpop.f32.mrb[17].mxu1 }
 0x11a   :  { %v875_v49 = vmul.f32 %v1998_v10, %v733_v45  ;;  %v608_v52 = vpop.f32.mrb[18].mxu0  ;;  %v736_v53 = vpop.f32.mrb[18].mxu1 }
 0x11b   :  { %1298 = vst.msk [vmem:[%s2393_s4 + $0x1c] sm:$0xf] %vm1290_vm1, %v1537_v46  ;;  %1330 = vst.msk [vmem:[%s2393_s4 + $0x9c] sm:$0xf] %vm1290_vm1, %v1569_v47  ;;  %v914_v54 = vadd.f32 %v2003_v12, %v843_v48  ;;  %v844_v56 = vmul.f32 %v1998_v10, %v608_v52  ;;  %v876_v57 = vmul.f32 %v1998_v10, %v736_v53  ;;  %v610_v58 = vpop.f32.mrb[19].mxu0  ;;  %v738_v59 = vpop.f32.mrb[19].mxu1 }
 0x11c   :  { %v946_v55 = vadd.f32 %v2003_v12, %v875_v49 }
 0x11d   :  { %v978_v60 = vmax.f32 %v914_v54, 0.0  ;;  %v915_v62 = vadd.f32 %v2003_v12, %v844_v56  ;;  %v947_v63 = vadd.f32 %v2003_v12, %v876_v57 }
 0x11e   :  { %v1010_v61 = vmax.f32 %v946_v55, 0.0 }
 0x11f   :  { %v1538_v0 = vpack.c.bf16 %v978_v60, %v978_v60  ;;  %v979_v2 = vmax.f32 %v915_v62, 0.0  ;;  %v1011_v3 = vmax.f32 %v947_v63, 0.0 }
 0x120   :  { %v1570_v1 = vpack.c.bf16 %v1010_v61, %v1010_v61  ;;  %v613_v4 = vpop.f32.mrb[20].mxu0  ;;  %v741_v5 = vpop.f32.mrb[20].mxu1 }
 0x121   :  { %1299 = vst.msk [vmem:[%s2393_s4 + $0x20] sm:$0xf] %vm1290_vm1, %v1538_v0  ;;  %v1539_v6 = vpack.c.bf16 %v979_v2, %v979_v2  ;;  %v1571_v7 = vpack.c.bf16 %v1011_v3, %v1011_v3  ;;  %v845_v8 = vmul.f32 %v1998_v10, %v613_v4  ;;  %v877_v9 = vmul.f32 %v1998_v10, %v741_v5  ;;  %v615_v11 = vpop.f32.mrb[21].mxu0  ;;  %v743_v13 = vpop.f32.mrb[21].mxu1 }
 0x122   :  { %1331 = vst.msk [vmem:[%s2393_s4 + $0xa0] sm:$0xf] %vm1290_vm1, %v1570_v1  ;;  %v616_v14 = vpop.f32.mrb[22].mxu0  ;;  %v744_v15 = vpop.f32.mrb[22].mxu1 }
 0x123   :  { %1300 = vst.msk [vmem:[%s2393_s4 + $0x24] sm:$0xf] %vm1290_vm1, %v1539_v6  ;;  %1332 = vst.msk [vmem:[%s2393_s4 + $0xa4] sm:$0xf] %vm1290_vm1, %v1571_v7  ;;  %v916_v16 = vadd.f32 %v2003_v12, %v845_v8  ;;  %v948_v17 = vadd.f32 %v2003_v12, %v877_v9  ;;  %v846_v18 = vmul.f32 %v1998_v10, %v616_v14  ;;  %v618_v20 = vpop.f32.mrb[23].mxu0  ;;  %v746_v21 = vpop.f32.mrb[23].mxu1 }
 0x124   :  { %v878_v19 = vmul.f32 %v1998_v10, %v744_v15 }
 0x125   :  { %v980_v22 = vmax.f32 %v916_v16, 0.0  ;;  %v1012_v23 = vmax.f32 %v948_v17, 0.0  ;;  %v917_v24 = vadd.f32 %v2003_v12, %v846_v18 }
 0x126   :  { %v949_v25 = vadd.f32 %v2003_v12, %v878_v19 }
 0x127   :  { %v1540_v26 = vpack.c.bf16 %v980_v22, %v980_v22  ;;  %v1572_v27 = vpack.c.bf16 %v1012_v23, %v1012_v23  ;;  %v981_v28 = vmax.f32 %v917_v24, 0.0 }
 0x128   :  { %v1013_v29 = vmax.f32 %v949_v25, 0.0  ;;  %v621_v30 = vpop.f32.mrb[24].mxu0  ;;  %v749_v31 = vpop.f32.mrb[24].mxu1 }
 0x129   :  { %1301 = vst.msk [vmem:[%s2393_s4 + $0x28] sm:$0xf] %vm1290_vm1, %v1540_v26  ;;  %1333 = vst.msk [vmem:[%s2393_s4 + $0xa8] sm:$0xf] %vm1290_vm1, %v1572_v27  ;;  %v1541_v32 = vpack.c.bf16 %v981_v28, %v981_v28  ;;  %v847_v34 = vmul.f32 %v1998_v10, %v621_v30  ;;  %v879_v35 = vmul.f32 %v1998_v10, %v749_v31  ;;  %v623_v36 = vpop.f32.mrb[25].mxu0  ;;  %v751_v37 = vpop.f32.mrb[25].mxu1 }
 0x12a   :  { %v1573_v33 = vpack.c.bf16 %v1013_v29, %v1013_v29  ;;  %v624_v38 = vpop.f32.mrb[26].mxu0  ;;  %v752_v39 = vpop.f32.mrb[26].mxu1 }
 0x12b   :  { %1302 = vst.msk [vmem:[%s2393_s4 + $0x2c] sm:$0xf] %vm1290_vm1, %v1541_v32  ;;  %v918_v40 = vadd.f32 %v2003_v12, %v847_v34  ;;  %v950_v41 = vadd.f32 %v2003_v12, %v879_v35  ;;  %v848_v42 = vmul.f32 %v1998_v10, %v624_v38  ;;  %v880_v43 = vmul.f32 %v1998_v10, %v752_v39  ;;  %v626_v44 = vpop.f32.mrb[27].mxu0  ;;  %v754_v45 = vpop.f32.mrb[27].mxu1 }
 0x12c   :  { %1334 = vst.msk [vmem:[%s2393_s4 + $0xac] sm:$0xf] %vm1290_vm1, %v1573_v33 }
 0x12d   :  { %v982_v46 = vmax.f32 %v918_v40, 0.0  ;;  %v1014_v47 = vmax.f32 %v950_v41, 0.0  ;;  %v919_v48 = vadd.f32 %v2003_v12, %v848_v42  ;;  %v951_v49 = vadd.f32 %v2003_v12, %v880_v43 }
 0x12f   :  { %v1542_v50 = vpack.c.bf16 %v982_v46, %v982_v46  ;;  %v1574_v51 = vpack.c.bf16 %v1014_v47, %v1014_v47  ;;  %v983_v52 = vmax.f32 %v919_v48, 0.0  ;;  %v1015_v53 = vmax.f32 %v951_v49, 0.0 }
 0x130   :  { %v629_v54 = vpop.f32.mrb[28].mxu0  ;;  %v757_v55 = vpop.f32.mrb[28].mxu1 }
 0x131   :  { %1303 = vst.msk [vmem:[%s2393_s4 + $0x30] sm:$0xf] %vm1290_vm1, %v1542_v50  ;;  %1335 = vst.msk [vmem:[%s2393_s4 + $0xb0] sm:$0xf] %vm1290_vm1, %v1574_v51  ;;  %v1543_v56 = vpack.c.bf16 %v983_v52, %v983_v52  ;;  %v1575_v57 = vpack.c.bf16 %v1015_v53, %v1015_v53  ;;  %v849_v58 = vmul.f32 %v1998_v10, %v629_v54  ;;  %v631_v60 = vpop.f32.mrb[29].mxu0  ;;  %v759_v61 = vpop.f32.mrb[29].mxu1 }
 0x132   :  { %v881_v59 = vmul.f32 %v1998_v10, %v757_v55  ;;  %v632_v62 = vpop.f32.mrb[30].mxu0  ;;  %v760_v63 = vpop.f32.mrb[30].mxu1 }
 0x133   :  { %1304 = vst.msk [vmem:[%s2393_s4 + $0x34] sm:$0xf] %vm1290_vm1, %v1543_v56  ;;  %1336 = vst.msk [vmem:[%s2393_s4 + $0xb4] sm:$0xf] %vm1290_vm1, %v1575_v57  ;;  %v920_v0 = vadd.f32 %v2003_v12, %v849_v58  ;;  %v850_v2 = vmul.f32 %v1998_v10, %v632_v62  ;;  %v882_v3 = vmul.f32 %v1998_v10, %v760_v63  ;;  %v634_v4 = vpop.f32.mrb[31].mxu0  ;;  %v762_v5 = vpop.f32.mrb[31].mxu1 }
 0x134   :  { %v952_v1 = vadd.f32 %v2003_v12, %v881_v59 }
 0x135   :  { %v984_v6 = vmax.f32 %v920_v0, 0.0  ;;  %v921_v8 = vadd.f32 %v2003_v12, %v850_v2  ;;  %v953_v9 = vadd.f32 %v2003_v12, %v882_v3 }
 0x136   :  { %v1016_v7 = vmax.f32 %v952_v1, 0.0 }
 0x137   :  { %v1544_v11 = vpack.c.bf16 %v984_v6, %v984_v6  ;;  %v985_v14 = vmax.f32 %v921_v8, 0.0  ;;  %v1017_v15 = vmax.f32 %v953_v9, 0.0 }
 0x138   :  { %v1576_v13 = vpack.c.bf16 %v1016_v7, %v1016_v7  ;;  %v637_v16 = vpop.f32.mrb[32].mxu0  ;;  %v765_v17 = vpop.f32.mrb[32].mxu1 }
 0x139   :  { %1305 = vst.msk [vmem:[%s2393_s4 + $0x38] sm:$0xf] %vm1290_vm1, %v1544_v11  ;;  %v1545_v18 = vpack.c.bf16 %v985_v14, %v985_v14  ;;  %v1577_v19 = vpack.c.bf16 %v1017_v15, %v1017_v15  ;;  %v851_v20 = vmul.f32 %v1998_v10, %v637_v16  ;;  %v883_v21 = vmul.f32 %v1998_v10, %v765_v17  ;;  %v639_v22 = vpop.f32.mrb[33].mxu0  ;;  %v767_v23 = vpop.f32.mrb[33].mxu1 }
 0x13a   :  { %1337 = vst.msk [vmem:[%s2393_s4 + $0xb8] sm:$0xf] %vm1290_vm1, %v1576_v13  ;;  %v640_v24 = vpop.f32.mrb[34].mxu0  ;;  %v768_v25 = vpop.f32.mrb[34].mxu1 }
 0x13b   :  { %1306 = vst.msk [vmem:[%s2393_s4 + $0x3c] sm:$0xf] %vm1290_vm1, %v1545_v18  ;;  %1338 = vst.msk [vmem:[%s2393_s4 + $0xbc] sm:$0xf] %vm1290_vm1, %v1577_v19  ;;  %v922_v26 = vadd.f32 %v2003_v12, %v851_v20  ;;  %v954_v27 = vadd.f32 %v2003_v12, %v883_v21  ;;  %v852_v28 = vmul.f32 %v1998_v10, %v640_v24  ;;  %v642_v30 = vpop.f32.mrb[35].mxu0  ;;  %v770_v31 = vpop.f32.mrb[35].mxu1 }
 0x13c   :  { %v884_v29 = vmul.f32 %v1998_v10, %v768_v25 }
 0x13d   :  { %v986_v32 = vmax.f32 %v922_v26, 0.0  ;;  %v1018_v33 = vmax.f32 %v954_v27, 0.0  ;;  %v923_v34 = vadd.f32 %v2003_v12, %v852_v28 }
 0x13e   :  { %v955_v35 = vadd.f32 %v2003_v12, %v884_v29 }
 0x13f   :  { %v1546_v36 = vpack.c.bf16 %v986_v32, %v986_v32  ;;  %v1578_v37 = vpack.c.bf16 %v1018_v33, %v1018_v33  ;;  %v987_v38 = vmax.f32 %v923_v34, 0.0 }
 0x140   :  { %v1019_v39 = vmax.f32 %v955_v35, 0.0  ;;  %v645_v40 = vpop.f32.mrb[36].mxu0  ;;  %v773_v41 = vpop.f32.mrb[36].mxu1 }
 0x141   :  { %1307 = vst.msk [vmem:[%s2393_s4 + $0x40] sm:$0xf] %vm1290_vm1, %v1546_v36  ;;  %1339 = vst.msk [vmem:[%s2393_s4 + $0xc0] sm:$0xf] %vm1290_vm1, %v1578_v37  ;;  %v1547_v42 = vpack.c.bf16 %v987_v38, %v987_v38  ;;  %v853_v44 = vmul.f32 %v1998_v10, %v645_v40  ;;  %v885_v45 = vmul.f32 %v1998_v10, %v773_v41  ;;  %v647_v46 = vpop.f32.mrb[37].mxu0  ;;  %v775_v47 = vpop.f32.mrb[37].mxu1 }
 0x142   :  { %v1579_v43 = vpack.c.bf16 %v1019_v39, %v1019_v39  ;;  %v648_v48 = vpop.f32.mrb[38].mxu0  ;;  %v776_v49 = vpop.f32.mrb[38].mxu1 }
 0x143   :  { %1308 = vst.msk [vmem:[%s2393_s4 + $0x44] sm:$0xf] %vm1290_vm1, %v1547_v42  ;;  %v924_v50 = vadd.f32 %v2003_v12, %v853_v44  ;;  %v956_v51 = vadd.f32 %v2003_v12, %v885_v45  ;;  %v854_v52 = vmul.f32 %v1998_v10, %v648_v48  ;;  %v886_v53 = vmul.f32 %v1998_v10, %v776_v49  ;;  %v650_v54 = vpop.f32.mrb[39].mxu0  ;;  %v778_v55 = vpop.f32.mrb[39].mxu1 }
 0x144   :  { %1340 = vst.msk [vmem:[%s2393_s4 + $0xc4] sm:$0xf] %vm1290_vm1, %v1579_v43 }
 0x145   :  { %v988_v56 = vmax.f32 %v924_v50, 0.0  ;;  %v1020_v57 = vmax.f32 %v956_v51, 0.0  ;;  %v925_v58 = vadd.f32 %v2003_v12, %v854_v52  ;;  %v957_v59 = vadd.f32 %v2003_v12, %v886_v53 }
 0x147   :  { %v1548_v60 = vpack.c.bf16 %v988_v56, %v988_v56  ;;  %v1580_v61 = vpack.c.bf16 %v1020_v57, %v1020_v57  ;;  %v989_v62 = vmax.f32 %v925_v58, 0.0  ;;  %v1021_v63 = vmax.f32 %v957_v59, 0.0 }
 0x148   :  { %v653_v0 = vpop.f32.mrb[40].mxu0  ;;  %v781_v1 = vpop.f32.mrb[40].mxu1 }
 0x149   :  { %1309 = vst.msk [vmem:[%s2393_s4 + $0x48] sm:$0xf] %vm1290_vm1, %v1548_v60  ;;  %1341 = vst.msk [vmem:[%s2393_s4 + $0xc8] sm:$0xf] %vm1290_vm1, %v1580_v61  ;;  %v1549_v2 = vpack.c.bf16 %v989_v62, %v989_v62  ;;  %v1581_v3 = vpack.c.bf16 %v1021_v63, %v1021_v63  ;;  %v855_v4 = vmul.f32 %v1998_v10, %v653_v0  ;;  %v655_v6 = vpop.f32.mrb[41].mxu0  ;;  %v783_v7 = vpop.f32.mrb[41].mxu1 }
 0x14a   :  { %v887_v5 = vmul.f32 %v1998_v10, %v781_v1  ;;  %v656_v8 = vpop.f32.mrb[42].mxu0  ;;  %v784_v9 = vpop.f32.mrb[42].mxu1 }
 0x14b   :  { %1310 = vst.msk [vmem:[%s2393_s4 + $0x4c] sm:$0xf] %vm1290_vm1, %v1549_v2  ;;  %1342 = vst.msk [vmem:[%s2393_s4 + $0xcc] sm:$0xf] %vm1290_vm1, %v1581_v3  ;;  %v926_v11 = vadd.f32 %v2003_v12, %v855_v4  ;;  %v856_v14 = vmul.f32 %v1998_v10, %v656_v8  ;;  %v888_v15 = vmul.f32 %v1998_v10, %v784_v9  ;;  %v658_v16 = vpop.f32.mrb[43].mxu0  ;;  %v786_v17 = vpop.f32.mrb[43].mxu1 }
 0x14c   :  { %v958_v13 = vadd.f32 %v2003_v12, %v887_v5 }
 0x14d   :  { %v990_v18 = vmax.f32 %v926_v11, 0.0  ;;  %v927_v20 = vadd.f32 %v2003_v12, %v856_v14  ;;  %v959_v21 = vadd.f32 %v2003_v12, %v888_v15 }
 0x14e   :  { %v1022_v19 = vmax.f32 %v958_v13, 0.0 }
 0x14f   :  { %v1550_v22 = vpack.c.bf16 %v990_v18, %v990_v18  ;;  %v991_v24 = vmax.f32 %v927_v20, 0.0  ;;  %v1023_v25 = vmax.f32 %v959_v21, 0.0 }
 0x150   :  { %v1582_v23 = vpack.c.bf16 %v1022_v19, %v1022_v19  ;;  %v661_v26 = vpop.f32.mrb[44].mxu0  ;;  %v789_v27 = vpop.f32.mrb[44].mxu1 }
 0x151   :  { %1311 = vst.msk [vmem:[%s2393_s4 + $0x50] sm:$0xf] %vm1290_vm1, %v1550_v22  ;;  %v1551_v28 = vpack.c.bf16 %v991_v24, %v991_v24  ;;  %v1583_v29 = vpack.c.bf16 %v1023_v25, %v1023_v25  ;;  %v857_v30 = vmul.f32 %v1998_v10, %v661_v26  ;;  %v889_v31 = vmul.f32 %v1998_v10, %v789_v27  ;;  %v663_v32 = vpop.f32.mrb[45].mxu0  ;;  %v791_v33 = vpop.f32.mrb[45].mxu1 }
 0x152   :  { %1343 = vst.msk [vmem:[%s2393_s4 + $0xd0] sm:$0xf] %vm1290_vm1, %v1582_v23  ;;  %v664_v34 = vpop.f32.mrb[46].mxu0  ;;  %v792_v35 = vpop.f32.mrb[46].mxu1 }
 0x153   :  { %1312 = vst.msk [vmem:[%s2393_s4 + $0x54] sm:$0xf] %vm1290_vm1, %v1551_v28  ;;  %1344 = vst.msk [vmem:[%s2393_s4 + $0xd4] sm:$0xf] %vm1290_vm1, %v1583_v29  ;;  %v928_v36 = vadd.f32 %v2003_v12, %v857_v30  ;;  %v960_v37 = vadd.f32 %v2003_v12, %v889_v31  ;;  %v858_v38 = vmul.f32 %v1998_v10, %v664_v34  ;;  %v666_v40 = vpop.f32.mrb[47].mxu0  ;;  %v794_v41 = vpop.f32.mrb[47].mxu1 }
 0x154   :  { %v890_v39 = vmul.f32 %v1998_v10, %v792_v35 }
 0x155   :  { %v992_v42 = vmax.f32 %v928_v36, 0.0  ;;  %v1024_v43 = vmax.f32 %v960_v37, 0.0  ;;  %v929_v44 = vadd.f32 %v2003_v12, %v858_v38 }
 0x156   :  { %v961_v45 = vadd.f32 %v2003_v12, %v890_v39 }
 0x157   :  { %v1552_v46 = vpack.c.bf16 %v992_v42, %v992_v42  ;;  %v1584_v47 = vpack.c.bf16 %v1024_v43, %v1024_v43  ;;  %v993_v48 = vmax.f32 %v929_v44, 0.0 }
 0x158   :  { %v1025_v49 = vmax.f32 %v961_v45, 0.0  ;;  %v669_v50 = vpop.f32.mrb[48].mxu0  ;;  %v797_v51 = vpop.f32.mrb[48].mxu1 }
 0x159   :  { %1313 = vst.msk [vmem:[%s2393_s4 + $0x58] sm:$0xf] %vm1290_vm1, %v1552_v46  ;;  %1345 = vst.msk [vmem:[%s2393_s4 + $0xd8] sm:$0xf] %vm1290_vm1, %v1584_v47  ;;  %v1553_v52 = vpack.c.bf16 %v993_v48, %v993_v48  ;;  %v859_v54 = vmul.f32 %v1998_v10, %v669_v50  ;;  %v891_v55 = vmul.f32 %v1998_v10, %v797_v51  ;;  %v671_v56 = vpop.f32.mrb[49].mxu0  ;;  %v799_v57 = vpop.f32.mrb[49].mxu1 }
 0x15a   :  { %v1585_v53 = vpack.c.bf16 %v1025_v49, %v1025_v49  ;;  %v672_v58 = vpop.f32.mrb[50].mxu0  ;;  %v800_v59 = vpop.f32.mrb[50].mxu1 }
 0x15b   :  { %1314 = vst.msk [vmem:[%s2393_s4 + $0x5c] sm:$0xf] %vm1290_vm1, %v1553_v52  ;;  %v930_v60 = vadd.f32 %v2003_v12, %v859_v54  ;;  %v962_v61 = vadd.f32 %v2003_v12, %v891_v55  ;;  %v860_v62 = vmul.f32 %v1998_v10, %v672_v58  ;;  %v892_v63 = vmul.f32 %v1998_v10, %v800_v59  ;;  %v674_v0 = vpop.f32.mrb[51].mxu0  ;;  %v802_v1 = vpop.f32.mrb[51].mxu1 }
 0x15c   :  { %1346 = vst.msk [vmem:[%s2393_s4 + $0xdc] sm:$0xf] %vm1290_vm1, %v1585_v53 }
 0x15d   :  { %v994_v2 = vmax.f32 %v930_v60, 0.0  ;;  %v1026_v3 = vmax.f32 %v962_v61, 0.0  ;;  %v931_v4 = vadd.f32 %v2003_v12, %v860_v62  ;;  %v963_v5 = vadd.f32 %v2003_v12, %v892_v63 }
 0x15f   :  { %v1554_v6 = vpack.c.bf16 %v994_v2, %v994_v2  ;;  %v1586_v7 = vpack.c.bf16 %v1026_v3, %v1026_v3  ;;  %v995_v8 = vmax.f32 %v931_v4, 0.0  ;;  %v1027_v9 = vmax.f32 %v963_v5, 0.0 }
 0x160   :  { %v677_v11 = vpop.f32.mrb[52].mxu0  ;;  %v805_v13 = vpop.f32.mrb[52].mxu1 }
 0x161   :  { %1315 = vst.msk [vmem:[%s2393_s4 + $0x60] sm:$0xf] %vm1290_vm1, %v1554_v6  ;;  %1347 = vst.msk [vmem:[%s2393_s4 + $0xe0] sm:$0xf] %vm1290_vm1, %v1586_v7  ;;  %v1555_v14 = vpack.c.bf16 %v995_v8, %v995_v8  ;;  %v1587_v15 = vpack.c.bf16 %v1027_v9, %v1027_v9  ;;  %v861_v16 = vmul.f32 %v1998_v10, %v677_v11  ;;  %v679_v18 = vpop.f32.mrb[53].mxu0  ;;  %v807_v19 = vpop.f32.mrb[53].mxu1 }
 0x162   :  { %v893_v17 = vmul.f32 %v1998_v10, %v805_v13  ;;  %v680_v20 = vpop.f32.mrb[54].mxu0  ;;  %v808_v21 = vpop.f32.mrb[54].mxu1 }
 0x163   :  { %1316 = vst.msk [vmem:[%s2393_s4 + $0x64] sm:$0xf] %vm1290_vm1, %v1555_v14  ;;  %1348 = vst.msk [vmem:[%s2393_s4 + $0xe4] sm:$0xf] %vm1290_vm1, %v1587_v15  ;;  %v932_v22 = vadd.f32 %v2003_v12, %v861_v16  ;;  %v862_v24 = vmul.f32 %v1998_v10, %v680_v20  ;;  %v894_v25 = vmul.f32 %v1998_v10, %v808_v21  ;;  %v682_v26 = vpop.f32.mrb[55].mxu0  ;;  %v810_v27 = vpop.f32.mrb[55].mxu1 }
 0x164   :  { %v964_v23 = vadd.f32 %v2003_v12, %v893_v17 }
 0x165   :  { %v996_v28 = vmax.f32 %v932_v22, 0.0  ;;  %v933_v30 = vadd.f32 %v2003_v12, %v862_v24  ;;  %v965_v31 = vadd.f32 %v2003_v12, %v894_v25 }
 0x166   :  { %v1028_v29 = vmax.f32 %v964_v23, 0.0 }
 0x167   :  { %v1556_v32 = vpack.c.bf16 %v996_v28, %v996_v28  ;;  %v997_v34 = vmax.f32 %v933_v30, 0.0  ;;  %v1029_v35 = vmax.f32 %v965_v31, 0.0 }
 0x168   :  { %v1588_v33 = vpack.c.bf16 %v1028_v29, %v1028_v29  ;;  %v685_v36 = vpop.f32.mrb[56].mxu0  ;;  %v813_v37 = vpop.f32.mrb[56].mxu1 }
 0x169   :  { %1317 = vst.msk [vmem:[%s2393_s4 + $0x68] sm:$0xf] %vm1290_vm1, %v1556_v32  ;;  %v1557_v38 = vpack.c.bf16 %v997_v34, %v997_v34  ;;  %v1589_v39 = vpack.c.bf16 %v1029_v35, %v1029_v35  ;;  %v863_v40 = vmul.f32 %v1998_v10, %v685_v36  ;;  %v895_v41 = vmul.f32 %v1998_v10, %v813_v37  ;;  %v687_v42 = vpop.f32.mrb[57].mxu0  ;;  %v815_v43 = vpop.f32.mrb[57].mxu1 }
 0x16a   :  { %1349 = vst.msk [vmem:[%s2393_s4 + $0xe8] sm:$0xf] %vm1290_vm1, %v1588_v33  ;;  %v688_v44 = vpop.f32.mrb[58].mxu0  ;;  %v816_v45 = vpop.f32.mrb[58].mxu1 }
 0x16b   :  { %1318 = vst.msk [vmem:[%s2393_s4 + $0x6c] sm:$0xf] %vm1290_vm1, %v1557_v38  ;;  %1350 = vst.msk [vmem:[%s2393_s4 + $0xec] sm:$0xf] %vm1290_vm1, %v1589_v39  ;;  %v934_v46 = vadd.f32 %v2003_v12, %v863_v40  ;;  %v966_v47 = vadd.f32 %v2003_v12, %v895_v41  ;;  %v864_v48 = vmul.f32 %v1998_v10, %v688_v44  ;;  %v690_v50 = vpop.f32.mrb[59].mxu0  ;;  %v818_v51 = vpop.f32.mrb[59].mxu1 }
 0x16c   :  { %v896_v49 = vmul.f32 %v1998_v10, %v816_v45 }
 0x16d   :  { %v998_v52 = vmax.f32 %v934_v46, 0.0  ;;  %v1030_v53 = vmax.f32 %v966_v47, 0.0  ;;  %v935_v54 = vadd.f32 %v2003_v12, %v864_v48 }
 0x16e   :  { %v967_v55 = vadd.f32 %v2003_v12, %v896_v49 }
 0x16f   :  { %v1558_v56 = vpack.c.bf16 %v998_v52, %v998_v52  ;;  %v1590_v57 = vpack.c.bf16 %v1030_v53, %v1030_v53  ;;  %v999_v58 = vmax.f32 %v935_v54, 0.0 }
 0x170   :  { %v1031_v59 = vmax.f32 %v967_v55, 0.0  ;;  %v693_v60 = vpop.f32.mrb[60].mxu0  ;;  %v821_v61 = vpop.f32.mrb[60].mxu1 }
 0x171   :  { %1319 = vst.msk [vmem:[%s2393_s4 + $0x70] sm:$0xf] %vm1290_vm1, %v1558_v56  ;;  %1351 = vst.msk [vmem:[%s2393_s4 + $0xf0] sm:$0xf] %vm1290_vm1, %v1590_v57  ;;  %v1559_v62 = vpack.c.bf16 %v999_v58, %v999_v58  ;;  %v865_v0 = vmul.f32 %v1998_v10, %v693_v60  ;;  %v897_v1 = vmul.f32 %v1998_v10, %v821_v61  ;;  %v695_v2 = vpop.f32.mrb[61].mxu0  ;;  %v823_v3 = vpop.f32.mrb[61].mxu1 }
 0x172   :  { %v1591_v63 = vpack.c.bf16 %v1031_v59, %v1031_v59  ;;  %v696_v4 = vpop.f32.mrb[62].mxu0  ;;  %v824_v5 = vpop.f32.mrb[62].mxu1 }
 0x173   :  { %1320 = vst.msk [vmem:[%s2393_s4 + $0x74] sm:$0xf] %vm1290_vm1, %v1559_v62  ;;  %v936_v6 = vadd.f32 %v2003_v12, %v865_v0  ;;  %v968_v7 = vadd.f32 %v2003_v12, %v897_v1  ;;  %v866_v8 = vmul.f32 %v1998_v10, %v696_v4  ;;  %v898_v9 = vmul.f32 %v1998_v10, %v824_v5  ;;  %v698_v11 = vpop.f32.mrb[63].mxu0  ;;  %v826_v13 = vpop.f32.mrb[63].mxu1 }
 0x174   :  { %1352 = vst.msk [vmem:[%s2393_s4 + $0xf4] sm:$0xf] %vm1290_vm1, %v1591_v63 }
 0x175   :  { %v1000_v14 = vmax.f32 %v936_v6, 0.0  ;;  %v1032_v15 = vmax.f32 %v968_v7, 0.0  ;;  %v937_v16 = vadd.f32 %v2003_v12, %v866_v8  ;;  %v969_v17 = vadd.f32 %v2003_v12, %v898_v9 }
 0x177   :  { %v1560_v18 = vpack.c.bf16 %v1000_v14, %v1000_v14  ;;  %v1592_v19 = vpack.c.bf16 %v1032_v15, %v1032_v15  ;;  %v1001_v20 = vmax.f32 %v937_v16, 0.0  ;;  %v1033_v21 = vmax.f32 %v969_v17, 0.0 }
 0x179   :  { %1321 = vst.msk [vmem:[%s2393_s4 + $0x78] sm:$0xf] %vm1290_vm1, %v1560_v18  ;;  %1353 = vst.msk [vmem:[%s2393_s4 + $0xf8] sm:$0xf] %vm1290_vm1, %v1592_v19  ;;  %v1561_v10 = vpack.c.bf16 %v1001_v20, %v1001_v20  ;;  %v1593_v22 = vpack.c.bf16 %v1033_v21, %v1033_v21 }
 0x17b   :  { %1322 = vst.msk [vmem:[%s2393_s4 + $0x7c] sm:$0xf] %vm1290_vm1, %v1561_v10  ;;  %1354 = vst.msk [vmem:[%s2393_s4 + $0xfc] sm:$0xf] %vm1290_vm1, %v1593_v22 }

</bundles_post_ra>
